<compile_context>
chip_gen: v5e
topology: v5e:2x2
jax: 0.10.0
libtpu: 0.0.40
codegen_flags: <defaults>
</compile_context>

<pallas_src>
import numpy as np

import jax
import jax.numpy as jnp
from jax import lax
from jax.experimental import pallas as pl
from jax.experimental.pallas import tpu as pltpu


# ---------------- device-dependent tiling defaults ----------------

def _defaults():
    kind = ""
    try:
        kind = jax.devices()[0].device_kind.lower()
    except Exception:
        pass
    big_vmem = any(s in kind for s in ("v4", "v5", "v6"))   # 128 MiB VMEM parts
    tile = 1024 if big_vmem else 512                        # v7x: 64 MiB VMEM
    vmem = (64 if big_vmem else 32) * 1024 * 1024
    return tile, vmem


TILE_M, _VMEM_LIMIT = _defaults()

_CP = pltpu.CompilerParams(
    dimension_semantics=("parallel",),
    vmem_limit_bytes=_VMEM_LIMIT,
)


def _pick_tile(m):
    """Rows per grid step: full block for tiny M, otherwise a multiple of 8 that
    gives >=2 grid steps (so the two v7x TensorCores both get work), capped at
    TILE_M.  Ragged last blocks are fine."""
    if m <= 256:
        return m
    half = ((m + 1) // 2 + 7) // 8 * 8
    return max(8, min(TILE_M, half))


# ---------------- Pallas kernels ----------------

def _conv_pool_kernel(x_ref, w_ref, b_ref, o_ref):
    """Fused conv(3x3,valid) + bias + ReLU + 2x2 max-pool (pooled-row form).

    x_ref: (TM, K)        bf16  pooled-row patches (K = 4 rows of the receptive
                                field packed along lanes).
    w_ref: (4, K, Nout)   bf16  Toeplitz-embedded conv weight, one slab per
                                (dh, dw) position of the 2x2 pooling window.
    b_ref: (1, Nout)      f32   bias tiled over the pooled output columns.
    o_ref: (TM, Nout)           relu(max_window(conv) + b)  (== maxpool(relu(conv+b))).
    """
    x = x_ref[...]
    acc = jnp.dot(x, w_ref[0], preferred_element_type=jnp.float32)
    for t in range(1, 4):
        acc = jnp.maximum(
            acc, jnp.dot(x, w_ref[t], preferred_element_type=jnp.float32))
    o_ref[...] = jnp.maximum(acc + b_ref[...], 0.0).astype(o_ref.dtype)


def conv_pool(patches, wbig, btile):
    """patches: (M, K) bf16; wbig: (4, K, Nout) bf16; btile: (1, Nout) f32."""
    M, K = patches.shape
    Nout = wbig.shape[-1]
    tm = _pick_tile(M)
    return pl.pallas_call(
        _conv_pool_kernel,
        out_shape=jax.ShapeDtypeStruct((M, Nout), jnp.bfloat16),
        grid=(pl.cdiv(M, tm),),
        in_specs=[
            pl.BlockSpec((tm, K), lambda i: (i, 0)),
            pl.BlockSpec((4, K, Nout), lambda i: (0, 0, 0)),
            pl.BlockSpec((1, Nout), lambda i: (0, 0)),
        ],
        out_specs=pl.BlockSpec((tm, Nout), lambda i: (i, 0)),
        compiler_params=_CP,
    )(patches, wbig, btile)


def _fc_fused_kernel(x_ref, w3_ref, b3_ref, w4_ref, b4_ref, o_ref):
    """Fused Linear(1600,128)+ReLU+Linear(128,10->128 padded) -- both weights
    stay resident in VMEM, the hidden activation never leaves the kernel."""
    h = jnp.dot(x_ref[...], w3_ref[...], preferred_element_type=jnp.float32)
    h = jnp.maximum(h + b3_ref[...], 0.0).astype(jnp.bfloat16)
    out = jnp.dot(h, w4_ref[...], preferred_element_type=jnp.float32) + b4_ref[...]
    o_ref[...] = out.astype(o_ref.dtype)


def fc_fused(x, w3, b3, w4p, b4p):
    M, K = x.shape
    tm = _pick_tile(M)
    return pl.pallas_call(
        _fc_fused_kernel,
        out_shape=jax.ShapeDtypeStruct((M, 128), jnp.float32),
        grid=(pl.cdiv(M, tm),),
        in_specs=[
            pl.BlockSpec((tm, K), lambda i: (i, 0)),
            pl.BlockSpec((K, 128), lambda i: (0, 0)),
            pl.BlockSpec((1, 128), lambda i: (0, 0)),
            pl.BlockSpec((128, 128), lambda i: (0, 0)),
            pl.BlockSpec((1, 128), lambda i: (0, 0)),
        ],
        out_specs=pl.BlockSpec((tm, 128), lambda i: (i, 0)),
        compiler_params=_CP,
    )(x, w3, b3, w4p, b4p)


# ---------------- Toeplitz weight embedding (host-side, at init) ----------------
#
# Pooled-row formulation: output row (image b, pooled row i) is computed from the
# patch of ALL input rows feeding that pooled row (4 rows, packed along lanes),
# via 4 matmuls (one per pooling-window position), then max / bias / ReLU.

_WIN = ((0, 0), (0, 1), (1, 0), (1, 1))   # (dh, dw) inside the 2x2 pool window


def build_conv1_toeplitz(w1_hwo):
    """w1_hwo: (3, 3, 32) = (kh, kw, cout), cin = 1.
    Patch lanes: k*28 + c   (k: input-row offset 0..3, c: input col 0..27).
    Output lanes: J*32 + co (J: pooled col 0..12)."""
    co = w1_hwo.shape[-1]
    w = np.zeros((4, 4 * 28, 13 * co), np.float32)
    for t, (dh, dw) in enumerate(_WIN):
        for di in range(3):
            for dj in range(3):
                for J in range(13):
                    r = (dh + di) * 28 + (2 * J + dw + dj)
                    w[t, r, J * co:(J + 1) * co] = w1_hwo[di, dj]
    return w


def build_conv2_toeplitz(w2_hwio):
    """w2_hwio: (3, 3, 32, 64).
    Patch lanes: k*416 + J*32 + ci  (k: p1-row offset 0..3, J: p1 col 0..12).
    Output lanes: J2*64 + co        (J2: pooled col 0..4)."""
    ci, co = w2_hwio.shape[2], w2_hwio.shape[3]
    w = np.zeros((4, 4 * 13 * ci, 5 * co), np.float32)
    for t, (dh, dw) in enumerate(_WIN):
        for di in range(3):
            for dj in range(3):
                for J2 in range(5):
                    r = (dh + di) * (13 * ci) + (2 * J2 + dw + dj) * ci
                    w[t, r:r + ci, J2 * co:(J2 + 1) * co] = w2_hwio[di, dj]
    return w


# ---------------- Params ----------------

def init_params(key):
    """PyTorch-like uniform(-1/sqrt(fan_in), 1/sqrt(fan_in)) init, stored in the
    kernel-ready layouts.  NOTE: to load real nn.Conv2d/nn.Linear weights,
    permute conv kernels (Cout,Cin,3,3)->(3,3,Cin,Cout) before the Toeplitz
    builders, and permute FC1 columns from (C,H,W)-flatten to (H,W,C)-flatten
    order before the reshape below."""
    ks = jax.random.split(key, 8)

    def u(k, shape, fan_in):
        b = 1.0 / float(np.sqrt(fan_in))
        return jax.random.uniform(k, shape, jnp.float32, -b, b)

    w1 = u(ks[0], (3, 3, 32), 9)          # Conv2d(1, 32, 3)
    b1 = u(ks[1], (32,), 9)
    w2 = u(ks[2], (3, 3, 32, 64), 288)    # Conv2d(32, 64, 3)
    b2 = u(ks[3], (64,), 288)
    w3 = u(ks[4], (5, 5, 64, 128), 1600)  # Linear(1600, 128), (H, W, C) row order
    b3 = u(ks[5], (128,), 1600)
    w4 = u(ks[6], (128, 10), 128)         # Linear(128, 10)
    b4 = u(ks[7], (10,), 128)

    w1big = build_conv1_toeplitz(np.asarray(w1))
    w2big = build_conv2_toeplitz(np.asarray(w2))
    w4p = np.zeros((128, 128), np.float32)
    w4p[:, :10] = np.asarray(w4)
    b4p = np.zeros((128,), np.float32)
    b4p[:10] = np.asarray(b4)

    bf16 = jnp.bfloat16
    params = {
        "w1big": jnp.asarray(w1big, bf16),
        "b1t": jnp.asarray(np.tile(np.asarray(b1), 13)[None, :], jnp.float32),
        "w2big": jnp.asarray(w2big, bf16),
        "b2t": jnp.asarray(np.tile(np.asarray(b2), 5)[None, :], jnp.float32),
        "w3": jnp.asarray(w3).reshape(1600, 128).astype(bf16),
        "b3": jnp.asarray(b3)[None, :].astype(jnp.float32),
        "w4p": jnp.asarray(w4p, bf16),
        "b4p": jnp.asarray(b4p, jnp.float32)[None, :],
    }
    masters = {"w1": w1, "b1": b1, "w2": w2, "b2": b2,
               "w3": w3, "b3": b3, "w4": jnp.asarray(w4), "b4": jnp.asarray(b4)}
    return params, masters


# ---------------- Forward ----------------

@jax.jit
def simple_cnn_forward(params, x_nchw):
    # x_nchw: (N, 1, 28, 28) float32 (PyTorch layout); 28x28 required by Linear(1600,128).
    N = x_nchw.shape[0]
    x = x_nchw.reshape(N, 28, 28).astype(jnp.bfloat16)

    # Conv1 + ReLU + MaxPool2d(2): pooled-row patches (N*13, 112), lane = k*28+c.
    p1_patches = jnp.stack([x[:, k:k + 26:2, :] for k in range(4)], axis=2)
    p1_patches = p1_patches.reshape(N * 13, 4 * 28)
    p1 = conv_pool(p1_patches, params["w1big"], params["b1t"])      # (N*13, 416) bf16

    # Conv2 + ReLU + MaxPool2d(2): pooled-row patches (N*5, 1664), lane = k*416+J*32+ci.
    p1r = p1.reshape(N, 13, 416)
    p2_patches = jnp.stack([p1r[:, k:k + 9:2, :] for k in range(4)], axis=2)
    p2_patches = p2_patches.reshape(N * 5, 4 * 416)
    p2 = conv_pool(p2_patches, params["w2big"], params["b2t"])      # (N*5, 320) bf16

    # Flatten (free: p2 lanes are already (J2, co) and rows are (b, i2)) + fused FC1/FC2.
    h_in = p2.reshape(N, 1600)
    logits = fc_fused(h_in, params["w3"], params["b3"],
                      params["w4p"], params["b4p"])                 # (N, 128) f32
    return logits[:, :10]


# ---------------- Pure-JAX reference (for the correctness check) ----------------

@jax.jit
def reference_forward(m, x_nchw):
    x = jnp.transpose(x_nchw, (0, 2, 3, 1)).astype(jnp.bfloat16).astype(jnp.float32)
    y = lax.conv_general_dilated(x, m["w1"].reshape(3, 3, 1, 32), (1, 1), "VALID",
                                 dimension_numbers=("NHWC", "HWIO", "NHWC"))
    y = jnp.maximum(y + m["b1"], 0.0)
    y = y.reshape(-1, 13, 2, 13, 2, 32).max(axis=(2, 4))
    y = lax.conv_general_dilated(y, m["w2"], (1, 1), "VALID",
                                 dimension_numbers=("NHWC", "HWIO", "NHWC"))
    y = jnp.maximum(y + m["b2"], 0.0)
    y = y[:, :10, :10, :].reshape(-1, 5, 2, 5, 2, 64).max(axis=(2, 4))
    y = y.reshape(y.shape[0], 1600)
    y = jnp.maximum(y @ m["w3"].reshape(1600, 128) + m["b3"], 0.0)
    return y @ m["w4"] + m["b4"]


if __name__ == "__main__":
    key = jax.random.PRNGKey(0)
    pkey, xkey = jax.random.split(key)
    params, masters = init_params(pkey)
    x = jax.random.normal(xkey, (2, 1, 28, 28), jnp.float32)

    out = simple_cnn_forward(params, x)
    jax.block_until_ready(out)
    assert out.shape == (2, 10) and out.dtype == jnp.float32

    ref = reference_forward(masters, x)
    np.testing.assert_allclose(np.asarray(out), np.asarray(ref), rtol=0.1, atol=0.03)
    print("KERNEL_OK")
</pallas_src>

<mosaic_0001>
module attributes {stable_mosaic.version = 11 : i64} {
  func.func @_conv_pool_kernel(%arg0: i32, %arg1: memref<26x112xbf16, #tpu.memory_space<vmem>>, %arg2: memref<4x112x416xbf16, #tpu.memory_space<vmem>>, %arg3: memref<1x416xf32, #tpu.memory_space<vmem>>, %arg4: memref<26x416xbf16, #tpu.memory_space<vmem>>) attributes {dimension_semantics = [#tpu.dimension_semantics<parallel>], iteration_bounds = array<i64: 1>, scalar_prefetch = 0 : i64, scratch_operands = 0 : i64, tpu.core_type = #tpu.core_type<tc>, window_params = [{transform_indices = @transform_0, window_bounds = array<i64: 26, 112>}, {pipeline_mode = #tpu.pipeline_mode<synchronous>, transform_indices = @transform_1, window_bounds = array<i64: 4, 112, 416>}, {pipeline_mode = #tpu.pipeline_mode<synchronous>, transform_indices = @transform_2, window_bounds = array<i64: 1, 416>}, {transform_indices = @transform_3, window_bounds = array<i64: 26, 416>}]} {
    %c0 = arith.constant 0 : index
    %c0_0 = arith.constant 0 : index
    %0 = vector.load %arg1[%c0, %c0_0] : memref<26x112xbf16, #tpu.memory_space<vmem>>, vector<26x112xbf16>
    %c0_1 = arith.constant 0 : index
    %c0_2 = arith.constant 0 : index
    %c0_3 = arith.constant 0 : index
    %1 = vector.load %arg2[%c0_1, %c0_2, %c0_3] : memref<4x112x416xbf16, #tpu.memory_space<vmem>>, vector<1x112x416xbf16>
    %2 = vector.shape_cast %1 : vector<1x112x416xbf16> to vector<112x416xbf16>
    %cst = arith.constant dense<0.000000e+00> : vector<26x416xf32>
    %3 = tpu.matmul %0, %2, %cst {dimension_numbers = #tpu.dot_dimension_numbers<[1], [0], [0], [1], [0, 0, 1, 1], [], []>} : vector<26x112xbf16>, vector<112x416xbf16>, vector<26x416xf32> -> vector<26x416xf32>
    %c1 = arith.constant 1 : index
    %c0_4 = arith.constant 0 : index
    %c0_5 = arith.constant 0 : index
    %4 = vector.load %arg2[%c1, %c0_4, %c0_5] : memref<4x112x416xbf16, #tpu.memory_space<vmem>>, vector<1x112x416xbf16>
    %5 = vector.shape_cast %4 : vector<1x112x416xbf16> to vector<112x416xbf16>
    %cst_6 = arith.constant dense<0.000000e+00> : vector<26x416xf32>
    %6 = tpu.matmul %0, %5, %cst_6 {dimension_numbers = #tpu.dot_dimension_numbers<[1], [0], [0], [1], [0, 0, 1, 1], [], []>} : vector<26x112xbf16>, vector<112x416xbf16>, vector<26x416xf32> -> vector<26x416xf32>
    %7 = arith.maximumf %3, %6 : vector<26x416xf32>
    %c2 = arith.constant 2 : index
    %c0_7 = arith.constant 0 : index
    %c0_8 = arith.constant 0 : index
    %8 = vector.load %arg2[%c2, %c0_7, %c0_8] : memref<4x112x416xbf16, #tpu.memory_space<vmem>>, vector<1x112x416xbf16>
    %9 = vector.shape_cast %8 : vector<1x112x416xbf16> to vector<112x416xbf16>
    %cst_9 = arith.constant dense<0.000000e+00> : vector<26x416xf32>
    %10 = tpu.matmul %0, %9, %cst_9 {dimension_numbers = #tpu.dot_dimension_numbers<[1], [0], [0], [1], [0, 0, 1, 1], [], []>} : vector<26x112xbf16>, vector<112x416xbf16>, vector<26x416xf32> -> vector<26x416xf32>
    %11 = arith.maximumf %7, %10 : vector<26x416xf32>
    %c3 = arith.constant 3 : index
    %c0_10 = arith.constant 0 : index
    %c0_11 = arith.constant 0 : index
    %12 = vector.load %arg2[%c3, %c0_10, %c0_11] : memref<4x112x416xbf16, #tpu.memory_space<vmem>>, vector<1x112x416xbf16>
    %13 = vector.shape_cast %12 : vector<1x112x416xbf16> to vector<112x416xbf16>
    %cst_12 = arith.constant dense<0.000000e+00> : vector<26x416xf32>
    %14 = tpu.matmul %0, %13, %cst_12 {dimension_numbers = #tpu.dot_dimension_numbers<[1], [0], [0], [1], [0, 0, 1, 1], [], []>} : vector<26x112xbf16>, vector<112x416xbf16>, vector<26x416xf32> -> vector<26x416xf32>
    %15 = arith.maximumf %11, %14 : vector<26x416xf32>
    %c0_13 = arith.constant 0 : index
    %c0_14 = arith.constant 0 : index
    %16 = vector.load %arg3[%c0_13, %c0_14] : memref<1x416xf32, #tpu.memory_space<vmem>>, vector<1x416xf32>
    %17 = vector.broadcast %16 : vector<1x416xf32> to vector<26x416xf32>
    %18 = arith.addf %15, %17 : vector<26x416xf32>
    %cst_15 = arith.constant 0.000000e+00 : f32
    %19 = vector.broadcast %cst_15 : f32 to vector<26x416xf32>
    %20 = arith.maximumf %18, %19 : vector<26x416xf32>
    %21 = arith.truncf %20 : vector<26x416xf32> to vector<26x416xbf16>
    %c0_16 = arith.constant 0 : index
    %c0_17 = arith.constant 0 : index
    %22 = vector.load %arg4[%c0_16, %c0_17] : memref<26x416xbf16, #tpu.memory_space<vmem>>, vector<26x416xbf16>
    tpu.vector_store %arg4[%c0_16, %c0_17], %21 {strides = array<i32>} : memref<26x416xbf16, #tpu.memory_space<vmem>>, vector<26x416xbf16>,
    return
  }
  func.func @transform_0(%arg0: i32) -> (i32, i32) {
    %c0_i32 = arith.constant 0 : i32
    %c0_i32_0 = arith.constant 0 : i32
    return %arg0, %c0_i32 : i32, i32
  }
  func.func @transform_1(%arg0: i32) -> (i32, i32, i32) {
    %c0_i32 = arith.constant 0 : i32
    %c0_i32_0 = arith.constant 0 : i32
    %c0_i32_1 = arith.constant 0 : i32
    %c0_i32_2 = arith.constant 0 : i32
    return %c0_i32, %c0_i32_0, %c0_i32_1 : i32, i32, i32
  }
  func.func @transform_2(%arg0: i32) -> (i32, i32) {
    %c0_i32 = arith.constant 0 : i32
    %c0_i32_0 = arith.constant 0 : i32
    %c0_i32_1 = arith.constant 0 : i32
    return %c0_i32, %c0_i32_0 : i32, i32
  }
  func.func @transform_3(%arg0: i32) -> (i32, i32) {
    %c0_i32 = arith.constant 0 : i32
    %c0_i32_0 = arith.constant 0 : i32
    return %arg0, %c0_i32 : i32, i32
  }
}

module attributes {stable_mosaic.version = 11 : i64} {
  func.func @_conv_pool_kernel(%arg0: i32, %arg1: memref<10x1664xbf16, #tpu.memory_space<vmem>>, %arg2: memref<4x1664x320xbf16, #tpu.memory_space<vmem>>, %arg3: memref<1x320xf32, #tpu.memory_space<vmem>>, %arg4: memref<10x320xbf16, #tpu.memory_space<vmem>>) attributes {dimension_semantics = [#tpu.dimension_semantics<parallel>], iteration_bounds = array<i64: 1>, scalar_prefetch = 0 : i64, scratch_operands = 0 : i64, tpu.core_type = #tpu.core_type<tc>, window_params = [{transform_indices = @transform_0, window_bounds = array<i64: 10, 1664>}, {pipeline_mode = #tpu.pipeline_mode<synchronous>, transform_indices = @transform_1, window_bounds = array<i64: 4, 1664, 320>}, {pipeline_mode = #tpu.pipeline_mode<synchronous>, transform_indices = @transform_2, window_bounds = array<i64: 1, 320>}, {transform_indices = @transform_3, window_bounds = array<i64: 10, 320>}]} {
    %c0 = arith.constant 0 : index
    %c0_0 = arith.constant 0 : index
    %0 = vector.load %arg1[%c0, %c0_0] : memref<10x1664xbf16, #tpu.memory_space<vmem>>, vector<10x1664xbf16>
    %c0_1 = arith.constant 0 : index
    %c0_2 = arith.constant 0 : index
    %c0_3 = arith.constant 0 : index
    %1 = vector.load %arg2[%c0_1, %c0_2, %c0_3] : memref<4x1664x320xbf16, #tpu.memory_space<vmem>>, vector<1x1664x320xbf16>
    %2 = vector.shape_cast %1 : vector<1x1664x320xbf16> to vector<1664x320xbf16>
    %cst = arith.constant dense<0.000000e+00> : vector<10x320xf32>
    %3 = tpu.matmul %0, %2, %cst {dimension_numbers = #tpu.dot_dimension_numbers<[1], [0], [0], [1], [0, 0, 1, 1], [], []>} : vector<10x1664xbf16>, vector<1664x320xbf16>, vector<10x320xf32> -> vector<10x320xf32>
    %c1 = arith.constant 1 : index
    %c0_4 = arith.constant 0 : index
    %c0_5 = arith.constant 0 : index
    %4 = vector.load %arg2[%c1, %c0_4, %c0_5] : memref<4x1664x320xbf16, #tpu.memory_space<vmem>>, vector<1x1664x320xbf16>
    %5 = vector.shape_cast %4 : vector<1x1664x320xbf16> to vector<1664x320xbf16>
    %cst_6 = arith.constant dense<0.000000e+00> : vector<10x320xf32>
    %6 = tpu.matmul %0, %5, %cst_6 {dimension_numbers = #tpu.dot_dimension_numbers<[1], [0], [0], [1], [0, 0, 1, 1], [], []>} : vector<10x1664xbf16>, vector<1664x320xbf16>, vector<10x320xf32> -> vector<10x320xf32>
    %7 = arith.maximumf %3, %6 : vector<10x320xf32>
    %c2 = arith.constant 2 : index
    %c0_7 = arith.constant 0 : index
    %c0_8 = arith.constant 0 : index
    %8 = vector.load %arg2[%c2, %c0_7, %c0_8] : memref<4x1664x320xbf16, #tpu.memory_space<vmem>>, vector<1x1664x320xbf16>
    %9 = vector.shape_cast %8 : vector<1x1664x320xbf16> to vector<1664x320xbf16>
    %cst_9 = arith.constant dense<0.000000e+00> : vector<10x320xf32>
    %10 = tpu.matmul %0, %9, %cst_9 {dimension_numbers = #tpu.dot_dimension_numbers<[1], [0], [0], [1], [0, 0, 1, 1], [], []>} : vector<10x1664xbf16>, vector<1664x320xbf16>, vector<10x320xf32> -> vector<10x320xf32>
    %11 = arith.maximumf %7, %10 : vector<10x320xf32>
    %c3 = arith.constant 3 : index
    %c0_10 = arith.constant 0 : index
    %c0_11 = arith.constant 0 : index
    %12 = vector.load %arg2[%c3, %c0_10, %c0_11] : memref<4x1664x320xbf16, #tpu.memory_space<vmem>>, vector<1x1664x320xbf16>
    %13 = vector.shape_cast %12 : vector<1x1664x320xbf16> to vector<1664x320xbf16>
    %cst_12 = arith.constant dense<0.000000e+00> : vector<10x320xf32>
    %14 = tpu.matmul %0, %13, %cst_12 {dimension_numbers = #tpu.dot_dimension_numbers<[1], [0], [0], [1], [0, 0, 1, 1], [], []>} : vector<10x1664xbf16>, vector<1664x320xbf16>, vector<10x320xf32> -> vector<10x320xf32>
    %15 = arith.maximumf %11, %14 : vector<10x320xf32>
    %c0_13 = arith.constant 0 : index
    %c0_14 = arith.constant 0 : index
    %16 = vector.load %arg3[%c0_13, %c0_14] : memref<1x320xf32, #tpu.memory_space<vmem>>, vector<1x320xf32>
    %17 = vector.broadcast %16 : vector<1x320xf32> to vector<10x320xf32>
    %18 = arith.addf %15, %17 : vector<10x320xf32>
    %cst_15 = arith.constant 0.000000e+00 : f32
    %19 = vector.broadcast %cst_15 : f32 to vector<10x320xf32>
    %20 = arith.maximumf %18, %19 : vector<10x320xf32>
    %21 = arith.truncf %20 : vector<10x320xf32> to vector<10x320xbf16>
    %c0_16 = arith.constant 0 : index
    %c0_17 = arith.constant 0 : index
    %22 = vector.load %arg4[%c0_16, %c0_17] : memref<10x320xbf16, #tpu.memory_space<vmem>>, vector<10x320xbf16>
    tpu.vector_store %arg4[%c0_16, %c0_17], %21 {strides = array<i32>} : memref<10x320xbf16, #tpu.memory_space<vmem>>, vector<10x320xbf16>,
    return
  }
  func.func @transform_0(%arg0: i32) -> (i32, i32) {
    %c0_i32 = arith.constant 0 : i32
    %c0_i32_0 = arith.constant 0 : i32
    return %arg0, %c0_i32 : i32, i32
  }
  func.func @transform_1(%arg0: i32) -> (i32, i32, i32) {
    %c0_i32 = arith.constant 0 : i32
    %c0_i32_0 = arith.constant 0 : i32
    %c0_i32_1 = arith.constant 0 : i32
    %c0_i32_2 = arith.constant 0 : i32
    return %c0_i32, %c0_i32_0, %c0_i32_1 : i32, i32, i32
  }
  func.func @transform_2(%arg0: i32) -> (i32, i32) {
    %c0_i32 = arith.constant 0 : i32
    %c0_i32_0 = arith.constant 0 : i32
    %c0_i32_1 = arith.constant 0 : i32
    return %c0_i32, %c0_i32_0 : i32, i32
  }
  func.func @transform_3(%arg0: i32) -> (i32, i32) {
    %c0_i32 = arith.constant 0 : i32
    %c0_i32_0 = arith.constant 0 : i32
    return %arg0, %c0_i32 : i32, i32
  }
}

module attributes {stable_mosaic.version = 11 : i64} {
  func.func @_fc_fused_kernel(%arg0: i32, %arg1: memref<2x1600xbf16, #tpu.memory_space<vmem>>, %arg2: memref<1600x128xbf16, #tpu.memory_space<vmem>>, %arg3: memref<1x128xf32, #tpu.memory_space<vmem>>, %arg4: memref<128x128xbf16, #tpu.memory_space<vmem>>, %arg5: memref<1x128xf32, #tpu.memory_space<vmem>>, %arg6: memref<2x128xf32, #tpu.memory_space<vmem>>) attributes {dimension_semantics = [#tpu.dimension_semantics<parallel>], iteration_bounds = array<i64: 1>, scalar_prefetch = 0 : i64, scratch_operands = 0 : i64, tpu.core_type = #tpu.core_type<tc>, window_params = [{transform_indices = @transform_0, window_bounds = array<i64: 2, 1600>}, {pipeline_mode = #tpu.pipeline_mode<synchronous>, transform_indices = @transform_1, window_bounds = array<i64: 1600, 128>}, {pipeline_mode = #tpu.pipeline_mode<synchronous>, transform_indices = @transform_2, window_bounds = array<i64: 1, 128>}, {pipeline_mode = #tpu.pipeline_mode<synchronous>, transform_indices = @transform_3, window_bounds = array<i64: 128, 128>}, {pipeline_mode = #tpu.pipeline_mode<synchronous>, transform_indices = @transform_4, window_bounds = array<i64: 1, 128>}, {transform_indices = @transform_5, window_bounds = array<i64: 2, 128>}]} {
    %c0 = arith.constant 0 : index
    %c0_0 = arith.constant 0 : index
    %0 = vector.load %arg1[%c0, %c0_0] : memref<2x1600xbf16, #tpu.memory_space<vmem>>, vector<2x1600xbf16>
    %c0_1 = arith.constant 0 : index
    %c0_2 = arith.constant 0 : index
    %1 = vector.load %arg2[%c0_1, %c0_2] : memref<1600x128xbf16, #tpu.memory_space<vmem>>, vector<1600x128xbf16>
    %cst = arith.constant dense<0.000000e+00> : vector<2x128xf32>
    %2 = tpu.matmul %0, %1, %cst {dimension_numbers = #tpu.dot_dimension_numbers<[1], [0], [0], [1], [0, 0, 1, 1], [], []>} : vector<2x1600xbf16>, vector<1600x128xbf16>, vector<2x128xf32> -> vector<2x128xf32>
    %c0_3 = arith.constant 0 : index
    %c0_4 = arith.constant 0 : index
    %3 = vector.load %arg3[%c0_3, %c0_4] : memref<1x128xf32, #tpu.memory_space<vmem>>, vector<1x128xf32>
    %4 = vector.broadcast %3 : vector<1x128xf32> to vector<2x128xf32>
    %5 = arith.addf %2, %4 : vector<2x128xf32>
    %cst_5 = arith.constant 0.000000e+00 : f32
    %6 = vector.broadcast %cst_5 : f32 to vector<2x128xf32>
    %7 = arith.maximumf %5, %6 : vector<2x128xf32>
    %8 = arith.truncf %7 : vector<2x128xf32> to vector<2x128xbf16>
    %c0_6 = arith.constant 0 : index
    %c0_7 = arith.constant 0 : index
    %9 = vector.load %arg4[%c0_6, %c0_7] : memref<128x128xbf16, #tpu.memory_space<vmem>>, vector<128x128xbf16>
    %cst_8 = arith.constant dense<0.000000e+00> : vector<2x128xf32>
    %10 = tpu.matmul %8, %9, %cst_8 {dimension_numbers = #tpu.dot_dimension_numbers<[1], [0], [0], [1], [0, 0, 1, 1], [], []>} : vector<2x128xbf16>, vector<128x128xbf16>, vector<2x128xf32> -> vector<2x128xf32>
    %c0_9 = arith.constant 0 : index
    %c0_10 = arith.constant 0 : index
    %11 = vector.load %arg5[%c0_9, %c0_10] : memref<1x128xf32, #tpu.memory_space<vmem>>, vector<1x128xf32>
    %12 = vector.broadcast %11 : vector<1x128xf32> to vector<2x128xf32>
    %13 = arith.addf %10, %12 : vector<2x128xf32>
    %c0_11 = arith.constant 0 : index
    %c0_12 = arith.constant 0 : index
    %14 = vector.load %arg6[%c0_11, %c0_12] : memref<2x128xf32, #tpu.memory_space<vmem>>, vector<2x128xf32>
    tpu.vector_store %arg6[%c0_11, %c0_12], %13 {strides = array<i32>} : memref<2x128xf32, #tpu.memory_space<vmem>>, vector<2x128xf32>,
    return
  }
  func.func @transform_0(%arg0: i32) -> (i32, i32) {
    %c0_i32 = arith.constant 0 : i32
    %c0_i32_0 = arith.constant 0 : i32
    return %arg0, %c0_i32 : i32, i32
  }
  func.func @transform_1(%arg0: i32) -> (i32, i32) {
    %c0_i32 = arith.constant 0 : i32
    %c0_i32_0 = arith.constant 0 : i32
    %c0_i32_1 = arith.constant 0 : i32
    return %c0_i32, %c0_i32_0 : i32, i32
  }
  func.func @transform_2(%arg0: i32) -> (i32, i32) {
    %c0_i32 = arith.constant 0 : i32
    %c0_i32_0 = arith.constant 0 : i32
    %c0_i32_1 = arith.constant 0 : i32
    return %c0_i32, %c0_i32_0 : i32, i32
  }
  func.func @transform_3(%arg0: i32) -> (i32, i32) {
    %c0_i32 = arith.constant 0 : i32
    %c0_i32_0 = arith.constant 0 : i32
    %c0_i32_1 = arith.constant 0 : i32
    return %c0_i32, %c0_i32_0 : i32, i32
  }
  func.func @transform_4(%arg0: i32) -> (i32, i32) {
    %c0_i32 = arith.constant 0 : i32
    %c0_i32_0 = arith.constant 0 : i32
    %c0_i32_1 = arith.constant 0 : i32
    return %c0_i32, %c0_i32_0 : i32, i32
  }
  func.func @transform_5(%arg0: i32) -> (i32, i32) {
    %c0_i32 = arith.constant 0 : i32
    %c0_i32_0 = arith.constant 0 : i32
    return %arg0, %c0_i32 : i32, i32
  }
}

</mosaic_0001>

<bundles_post_ra>
// kernel: simple_cnn_forward.3
= control target key start
LH: loop header
LB: loop body
LE: loop exit
PB: predicated region body
PF: predicated region fallthrough
CT: control target
= control target key end

     0   :  { %8 = vsyncpa [#allocation3], 0  ;;  %s1859_s15 = smov [#allocation2]   ;;  %s2780_s0 = inlined_call_operand.vmem [shape: bf16[26,112], index: 0, kind: input, shape index: {}]   ;;  %s2781_s1 = inlined_call_operand.vmem [shape: bf16[4,112,416], index: 1, kind: input, shape index: {}]   ;;  %s2782_s2 = inlined_call_operand.hbm [shape: f32[1,416], index: 2, kind: input, shape index: {}]   ;;  %s2783_s3 = inlined_call_operand.vmem [shape: bf16[26,416], index: 3, kind: output, shape index: {}]  }
   0x1   :  { %s18_s14 = sshll.u32 %s2782_s2, 4  ;;  %s20_s16 = sshll.u32 %s1859_s15, 4  ;;  %s19_s14 = int_to_ptr.hbm [resolvable:$true] %s18_s14  ;;  %s21_s16 = int_to_ptr.vmem [resolvable:$true] %s20_s16 }
   0x2   :  { %23 = dma.hbm_to_vmem [thread:$0]  %s19_s14, 64, %s21_s16, [#allocation3]  }
   0x3   :  { %1857 = dma.done.wait [#allocation3], 64  }
   0x4   :  { %1858 = vsyncadd [#allocation3], 4294967232  ;;  %v1252_v0 = vld [vmem:[%s2781_s1 + $0xc0] sm:$0xf]  ;;  %v1746_v1 = vld [vmem:[%s2781_s1 + $0xcc] sm:$0xf0] }
   0x5   :  { %v1744_v2 = vld [vmem:[%s2781_s1 + $0xc4] sm:$0xf]  ;;  %v1253_v3 = vor.u32 %v1746_v1, %v1252_v0  ;;  %v1254_v4 = vld [vmem:[%s2781_s1 + $0xd0] sm:$0xf0]  ;;  %v1260_v5 = vld [vmem:[%s2781_s1 + $0xc8] sm:$0xf] }
   0x6   :  { %v1747_v6 = vld [vmem:[%s2781_s1 + $0xd4] sm:$0xf0]  ;;  %v1257_v7 = vor.u32 %v1744_v2, %v1254_v4  ;;  %v1745_v9 = vld [vmem:[%s2781_s1 + $0xcc] sm:$0xf]  ;;  %v1262_v10 = vld [vmem:[%s2781_s1 + $0xd8] sm:$0xf0] }
   0x7   :  { %v1261_v8 = vor.u32 %v1747_v6, %v1260_v5  ;;  %v1236_v11 = vld [vmem:[%s2781_s1 + $0xa0] sm:$0xf]  ;;  %219 = vmatpush.bf16.msra.mxu0 %v1253_v3  ;;  %v1265_v12 = vor.u32 %v1745_v9, %v1262_v10  ;;  %v1742_v13 = vld [vmem:[%s2781_s1 + $0xac] sm:$0xf0]  ;;  %v1740_v14 = vld [vmem:[%s2781_s1 + $0xa4] sm:$0xf] }
   0x8   :  { %v1238_v15 = vld [vmem:[%s2781_s1 + $0xb0] sm:$0xf0]  ;;  %238 = vmatpush.bf16.msra.mxu1 %v1257_v7  ;;  %v1237_v16 = vor.u32 %v1742_v13, %v1236_v11  ;;  %v1244_v18 = vld [vmem:[%s2781_s1 + $0xa8] sm:$0xf]  ;;  %v1743_v19 = vld [vmem:[%s2781_s1 + $0xb4] sm:$0xf0] }
   0x9   :  { %257 = vmatpush.bf16.msra.mxu2 %v1261_v8  ;;  %v1241_v17 = vor.u32 %v1740_v14, %v1238_v15  ;;  %v1741_v20 = vld [vmem:[%s2781_s1 + $0xac] sm:$0xf]  ;;  %276 = vmatpush.bf16.msra.mxu3 %v1265_v12  ;;  %v1245_v21 = vor.u32 %v1743_v19, %v1244_v18  ;;  %v1246_v22 = vld [vmem:[%s2781_s1 + $0xb8] sm:$0xf0]  ;;  %v1220_v23 = vld [vmem:[%s2781_s1 + $0x80] sm:$0xf] }
   0xa   :  { %v1738_v24 = vld [vmem:[%s2781_s1 + $0x8c] sm:$0xf0]  ;;  %v1249_v25 = vor.u32 %v1741_v20, %v1246_v22  ;;  %v1736_v26 = vld [vmem:[%s2781_s1 + $0x84] sm:$0xf]  ;;  %v1222_v27 = vld [vmem:[%s2781_s1 + $0x90] sm:$0xf0] }
   0xb   :  { %v1228_v28 = vld [vmem:[%s2781_s1 + $0x88] sm:$0xf]  ;;  %220 = vmatpush.bf16.msra.mxu0 %v1237_v16  ;;  %v1221_v29 = vor.u32 %v1738_v24, %v1220_v23  ;;  %v1739_v30 = vld [vmem:[%s2781_s1 + $0x94] sm:$0xf0]  ;;  %v1737_v31 = vld [vmem:[%s2781_s1 + $0x8c] sm:$0xf]  ;;  %v1225_v33 = vor.u32 %v1736_v26, %v1222_v27 }
   0xc   :  { %v1230_v32 = vld [vmem:[%s2781_s1 + $0x98] sm:$0xf0]  ;;  %239 = vmatpush.bf16.msra.mxu1 %v1241_v17  ;;  %v1229_v34 = vor.u32 %v1739_v30, %v1228_v28  ;;  %v1204_v35 = vld [vmem:[%s2781_s1 + $0x60] sm:$0xf]  ;;  %v1734_v36 = vld [vmem:[%s2781_s1 + $0x6c] sm:$0xf0] }
   0xd   :  { %258 = vmatpush.bf16.msra.mxu2 %v1245_v21  ;;  %v1732_v37 = vld [vmem:[%s2781_s1 + $0x64] sm:$0xf]  ;;  %277 = vmatpush.bf16.msra.mxu3 %v1249_v25  ;;  %v1233_v38 = vor.u32 %v1737_v31, %v1230_v32  ;;  %v1206_v39 = vld [vmem:[%s2781_s1 + $0x70] sm:$0xf0]  ;;  %v1212_v40 = vld [vmem:[%s2781_s1 + $0x68] sm:$0xf]  ;;  %v1205_v44 = vor.u32 %v1734_v36, %v1204_v35 }
   0xe   :  { %v1735_v41 = vld [vmem:[%s2781_s1 + $0x74] sm:$0xf0]  ;;  %v1733_v42 = vld [vmem:[%s2781_s1 + $0x6c] sm:$0xf]  ;;  %v1214_v43 = vld [vmem:[%s2781_s1 + $0x78] sm:$0xf0]  ;;  %v1209_v45 = vor.u32 %v1732_v37, %v1206_v39 }
   0xf   :  { %221 = vmatpush.bf16.msra.mxu0 %v1221_v29  ;;  %v1213_v46 = vor.u32 %v1735_v41, %v1212_v40  ;;  %v1188_v47 = vld [vmem:[%s2781_s1 + $0x40] sm:$0xf]  ;;  %v1730_v48 = vld [vmem:[%s2781_s1 + $0x4c] sm:$0xf0]  ;;  %v1728_v49 = vld [vmem:[%s2781_s1 + $0x44] sm:$0xf]  ;;  %v1217_v50 = vor.u32 %v1733_v42, %v1214_v43 }
  0x10   :  { %240 = vmatpush.bf16.msra.mxu1 %v1225_v33  ;;  %v1190_v51 = vld [vmem:[%s2781_s1 + $0x50] sm:$0xf0]  ;;  %v1196_v52 = vld [vmem:[%s2781_s1 + $0x48] sm:$0xf]  ;;  %v1731_v53 = vld [vmem:[%s2781_s1 + $0x54] sm:$0xf0]  ;;  %v1189_v56 = vor.u32 %v1730_v48, %v1188_v47 }
  0x11   :  { %259 = vmatpush.bf16.msra.mxu2 %v1229_v34  ;;  %278 = vmatpush.bf16.msra.mxu3 %v1233_v38  ;;  %v1729_v54 = vld [vmem:[%s2781_s1 + $0x4c] sm:$0xf]  ;;  %v1198_v55 = vld [vmem:[%s2781_s1 + $0x58] sm:$0xf0]  ;;  %v1193_v57 = vor.u32 %v1728_v49, %v1190_v51  ;;  %v1197_v58 = vor.u32 %v1731_v53, %v1196_v52  ;;  %v1172_v59 = vld [vmem:[%s2781_s1 + $0x20] sm:$0xf] }
  0x12   :  { %v1726_v60 = vld [vmem:[%s2781_s1 + $0x2c] sm:$0xf0]  ;;  %v1724_v61 = vld [vmem:[%s2781_s1 + $0x24] sm:$0xf]  ;;  %v1201_v62 = vor.u32 %v1729_v54, %v1198_v55  ;;  %v1174_v63 = vld [vmem:[%s2781_s1 + $0x30] sm:$0xf0] }
  0x13   :  { %222 = vmatpush.bf16.msra.mxu0 %v1205_v44  ;;  %v1180_v0 = vld [vmem:[%s2781_s1 + $0x28] sm:$0xf]  ;;  %v1727_v1 = vld [vmem:[%s2781_s1 + $0x34] sm:$0xf0]  ;;  %v1725_v2 = vld [vmem:[%s2781_s1 + $0x2c] sm:$0xf]  ;;  %v1173_v4 = vor.u32 %v1726_v60, %v1172_v59  ;;  %v1177_v6 = vor.u32 %v1724_v61, %v1174_v63 }
  0x14   :  { %241 = vmatpush.bf16.msra.mxu1 %v1209_v45  ;;  %v1182_v3 = vld [vmem:[%s2781_s1 + $0x38] sm:$0xf0]  ;;  %v1156_v5 = vld [vmem:[%s2781_s1] sm:$0xf]  ;;  %v1181_v7 = vor.u32 %v1727_v1, %v1180_v0  ;;  %v1722_v8 = vld [vmem:[%s2781_s1 + $0xc] sm:$0xf0] }
  0x15   :  { %260 = vmatpush.bf16.msra.mxu2 %v1213_v46  ;;  %279 = vmatpush.bf16.msra.mxu3 %v1217_v50  ;;  %v1720_v9 = vld [vmem:[%s2781_s1 + $0x4] sm:$0xf]  ;;  %v1158_v10 = vld [vmem:[%s2781_s1 + $0x10] sm:$0xf0]  ;;  %v1185_v11 = vor.u32 %v1725_v2, %v1182_v3  ;;  %v1164_v12 = vld [vmem:[%s2781_s1 + $0x8] sm:$0xf]  ;;  %v1157_v18 = vor.u32 %v1722_v8, %v1156_v5 }
  0x16   :  { %v1723_v13 = vld [vmem:[%s2781_s1 + $0x14] sm:$0xf0]  ;;  %v1721_v14 = vld [vmem:[%s2781_s1 + $0xc] sm:$0xf]  ;;  %v1166_v15 = vld [vmem:[%s2781_s1 + $0x18] sm:$0xf0]  ;;  %v1161_v21 = vor.u32 %v1720_v9, %v1158_v10 }
  0x17   :  { %223 = vmatpush.bf16.msra.mxu0 %v1189_v56  ;;  %v1408_v16 = vld [vmem:[%s2781_s1 + $0x1a8] sm:$0xf]  ;;  %v1775_v17 = vld [vmem:[%s2781_s1 + $0x1b4] sm:$0xf0]  ;;  %v1773_v19 = vld [vmem:[%s2781_s1 + $0x1ac] sm:$0xf]  ;;  %v1165_v22 = vor.u32 %v1723_v13, %v1164_v12  ;;  %v1169_v24 = vor.u32 %v1721_v14, %v1166_v15 }
  0x18   :  { %242 = vmatpush.bf16.msra.mxu1 %v1193_v57  ;;  %v1410_v20 = vld [vmem:[%s2781_s1 + $0x1b8] sm:$0xf0]  ;;  %v2066_v23 = vld [vmem:[%s2780_s0] sm:$0xff]  ;;  %v1409_v25 = vor.u32 %v1775_v17, %v1408_v16  ;;  %v1774_v27 = vld [vmem:[%s2781_s1 + $0x1ac] sm:$0xf0]  ;;  %vm211_vm0 = vcmask 916480  }
  0x19   :  { %261 = vmatpush.bf16.msra.mxu2 %v1197_v58  ;;  %280 = vmatpush.bf16.msra.mxu3 %v1201_v62  ;;  %v1400_v26 = vld [vmem:[%s2781_s1 + $0x1a0] sm:$0xf]  ;;  %v1772_v28 = vld [vmem:[%s2781_s1 + $0x1a4] sm:$0xf]  ;;  %v1413_v29 = vor.u32 %v1773_v19, %v1410_v20  ;;  %v1402_v30 = vld [vmem:[%s2781_s1 + $0x1b0] sm:$0xf0] }
  0x1a   :  { %v1392_v31 = vld [vmem:[%s2781_s1 + $0x188] sm:$0xf]  ;;  %v1771_v32 = vld [vmem:[%s2781_s1 + $0x194] sm:$0xf0]  ;;  %v1769_v33 = vld [vmem:[%s2781_s1 + $0x18c] sm:$0xf]  ;;  %v1401_v35 = vor.u32 %v1774_v27, %v1400_v26  ;;  %v1405_v36 = vor.u32 %v1772_v28, %v1402_v30 }
  0x1b   :  { %224 = vmatpush.bf16.msra.mxu0 %v1173_v4  ;;  %v1394_v34 = vld [vmem:[%s2781_s1 + $0x198] sm:$0xf0]  ;;  %v1393_v37 = vor.u32 %v1771_v32, %v1392_v31  ;;  %v1384_v38 = vld [vmem:[%s2781_s1 + $0x180] sm:$0xf]  ;;  %v1770_v39 = vld [vmem:[%s2781_s1 + $0x18c] sm:$0xf0] }
  0x1c   :  { %243 = vmatpush.bf16.msra.mxu1 %v1177_v6  ;;  %v1768_v40 = vld [vmem:[%s2781_s1 + $0x184] sm:$0xf]  ;;  %v1397_v41 = vor.u32 %v1769_v33, %v1394_v34  ;;  %v1386_v42 = vld [vmem:[%s2781_s1 + $0x190] sm:$0xf0]  ;;  %v1376_v43 = vld [vmem:[%s2781_s1 + $0x168] sm:$0xf]  ;;  %v1385_v47 = vor.u32 %v1770_v39, %v1384_v38 }
  0x1d   :  { %262 = vmatpush.bf16.msra.mxu2 %v1181_v7  ;;  %281 = vmatpush.bf16.msra.mxu3 %v1185_v11  ;;  %v1767_v44 = vld [vmem:[%s2781_s1 + $0x174] sm:$0xf0]  ;;  %v1765_v45 = vld [vmem:[%s2781_s1 + $0x16c] sm:$0xf]  ;;  %v1378_v46 = vld [vmem:[%s2781_s1 + $0x178] sm:$0xf0]  ;;  %v1389_v48 = vor.u32 %v1768_v40, %v1386_v42 }
  0x1e   :  { %v1377_v49 = vor.u32 %v1767_v44, %v1376_v43  ;;  %v1368_v50 = vld [vmem:[%s2781_s1 + $0x160] sm:$0xf]  ;;  %v1766_v51 = vld [vmem:[%s2781_s1 + $0x16c] sm:$0xf0]  ;;  %v1764_v52 = vld [vmem:[%s2781_s1 + $0x164] sm:$0xf]  ;;  %v1381_v53 = vor.u32 %v1765_v45, %v1378_v46 }
  0x1f   :  { %225 = vmatpush.bf16.msra.mxu0 %v1157_v18  ;;  %v1370_v54 = vld [vmem:[%s2781_s1 + $0x170] sm:$0xf0]  ;;  %v1360_v55 = vld [vmem:[%s2781_s1 + $0x148] sm:$0xf]  ;;  %v1763_v56 = vld [vmem:[%s2781_s1 + $0x154] sm:$0xf0]  ;;  %v1369_v59 = vor.u32 %v1766_v51, %v1368_v50 }
  0x20   :  { %244 = vmatpush.bf16.msra.mxu1 %v1161_v21  ;;  %v1761_v57 = vld [vmem:[%s2781_s1 + $0x14c] sm:$0xf]  ;;  %v1362_v58 = vld [vmem:[%s2781_s1 + $0x158] sm:$0xf0]  ;;  %v1373_v60 = vor.u32 %v1764_v52, %v1370_v54  ;;  %v1361_v61 = vor.u32 %v1763_v56, %v1360_v55  ;;  %v1152_v62 = vld [vmem:[%s2780_s0 + $0x8] sm:$0xf] }
  0x21   :  { %263 = vmatpush.bf16.msra.mxu2 %v1165_v22  ;;  %282 = vmatpush.bf16.msra.mxu3 %v1169_v24  ;;  %v1352_v63 = vld [vmem:[%s2781_s1 + $0x140] sm:$0xf]  ;;  %v1762_v0 = vld [vmem:[%s2781_s1 + $0x14c] sm:$0xf0]  ;;  %v1760_v1 = vld [vmem:[%s2781_s1 + $0x144] sm:$0xf]  ;;  %v1365_v2 = vor.u32 %v1761_v57, %v1362_v58 }
  0x22   :  { %1266 = vmatmul.msk.bf16.vlgmr.msra.gmra.mxu0 %vm211_vm0, %v2066_v23  ;;  %v1354_v3 = vld [vmem:[%s2781_s1 + $0x150] sm:$0xf0]  ;;  %v1344_v4 = vld [vmem:[%s2781_s1 + $0x128] sm:$0xf]  ;;  %v1759_v5 = vld [vmem:[%s2781_s1 + $0x134] sm:$0xf0]  ;;  %v1353_v9 = vor.u32 %v1762_v0, %v1352_v63 }
  0x23   :  { %1268 = vmatmul.msk.bf16.vlgmr.msra.gmra.mxu1 %vm211_vm0, %v2066_v23  ;;  %464 = vmatpush.bf16.msrb.mxu0 %v1401_v35  ;;  %v1719_v6 = vld [vmem:[%s2780_s0 + $0x8] sm:$0x10]  ;;  %v1346_v8 = vld [vmem:[%s2781_s1 + $0x138] sm:$0xf0]  ;;  %v1357_v10 = vor.u32 %v1760_v1, %v1354_v3  ;;  %v1345_v11 = vor.u32 %v1759_v5, %v1344_v4  ;;  %v1336_v12 = vld [vmem:[%s2781_s1 + $0x120] sm:$0xf] }
  0x24   :  { %1270 = vmatmul.msk.bf16.vlgmr.msra.gmra.mxu2 %vm211_vm0, %v2066_v23  ;;  %1272 = vmatmul.msk.bf16.vlgmr.msra.gmra.mxu3 %vm211_vm0, %v2066_v23  ;;  %v1757_v7 = vld [vmem:[%s2781_s1 + $0x12c] sm:$0xf]  ;;  %v1758_v13 = vld [vmem:[%s2781_s1 + $0x12c] sm:$0xf0]  ;;  %v1756_v14 = vld [vmem:[%s2781_s1 + $0x124] sm:$0xf]  ;;  %v2187_v15 = vor.u32 %v1719_v6, %v1152_v62 }
  0x25   :  { %502 = vmatpush.bf16.msrb.mxu2 %v1409_v25  ;;  %521 = vmatpush.bf16.msrb.mxu3 %v1413_v29  ;;  %v1349_v16 = vor.u32 %v1757_v7, %v1346_v8  ;;  %v1338_v17 = vld [vmem:[%s2781_s1 + $0x130] sm:$0xf0]  ;;  %v1328_v18 = vld [vmem:[%s2781_s1 + $0x108] sm:$0xf]  ;;  %v1755_v19 = vld [vmem:[%s2781_s1 + $0x114] sm:$0xf0]  ;;  %v1337_v22 = vor.u32 %v1758_v13, %v1336_v12 }
  0x26   :  { %483 = vmatpush.bf16.msrb.mxu1 %v1405_v36  ;;  %v1753_v20 = vld [vmem:[%s2781_s1 + $0x10c] sm:$0xf]  ;;  %v1330_v21 = vld [vmem:[%s2781_s1 + $0x118] sm:$0xf0]  ;;  %v1320_v24 = vld [vmem:[%s2781_s1 + $0x100] sm:$0xf]  ;;  %v1341_v25 = vor.u32 %v1756_v14, %v1338_v17  ;;  %v1329_v26 = vor.u32 %v1755_v19, %v1328_v18 }
  0x27   :  { %465 = vmatpush.bf16.msrb.mxu0 %v1385_v47  ;;  %v1754_v27 = vld [vmem:[%s2781_s1 + $0x10c] sm:$0xf0]  ;;  %v1752_v28 = vld [vmem:[%s2781_s1 + $0x104] sm:$0xf]  ;;  %v1322_v29 = vld [vmem:[%s2781_s1 + $0x110] sm:$0xf0]  ;;  %v1333_v30 = vor.u32 %v1753_v20, %v1330_v21 }
  0x28   :  { %v1312_v31 = vld [vmem:[%s2781_s1 + $0xe8] sm:$0xf]  ;;  %v1751_v32 = vld [vmem:[%s2781_s1 + $0xf4] sm:$0xf0]  ;;  %v1749_v33 = vld [vmem:[%s2781_s1 + $0xec] sm:$0xf] }
  0x29   :  { %503 = vmatpush.bf16.msrb.mxu2 %v1393_v37  ;;  %522 = vmatpush.bf16.msrb.mxu3 %v1397_v41  ;;  %v1314_v34 = vld [vmem:[%s2781_s1 + $0xf8] sm:$0xf0]  ;;  %v1556_v35 = vld [vmem:[%s2781_s1 + $0x288] sm:$0xf]  ;;  %v1803_v36 = vld [vmem:[%s2781_s1 + $0x294] sm:$0xf0]  ;;  %v1321_v37 = vor.u32 %v1754_v27, %v1320_v24  ;;  %v1325_v41 = vor.u32 %v1752_v28, %v1322_v29  ;;  %v1313_v42 = vor.u32 %v1751_v32, %v1312_v31 }
  0x2a   :  { %484 = vmatpush.bf16.msrb.mxu1 %v1389_v48  ;;  %v1304_v38 = vld [vmem:[%s2781_s1 + $0xe0] sm:$0xf]  ;;  %v1801_v39 = vld [vmem:[%s2781_s1 + $0x28c] sm:$0xf]  ;;  %v1558_v40 = vld [vmem:[%s2781_s1 + $0x298] sm:$0xf0]  ;;  %v1317_v46 = vor.u32 %v1749_v33, %v1314_v34  ;;  %v1557_v47 = vor.u32 %v1803_v36, %v1556_v35 }
  0x2b   :  { %466 = vmatpush.bf16.msrb.mxu0 %v1369_v59  ;;  %v1750_v43 = vld [vmem:[%s2781_s1 + $0xec] sm:$0xf0]  ;;  %v1748_v44 = vld [vmem:[%s2781_s1 + $0xe4] sm:$0xf]  ;;  %v1306_v45 = vld [vmem:[%s2781_s1 + $0xf0] sm:$0xf0]  ;;  %v1561_v51 = vor.u32 %v1801_v39, %v1558_v40 }
  0x2c   :  { %v1548_v48 = vld [vmem:[%s2781_s1 + $0x280] sm:$0xf]  ;;  %v1800_v50 = vld [vmem:[%s2781_s1 + $0x284] sm:$0xf]  ;;  %v1550_v52 = vld [vmem:[%s2781_s1 + $0x290] sm:$0xf0]  ;;  %v1305_v55 = vor.u32 %v1750_v43, %v1304_v38  ;;  %v1309_v58 = vor.u32 %v1748_v44, %v1306_v45 }
  0x2d   :  { %504 = vmatpush.bf16.msrb.mxu2 %v1377_v49  ;;  %523 = vmatpush.bf16.msrb.mxu3 %v1381_v53  ;;  %v1802_v49 = vld [vmem:[%s2781_s1 + $0x28c] sm:$0xf0]  ;;  %v1540_v53 = vld [vmem:[%s2781_s1 + $0x268] sm:$0xf]  ;;  %v1799_v54 = vld [vmem:[%s2781_s1 + $0x274] sm:$0xf0] }
  0x2e   :  { %485 = vmatpush.bf16.msrb.mxu1 %v1373_v60  ;;  %v1797_v56 = vld [vmem:[%s2781_s1 + $0x26c] sm:$0xf]  ;;  %v1542_v57 = vld [vmem:[%s2781_s1 + $0x278] sm:$0xf0]  ;;  %v1549_v59 = vor.u32 %v1802_v49, %v1548_v48  ;;  %v1553_v60 = vor.u32 %v1800_v50, %v1550_v52  ;;  %v1532_v62 = vld [vmem:[%s2781_s1 + $0x260] sm:$0xf] }
  0x2f   :  { %467 = vmatpush.bf16.msrb.mxu0 %v1353_v9  ;;  %v1798_v63 = vld [vmem:[%s2781_s1 + $0x26c] sm:$0xf0]  ;;  %v1545_v0 = vor.u32 %v1797_v56, %v1542_v57  ;;  %v1796_v1 = vld [vmem:[%s2781_s1 + $0x264] sm:$0xf]  ;;  %v1524_v4 = vld [vmem:[%s2781_s1 + $0x248] sm:$0xf] }
  0x30   :  { %v1533_v3 = vor.u32 %v1798_v63, %v1532_v62  ;;  %v1795_v5 = vld [vmem:[%s2781_s1 + $0x254] sm:$0xf0]  ;;  %v1793_v6 = vld [vmem:[%s2781_s1 + $0x24c] sm:$0xf]  ;;  %v1526_v8 = vld [vmem:[%s2781_s1 + $0x258] sm:$0xf0] }
  0x31   :  { %505 = vmatpush.bf16.msrb.mxu2 %v1361_v61  ;;  %524 = vmatpush.bf16.msrb.mxu3 %v1365_v2  ;;  %v1541_v61 = vor.u32 %v1799_v54, %v1540_v53  ;;  %v1534_v2 = vld [vmem:[%s2781_s1 + $0x270] sm:$0xf0]  ;;  %v1516_v9 = vld [vmem:[%s2781_s1 + $0x240] sm:$0xf]  ;;  %v1525_v13 = vor.u32 %v1795_v5, %v1524_v4  ;;  %v1529_v14 = vor.u32 %v1793_v6, %v1526_v8  ;;  %v1508_v17 = vld [vmem:[%s2781_s1 + $0x228] sm:$0xf] }
  0x32   :  { %486 = vmatpush.bf16.msrb.mxu1 %v1357_v10  ;;  %1267 = vmatmul.msk.bf16.gmra.mxu0 %vm211_vm0, %v2187_v15  ;;  %v1537_v7 = vor.u32 %v1796_v1, %v1534_v2  ;;  %v1794_v10 = vld [vmem:[%s2781_s1 + $0x24c] sm:$0xf0]  ;;  %v1518_v12 = vld [vmem:[%s2781_s1 + $0x250] sm:$0xf0]  ;;  %v1791_v18 = vld [vmem:[%s2781_s1 + $0x234] sm:$0xf0] }
  0x33   :  { %1269 = vmatmul.msk.bf16.gmra.mxu1 %vm211_vm0, %v2187_v15  ;;  %468 = vmatpush.bf16.msrb.mxu0 %v1337_v22  ;;  %v1789_v19 = vld [vmem:[%s2781_s1 + $0x22c] sm:$0xf]  ;;  %v1510_v21 = vld [vmem:[%s2781_s1 + $0x238] sm:$0xf0]  ;;  %v1500_v22 = vld [vmem:[%s2781_s1 + $0x220] sm:$0xf]  ;;  %v1509_v27 = vor.u32 %v1791_v18, %v1508_v17 }
  0x34   :  { %1271 = vmatmul.msk.bf16.gmra.mxu2 %vm211_vm0, %v2187_v15  ;;  %1273 = vmatmul.msk.bf16.gmra.mxu3 %vm211_vm0, %v2187_v15  ;;  %v1790_v24 = vld [vmem:[%s2781_s1 + $0x22c] sm:$0xf0]  ;;  %v1513_v28 = vor.u32 %v1789_v19, %v1510_v21  ;;  %v1787_v31 = vld [vmem:[%s2781_s1 + $0x214] sm:$0xf0]  ;;  %v1785_v32 = vld [vmem:[%s2781_s1 + $0x20c] sm:$0xf] }
  0x35   :  { %506 = vmatpush.bf16.msrb.mxu2 %v1345_v11  ;;  %525 = vmatpush.bf16.msrb.mxu3 %v1349_v16  ;;  %v1792_v11 = vld [vmem:[%s2781_s1 + $0x244] sm:$0xf]  ;;  %v1517_v16 = vor.u32 %v1794_v10, %v1516_v9  ;;  %v1501_v29 = vor.u32 %v1790_v24, %v1500_v22  ;;  %v1494_v34 = vld [vmem:[%s2781_s1 + $0x218] sm:$0xf0]  ;;  %v1484_v35 = vld [vmem:[%s2781_s1 + $0x200] sm:$0xf] }
  0x36   :  { %487 = vmatpush.bf16.msrb.mxu1 %v1341_v25  ;;  %v1521_v20 = vor.u32 %v1792_v11, %v1518_v12  ;;  %v1788_v25 = vld [vmem:[%s2781_s1 + $0x224] sm:$0xf]  ;;  %v1786_v36 = vld [vmem:[%s2781_s1 + $0x20c] sm:$0xf0]  ;;  %v1486_v38 = vld [vmem:[%s2781_s1 + $0x210] sm:$0xf0]  ;;  %v1497_v40 = vor.u32 %v1785_v32, %v1494_v34 }
  0x37   :  { %469 = vmatpush.bf16.msrb.mxu0 %v1321_v37  ;;  %v1784_v37 = vld [vmem:[%s2781_s1 + $0x204] sm:$0xf]  ;;  %v1783_v43 = vld [vmem:[%s2781_s1 + $0x1f4] sm:$0xf0]  ;;  %v1781_v44 = vld [vmem:[%s2781_s1 + $0x1ec] sm:$0xf] }
  0x38   :  { %v1489_v45 = vor.u32 %v1784_v37, %v1486_v38  ;;  %v1782_v48 = vld [vmem:[%s2781_s1 + $0x1ec] sm:$0xf0]  ;;  %v1780_v49 = vld [vmem:[%s2781_s1 + $0x1e4] sm:$0xf]  ;;  %v1470_v50 = vld [vmem:[%s2781_s1 + $0x1f0] sm:$0xf0] }
  0x39   :  { %507 = vmatpush.bf16.msrb.mxu2 %v1329_v26  ;;  %526 = vmatpush.bf16.msrb.mxu3 %v1333_v30  ;;  %v1502_v26 = vld [vmem:[%s2781_s1 + $0x230] sm:$0xf0]  ;;  %v1492_v30 = vld [vmem:[%s2781_s1 + $0x208] sm:$0xf]  ;;  %v1779_v53 = vld [vmem:[%s2781_s1 + $0x1d4] sm:$0xf0] }
  0x3a   :  { %488 = vmatpush.bf16.msrb.mxu1 %v1325_v41  ;;  %v1505_v33 = vor.u32 %v1788_v25, %v1502_v26  ;;  %v1493_v39 = vor.u32 %v1787_v31, %v1492_v30  ;;  %v1485_v41 = vor.u32 %v1786_v36, %v1484_v35  ;;  %v1460_v52 = vld [vmem:[%s2781_s1 + $0x1c8] sm:$0xf]  ;;  %v1777_v56 = vld [vmem:[%s2781_s1 + $0x1cc] sm:$0xf]  ;;  %v1462_v57 = vld [vmem:[%s2781_s1 + $0x1d8] sm:$0xf0] }
  0x3b   :  { %470 = vmatpush.bf16.msrb.mxu0 %v1305_v55  ;;  %v1454_v62 = vld [vmem:[%s2781_s1 + $0x1d0] sm:$0xf0]  ;;  %v1704_v63 = vld [vmem:[%s2781_s1 + $0x368] sm:$0xf]  ;;  %v1829_v1 = vld [vmem:[%s2781_s1 + $0x36c] sm:$0xf]  ;;  %v1461_v2 = vor.u32 %v1779_v53, %v1460_v52  ;;  %v1465_v6 = vor.u32 %v1777_v56, %v1462_v57 }
  0x3c   :  { %v1696_v4 = vld [vmem:[%s2781_s1 + $0x360] sm:$0xf]  ;;  %v1830_v5 = vld [vmem:[%s2781_s1 + $0x36c] sm:$0xf0]  ;;  %v1828_v8 = vld [vmem:[%s2781_s1 + $0x364] sm:$0xf] }
  0x3d   :  { %508 = vmatpush.bf16.msrb.mxu2 %v1313_v42  ;;  %527 = vmatpush.bf16.msrb.mxu3 %v1317_v46  ;;  %v1476_v42 = vld [vmem:[%s2781_s1 + $0x1e8] sm:$0xf]  ;;  %v1478_v46 = vld [vmem:[%s2781_s1 + $0x1f8] sm:$0xf0]  ;;  %v1698_v9 = vld [vmem:[%s2781_s1 + $0x370] sm:$0xf0] }
  0x3e   :  { %489 = vmatpush.bf16.msrb.mxu1 %v1309_v58  ;;  %v1481_v54 = vor.u32 %v1781_v44, %v1478_v46  ;;  %v1452_v58 = vld [vmem:[%s2781_s1 + $0x1c0] sm:$0xf]  ;;  %v1825_v17 = vld [vmem:[%s2781_s1 + $0x34c] sm:$0xf]  ;;  %v1701_v18 = vor.u32 %v1828_v8, %v1698_v9  ;;  %v1690_v19 = vld [vmem:[%s2781_s1 + $0x358] sm:$0xf0] }
  0x3f   :  { %725 = vmatpush.bf16.msra.mxu0 %v1549_v59  ;;  %v1473_v59 = vor.u32 %v1780_v49, %v1470_v50  ;;  %v1826_v21 = vld [vmem:[%s2781_s1 + $0x34c] sm:$0xf0]  ;;  %v1824_v22 = vld [vmem:[%s2781_s1 + $0x344] sm:$0xf]  ;;  %v1682_v24 = vld [vmem:[%s2781_s1 + $0x350] sm:$0xf0]  ;;  %v1693_v26 = vor.u32 %v1825_v17, %v1690_v19 }
  0x40   :  { %v1821_v30 = vld [vmem:[%s2781_s1 + $0x32c] sm:$0xf]  ;;  %v1685_v31 = vor.u32 %v1824_v22, %v1682_v24  ;;  %v1674_v32 = vld [vmem:[%s2781_s1 + $0x338] sm:$0xf0]  ;;  %v1822_v34 = vld [vmem:[%s2781_s1 + $0x32c] sm:$0xf0] }
  0x41   :  { %763 = vmatpush.bf16.msra.mxu2 %v1557_v47  ;;  %782 = vmatpush.bf16.msra.mxu3 %v1561_v51  ;;  %v1468_v47 = vld [vmem:[%s2781_s1 + $0x1e0] sm:$0xf]  ;;  %v1477_v51 = vor.u32 %v1783_v43, %v1476_v42  ;;  %v1820_v35 = vld [vmem:[%s2781_s1 + $0x324] sm:$0xf]  ;;  %v1666_v36 = vld [vmem:[%s2781_s1 + $0x330] sm:$0xf0]  ;;  %v1677_v38 = vor.u32 %v1821_v30, %v1674_v32 }
  0x42   :  { %744 = vmatpush.bf16.msra.mxu1 %v1553_v60  ;;  %1414 = vmatmul.msk.bf16.vlgmr.msrb.gmra.mxu0 %vm211_vm0, %v2066_v23  ;;  %v1469_v55 = vor.u32 %v1782_v48, %v1468_v47  ;;  %v1778_v60 = vld [vmem:[%s2781_s1 + $0x1cc] sm:$0xf0]  ;;  %v1669_v42 = vor.u32 %v1820_v35, %v1666_v36  ;;  %v1817_v43 = vld [vmem:[%s2781_s1 + $0x30c] sm:$0xf]  ;;  %v1648_v44 = vld [vmem:[%s2781_s1 + $0x300] sm:$0xf] }
  0x43   :  { %726 = vmatpush.bf16.msra.mxu0 %v1533_v3  ;;  %1416 = vmatmul.msk.bf16.vlgmr.msrb.gmra.mxu1 %vm211_vm0, %v2066_v23  ;;  %v1706_v3 = vld [vmem:[%s2781_s1 + $0x378] sm:$0xf0]  ;;  %v1816_v48 = vld [vmem:[%s2781_s1 + $0x304] sm:$0xf]  ;;  %v1650_v49 = vld [vmem:[%s2781_s1 + $0x310] sm:$0xf0] }
  0x44   :  { %1418 = vmatmul.msk.bf16.vlgmr.msrb.gmra.mxu2 %vm211_vm0, %v2066_v23  ;;  %1420 = vmatmul.msk.bf16.vlgmr.msrb.gmra.mxu3 %vm211_vm0, %v2066_v23  ;;  %v1709_v12 = vor.u32 %v1829_v1, %v1706_v3  ;;  %v1658_v47 = vld [vmem:[%s2781_s1 + $0x318] sm:$0xf0]  ;;  %v1640_v50 = vld [vmem:[%s2781_s1 + $0x2e8] sm:$0xf]  ;;  %v1632_v56 = vld [vmem:[%s2781_s1 + $0x2e0] sm:$0xf] }
  0x45   :  { %764 = vmatpush.bf16.msra.mxu2 %v1541_v61  ;;  %783 = vmatpush.bf16.msra.mxu3 %v1545_v0  ;;  %v1776_v61 = vld [vmem:[%s2781_s1 + $0x1c4] sm:$0xf]  ;;  %v1831_v0 = vld [vmem:[%s2781_s1 + $0x374] sm:$0xf0]  ;;  %v1661_v53 = vor.u32 %v1817_v43, %v1658_v47  ;;  %v1814_v57 = vld [vmem:[%s2781_s1 + $0x2ec] sm:$0xf0] }
  0x46   :  { %745 = vmatpush.bf16.msra.mxu1 %v1537_v7  ;;  %v1453_v7 = vor.u32 %v1778_v60, %v1452_v58  ;;  %v1457_v10 = vor.u32 %v1776_v61, %v1454_v62  ;;  %v1705_v11 = vor.u32 %v1831_v0, %v1704_v63  ;;  %v1812_v60 = vld [vmem:[%s2781_s1 + $0x2e4] sm:$0xf]  ;;  %v1634_v61 = vld [vmem:[%s2781_s1 + $0x2f0] sm:$0xf0]  ;;  %v1624_v62 = vld [vmem:[%s2781_s1 + $0x2c8] sm:$0xf]  ;;  %v1633_v0 = vor.u32 %v1814_v57, %v1632_v56 }
  0x47   :  { %727 = vmatpush.bf16.msra.mxu0 %v1517_v16  ;;  %v1827_v16 = vld [vmem:[%s2781_s1 + $0x354] sm:$0xf0]  ;;  %v1809_v3 = vld [vmem:[%s2781_s1 + $0x2cc] sm:$0xf]  ;;  %v1808_v8 = vld [vmem:[%s2781_s1 + $0x2c4] sm:$0xf] }
  0x48   :  { %v1811_v63 = vld [vmem:[%s2781_s1 + $0x2d4] sm:$0xf0]  ;;  %v1618_v9 = vld [vmem:[%s2781_s1 + $0x2d0] sm:$0xf0]  ;;  %v1600_v17 = vld [vmem:[%s2781_s1 + $0x2a0] sm:$0xf] }
  0x49   :  { %765 = vmatpush.bf16.msra.mxu2 %v1525_v13  ;;  %784 = vmatpush.bf16.msra.mxu3 %v1529_v14  ;;  %v1697_v13 = vor.u32 %v1830_v5, %v1696_v4  ;;  %v1688_v14 = vld [vmem:[%s2781_s1 + $0x348] sm:$0xf]  ;;  %v1616_v4 = vld [vmem:[%s2781_s1 + $0x2c0] sm:$0xf]  ;;  %v1810_v5 = vld [vmem:[%s2781_s1 + $0x2cc] sm:$0xf0] }
  0x4a   :  { %746 = vmatpush.bf16.msra.mxu1 %v1521_v20  ;;  %v1680_v20 = vld [vmem:[%s2781_s1 + $0x340] sm:$0xf]  ;;  %v1689_v25 = vor.u32 %v1827_v16, %v1688_v14  ;;  %v1621_v14 = vor.u32 %v1808_v8, %v1618_v9  ;;  %v1805_v16 = vld [vmem:[%s2781_s1 + $0x2ac] sm:$0xf]  ;;  %v1602_v22 = vld [vmem:[%s2781_s1 + $0x2b0] sm:$0xf0] }
  0x4b   :  { %728 = vmatpush.bf16.msra.mxu0 %v1501_v29  ;;  %v1823_v29 = vld [vmem:[%s2781_s1 + $0x334] sm:$0xf0]  ;;  %vm1128_vm1 = vcmask 1043456   ;;  %vm1129_vm2 = vcmask 261124   ;;  %vm1137_vm4 = vcmask 1040384   ;;  %vm1138_vm5 = vcmask 258052  }
  0x4c   :  { %vm2721_vm3 = vmor %vm1129_vm2, %vm1128_vm1 }
  0x4d   :  { %766 = vmatpush.bf16.msra.mxu2 %v1509_v27  ;;  %785 = vmatpush.bf16.msra.mxu3 %v1513_v28  ;;  %v1681_v27 = vor.u32 %v1826_v21, %v1680_v20  ;;  %v1672_v28 = vld [vmem:[%s2781_s1 + $0x328] sm:$0xf]  ;;  %v1610_v20 = vld [vmem:[%s2781_s1 + $0x2b8] sm:$0xf0]  ;;  %v1804_v21 = vld [vmem:[%s2781_s1 + $0x2a4] sm:$0xf] }
  0x4e   :  { %747 = vmatpush.bf16.msra.mxu1 %v1505_v33  ;;  %v1664_v33 = vld [vmem:[%s2781_s1 + $0x320] sm:$0xf]  ;;  %v1673_v37 = vor.u32 %v1823_v29, %v1672_v28  ;;  %vm1139_vm6 = vmor %vm1138_vm5, %vm1137_vm4 }
  0x4f   :  { %729 = vmatpush.bf16.msra.mxu0 %v1485_v41  ;;  %v1819_v41 = vld [vmem:[%s2781_s1 + $0x314] sm:$0xf0] }
  0x51   :  { %767 = vmatpush.bf16.msra.mxu2 %v1493_v39  ;;  %786 = vmatpush.bf16.msra.mxu3 %v1497_v40  ;;  %v1665_v39 = vor.u32 %v1822_v34, %v1664_v33  ;;  %v1656_v40 = vld [vmem:[%s2781_s1 + $0x308] sm:$0xf] }
  0x52   :  { %748 = vmatpush.bf16.msra.mxu1 %v1489_v45  ;;  %1415 = vmatmul.msk.bf16.gmra.mxu0 %vm211_vm0, %v2187_v15  ;;  %v1818_v45 = vld [vmem:[%s2781_s1 + $0x30c] sm:$0xf0]  ;;  %v1657_v46 = vor.u32 %v1819_v41, %v1656_v40 }
  0x53   :  { %730 = vmatpush.bf16.msra.mxu0 %v1469_v55  ;;  %1417 = vmatmul.msk.bf16.gmra.mxu1 %vm211_vm0, %v2187_v15  ;;  %v1649_v52 = vor.u32 %v1818_v45, %v1648_v44  ;;  %v1813_v55 = vld [vmem:[%s2781_s1 + $0x2ec] sm:$0xf] }
  0x54   :  { %1419 = vmatmul.msk.bf16.gmra.mxu2 %vm211_vm0, %v2187_v15  ;;  %1421 = vmatmul.msk.bf16.gmra.mxu3 %vm211_vm0, %v2187_v15 }
  0x55   :  { %768 = vmatpush.bf16.msra.mxu2 %v1477_v51  ;;  %787 = vmatpush.bf16.msra.mxu3 %v1481_v54  ;;  %v1815_v51 = vld [vmem:[%s2781_s1 + $0x2f4] sm:$0xf0]  ;;  %v1653_v54 = vor.u32 %v1816_v48, %v1650_v49 }
  0x56   :  { %749 = vmatpush.bf16.msra.mxu1 %v1473_v59  ;;  %v1641_v58 = vor.u32 %v1815_v51, %v1640_v50  ;;  %v1642_v59 = vld [vmem:[%s2781_s1 + $0x2f8] sm:$0xf0] }
  0x57   :  { %731 = vmatpush.bf16.msra.mxu0 %v1453_v7  ;;  %v1645_v1 = vor.u32 %v1813_v55, %v1642_v59  ;;  %v1626_v7 = vld [vmem:[%s2781_s1 + $0x2d8] sm:$0xf0] }
  0x59   :  { %769 = vmatpush.bf16.msra.mxu2 %v1461_v2  ;;  %788 = vmatpush.bf16.msra.mxu3 %v1465_v6  ;;  %v1637_v2 = vor.u32 %v1812_v60, %v1634_v61  ;;  %v1625_v6 = vor.u32 %v1811_v63, %v1624_v62 }
  0x5a   :  { %750 = vmatpush.bf16.msra.mxu1 %v1457_v10  ;;  %v1608_v10 = vld [vmem:[%s2781_s1 + $0x2a8] sm:$0xf] }
  0x5b   :  { %986 = vmatpush.bf16.msrb.mxu0 %v1697_v13  ;;  %v1629_v13 = vor.u32 %v1809_v3, %v1626_v7  ;;  %v1077_v7 = vld [vmem:[#allocation2] sm:$0xf] }
  0x5d   :  { %1024 = vmatpush.bf16.msrb.mxu2 %v1705_v11  ;;  %1043 = vmatpush.bf16.msrb.mxu3 %v1709_v12  ;;  %v1807_v11 = vld [vmem:[%s2781_s1 + $0x2b4] sm:$0xf0]  ;;  %v1617_v12 = vor.u32 %v1810_v5, %v1616_v4 }
  0x5e   :  { %1005 = vmatpush.bf16.msrb.mxu1 %v1701_v18  ;;  %v1806_v18 = vld [vmem:[%s2781_s1 + $0x2ac] sm:$0xf0]  ;;  %v1609_v19 = vor.u32 %v1807_v11, %v1608_v10 }
  0x5f   :  { %987 = vmatpush.bf16.msrb.mxu0 %v1681_v27  ;;  %v1601_v24 = vor.u32 %v1806_v18, %v1600_v17  ;;  %v2694_v17 = vperm.slane %v1077_v7, 1 }
  0x61   :  { %1025 = vmatpush.bf16.msrb.mxu2 %v1689_v25  ;;  %1044 = vmatpush.bf16.msrb.mxu3 %v1693_v26  ;;  %v1613_v25 = vor.u32 %v1805_v16, %v1610_v20  ;;  %v1605_v26 = vor.u32 %v1804_v21, %v1602_v22 }
  0x62   :  { %1006 = vmatpush.bf16.msrb.mxu1 %v1685_v31  ;;  %1562 = vmatmul.msk.bf16.vlgmr.msra.gmra.mxu0 %vm211_vm0, %v2066_v23 }
  0x63   :  { %988 = vmatpush.bf16.msrb.mxu0 %v1665_v39  ;;  %1564 = vmatmul.msk.bf16.vlgmr.msra.gmra.mxu1 %vm211_vm0, %v2066_v23 }
  0x64   :  { %1566 = vmatmul.msk.bf16.vlgmr.msra.gmra.mxu2 %vm211_vm0, %v2066_v23  ;;  %1568 = vmatmul.msk.bf16.vlgmr.msra.gmra.mxu3 %vm211_vm0, %v2066_v23 }
  0x65   :  { %1026 = vmatpush.bf16.msrb.mxu2 %v1673_v37  ;;  %1045 = vmatpush.bf16.msrb.mxu3 %v1677_v38 }
  0x66   :  { %1007 = vmatpush.bf16.msrb.mxu1 %v1669_v42 }
  0x67   :  { %989 = vmatpush.bf16.msrb.mxu0 %v1649_v52 }
  0x69   :  { %1027 = vmatpush.bf16.msrb.mxu2 %v1657_v46  ;;  %1046 = vmatpush.bf16.msrb.mxu3 %v1661_v53 }
  0x6a   :  { %1008 = vmatpush.bf16.msrb.mxu1 %v1653_v54 }
  0x6b   :  { %990 = vmatpush.bf16.msrb.mxu0 %v1633_v0 }
  0x6d   :  { %1028 = vmatpush.bf16.msrb.mxu2 %v1641_v58  ;;  %1047 = vmatpush.bf16.msrb.mxu3 %v1645_v1 }
  0x6e   :  { %1009 = vmatpush.bf16.msrb.mxu1 %v1637_v2 }
  0x6f   :  { %991 = vmatpush.bf16.msrb.mxu0 %v1617_v12  ;;  %v2690_v12 = vperm.slane %v1077_v7, 0 }
  0x71   :  { %1029 = vmatpush.bf16.msrb.mxu2 %v1625_v6  ;;  %1048 = vmatpush.bf16.msrb.mxu3 %v1629_v13 }
  0x72   :  { %1010 = vmatpush.bf16.msrb.mxu1 %v1621_v14  ;;  %1563 = vmatmul.msk.bf16.gmra.mxu0 %vm211_vm0, %v2187_v15 }
  0x73   :  { %992 = vmatpush.bf16.msrb.mxu0 %v1601_v24  ;;  %1565 = vmatmul.msk.bf16.gmra.mxu1 %vm211_vm0, %v2187_v15 }
  0x74   :  { %1567 = vmatmul.msk.bf16.gmra.mxu2 %vm211_vm0, %v2187_v15  ;;  %1569 = vmatmul.msk.bf16.gmra.mxu3 %vm211_vm0, %v2187_v15 }
  0x75   :  { %1030 = vmatpush.bf16.msrb.mxu2 %v1609_v19  ;;  %1049 = vmatpush.bf16.msrb.mxu3 %v1613_v25 }
  0x76   :  { %1011 = vmatpush.bf16.msrb.mxu1 %v1605_v26 }
  0x82   :  { %1710 = vmatmul.msk.bf16.vlgmr.msrb.gmra.mxu0 %vm211_vm0, %v2066_v23 }
  0x83   :  { %1712 = vmatmul.msk.bf16.vlgmr.msrb.gmra.mxu1 %vm211_vm0, %v2066_v23 }
  0x84   :  { %1714 = vmatmul.msk.bf16.vlgmr.msrb.gmra.mxu2 %vm211_vm0, %v2066_v23  ;;  %1716 = vmatmul.msk.bf16.vlgmr.msrb.gmra.mxu3 %vm211_vm0, %v2066_v23 }
  0x92   :  { %1711 = vmatmul.msk.bf16.gmra.mxu0 %vm211_vm0, %v2187_v15 }
  0x93   :  { %1713 = vmatmul.msk.bf16.gmra.mxu1 %vm211_vm0, %v2187_v15 }
  0x94   :  { %1715 = vmatmul.msk.bf16.gmra.mxu2 %vm211_vm0, %v2187_v15  ;;  %1717 = vmatmul.msk.bf16.gmra.mxu3 %vm211_vm0, %v2187_v15 }
  0x9f   :  { %v227_v27 = vpop.f32.mrf.mxu0 }
  0xa0   :  { %v246_v28 = vpop.f32.mrf.mxu1 }
  0xa7   :  { %v2632_v29 = vpop.f32.mrf.mxu2  ;;  %v2634_v30 = vpop.f32.mrf.mxu3 }
  0xa8   :  { %v2636_v31 = vpop.f32.mrf.mxu0  ;;  %v2638_v23 = vpop.f32.mrf.mxu1 }
  0xaf   :  { %v2640_v32 = vpop.f32.mrf.mxu2  ;;  %v2642_v33 = vpop.f32.mrf.mxu3 }
  0xb0   :  { %v2644_v34 = vpop.f32.mrf.mxu0  ;;  %v2646_v35 = vpop.f32.mrf.mxu1 }
  0xb7   :  { %v2648_v36 = vpop.f32.mrf.mxu2  ;;  %v2650_v15 = vpop.f32.mrf.mxu3 }
  0xb8   :  { %v2652_v37 = vpop.f32.mrf.mxu0  ;;  %v2654_v38 = vpop.f32.mrf.mxu1 }
  0xbf   :  { %v2656_v39 = vpop.f32.mrf.mxu2  ;;  %v2658_v40 = vpop.f32.mrf.mxu3 }
  0xc0   :  { %v472_v41 = vpop.f32.mrf.mxu0  ;;  %v491_v42 = vpop.f32.mrf.mxu1 }
  0xc1   :  { %v539_v8 = vmax.f32 %v227_v27, %v472_v41  ;;  %v540_v9 = vmax.f32 %v246_v28, %v491_v42 }
  0xc7   :  { %v510_v43 = vpop.f32.mrf.mxu2  ;;  %v529_v44 = vpop.f32.mrf.mxu3 }
  0xc8   :  { %v474_v45 = vpop.f32.mrf.mxu0  ;;  %v493_v46 = vpop.f32.mrf.mxu1  ;;  %v541_v22 = vmax.f32 %v2632_v29, %v510_v43  ;;  %v542_v25 = vmax.f32 %v2634_v30, %v529_v44 }
  0xc9   :  { %v543_v26 = vmax.f32 %v2636_v31, %v474_v45  ;;  %v544_v28 = vmax.f32 %v2638_v23, %v493_v46 }
  0xcf   :  { %v2660_v47 = vpop.f32.mrf.mxu2  ;;  %v2662_v48 = vpop.f32.mrf.mxu3 }
  0xd0   :  { %v2664_v49 = vpop.f32.mrf.mxu0  ;;  %v2666_v50 = vpop.f32.mrf.mxu1 }
  0xd7   :  { %v2668_v51 = vpop.f32.mrf.mxu2  ;;  %v2670_v52 = vpop.f32.mrf.mxu3 }
  0xd8   :  { %v2672_v53 = vpop.f32.mrf.mxu0  ;;  %v2674_v54 = vpop.f32.mrf.mxu1 }
  0xdf   :  { %v2676_v55 = vpop.f32.mrf.mxu2  ;;  %v2678_v56 = vpop.f32.mrf.mxu3 }
  0xe0   :  { %v733_v57 = vpop.f32.mrf.mxu0  ;;  %v752_v58 = vpop.f32.mrf.mxu1 }
  0xe1   :  { %v800_v10 = vmax.f32 %v539_v8, %v733_v57  ;;  %v801_v13 = vmax.f32 %v540_v9, %v752_v58  ;;  %v2702_v57 = vperm.slane %v1077_v7, 2 }
  0xe7   :  { %v771_v59 = vpop.f32.mrf.mxu2  ;;  %v790_v60 = vpop.f32.mrf.mxu3 }
  0xe8   :  { %v735_v61 = vpop.f32.mrf.mxu0  ;;  %v754_v62 = vpop.f32.mrf.mxu1  ;;  %v802_v41 = vmax.f32 %v541_v22, %v771_v59  ;;  %v803_v58 = vmax.f32 %v542_v25, %v790_v60  ;;  %v545_v60 = vmax.f32 %v2640_v32, %v2660_v47  ;;  %v548_v22 = vmax.f32 %v2646_v35, %v2666_v50 }
  0xe9   :  { %v804_v8 = vmax.f32 %v543_v26, %v735_v61 }
  0xef   :  { %v773_v63 = vpop.f32.mrf.mxu2  ;;  %v792_v0 = vpop.f32.mrf.mxu3 }
  0xf0   :  { %v738_v1 = vpop.f32.mrf.mxu0  ;;  %v757_v2 = vpop.f32.mrf.mxu1 }
  0xf7   :  { %v2680_v3 = vpop.f32.mrf.mxu2  ;;  %v2682_v4 = vpop.f32.mrf.mxu3 }
  0xf8   :  { %v2684_v5 = vpop.f32.mrf.mxu0  ;;  %v2686_v6 = vpop.f32.mrf.mxu1 }
  0xff   :  { %v2688_v11 = vpop.f32.mrf.mxu2  ;;  %v2692_v14 = vpop.f32.mrf.mxu3 }
 0x100   :  { %v994_v16 = vpop.f32.mrf.mxu0  ;;  %v1013_v19 = vpop.f32.mrf.mxu1 }
 0x101   :  { %v1061_v18 = vmax.f32 %v800_v10, %v994_v16  ;;  %v1062_v20 = vmax.f32 %v801_v13, %v1013_v19  ;;  %v2704_v10 = vperm.slane %v1077_v7, 3  ;;  %v805_v13 = vmax.f32 %v544_v28, %v754_v62 }
 0x102   :  { %v546_v7 = vmax.f32 %v2642_v33, %v2662_v48  ;;  %v547_v19 = vmax.f32 %v2644_v34, %v2664_v49 }
 0x103   :  { %v1087_v21 = vadd.f32 %v2690_v12, %v1061_v18  ;;  %v1088_v24 = vadd.f32 %v2694_v17, %v1062_v20 }
 0x104   :  { %v807_v47 = vmax.f32 %v546_v7, %v792_v0  ;;  %v808_v26 = vmax.f32 %v547_v19, %v738_v1 }
 0x105   :  { %v1103_v27 = vmax.f32 %v1087_v21, 0.0  ;;  %v1104_v42 = vmax.f32 %v1088_v24, 0.0  ;;  %v806_v24 = vmax.f32 %v545_v60, %v773_v63 }
 0x107   :  { %v1032_v9 = vpop.f32.mrf.mxu2  ;;  %v1119_v29 = vpack.c.bf16 %v1104_v42, %v1103_v27  ;;  %v1051_v16 = vpop.f32.mrf.mxu3 }
 0x108   :  { %v1063_v43 = vmax.f32 %v802_v41, %v1032_v9  ;;  %v996_v18 = vpop.f32.mrf.mxu0  ;;  %v1064_v30 = vmax.f32 %v803_v58, %v1051_v16  ;;  %v1015_v31 = vpop.f32.mrf.mxu1  ;;  %v809_v41 = vmax.f32 %v548_v22, %v757_v2  ;;  %v549_v58 = vmax.f32 %v2648_v36, %v2668_v51 }
 0x109   :  { %v1065_v44 = vmax.f32 %v804_v8, %v996_v18  ;;  %1127 = vst [vmem:[%s2783_s3] sm:$0xff] %v1119_v29  ;;  %v1066_v45 = vmax.f32 %v805_v13, %v1015_v31  ;;  %v550_v13 = vmax.f32 %v2650_v15, %v2670_v52  ;;  %v551_v29 = vmax.f32 %v2652_v37, %v2672_v53 }
 0x10a   :  { %v1089_v23 = vadd.f32 %v2702_v57, %v1063_v43  ;;  %v1090_v46 = vadd.f32 %v2704_v10, %v1064_v30  ;;  %v552_v18 = vmax.f32 %v2654_v38, %v2674_v54  ;;  %v810_v30 = vmax.f32 %v549_v58, %v2680_v3 }
 0x10b   :  { %v1091_v59 = vadd.f32 %v2690_v12, %v1065_v44  ;;  %v1092_v62 = vadd.f32 %v2694_v17, %v1066_v45  ;;  %v811_v31 = vmax.f32 %v550_v13, %v2682_v4  ;;  %v812_v36 = vmax.f32 %v551_v29, %v2684_v5 }
 0x10c   :  { %v1105_v61 = vmax.f32 %v1089_v23, 0.0  ;;  %v1106_v20 = vmax.f32 %v1090_v46, 0.0  ;;  %v813_v45 = vmax.f32 %v552_v18, %v2686_v6 }
 0x10d   :  { %v1107_v21 = vmax.f32 %v1091_v59, 0.0  ;;  %v1108_v32 = vmax.f32 %v1092_v62, 0.0  ;;  %v553_v59 = vmax.f32 %v2656_v39, %v2676_v55  ;;  %v554_v62 = vmax.f32 %v2658_v40, %v2678_v56 }
 0x10e   :  { %v1120_v27 = vpack.c.bf16 %v1106_v20, %v1105_v61 }
 0x10f   :  { %v1034_v28 = vpop.f32.mrf.mxu2  ;;  %v1121_v33 = vpack.c.bf16 %v1108_v32, %v1107_v21  ;;  %v1053_v42 = vpop.f32.mrf.mxu3  ;;  %v814_v20 = vmax.f32 %v553_v59, %v2688_v11  ;;  %v815_v22 = vmax.f32 %v554_v62, %v2692_v14 }
 0x110   :  { %v1067_v48 = vmax.f32 %v806_v24, %v1034_v28  ;;  %v999_v34 = vpop.f32.mrf.mxu0  ;;  %1131 = vst.msk [vmem:[%s2783_s3 + $0x8] sm:$0xff] %vm2721_vm3, %v1120_v27  ;;  %v1068_v35 = vmax.f32 %v807_v47, %v1053_v42  ;;  %v1018_v50 = vpop.f32.mrf.mxu1 }
 0x111   :  { %v1069_v49 = vmax.f32 %v808_v26, %v999_v34  ;;  %1132 = vst [vmem:[%s2783_s3 + $0x10] sm:$0xff] %v1121_v33  ;;  %v1070_v0 = vmax.f32 %v809_v41, %v1018_v50 }
 0x112   :  { %v1093_v63 = vadd.f32 %v2702_v57, %v1067_v48  ;;  %v1094_v1 = vadd.f32 %v2704_v10, %v1068_v35 }
 0x113   :  { %v1095_v2 = vadd.f32 %v2690_v12, %v1069_v49  ;;  %v1096_v9 = vadd.f32 %v2694_v17, %v1070_v0 }
 0x114   :  { %v1109_v8 = vmax.f32 %v1093_v63, 0.0  ;;  %v1110_v43 = vmax.f32 %v1094_v1, 0.0 }
 0x115   :  { %v1111_v16 = vmax.f32 %v1095_v2, 0.0  ;;  %v1112_v44 = vmax.f32 %v1096_v9, 0.0 }
 0x116   :  { %v1122_v51 = vpack.c.bf16 %v1110_v43, %v1109_v8 }
 0x117   :  { %v1037_v23 = vpop.f32.mrf.mxu2  ;;  %v1123_v15 = vpack.c.bf16 %v1112_v44, %v1111_v16  ;;  %v1056_v46 = vpop.f32.mrf.mxu3 }
 0x118   :  { %v1071_v52 = vmax.f32 %v810_v30, %v1037_v23  ;;  %v1001_v37 = vpop.f32.mrf.mxu0  ;;  %1133 = vst.msk [vmem:[%s2783_s3 + $0x18] sm:$0xff] %vm2721_vm3, %v1122_v51  ;;  %v1072_v38 = vmax.f32 %v811_v31, %v1056_v46  ;;  %v1020_v54 = vpop.f32.mrf.mxu1 }
 0x119   :  { %v1073_v53 = vmax.f32 %v812_v36, %v1001_v37  ;;  %1134 = vst [vmem:[%s2783_s3 + $0x20] sm:$0xff] %v1123_v15  ;;  %v1074_v4 = vmax.f32 %v813_v45, %v1020_v54 }
 0x11a   :  { %v1097_v3 = vadd.f32 %v2702_v57, %v1071_v52  ;;  %v1098_v5 = vadd.f32 %v2704_v10, %v1072_v38 }
 0x11b   :  { %v1099_v6 = vadd.f32 %v2690_v12, %v1073_v53  ;;  %v1100_v61 = vadd.f32 %v2694_v17, %v1074_v4 }
 0x11c   :  { %v1113_v60 = vmax.f32 %v1097_v3, 0.0  ;;  %v1114_v7 = vmax.f32 %v1098_v5, 0.0 }
 0x11d   :  { %v1115_v19 = vmax.f32 %v1099_v6, 0.0  ;;  %v1116_v21 = vmax.f32 %v1100_v61, 0.0 }
 0x11e   :  { %v1124_v24 = vpack.c.bf16 %v1114_v7, %v1113_v60 }
 0x11f   :  { %v1039_v32 = vpop.f32.mrf.mxu2  ;;  %v1125_v47 = vpack.c.bf16 %v1116_v21, %v1115_v19  ;;  %v1058_v26 = vpop.f32.mrf.mxu3 }
 0x120   :  { %v1075_v12 = vmax.f32 %v814_v20, %v1039_v32  ;;  %1135 = vst.msk [vmem:[%s2783_s3 + $0x28] sm:$0xff] %vm2721_vm3, %v1124_v24  ;;  %v1076_v39 = vmax.f32 %v815_v22, %v1058_v26 }
 0x121   :  { %1136 = vst [vmem:[%s2783_s3 + $0x30] sm:$0x11] %v1125_v47 }
 0x122   :  { %v1101_v40 = vadd.f32 %v2702_v57, %v1075_v12  ;;  %v1102_v55 = vadd.f32 %v2704_v10, %v1076_v39 }
 0x124   :  { %v1117_v56 = vmax.f32 %v1101_v40, 0.0  ;;  %v1118_v11 = vmax.f32 %v1102_v55, 0.0 }
 0x126   :  { %v1126_v14 = vpack.c.bf16 %v1118_v11, %v1117_v56 }
 0x128   :  { %1140 = vst.msk [vmem:[%s2783_s3 + $0x38] sm:$0x11] %vm1139_vm6, %v1126_v14 }
 0x129   :  { %1145 = vsyncpa [#allocation3], 1 }

// kernel: simple_cnn_forward.5
= control target key start
LH: loop header
LB: loop body
LE: loop exit
PB: predicated region body
PF: predicated region fallthrough
CT: control target
= control target key end

     0   :  { %s2072_s0 = inlined_call_operand.vmem [shape: bf16[2,1600], index: 0, kind: input, shape index: {}]   ;;  %s2073_s1 = inlined_call_operand.vmem [shape: bf16[1600,128], index: 1, kind: input, shape index: {}]   ;;  %s2074_s2 = inlined_call_operand.vmem [shape: f32[1,128], index: 2, kind: input, shape index: {}]   ;;  %s2075_s3 = inlined_call_operand.vmem [shape: bf16[128,128], index: 3, kind: input, shape index: {}]   ;;  %s2076_s4 = inlined_call_operand.vmem [shape: f32[1,128], index: 4, kind: input, shape index: {}]   ;;  %s2077_s5 = inlined_call_operand.hbm [shape: f32[2,128], index: 5, kind: output, shape index: {}]  }
   0x1   :  { %v1569_v0 = vld [vmem:[%s2073_s1 + $0x38] sm:$0xff]  ;;  %v1568_v4 = vld [vmem:[%s2073_s1 + $0x30] sm:$0xff]  ;;  %v1567_v8 = vld [vmem:[%s2073_s1 + $0x28] sm:$0xff] }
   0x2   :  { %v1585_v1 = vld [vmem:[%s2073_s1 + $0xb8] sm:$0xff]  ;;  %860 = vmatpush.bf16.msra.mxu0 %v1569_v0  ;;  %v1584_v5 = vld [vmem:[%s2073_s1 + $0xb0] sm:$0xff]  ;;  %v1583_v9 = vld [vmem:[%s2073_s1 + $0xa8] sm:$0xff] }
   0x3   :  { %v1593_v2 = vld [vmem:[%s2073_s1 + $0xf8] sm:$0xff]  ;;  %886 = vmatpush.bf16.msra.mxu2 %v1585_v1  ;;  %v1592_v6 = vld [vmem:[%s2073_s1 + $0xf0] sm:$0xff]  ;;  %v1591_v10 = vld [vmem:[%s2073_s1 + $0xe8] sm:$0xff] }
   0x4   :  { %v1577_v3 = vld [vmem:[%s2073_s1 + $0x78] sm:$0xff]  ;;  %899 = vmatpush.bf16.msra.mxu3 %v1593_v2  ;;  %v1576_v7 = vld [vmem:[%s2073_s1 + $0x70] sm:$0xff]  ;;  %v1575_v11 = vld [vmem:[%s2073_s1 + $0x68] sm:$0xff] }
   0x5   :  { %873 = vmatpush.bf16.msra.mxu1 %v1577_v3  ;;  %v1566_v12 = vld [vmem:[%s2073_s1 + $0x20] sm:$0xff]  ;;  %v1565_v16 = vld [vmem:[%s2073_s1 + $0x18] sm:$0xff]  ;;  %v1564_v21 = vld [vmem:[%s2073_s1 + $0x10] sm:$0xff] }
   0x6   :  { %861 = vmatpush.bf16.msra.mxu0 %v1568_v4  ;;  %v1582_v13 = vld [vmem:[%s2073_s1 + $0xa0] sm:$0xff]  ;;  %v1581_v17 = vld [vmem:[%s2073_s1 + $0x98] sm:$0xff]  ;;  %v1580_v22 = vld [vmem:[%s2073_s1 + $0x90] sm:$0xff] }
   0x7   :  { %887 = vmatpush.bf16.msra.mxu2 %v1584_v5  ;;  %v1590_v14 = vld [vmem:[%s2073_s1 + $0xe0] sm:$0xff]  ;;  %v1589_v18 = vld [vmem:[%s2073_s1 + $0xd8] sm:$0xff]  ;;  %v1588_v23 = vld [vmem:[%s2073_s1 + $0xd0] sm:$0xff] }
   0x8   :  { %900 = vmatpush.bf16.msra.mxu3 %v1592_v6  ;;  %v1574_v15 = vld [vmem:[%s2073_s1 + $0x60] sm:$0xff]  ;;  %v1573_v19 = vld [vmem:[%s2073_s1 + $0x58] sm:$0xff]  ;;  %v1572_v24 = vld [vmem:[%s2073_s1 + $0x50] sm:$0xff] }
   0x9   :  { %874 = vmatpush.bf16.msra.mxu1 %v1576_v7  ;;  %v22_v20 = vld [vmem:[%s2072_s0] sm:$0xff] }
   0xa   :  { %862 = vmatpush.bf16.msra.mxu0 %v1567_v8  ;;  %229 = vst [vmem:[#allocation1] ss:$9 sm:$0xff] %v22_v20 }
   0xb   :  { %888 = vmatpush.bf16.msra.mxu2 %v1583_v9 }
   0xc   :  { %901 = vmatpush.bf16.msra.mxu3 %v1591_v10 }
   0xd   :  { %875 = vmatpush.bf16.msra.mxu1 %v1575_v11 }
   0xe   :  { %863 = vmatpush.bf16.msra.mxu0 %v1566_v12 }
   0xf   :  { %889 = vmatpush.bf16.msra.mxu2 %v1582_v13 }
  0x10   :  { %902 = vmatpush.bf16.msra.mxu3 %v1590_v14 }
  0x11   :  { %876 = vmatpush.bf16.msra.mxu1 %v1574_v15 }
  0x12   :  { %864 = vmatpush.bf16.msra.mxu0 %v1565_v16 }
  0x13   :  { %890 = vmatpush.bf16.msra.mxu2 %v1581_v17 }
  0x14   :  { %903 = vmatpush.bf16.msra.mxu3 %v1589_v18 }
  0x15   :  { %877 = vmatpush.bf16.msra.mxu1 %v1573_v19 }
  0x16   :  { %10 = vsyncpa [#allocation3], 0  ;;  %865 = vmatpush.bf16.msra.mxu0 %v1564_v21  ;;  %v1563_v25 = vld [vmem:[%s2073_s1 + $0x8] sm:$0xff]  ;;  %v1562_v29 = vld [vmem:[%s2073_s1] sm:$0xff]  ;;  %vm857_vm0 = vcmask 523264   ;;  %s1699_s9 = smov [#allocation2]  }
  0x17   :  { %891 = vmatpush.bf16.msra.mxu2 %v1580_v22  ;;  %v1579_v26 = vld [vmem:[%s2073_s1 + $0x88] sm:$0xff]  ;;  %v1578_v30 = vld [vmem:[%s2073_s1 + $0x80] sm:$0xff]  ;;  %v1601_v32 = vld [vmem:[%s2073_s1 + $0x138] sm:$0xff]  ;;  %s1118_s10 = sshll.u32 %s1699_s9, 4  ;;  %s1120_s13 = sshll.u32 %s2077_s5, 4  ;;  %s1119_s10 = int_to_ptr.vmem [resolvable:$true] %s1118_s10  ;;  %s1121_s13 = int_to_ptr.hbm [resolvable:$true] %s1120_s13 }
  0x18   :  { %904 = vmatpush.bf16.msra.mxu3 %v1588_v23  ;;  %v1587_v27 = vld [vmem:[%s2073_s1 + $0xc8] sm:$0xff]  ;;  %v1586_v31 = vld [vmem:[%s2073_s1 + $0xc0] sm:$0xff]  ;;  %v1617_v33 = vld [vmem:[%s2073_s1 + $0x1b8] sm:$0xff] }
  0x19   :  { %878 = vmatpush.bf16.msra.mxu1 %v1572_v24  ;;  %v1571_v28 = vld [vmem:[%s2073_s1 + $0x48] sm:$0xff]  ;;  %v1625_v34 = vld [vmem:[%s2073_s1 + $0x1f8] sm:$0xff]  ;;  %v1570_v35 = vld [vmem:[%s2073_s1 + $0x40] sm:$0xff] }
  0x1a   :  { %866 = vmatpush.bf16.msra.mxu0 %v1563_v25  ;;  %v1609_v36 = vld [vmem:[%s2073_s1 + $0x178] sm:$0xff]  ;;  %v1600_v38 = vld [vmem:[%s2073_s1 + $0x130] sm:$0xff]  ;;  %v230_v39 = vld [vmem:[#allocation1] sm:$0xff] }
  0x1b   :  { %892 = vmatpush.bf16.msra.mxu2 %v1579_v26  ;;  %v232_v37 = vld [vmem:[#allocation1 + $0x12] sm:$0xff]  ;;  %v233_v42 = vld [vmem:[#allocation1 + $0x1b] sm:$0xff]  ;;  %v231_v44 = vld [vmem:[#allocation1 + $0x9] sm:$0xff] }
  0x1c   :  { %905 = vmatpush.bf16.msra.mxu3 %v1587_v27  ;;  %v1616_v40 = vld [vmem:[%s2073_s1 + $0x1b0] sm:$0xff]  ;;  %v1599_v45 = vld [vmem:[%s2073_s1 + $0x128] sm:$0xff]  ;;  %v237_v51 = vld [vmem:[#allocation1 + $0x3f] sm:$0xff] }
  0x1d   :  { %879 = vmatpush.bf16.msra.mxu1 %v1571_v28  ;;  %v1624_v41 = vld [vmem:[%s2073_s1 + $0x1f0] sm:$0xff]  ;;  %v1615_v46 = vld [vmem:[%s2073_s1 + $0x1a8] sm:$0xff]  ;;  %v1598_v54 = vld [vmem:[%s2073_s1 + $0x120] sm:$0xff] }
  0x1e   :  { %867 = vmatpush.bf16.msra.mxu0 %v1562_v29  ;;  %v1608_v43 = vld [vmem:[%s2073_s1 + $0x170] sm:$0xff]  ;;  %v1623_v47 = vld [vmem:[%s2073_s1 + $0x1e8] sm:$0xff]  ;;  %v1614_v55 = vld [vmem:[%s2073_s1 + $0x1a0] sm:$0xff] }
  0x1f   :  { %893 = vmatpush.bf16.msra.mxu2 %v1578_v30  ;;  %v1607_v48 = vld [vmem:[%s2073_s1 + $0x168] sm:$0xff]  ;;  %v236_v49 = vld [vmem:[#allocation1 + $0x36] sm:$0xff]  ;;  %v1622_v56 = vld [vmem:[%s2073_s1 + $0x1e0] sm:$0xff] }
  0x20   :  { %906 = vmatpush.bf16.msra.mxu3 %v1586_v31  ;;  %v234_v50 = vld [vmem:[#allocation1 + $0x24] sm:$0xff]  ;;  %v1868_v53 = vld [vmem:[#allocation1 + $0x2d] sm:$0xff]  ;;  %v1597_v58 = vld [vmem:[%s2073_s1 + $0x118] sm:$0xff] }
  0x21   :  { %880 = vmatpush.bf16.msra.mxu1 %v1570_v35  ;;  %868 = vmatmul.bf16.vlgmr.msra.gmra.mxu0 %v230_v39  ;;  %v23_v52 = vld [vmem:[%s2072_s0 + $0x8] sm:$0x1f]  ;;  %v1606_v57 = vld [vmem:[%s2073_s1 + $0x160] sm:$0xff]  ;;  %v1613_v59 = vld [vmem:[%s2073_s1 + $0x198] sm:$0xff] }
  0x22   :  { %912 = vmatpush.bf16.msrb.mxu0 %v1601_v32  ;;  %894 = vmatmul.bf16.vlgmr.msra.gmra.mxu2 %v232_v37  ;;  %239 = vst [vmem:[#allocation1] ss:$9 sm:$0xff] %v23_v52  ;;  %v1621_v60 = vld [vmem:[%s2073_s1 + $0x1d8] sm:$0xff]  ;;  %v1596_v62 = vld [vmem:[%s2073_s1 + $0x110] sm:$0xff]  ;;  %v1595_v2 = vld [vmem:[%s2073_s1 + $0x108] sm:$0xff] }
  0x23   :  { %938 = vmatpush.bf16.msrb.mxu2 %v1617_v33  ;;  %907 = vmatmul.bf16.vlgmr.msra.gmra.mxu3 %v233_v42  ;;  %v1605_v61 = vld [vmem:[%s2073_s1 + $0x158] sm:$0xff]  ;;  %v1612_v63 = vld [vmem:[%s2073_s1 + $0x190] sm:$0xff]  ;;  %v1611_v3 = vld [vmem:[%s2073_s1 + $0x188] sm:$0xff] }
  0x24   :  { %951 = vmatpush.bf16.msrb.mxu3 %v1625_v34  ;;  %881 = vmatmul.bf16.vlgmr.msra.gmra.mxu1 %v231_v44  ;;  %v1620_v0 = vld [vmem:[%s2073_s1 + $0x1d0] sm:$0xff]  ;;  %v1619_v4 = vld [vmem:[%s2073_s1 + $0x1c8] sm:$0xff]  ;;  %v1594_v6 = vld [vmem:[%s2073_s1 + $0x100] sm:$0xff] }
  0x25   :  { %925 = vmatpush.bf16.msrb.mxu1 %v1609_v36  ;;  %v1604_v1 = vld [vmem:[%s2073_s1 + $0x150] sm:$0xff]  ;;  %v1603_v5 = vld [vmem:[%s2073_s1 + $0x148] sm:$0xff]  ;;  %v1610_v7 = vld [vmem:[%s2073_s1 + $0x180] sm:$0xff] }
  0x26   :  { %913 = vmatpush.bf16.msrb.mxu0 %v1600_v38  ;;  %v1618_v8 = vld [vmem:[%s2073_s1 + $0x1c0] sm:$0xff]  ;;  %v1633_v9 = vld [vmem:[%s2073_s1 + $0x238] sm:$0xff]  ;;  %v1632_v14 = vld [vmem:[%s2073_s1 + $0x230] sm:$0xff] }
  0x27   :  { %939 = vmatpush.bf16.msrb.mxu2 %v1616_v40  ;;  %v1649_v10 = vld [vmem:[%s2073_s1 + $0x2b8] sm:$0xff]  ;;  %v1602_v12 = vld [vmem:[%s2073_s1 + $0x140] sm:$0xff]  ;;  %v1648_v15 = vld [vmem:[%s2073_s1 + $0x2b0] sm:$0xff] }
  0x28   :  { %952 = vmatpush.bf16.msrb.mxu3 %v1624_v41  ;;  %v1657_v11 = vld [vmem:[%s2073_s1 + $0x2f8] sm:$0xff]  ;;  %v1656_v16 = vld [vmem:[%s2073_s1 + $0x2f0] sm:$0xff]  ;;  %v1631_v18 = vld [vmem:[%s2073_s1 + $0x228] sm:$0xff] }
  0x29   :  { %926 = vmatpush.bf16.msrb.mxu1 %v1608_v43  ;;  %v1641_v13 = vld [vmem:[%s2073_s1 + $0x278] sm:$0xff]  ;;  %v1640_v17 = vld [vmem:[%s2073_s1 + $0x270] sm:$0xff]  ;;  %v1647_v19 = vld [vmem:[%s2073_s1 + $0x2a8] sm:$0xff] }
  0x2a   :  { %914 = vmatpush.bf16.msrb.mxu0 %v1599_v45  ;;  %v1655_v20 = vld [vmem:[%s2073_s1 + $0x2e8] sm:$0xff]  ;;  %v1630_v22 = vld [vmem:[%s2073_s1 + $0x220] sm:$0xff]  ;;  %v1629_v26 = vld [vmem:[%s2073_s1 + $0x218] sm:$0xff] }
  0x2b   :  { %940 = vmatpush.bf16.msrb.mxu2 %v1615_v46  ;;  %v1639_v21 = vld [vmem:[%s2073_s1 + $0x268] sm:$0xff]  ;;  %v1646_v23 = vld [vmem:[%s2073_s1 + $0x2a0] sm:$0xff]  ;;  %v1645_v27 = vld [vmem:[%s2073_s1 + $0x298] sm:$0xff] }
  0x2c   :  { %953 = vmatpush.bf16.msrb.mxu3 %v1623_v47  ;;  %v1654_v24 = vld [vmem:[%s2073_s1 + $0x2e0] sm:$0xff]  ;;  %v1653_v28 = vld [vmem:[%s2073_s1 + $0x2d8] sm:$0xff]  ;;  %v1628_v30 = vld [vmem:[%s2073_s1 + $0x210] sm:$0xff] }
  0x2d   :  { %927 = vmatpush.bf16.msrb.mxu1 %v1607_v48  ;;  %v1638_v25 = vld [vmem:[%s2073_s1 + $0x260] sm:$0xff]  ;;  %v1637_v29 = vld [vmem:[%s2073_s1 + $0x258] sm:$0xff]  ;;  %v1644_v31 = vld [vmem:[%s2073_s1 + $0x290] sm:$0xff] }
  0x2e   :  { %915 = vmatpush.bf16.msrb.mxu0 %v1598_v54  ;;  %v1652_v32 = vld [vmem:[%s2073_s1 + $0x2d0] sm:$0xff]  ;;  %v1627_v34 = vld [vmem:[%s2073_s1 + $0x208] sm:$0xff]  ;;  %v1626_v38 = vld [vmem:[%s2073_s1 + $0x200] sm:$0xff] }
  0x2f   :  { %941 = vmatpush.bf16.msrb.mxu2 %v1614_v55  ;;  %v1636_v33 = vld [vmem:[%s2073_s1 + $0x250] sm:$0xff]  ;;  %v1643_v35 = vld [vmem:[%s2073_s1 + $0x288] sm:$0xff]  ;;  %v1642_v39 = vld [vmem:[%s2073_s1 + $0x280] sm:$0xff] }
  0x30   :  { %954 = vmatpush.bf16.msrb.mxu3 %v1622_v56  ;;  %v1651_v36 = vld [vmem:[%s2073_s1 + $0x2c8] sm:$0xff]  ;;  %v1650_v40 = vld [vmem:[%s2073_s1 + $0x2c0] sm:$0xff]  ;;  %v1661_v41 = vld [vmem:[%s2073_s1 + $0x318] sm:$0xff] }
  0x31   :  { %928 = vmatpush.bf16.msrb.mxu1 %v1606_v57  ;;  %v1635_v37 = vld [vmem:[%s2073_s1 + $0x248] sm:$0xff]  ;;  %v1634_v42 = vld [vmem:[%s2073_s1 + $0x240] sm:$0xff]  ;;  %v242_v44 = vld [vmem:[#allocation1 + $0x12] sm:$0xff] }
  0x32   :  { %916 = vmatpush.bf16.msrb.mxu0 %v1597_v58  ;;  %v240_v43 = vld [vmem:[#allocation1] sm:$0xff]  ;;  %v1660_v46 = vld [vmem:[%s2073_s1 + $0x310] sm:$0xff]  ;;  %v1659_v48 = vld [vmem:[%s2073_s1 + $0x308] sm:$0xff] }
  0x33   :  { %942 = vmatpush.bf16.msrb.mxu2 %v1613_v59  ;;  %v243_v45 = vld [vmem:[#allocation1 + $0x1b] sm:$0xff]  ;;  %v241_v47 = vld [vmem:[#allocation1 + $0x9] sm:$0xff] }
  0x34   :  { %955 = vmatpush.bf16.msrb.mxu3 %v1621_v60  ;;  %v1669_v54 = vld [vmem:[%s2075_s3 + $0x38] sm:$0xff]  ;;  %v1668_v58 = vld [vmem:[%s2075_s3 + $0x30] sm:$0xff] }
  0x35   :  { %929 = vmatpush.bf16.msrb.mxu1 %v1605_v61  ;;  %v1667_v61 = vld [vmem:[%s2075_s3 + $0x28] sm:$0xff] }
  0x36   :  { %917 = vmatpush.bf16.msrb.mxu0 %v1596_v62  ;;  %v1671_v62 = vld [vmem:[%s2074_s2] ss:$0 sm:$0xff] }
  0x37   :  { %943 = vmatpush.bf16.msrb.mxu2 %v1612_v63  ;;  %v1666_v63 = vld [vmem:[%s2075_s3 + $0x20] sm:$0xff] }
  0x38   :  { %956 = vmatpush.bf16.msrb.mxu3 %v1620_v0 }
  0x39   :  { %930 = vmatpush.bf16.msrb.mxu1 %v1604_v1 }
  0x3a   :  { %918 = vmatpush.bf16.msrb.mxu0 %v1595_v2 }
  0x3b   :  { %944 = vmatpush.bf16.msrb.mxu2 %v1611_v3  ;;  %v1665_v3 = vld [vmem:[%s2075_s3 + $0x18] sm:$0xff] }
  0x3c   :  { %957 = vmatpush.bf16.msrb.mxu3 %v1619_v4 }
  0x3d   :  { %931 = vmatpush.bf16.msrb.mxu1 %v1603_v5 }
  0x3e   :  { %919 = vmatpush.bf16.msrb.mxu0 %v1594_v6  ;;  %v1664_v6 = vld [vmem:[%s2075_s3 + $0x10] sm:$0xff] }
  0x3f   :  { %945 = vmatpush.bf16.msrb.mxu2 %v1610_v7 }
  0x40   :  { %958 = vmatpush.bf16.msrb.mxu3 %v1618_v8 }
  0x41   :  { %932 = vmatpush.bf16.msrb.mxu1 %v1602_v12  ;;  %920 = vmatmul.bf16.vlgmr.msrb.gmra.mxu0 %v234_v50  ;;  %v244_v50 = vld [vmem:[#allocation1 + $0x24] sm:$0xff] }
  0x42   :  { %964 = vmatpush.bf16.msra.mxu0 %v1633_v9  ;;  %946 = vmatmul.bf16.vlgmr.msrb.gmra.mxu2 %v236_v49  ;;  %v1658_v49 = vld [vmem:[%s2073_s1 + $0x300] sm:$0xff] }
  0x43   :  { %990 = vmatpush.bf16.msra.mxu2 %v1649_v10  ;;  %959 = vmatmul.bf16.vlgmr.msrb.gmra.mxu3 %v237_v51 }
  0x44   :  { %1003 = vmatpush.bf16.msra.mxu3 %v1657_v11  ;;  %933 = vmatmul.bf16.vlgmr.msrb.gmra.mxu1 %v1868_v53  ;;  %v1663_v11 = vld [vmem:[%s2075_s3 + $0x8] sm:$0xff] }
  0x45   :  { %977 = vmatpush.bf16.msra.mxu1 %v1641_v13 }
  0x46   :  { %965 = vmatpush.bf16.msra.mxu0 %v1632_v14 }
  0x47   :  { %991 = vmatpush.bf16.msra.mxu2 %v1648_v15  ;;  %v1662_v15 = vld [vmem:[%s2075_s3] sm:$0xff] }
  0x48   :  { %1004 = vmatpush.bf16.msra.mxu3 %v1656_v16 }
  0x49   :  { %978 = vmatpush.bf16.msra.mxu1 %v1640_v17 }
  0x4a   :  { %966 = vmatpush.bf16.msra.mxu0 %v1631_v18 }
  0x4b   :  { %992 = vmatpush.bf16.msra.mxu2 %v1647_v19 }
  0x4c   :  { %1005 = vmatpush.bf16.msra.mxu3 %v1655_v20 }
  0x4d   :  { %979 = vmatpush.bf16.msra.mxu1 %v1639_v21 }
  0x4e   :  { %967 = vmatpush.bf16.msra.mxu0 %v1630_v22 }
  0x4f   :  { %993 = vmatpush.bf16.msra.mxu2 %v1646_v23 }
  0x50   :  { %1006 = vmatpush.bf16.msra.mxu3 %v1654_v24 }
  0x51   :  { %980 = vmatpush.bf16.msra.mxu1 %v1638_v25 }
  0x52   :  { %968 = vmatpush.bf16.msra.mxu0 %v1629_v26 }
  0x53   :  { %994 = vmatpush.bf16.msra.mxu2 %v1645_v27 }
  0x54   :  { %1007 = vmatpush.bf16.msra.mxu3 %v1653_v28 }
  0x55   :  { %981 = vmatpush.bf16.msra.mxu1 %v1637_v29 }
  0x56   :  { %969 = vmatpush.bf16.msra.mxu0 %v1628_v30 }
  0x57   :  { %995 = vmatpush.bf16.msra.mxu2 %v1644_v31 }
  0x58   :  { %1008 = vmatpush.bf16.msra.mxu3 %v1652_v32 }
  0x59   :  { %982 = vmatpush.bf16.msra.mxu1 %v1636_v33 }
  0x5a   :  { %970 = vmatpush.bf16.msra.mxu0 %v1627_v34 }
  0x5b   :  { %996 = vmatpush.bf16.msra.mxu2 %v1643_v35 }
  0x5c   :  { %1009 = vmatpush.bf16.msra.mxu3 %v1651_v36 }
  0x5d   :  { %983 = vmatpush.bf16.msra.mxu1 %v1635_v37  ;;  %v1672_v37 = vld [vmem:[%s2076_s4] ss:$0 sm:$0xff] }
  0x5e   :  { %971 = vmatpush.bf16.msra.mxu0 %v1626_v38 }
  0x5f   :  { %997 = vmatpush.bf16.msra.mxu2 %v1642_v39 }
  0x60   :  { %1010 = vmatpush.bf16.msra.mxu3 %v1650_v40 }
  0x61   :  { %984 = vmatpush.bf16.msra.mxu1 %v1634_v42  ;;  %972 = vmatmul.bf16.vlgmr.msra.gmra.mxu0 %v240_v43 }
  0x62   :  { %1020 = vmatpush.bf16.msrb.mxu0 %v1661_v41  ;;  %998 = vmatmul.bf16.vlgmr.msra.gmra.mxu2 %v242_v44 }
  0x63   :  { %1011 = vmatmul.bf16.vlgmr.msra.gmra.mxu3 %v243_v45 }
  0x64   :  { %985 = vmatmul.bf16.vlgmr.msra.gmra.mxu1 %v241_v47 }
  0x65   :  { %1099 = vmatpush.bf16.msrb.mxu1 %v1669_v54 }
  0x66   :  { %1021 = vmatpush.bf16.msrb.mxu0 %v1660_v46 }
  0x69   :  { %1100 = vmatpush.bf16.msrb.mxu1 %v1668_v58 }
  0x6a   :  { %1022 = vmatpush.bf16.msrb.mxu0 %v1659_v48 }
  0x6d   :  { %1101 = vmatpush.bf16.msrb.mxu1 %v1667_v61 }
  0x6e   :  { %1023 = vmatpush.bf16.msrb.mxu0 %v1658_v49 }
  0x71   :  { %1529 = vmatmul.msk.bf16.vlgmr.msrb.gmra.mxu0 %vm857_vm0, %v244_v50  ;;  %1102 = vmatpush.bf16.msrb.mxu1 %v1666_v63 }
  0x75   :  { %1103 = vmatpush.bf16.msrb.mxu1 %v1665_v3 }
  0x79   :  { %1104 = vmatpush.bf16.msrb.mxu1 %v1664_v6 }
  0x7d   :  { %1105 = vmatpush.bf16.msrb.mxu1 %v1663_v11 }
  0x81   :  { %1106 = vmatpush.bf16.msrb.mxu1 %v1662_v15 }
  0x9e   :  { %v869_v51 = vpop.f32.mrf.mxu0 }
  0x9f   :  { %v870_v2 = vadd.f32 %v1671_v62, %v869_v51 }
  0xa1   :  { %v882_v52 = vpop.f32.mrf.mxu1 }
  0xa2   :  { %v883_v7 = vadd.f32 %v882_v52, %v870_v2 }
  0xa5   :  { %v895_v53 = vpop.f32.mrf.mxu2 }
  0xa6   :  { %v908_v55 = vpop.f32.mrf.mxu3  ;;  %v871_v56 = vpop.f32.mrf.mxu0  ;;  %v896_v10 = vadd.f32 %v895_v53, %v883_v7 }
  0xa8   :  { %v909_v14 = vadd.f32 %v908_v55, %v896_v10 }
  0xa9   :  { %v884_v57 = vpop.f32.mrf.mxu1 }
  0xad   :  { %v897_v59 = vpop.f32.mrf.mxu2 }
  0xae   :  { %v910_v60 = vpop.f32.mrf.mxu3 }
  0xbe   :  { %v921_v0 = vpop.f32.mrf.mxu0 }
  0xbf   :  { %v922_v16 = vadd.f32 %v921_v0, %v909_v14 }
  0xc1   :  { %v934_v1 = vpop.f32.mrf.mxu1 }
  0xc2   :  { %v935_v17 = vadd.f32 %v934_v1, %v922_v16 }
  0xc5   :  { %v947_v4 = vpop.f32.mrf.mxu2 }
  0xc6   :  { %v960_v5 = vpop.f32.mrf.mxu3  ;;  %v923_v8 = vpop.f32.mrf.mxu0  ;;  %v948_v18 = vadd.f32 %v947_v4, %v935_v17 }
  0xc8   :  { %v961_v21 = vadd.f32 %v960_v5, %v948_v18 }
  0xc9   :  { %v936_v9 = vpop.f32.mrf.mxu1 }
  0xcd   :  { %v949_v12 = vpop.f32.mrf.mxu2 }
  0xce   :  { %v962_v13 = vpop.f32.mrf.mxu3 }
  0xde   :  { %v973_v19 = vpop.f32.mrf.mxu0 }
  0xdf   :  { %v974_v22 = vadd.f32 %v973_v19, %v961_v21 }
  0xe1   :  { %v986_v20 = vpop.f32.mrf.mxu1 }
  0xe2   :  { %v987_v26 = vadd.f32 %v986_v20, %v974_v22 }
  0xe5   :  { %v999_v23 = vpop.f32.mrf.mxu2 }
  0xe6   :  { %v1012_v24 = vpop.f32.mrf.mxu3  ;;  %v975_v25 = vpop.f32.mrf.mxu0  ;;  %v1000_v28 = vadd.f32 %v999_v23, %v987_v26 }
  0xe8   :  { %v1013_v30 = vadd.f32 %v1012_v24, %v1000_v28 }
  0xe9   :  { %v988_v27 = vpop.f32.mrf.mxu1 }
  0xed   :  { %v1001_v29 = vpop.f32.mrf.mxu2 }
  0xee   :  { %v1014_v31 = vpop.f32.mrf.mxu3  ;;  %v1025_v32 = vpop.f32.mrf.mxu0 }
  0xef   :  { %v1026_v33 = vadd.f32 %v1025_v32, %v1013_v30 }
  0xf1   :  { %v1029_v34 = vmax.f32 %v1026_v33, 0.0 }
  0xf3   :  { %v1030_v35 = vpack.c.bf16 %v1029_v34, %v1029_v34 }
  0xf5   :  { %1107 = vmatmul.bf16.vlgmr.msrb.gmra.mxu1 %v1030_v35 }
  0xf6   :  { %v1027_v36 = vpop.f32.mrf.mxu0 }
 0x172   :  { %v1108_v38 = vpop.f32.mrf.mxu1 }
 0x173   :  { %v1109_v39 = vadd.f32 %v1672_v37, %v1108_v38 }
 0x175   :  { %1112 = vst [vmem:[#allocation2] sm:$0x3] %v1109_v39 }
 0x176   :  { %1123 = dma.vmem_to_hbm [thread:$0]  %s1119_s10, 32, %s1121_s13, [#allocation3]  }
 0x17a   :  { %v1110_v40 = vpop.f32.mrf.mxu1 }
 0x17b   :  { %1697 = dma.done.wait [#allocation3], 32  }
 0x17c   :  { %1698 = vsyncadd [#allocation3], 4294967264 }
 0x17d   :  { %1128 = vsyncpa [#allocation3], 1 }

// kernel: simple_cnn_forward.4
= control target key start
LH: loop header
LB: loop body
LE: loop exit
PB: predicated region body
PF: predicated region fallthrough
CT: control target
= control target key end

     0   :  { %vm10644_vm0 = vcmask 519168   ;;  %vm10647_vm1 = vcmask 516096   ;;  %s26465_s1 = inlined_call_operand.vmem [shape: bf16[4,1664,320], index: 1, kind: input, shape index: {}]   ;;  %s26466_s0 = inlined_call_operand.vmem [shape: bf16[10,1664], index: 0, kind: input, shape index: {}]   ;;  %s26467_s2 = inlined_call_operand.vmem [shape: f32[1,320], index: 2, kind: input, shape index: {}]   ;;  %s26468_s3 = inlined_call_operand.vmem [shape: bf16[10,320], index: 3, kind: output, shape index: {}]  }
   0x1   :  { %v10791_v0 = vld [vmem:[%s26465_s1 + $0xa8] sm:$0xf]  ;;  %v16980_v1 = vld [vmem:[%s26465_s1 + $0xb0] sm:$0xf0]  ;;  %v10779_v11 = vld [vmem:[%s26465_s1 + $0x90] sm:$0xf] }
   0x2   :  { %v10887_v2 = vld [vmem:[%s26465_s1 + $0x168] sm:$0xf]  ;;  %v10792_v3 = vor.u32 %v16980_v1, %v10791_v0  ;;  %v17004_v4 = vld [vmem:[%s26465_s1 + $0x170] sm:$0xf0]  ;;  %v16977_v13 = vld [vmem:[%s26465_s1 + $0x98] sm:$0xf0] }
   0x3   :  { %v10983_v5 = vld [vmem:[%s26465_s1 + $0x228] sm:$0xf]  ;;  %v17028_v6 = vld [vmem:[%s26465_s1 + $0x230] sm:$0xf0]  ;;  %v10888_v7 = vor.u32 %v17004_v4, %v10887_v2  ;;  %v10875_v14 = vld [vmem:[%s26465_s1 + $0x150] sm:$0xf]  ;;  %v10780_v16 = vor.u32 %v16977_v13, %v10779_v11 }
   0x4   :  { %v10984_v8 = vor.u32 %v17028_v6, %v10983_v5  ;;  %v11079_v9 = vld [vmem:[%s26465_s1 + $0x2e8] sm:$0xf]  ;;  %v17052_v10 = vld [vmem:[%s26465_s1 + $0x2f0] sm:$0xf0]  ;;  %2174 = vmatpush.bf16.msra.mxu0 %v10792_v3  ;;  %v17001_v15 = vld [vmem:[%s26465_s1 + $0x158] sm:$0xf0] }
   0x5   :  { %v11080_v12 = vor.u32 %v17052_v10, %v11079_v9  ;;  %2188 = vmatpush.bf16.msra.mxu1 %v10888_v7  ;;  %v10876_v17 = vor.u32 %v17001_v15, %v10875_v14  ;;  %v10971_v18 = vld [vmem:[%s26465_s1 + $0x210] sm:$0xf]  ;;  %v17025_v19 = vld [vmem:[%s26465_s1 + $0x218] sm:$0xf0]  ;;  %v10767_v23 = vld [vmem:[%s26465_s1 + $0x78] sm:$0xf] }
   0x6   :  { %2202 = vmatpush.bf16.msra.mxu2 %v10984_v8  ;;  %v11067_v20 = vld [vmem:[%s26465_s1 + $0x2d0] sm:$0xf]  ;;  %v10972_v21 = vor.u32 %v17025_v19, %v10971_v18  ;;  %v17049_v22 = vld [vmem:[%s26465_s1 + $0x2d8] sm:$0xf0]  ;;  %v16974_v24 = vld [vmem:[%s26465_s1 + $0x80] sm:$0xf0] }
   0x7   :  { %2216 = vmatpush.bf16.msra.mxu3 %v11080_v12  ;;  %v11068_v25 = vor.u32 %v17049_v22, %v11067_v20  ;;  %v10863_v26 = vld [vmem:[%s26465_s1 + $0x138] sm:$0xf]  ;;  %v16998_v27 = vld [vmem:[%s26465_s1 + $0x140] sm:$0xf0]  ;;  %v10768_v29 = vor.u32 %v16974_v24, %v10767_v23  ;;  %v10755_v35 = vld [vmem:[%s26465_s1 + $0x60] sm:$0xf] }
   0x8   :  { %v10959_v28 = vld [vmem:[%s26465_s1 + $0x1f8] sm:$0xf]  ;;  %2175 = vmatpush.bf16.msra.mxu0 %v10780_v16  ;;  %v17022_v30 = vld [vmem:[%s26465_s1 + $0x200] sm:$0xf0]  ;;  %v10864_v33 = vor.u32 %v16998_v27, %v10863_v26  ;;  %v16971_v36 = vld [vmem:[%s26465_s1 + $0x68] sm:$0xf0] }
   0x9   :  { %v11055_v31 = vld [vmem:[%s26465_s1 + $0x2b8] sm:$0xf]  ;;  %v17046_v32 = vld [vmem:[%s26465_s1 + $0x2c0] sm:$0xf0]  ;;  %2189 = vmatpush.bf16.msra.mxu1 %v10876_v17  ;;  %v10960_v34 = vor.u32 %v17022_v30, %v10959_v28  ;;  %v10851_v37 = vld [vmem:[%s26465_s1 + $0x120] sm:$0xf]  ;;  %v10756_v44 = vor.u32 %v16971_v36, %v10755_v35 }
   0xa   :  { %2203 = vmatpush.bf16.msra.mxu2 %v10972_v21  ;;  %v11056_v38 = vor.u32 %v17046_v32, %v11055_v31  ;;  %v16995_v39 = vld [vmem:[%s26465_s1 + $0x128] sm:$0xf0]  ;;  %v10947_v40 = vld [vmem:[%s26465_s1 + $0x1e0] sm:$0xf]  ;;  %v10743_v47 = vld [vmem:[%s26465_s1 + $0x48] sm:$0xf] }
   0xb   :  { %2217 = vmatpush.bf16.msra.mxu3 %v11068_v25  ;;  %v17019_v41 = vld [vmem:[%s26465_s1 + $0x1e8] sm:$0xf0]  ;;  %v11043_v42 = vld [vmem:[%s26465_s1 + $0x2a0] sm:$0xf]  ;;  %v10852_v45 = vor.u32 %v16995_v39, %v10851_v37  ;;  %v16968_v48 = vld [vmem:[%s26465_s1 + $0x50] sm:$0xf0] }
   0xc   :  { %v17043_v43 = vld [vmem:[%s26465_s1 + $0x2a8] sm:$0xf0]  ;;  %2176 = vmatpush.bf16.msra.mxu0 %v10768_v29  ;;  %v10948_v46 = vor.u32 %v17019_v41, %v10947_v40  ;;  %v10839_v49 = vld [vmem:[%s26465_s1 + $0x108] sm:$0xf]  ;;  %v16992_v51 = vld [vmem:[%s26465_s1 + $0x110] sm:$0xf0]  ;;  %v10744_v56 = vor.u32 %v16968_v48, %v10743_v47 }
   0xd   :  { %2190 = vmatpush.bf16.msra.mxu1 %v10864_v33  ;;  %v11044_v50 = vor.u32 %v17043_v43, %v11043_v42  ;;  %v10935_v52 = vld [vmem:[%s26465_s1 + $0x1c8] sm:$0xf]  ;;  %v17016_v53 = vld [vmem:[%s26465_s1 + $0x1d0] sm:$0xf0]  ;;  %v10840_v57 = vor.u32 %v16992_v51, %v10839_v49  ;;  %v10731_v59 = vld [vmem:[%s26465_s1 + $0x30] sm:$0xf] }
   0xe   :  { %2204 = vmatpush.bf16.msra.mxu2 %v10960_v34  ;;  %v11031_v54 = vld [vmem:[%s26465_s1 + $0x288] sm:$0xf]  ;;  %v17040_v55 = vld [vmem:[%s26465_s1 + $0x290] sm:$0xf0]  ;;  %v10936_v58 = vor.u32 %v17016_v53, %v10935_v52  ;;  %v16965_v60 = vld [vmem:[%s26465_s1 + $0x38] sm:$0xf0] }
   0xf   :  { %2218 = vmatpush.bf16.msra.mxu3 %v11056_v38  ;;  %v10827_v61 = vld [vmem:[%s26465_s1 + $0xf0] sm:$0xf]  ;;  %v11032_v62 = vor.u32 %v17040_v55, %v11031_v54  ;;  %v16989_v63 = vld [vmem:[%s26465_s1 + $0xf8] sm:$0xf0]  ;;  %v10732_v4 = vor.u32 %v16965_v60, %v10731_v59  ;;  %v10719_v7 = vld [vmem:[%s26465_s1 + $0x18] sm:$0xf] }
  0x10   :  { %2177 = vmatpush.bf16.msra.mxu0 %v10756_v44  ;;  %v10923_v0 = vld [vmem:[%s26465_s1 + $0x1b0] sm:$0xf]  ;;  %v17013_v1 = vld [vmem:[%s26465_s1 + $0x1b8] sm:$0xf0]  ;;  %v10828_v5 = vor.u32 %v16989_v63, %v10827_v61  ;;  %v16962_v8 = vld [vmem:[%s26465_s1 + $0x20] sm:$0xf0] }
  0x11   :  { %2191 = vmatpush.bf16.msra.mxu1 %v10852_v45  ;;  %v11019_v2 = vld [vmem:[%s26465_s1 + $0x270] sm:$0xf]  ;;  %v17037_v3 = vld [vmem:[%s26465_s1 + $0x278] sm:$0xf0]  ;;  %v10924_v6 = vor.u32 %v17013_v1, %v10923_v0  ;;  %v10815_v9 = vld [vmem:[%s26465_s1 + $0xd8] sm:$0xf]  ;;  %v10720_v16 = vor.u32 %v16962_v8, %v10719_v7 }
  0x12   :  { %2205 = vmatpush.bf16.msra.mxu2 %v10948_v46  ;;  %v11020_v10 = vor.u32 %v17037_v3, %v11019_v2  ;;  %v16986_v11 = vld [vmem:[%s26465_s1 + $0xe0] sm:$0xf0]  ;;  %v10911_v12 = vld [vmem:[%s26465_s1 + $0x198] sm:$0xf]  ;;  %v10707_v17 = vld [vmem:[%s26465_s1] sm:$0xf] }
  0x13   :  { %2219 = vmatpush.bf16.msra.mxu3 %v11044_v50  ;;  %v17010_v13 = vld [vmem:[%s26465_s1 + $0x1a0] sm:$0xf0]  ;;  %v11007_v14 = vld [vmem:[%s26465_s1 + $0x258] sm:$0xf]  ;;  %v16959_v18 = vld [vmem:[%s26465_s1 + $0x8] sm:$0xf0]  ;;  %v10816_v19 = vor.u32 %v16986_v11, %v10815_v9 }
  0x14   :  { %2178 = vmatpush.bf16.msra.mxu0 %v10744_v56  ;;  %v17034_v15 = vld [vmem:[%s26465_s1 + $0x260] sm:$0xf0]  ;;  %v10912_v20 = vor.u32 %v17010_v13, %v10911_v12  ;;  %v10803_v21 = vld [vmem:[%s26465_s1 + $0xc0] sm:$0xf]  ;;  %v16983_v22 = vld [vmem:[%s26465_s1 + $0xc8] sm:$0xf0]  ;;  %v10708_v31 = vor.u32 %v16959_v18, %v10707_v17 }
  0x15   :  { %2192 = vmatpush.bf16.msra.mxu1 %v10840_v57  ;;  %v10899_v23 = vld [vmem:[%s26465_s1 + $0x180] sm:$0xf]  ;;  %v11008_v24 = vor.u32 %v17034_v15, %v11007_v14  ;;  %v17007_v25 = vld [vmem:[%s26465_s1 + $0x188] sm:$0xf0]  ;;  %v11175_v28 = vld [vmem:[%s26465_s1 + $0x3a8] sm:$0xf]  ;;  %v10804_v35 = vor.u32 %v16983_v22, %v10803_v21 }
  0x16   :  { %2206 = vmatpush.bf16.msra.mxu2 %v10936_v58  ;;  %v10995_v26 = vld [vmem:[%s26465_s1 + $0x240] sm:$0xf]  ;;  %v17031_v27 = vld [vmem:[%s26465_s1 + $0x248] sm:$0xf0]  ;;  %v17076_v29 = vld [vmem:[%s26465_s1 + $0x3b0] sm:$0xf0]  ;;  %v10900_v36 = vor.u32 %v17007_v25, %v10899_v23 }
  0x17   :  { %2220 = vmatpush.bf16.msra.mxu3 %v11032_v62  ;;  %v11271_v30 = vld [vmem:[%s26465_s1 + $0x468] sm:$0xf]  ;;  %v17100_v32 = vld [vmem:[%s26465_s1 + $0x470] sm:$0xf0]  ;;  %v10996_v39 = vor.u32 %v17031_v27, %v10995_v26  ;;  %v11176_v40 = vor.u32 %v17076_v29, %v11175_v28  ;;  %v11163_v41 = vld [vmem:[%s26465_s1 + $0x390] sm:$0xf] }
  0x18   :  { %2179 = vmatpush.bf16.msra.mxu0 %v10732_v4  ;;  %v11367_v33 = vld [vmem:[%s26465_s1 + $0x528] sm:$0xf]  ;;  %v17124_v34 = vld [vmem:[%s26465_s1 + $0x530] sm:$0xf0]  ;;  %v17073_v42 = vld [vmem:[%s26465_s1 + $0x398] sm:$0xf0]  ;;  %v11272_v43 = vor.u32 %v17100_v32, %v11271_v30 }
  0x19   :  { %2193 = vmatpush.bf16.msra.mxu1 %v10828_v5  ;;  %v11463_v37 = vld [vmem:[%s26465_s1 + $0x5e8] sm:$0xf]  ;;  %v17148_v38 = vld [vmem:[%s26465_s1 + $0x5f0] sm:$0xf0]  ;;  %v11368_v44 = vor.u32 %v17124_v34, %v11367_v33  ;;  %v11259_v45 = vld [vmem:[%s26465_s1 + $0x450] sm:$0xf]  ;;  %v11164_v55 = vor.u32 %v17073_v42, %v11163_v41 }
  0x1a   :  { %2207 = vmatpush.bf16.msra.mxu2 %v10924_v6  ;;  %v17097_v46 = vld [vmem:[%s26465_s1 + $0x458] sm:$0xf0]  ;;  %v11355_v47 = vld [vmem:[%s26465_s1 + $0x510] sm:$0xf]  ;;  %v11464_v48 = vor.u32 %v17148_v38, %v11463_v37  ;;  %v10655_v52 = vld [vmem:[%s26466_s0] sm:$0xf] }
  0x1b   :  { %2221 = vmatpush.bf16.msra.mxu3 %v11020_v10  ;;  %v17121_v49 = vld [vmem:[%s26465_s1 + $0x518] sm:$0xf0]  ;;  %v11451_v50 = vld [vmem:[%s26465_s1 + $0x5d0] sm:$0xf]  ;;  %v16951_v53 = vld [vmem:[%s26466_s0 + $0x30] sm:$0x10]  ;;  %v11260_v60 = vor.u32 %v17097_v46, %v11259_v45 }
  0x1c   :  { %2180 = vmatpush.bf16.msra.mxu0 %v10720_v16  ;;  %v17145_v51 = vld [vmem:[%s26465_s1 + $0x5d8] sm:$0xf0]  ;;  %v10663_v54 = vld [vmem:[%s26466_s0 + $0x8] sm:$0xf]  ;;  %v11151_v56 = vld [vmem:[%s26465_s1 + $0x378] sm:$0xf]  ;;  %v18481_v58 = vor.u32 %v16951_v53, %v10655_v52  ;;  %v11356_v61 = vor.u32 %v17121_v49, %v11355_v47 }
  0x1d   :  { %2194 = vmatpush.bf16.msra.mxu1 %v10816_v19  ;;  %v17070_v57 = vld [vmem:[%s26465_s1 + $0x380] sm:$0xf0]  ;;  %v16952_v59 = vld [vmem:[%s26466_s0 + $0x38] sm:$0x10]  ;;  %v11247_v62 = vld [vmem:[%s26465_s1 + $0x438] sm:$0xf]  ;;  %v11452_v2 = vor.u32 %v17145_v51, %v11451_v50 }
  0x1e   :  { %2208 = vmatpush.bf16.msra.mxu2 %v10912_v20  ;;  %v17094_v63 = vld [vmem:[%s26465_s1 + $0x440] sm:$0xf0]  ;;  %v11343_v0 = vld [vmem:[%s26465_s1 + $0x4f8] sm:$0xf]  ;;  %v18495_v1 = vor.u32 %v16952_v59, %v10663_v54  ;;  %v16946_v8 = vld [vmem:[%s26466_s0 + $0xc] sm:$0xf]  ;;  %v11152_v9 = vor.u32 %v17070_v57, %v11151_v56 }
  0x1f   :  { %2222 = vmatpush.bf16.msra.mxu3 %v11008_v24  ;;  %v17118_v3 = vld [vmem:[%s26465_s1 + $0x500] sm:$0xf0]  ;;  %v11439_v4 = vld [vmem:[%s26465_s1 + $0x5b8] sm:$0xf]  ;;  %v10665_v11 = vld [vmem:[%s26466_s0 + $0x3c] sm:$0x10]  ;;  %v11248_v12 = vor.u32 %v17094_v63, %v11247_v62 }
  0x20   :  { %2181 = vmatpush.bf16.msra.mxu0 %v10708_v31  ;;  %v17142_v5 = vld [vmem:[%s26465_s1 + $0x5c0] sm:$0xf0]  ;;  %v10657_v7 = vld [vmem:[%s26466_s0 + $0x34] sm:$0x10]  ;;  %v11344_v13 = vor.u32 %v17118_v3, %v11343_v0  ;;  %v11139_v14 = vld [vmem:[%s26465_s1 + $0x360] sm:$0xf]  ;;  %v18531_v17 = vor.u32 %v16946_v8, %v10665_v11 }
  0x21   :  { %2195 = vmatpush.bf16.msra.mxu1 %v10804_v35  ;;  %v16945_v6 = vld [vmem:[%s26466_s0 + $0x4] sm:$0xf]  ;;  %v17067_v15 = vld [vmem:[%s26465_s1 + $0x368] sm:$0xf0]  ;;  %v11235_v16 = vld [vmem:[%s26465_s1 + $0x420] sm:$0xf]  ;;  %v11440_v18 = vor.u32 %v17142_v5, %v11439_v4 }
  0x22   :  { %2209 = vmatpush.bf16.msra.mxu2 %v10900_v36  ;;  %v18517_v10 = vor.u32 %v16945_v6, %v10657_v7  ;;  %v17091_v19 = vld [vmem:[%s26465_s1 + $0x428] sm:$0xf0]  ;;  %v11331_v20 = vld [vmem:[%s26465_s1 + $0x4e0] sm:$0xf]  ;;  %v11140_v24 = vor.u32 %v17067_v15, %v11139_v14  ;;  %v11127_v27 = vld [vmem:[%s26465_s1 + $0x348] sm:$0xf] }
  0x23   :  { %2223 = vmatpush.bf16.msra.mxu3 %v10996_v39  ;;  %2182 = vmatmul.bf16.vlgmr.msra.gmra.mxu0 %v18481_v58  ;;  %v17115_v21 = vld [vmem:[%s26465_s1 + $0x4e8] sm:$0xf0]  ;;  %v11427_v22 = vld [vmem:[%s26465_s1 + $0x5a0] sm:$0xf]  ;;  %v11236_v25 = vor.u32 %v17091_v19, %v11235_v16  ;;  %v17064_v28 = vld [vmem:[%s26465_s1 + $0x350] sm:$0xf0] }
  0x24   :  { %2230 = vmatpush.bf16.msrb.mxu0 %v11176_v40  ;;  %2196 = vmatmul.bf16.vlgmr.msra.gmra.mxu1 %v18517_v10  ;;  %v17139_v23 = vld [vmem:[%s26465_s1 + $0x5a8] sm:$0xf0]  ;;  %v11332_v26 = vor.u32 %v17115_v21, %v11331_v20  ;;  %v11223_v29 = vld [vmem:[%s26465_s1 + $0x408] sm:$0xf]  ;;  %v17088_v31 = vld [vmem:[%s26465_s1 + $0x410] sm:$0xf0]  ;;  %v11128_v36 = vor.u32 %v17064_v28, %v11127_v27 }
  0x25   :  { %2244 = vmatpush.bf16.msrb.mxu1 %v11272_v43  ;;  %2210 = vmatmul.bf16.vlgmr.msra.gmra.mxu2 %v18495_v1  ;;  %v11428_v30 = vor.u32 %v17139_v23, %v11427_v22  ;;  %v11319_v32 = vld [vmem:[%s26465_s1 + $0x4c8] sm:$0xf]  ;;  %v17112_v33 = vld [vmem:[%s26465_s1 + $0x4d0] sm:$0xf0]  ;;  %v11224_v37 = vor.u32 %v17088_v31, %v11223_v29  ;;  %v11115_v39 = vld [vmem:[%s26465_s1 + $0x330] sm:$0xf] }
  0x26   :  { %2258 = vmatpush.bf16.msrb.mxu2 %v11368_v44  ;;  %2224 = vmatmul.bf16.vlgmr.msra.gmra.mxu3 %v18531_v17  ;;  %v11415_v34 = vld [vmem:[%s26465_s1 + $0x588] sm:$0xf]  ;;  %v17136_v35 = vld [vmem:[%s26465_s1 + $0x590] sm:$0xf0]  ;;  %v11320_v38 = vor.u32 %v17112_v33, %v11319_v32  ;;  %v17061_v40 = vld [vmem:[%s26465_s1 + $0x338] sm:$0xf0] }
  0x27   :  { %2272 = vmatpush.bf16.msrb.mxu3 %v11464_v48  ;;  %v11211_v41 = vld [vmem:[%s26465_s1 + $0x3f0] sm:$0xf]  ;;  %v11416_v42 = vor.u32 %v17136_v35, %v11415_v34  ;;  %v17085_v43 = vld [vmem:[%s26465_s1 + $0x3f8] sm:$0xf0]  ;;  %v11116_v48 = vor.u32 %v17061_v40, %v11115_v39  ;;  %v11103_v49 = vld [vmem:[%s26465_s1 + $0x318] sm:$0xf] }
  0x28   :  { %2231 = vmatpush.bf16.msrb.mxu0 %v11164_v55  ;;  %v11307_v44 = vld [vmem:[%s26465_s1 + $0x4b0] sm:$0xf]  ;;  %v17109_v45 = vld [vmem:[%s26465_s1 + $0x4b8] sm:$0xf0]  ;;  %v11212_v50 = vor.u32 %v17085_v43, %v11211_v41  ;;  %v17058_v52 = vld [vmem:[%s26465_s1 + $0x320] sm:$0xf0] }
  0x29   :  { %2245 = vmatpush.bf16.msrb.mxu1 %v11260_v60  ;;  %v11403_v46 = vld [vmem:[%s26465_s1 + $0x570] sm:$0xf]  ;;  %v17133_v47 = vld [vmem:[%s26465_s1 + $0x578] sm:$0xf0]  ;;  %v11308_v51 = vor.u32 %v17109_v45, %v11307_v44  ;;  %v11199_v53 = vld [vmem:[%s26465_s1 + $0x3d8] sm:$0xf]  ;;  %v11104_v63 = vor.u32 %v17058_v52, %v11103_v49 }
  0x2a   :  { %2259 = vmatpush.bf16.msrb.mxu2 %v11356_v61  ;;  %v17082_v54 = vld [vmem:[%s26465_s1 + $0x3e0] sm:$0xf0]  ;;  %v11404_v55 = vor.u32 %v17133_v47, %v11403_v46  ;;  %v11295_v56 = vld [vmem:[%s26465_s1 + $0x498] sm:$0xf]  ;;  %v11091_v61 = vld [vmem:[%s26465_s1 + $0x300] sm:$0xf] }
  0x2b   :  { %2273 = vmatpush.bf16.msrb.mxu3 %v11452_v2  ;;  %v17106_v57 = vld [vmem:[%s26465_s1 + $0x4a0] sm:$0xf0]  ;;  %v11391_v59 = vld [vmem:[%s26465_s1 + $0x558] sm:$0xf]  ;;  %v17055_v62 = vld [vmem:[%s26465_s1 + $0x308] sm:$0xf0]  ;;  %v11200_v5 = vor.u32 %v17082_v54, %v11199_v53 }
  0x2c   :  { %2232 = vmatpush.bf16.msrb.mxu0 %v11152_v9  ;;  %v17130_v60 = vld [vmem:[%s26465_s1 + $0x560] sm:$0xf0]  ;;  %v11187_v0 = vld [vmem:[%s26465_s1 + $0x3c0] sm:$0xf]  ;;  %v17079_v2 = vld [vmem:[%s26465_s1 + $0x3c8] sm:$0xf0]  ;;  %v11296_v6 = vor.u32 %v17106_v57, %v11295_v56  ;;  %v11092_v19 = vor.u32 %v17055_v62, %v11091_v61 }
  0x2d   :  { %2246 = vmatpush.bf16.msrb.mxu1 %v11248_v12  ;;  %v11283_v3 = vld [vmem:[%s26465_s1 + $0x480] sm:$0xf]  ;;  %v17103_v4 = vld [vmem:[%s26465_s1 + $0x488] sm:$0xf0]  ;;  %v11559_v9 = vld [vmem:[%s26465_s1 + $0x6a8] sm:$0xf]  ;;  %v11392_v11 = vor.u32 %v17130_v60, %v11391_v59  ;;  %v11188_v23 = vor.u32 %v17079_v2, %v11187_v0 }
  0x2e   :  { %2260 = vmatpush.bf16.msrb.mxu2 %v11344_v13  ;;  %v11379_v7 = vld [vmem:[%s26465_s1 + $0x540] sm:$0xf]  ;;  %v17127_v8 = vld [vmem:[%s26465_s1 + $0x548] sm:$0xf0]  ;;  %v17172_v12 = vld [vmem:[%s26465_s1 + $0x6b0] sm:$0xf0] }
  0x2f   :  { %2274 = vmatpush.bf16.msrb.mxu3 %v11440_v18  ;;  %v11655_v13 = vld [vmem:[%s26465_s1 + $0x768] sm:$0xf]  ;;  %v17196_v14 = vld [vmem:[%s26465_s1 + $0x770] sm:$0xf0]  ;;  %v10671_v21 = vld [vmem:[%s26466_s0 + $0x10] sm:$0xf]  ;;  %v11380_v28 = vor.u32 %v17127_v8, %v11379_v7  ;;  %v11560_v29 = vor.u32 %v17172_v12, %v11559_v9 }
  0x30   :  { %2233 = vmatpush.bf16.msrb.mxu0 %v11140_v24  ;;  %v11751_v15 = vld [vmem:[%s26465_s1 + $0x828] sm:$0xf]  ;;  %v17220_v16 = vld [vmem:[%s26465_s1 + $0x830] sm:$0xf0]  ;;  %v16953_v22 = vld [vmem:[%s26466_s0 + $0x40] sm:$0x10]  ;;  %v11284_v24 = vor.u32 %v17103_v4, %v11283_v3  ;;  %v11656_v33 = vor.u32 %v17196_v14, %v11655_v13 }
  0x31   :  { %2247 = vmatpush.bf16.msrb.mxu1 %v11236_v25  ;;  %v11847_v18 = vld [vmem:[%s26465_s1 + $0x8e8] sm:$0xf]  ;;  %v17244_v20 = vld [vmem:[%s26465_s1 + $0x8f0] sm:$0xf0]  ;;  %v10679_v25 = vld [vmem:[%s26466_s0 + $0x18] sm:$0xf]  ;;  %v11752_v34 = vor.u32 %v17220_v16, %v11751_v15  ;;  %v18703_v39 = vor.u32 %v16953_v22, %v10671_v21 }
  0x32   :  { %2261 = vmatpush.bf16.msrb.mxu2 %v11332_v26  ;;  %v16954_v26 = vld [vmem:[%s26466_s0 + $0x48] sm:$0x10]  ;;  %v16947_v27 = vld [vmem:[%s26466_s0 + $0x14] sm:$0xf]  ;;  %v16948_v31 = vld [vmem:[%s26466_s0 + $0x1c] sm:$0xf] }
  0x33   :  { %2275 = vmatpush.bf16.msrb.mxu3 %v11428_v30  ;;  %v10673_v30 = vld [vmem:[%s26466_s0 + $0x44] sm:$0x10]  ;;  %v10681_v32 = vld [vmem:[%s26466_s0 + $0x4c] sm:$0x10]  ;;  %v17193_v40 = vld [vmem:[%s26465_s1 + $0x758] sm:$0xf0]  ;;  %v18714_v43 = vor.u32 %v16954_v26, %v10679_v25 }
  0x34   :  { %2234 = vmatpush.bf16.msrb.mxu0 %v11128_v36  ;;  %v11547_v35 = vld [vmem:[%s26465_s1 + $0x690] sm:$0xf]  ;;  %v17169_v36 = vld [vmem:[%s26465_s1 + $0x698] sm:$0xf0]  ;;  %v18716_v44 = vor.u32 %v16947_v27, %v10673_v30  ;;  %v18724_v47 = vor.u32 %v16948_v31, %v10681_v32  ;;  %v17166_v52 = vld [vmem:[%s26465_s1 + $0x680] sm:$0xf0] }
  0x35   :  { %2248 = vmatpush.bf16.msrb.mxu1 %v11224_v37  ;;  %v11643_v37 = vld [vmem:[%s26465_s1 + $0x750] sm:$0xf]  ;;  %v17241_v46 = vld [vmem:[%s26465_s1 + $0x8d8] sm:$0xf0]  ;;  %v11631_v53 = vld [vmem:[%s26465_s1 + $0x738] sm:$0xf] }
  0x36   :  { %2262 = vmatpush.bf16.msrb.mxu2 %v11320_v38  ;;  %v11848_v38 = vor.u32 %v17244_v20, %v11847_v18  ;;  %v11739_v41 = vld [vmem:[%s26465_s1 + $0x810] sm:$0xf]  ;;  %v11644_v49 = vor.u32 %v17193_v40, %v11643_v37  ;;  %v11727_v56 = vld [vmem:[%s26465_s1 + $0x7f8] sm:$0xf]  ;;  %v17214_v57 = vld [vmem:[%s26465_s1 + $0x800] sm:$0xf0] }
  0x37   :  { %2276 = vmatpush.bf16.msrb.mxu3 %v11416_v42  ;;  %v17217_v42 = vld [vmem:[%s26465_s1 + $0x818] sm:$0xf0]  ;;  %v11835_v45 = vld [vmem:[%s26465_s1 + $0x8d0] sm:$0xf]  ;;  %v11823_v59 = vld [vmem:[%s26465_s1 + $0x8b8] sm:$0xf] }
  0x38   :  { %2235 = vmatpush.bf16.msrb.mxu0 %v11116_v48  ;;  %v11548_v48 = vor.u32 %v17169_v36, %v11547_v35  ;;  %v11836_v54 = vor.u32 %v17241_v46, %v11835_v45  ;;  %v17238_v60 = vld [vmem:[%s26465_s1 + $0x8c0] sm:$0xf0]  ;;  %v11523_v0 = vld [vmem:[%s26465_s1 + $0x660] sm:$0xf]  ;;  %v17163_v2 = vld [vmem:[%s26465_s1 + $0x668] sm:$0xf0] }
  0x39   :  { %2249 = vmatpush.bf16.msrb.mxu1 %v11212_v50  ;;  %v11740_v50 = vor.u32 %v17217_v42, %v11739_v41  ;;  %v11619_v3 = vld [vmem:[%s26465_s1 + $0x720] sm:$0xf]  ;;  %v11824_v4 = vor.u32 %v17238_v60, %v11823_v59  ;;  %v17211_v7 = vld [vmem:[%s26465_s1 + $0x7e8] sm:$0xf0]  ;;  %v11511_v14 = vld [vmem:[%s26465_s1 + $0x648] sm:$0xf] }
  0x3a   :  { %2263 = vmatpush.bf16.msrb.mxu2 %v11308_v51  ;;  %v11535_v51 = vld [vmem:[%s26465_s1 + $0x678] sm:$0xf]  ;;  %v11811_v8 = vld [vmem:[%s26465_s1 + $0x8a0] sm:$0xf]  ;;  %v17235_v9 = vld [vmem:[%s26465_s1 + $0x8a8] sm:$0xf0] }
  0x3b   :  { %2277 = vmatpush.bf16.msrb.mxu3 %v11404_v55  ;;  %v17190_v55 = vld [vmem:[%s26465_s1 + $0x740] sm:$0xf0]  ;;  %v11536_v61 = vor.u32 %v17166_v52, %v11535_v51  ;;  %v17160_v15 = vld [vmem:[%s26465_s1 + $0x650] sm:$0xf0]  ;;  %v11607_v16 = vld [vmem:[%s26465_s1 + $0x708] sm:$0xf]  ;;  %v11812_v18 = vor.u32 %v17235_v9, %v11811_v8 }
  0x3c   :  { %2236 = vmatpush.bf16.msrb.mxu0 %v11104_v63  ;;  %v11632_v62 = vor.u32 %v17190_v55, %v11631_v53  ;;  %v11728_v63 = vor.u32 %v17214_v57, %v11727_v56  ;;  %v11703_v20 = vld [vmem:[%s26465_s1 + $0x7c8] sm:$0xf]  ;;  %v17208_v21 = vld [vmem:[%s26465_s1 + $0x7d0] sm:$0xf0]  ;;  %v11499_v27 = vld [vmem:[%s26465_s1 + $0x630] sm:$0xf] }
  0x3d   :  { %2250 = vmatpush.bf16.msrb.mxu1 %v11200_v5  ;;  %v17187_v5 = vld [vmem:[%s26465_s1 + $0x728] sm:$0xf0]  ;;  %v11799_v22 = vld [vmem:[%s26465_s1 + $0x888] sm:$0xf]  ;;  %v11704_v26 = vor.u32 %v17208_v21, %v11703_v20  ;;  %v17181_v31 = vld [vmem:[%s26465_s1 + $0x6f8] sm:$0xf0] }
  0x3e   :  { %2264 = vmatpush.bf16.msrb.mxu2 %v11296_v6  ;;  %v11715_v6 = vld [vmem:[%s26465_s1 + $0x7e0] sm:$0xf]  ;;  %v11620_v12 = vor.u32 %v17187_v5, %v11619_v3  ;;  %v11691_v32 = vld [vmem:[%s26465_s1 + $0x7b0] sm:$0xf]  ;;  %v17229_v35 = vld [vmem:[%s26465_s1 + $0x878] sm:$0xf0] }
  0x3f   :  { %2278 = vmatpush.bf16.msrb.mxu3 %v11392_v11  ;;  %v11524_v11 = vor.u32 %v17163_v2, %v11523_v0  ;;  %v11716_v13 = vor.u32 %v17211_v7, %v11715_v6  ;;  %v11487_v37 = vld [vmem:[%s26465_s1 + $0x618] sm:$0xf]  ;;  %v17154_v41 = vld [vmem:[%s26465_s1 + $0x620] sm:$0xf0]  ;;  %v11475_v52 = vld [vmem:[%s26465_s1 + $0x600] sm:$0xf] }
  0x40   :  { %2237 = vmatpush.bf16.msrb.mxu0 %v11092_v19  ;;  %v17184_v19 = vld [vmem:[%s26465_s1 + $0x710] sm:$0xf0]  ;;  %v11583_v42 = vld [vmem:[%s26465_s1 + $0x6d8] sm:$0xf]  ;;  %v17178_v45 = vld [vmem:[%s26465_s1 + $0x6e0] sm:$0xf0] }
  0x41   :  { %2251 = vmatpush.bf16.msrb.mxu1 %v11188_v23  ;;  %v17232_v23 = vld [vmem:[%s26465_s1 + $0x890] sm:$0xf0]  ;;  %v11608_v25 = vor.u32 %v17184_v19, %v11607_v16  ;;  %v17226_v51 = vld [vmem:[%s26465_s1 + $0x860] sm:$0xf0]  ;;  %v17151_v53 = vld [vmem:[%s26465_s1 + $0x608] sm:$0xf0]  ;;  %v11584_v60 = vor.u32 %v17178_v45, %v11583_v42 }
  0x42   :  { %2265 = vmatpush.bf16.msrb.mxu2 %v11284_v24  ;;  %v11512_v24 = vor.u32 %v17160_v15, %v11511_v14  ;;  %v11800_v30 = vor.u32 %v17232_v23, %v11799_v22  ;;  %v11571_v55 = vld [vmem:[%s26465_s1 + $0x6c0] sm:$0xf]  ;;  %v17175_v56 = vld [vmem:[%s26465_s1 + $0x6c8] sm:$0xf0]  ;;  %v11943_v0 = vld [vmem:[%s26465_s1 + $0x9a8] sm:$0xf]  ;;  %v11476_v9 = vor.u32 %v17151_v53, %v11475_v52 }
  0x43   :  { %2279 = vmatpush.bf16.msrb.mxu3 %v11380_v28  ;;  %2238 = vmatmul.bf16.vlgmr.msrb.gmra.mxu0 %v18703_v39  ;;  %v17157_v28 = vld [vmem:[%s26465_s1 + $0x638] sm:$0xf0]  ;;  %v11667_v57 = vld [vmem:[%s26465_s1 + $0x780] sm:$0xf]  ;;  %v17199_v59 = vld [vmem:[%s26465_s1 + $0x788] sm:$0xf0]  ;;  %v11572_v14 = vor.u32 %v17175_v56, %v11571_v55 }
  0x44   :  { %2286 = vmatpush.bf16.msra.mxu0 %v11560_v29  ;;  %2252 = vmatmul.bf16.vlgmr.msrb.gmra.mxu1 %v18716_v44  ;;  %v11595_v29 = vld [vmem:[%s26465_s1 + $0x6f0] sm:$0xf]  ;;  %v11500_v36 = vor.u32 %v17157_v28, %v11499_v27  ;;  %v17268_v3 = vld [vmem:[%s26465_s1 + $0x9b0] sm:$0xf0]  ;;  %v10793_v5 = vld [vmem:[%s26465_s1 + $0xb4] sm:$0xf0]  ;;  %v11668_v15 = vor.u32 %v17199_v59, %v11667_v57 }
  0x45   :  { %2300 = vmatpush.bf16.msra.mxu1 %v11656_v33  ;;  %2266 = vmatmul.bf16.vlgmr.msrb.gmra.mxu2 %v18714_v43  ;;  %v17205_v33 = vld [vmem:[%s26465_s1 + $0x7b8] sm:$0xf0]  ;;  %v17003_v6 = vld [vmem:[%s26465_s1 + $0x16c] sm:$0xf]  ;;  %v10889_v7 = vld [vmem:[%s26465_s1 + $0x174] sm:$0xf0]  ;;  %v11944_v21 = vor.u32 %v17268_v3, %v11943_v0 }
  0x46   :  { %2314 = vmatpush.bf16.msra.mxu2 %v11752_v34  ;;  %2280 = vmatmul.bf16.vlgmr.msrb.gmra.mxu3 %v18724_v47  ;;  %v11787_v34 = vld [vmem:[%s26465_s1 + $0x870] sm:$0xf]  ;;  %v11692_v40 = vor.u32 %v17205_v33, %v11691_v32  ;;  %v17027_v8 = vld [vmem:[%s26465_s1 + $0x22c] sm:$0xf]  ;;  %v10695_v16 = vld [vmem:[%s26466_s0 + $0x28] sm:$0xf] }
  0x47   :  { %2328 = vmatpush.bf16.msra.mxu3 %v11848_v38  ;;  %v11596_v38 = vor.u32 %v17181_v31, %v11595_v29  ;;  %v11788_v46 = vor.u32 %v17229_v35, %v11787_v34  ;;  %v16949_v19 = vld [vmem:[%s26466_s0 + $0x24] sm:$0xf]  ;;  %v10689_v22 = vld [vmem:[%s26466_s0 + $0x54] sm:$0x10]  ;;  %v16950_v23 = vld [vmem:[%s26466_s0 + $0x2c] sm:$0xf] }
  0x48   :  { %2287 = vmatpush.bf16.msra.mxu0 %v11548_v48  ;;  %v11679_v48 = vld [vmem:[%s26465_s1 + $0x798] sm:$0xf]  ;;  %v11931_v27 = vld [vmem:[%s26465_s1 + $0x990] sm:$0xf]  ;;  %v17265_v28 = vld [vmem:[%s26465_s1 + $0x998] sm:$0xf0] }
  0x49   :  { %2301 = vmatpush.bf16.msra.mxu1 %v11644_v49  ;;  %v17202_v49 = vld [vmem:[%s26465_s1 + $0x7a0] sm:$0xf0]  ;;  %v16976_v29 = vld [vmem:[%s26465_s1 + $0x94] sm:$0xf]  ;;  %v10781_v32 = vld [vmem:[%s26465_s1 + $0x9c] sm:$0xf0] }
  0x4a   :  { %2315 = vmatpush.bf16.msra.mxu2 %v11740_v50  ;;  %v11775_v50 = vld [vmem:[%s26465_s1 + $0x858] sm:$0xf]  ;;  %v17000_v33 = vld [vmem:[%s26465_s1 + $0x154] sm:$0xf]  ;;  %v10877_v34 = vld [vmem:[%s26465_s1 + $0x15c] sm:$0xf0]  ;;  %v10784_v42 = vor.u32 %v16976_v29, %v10781_v32 }
  0x4b   :  { %2329 = vmatpush.bf16.msra.mxu3 %v11836_v54  ;;  %v11488_v54 = vor.u32 %v17154_v41, %v11487_v37  ;;  %v11776_v2 = vor.u32 %v17226_v51, %v11775_v50  ;;  %v17024_v37 = vld [vmem:[%s26465_s1 + $0x214] sm:$0xf]  ;;  %v11932_v41 = vor.u32 %v17265_v28, %v11931_v27  ;;  %v10880_v45 = vor.u32 %v17000_v33, %v10877_v34  ;;  %v10769_v51 = vld [vmem:[%s26465_s1 + $0x84] sm:$0xf0]  ;;  %v16997_v52 = vld [vmem:[%s26465_s1 + $0x13c] sm:$0xf] }
  0x4c   :  { %2288 = vmatpush.bf16.msra.mxu0 %v11536_v61  ;;  %v11680_v61 = vor.u32 %v17202_v49, %v11679_v48  ;;  %v17262_v48 = vld [vmem:[%s26465_s1 + $0x980] sm:$0xf0]  ;;  %v16973_v49 = vld [vmem:[%s26465_s1 + $0x7c] sm:$0xf]  ;;  %v10865_v53 = vld [vmem:[%s26465_s1 + $0x144] sm:$0xf0] }
  0x4d   :  { %2302 = vmatpush.bf16.msra.mxu1 %v11632_v62  ;;  %v11763_v62 = vld [vmem:[%s26465_s1 + $0x840] sm:$0xf]  ;;  %v10961_v55 = vld [vmem:[%s26465_s1 + $0x204] sm:$0xf0]  ;;  %v10772_v57 = vor.u32 %v16973_v49, %v10769_v51  ;;  %v10868_v59 = vor.u32 %v16997_v52, %v10865_v53  ;;  %v10757_v0 = vld [vmem:[%s26465_s1 + $0x6c] sm:$0xf0] }
  0x4e   :  { %2316 = vmatpush.bf16.msra.mxu2 %v11728_v63  ;;  %v17223_v63 = vld [vmem:[%s26465_s1 + $0x848] sm:$0xf0]  ;;  %v10853_v3 = vld [vmem:[%s26465_s1 + $0x12c] sm:$0xf0]  ;;  %v10733_v27 = vld [vmem:[%s26465_s1 + $0x3c] sm:$0xf0] }
  0x4f   :  { %2330 = vmatpush.bf16.msra.mxu3 %v11824_v4  ;;  %v16979_v4 = vld [vmem:[%s26465_s1 + $0xac] sm:$0xf]  ;;  %v11764_v20 = vor.u32 %v17223_v63, %v11763_v62  ;;  %v16970_v62 = vld [vmem:[%s26465_s1 + $0x64] sm:$0xf]  ;;  %v16988_v28 = vld [vmem:[%s26465_s1 + $0xf4] sm:$0xf] }
  0x50   :  { %2289 = vmatpush.bf16.msra.mxu0 %v11524_v11  ;;  %v10985_v11 = vld [vmem:[%s26465_s1 + $0x234] sm:$0xf0]  ;;  %v10829_v29 = vld [vmem:[%s26465_s1 + $0xfc] sm:$0xf0]  ;;  %v10817_v49 = vld [vmem:[%s26465_s1 + $0xe4] sm:$0xf0] }
  0x51   :  { %2303 = vmatpush.bf16.msra.mxu1 %v11620_v12  ;;  %v10687_v12 = vld [vmem:[%s26466_s0 + $0x20] sm:$0xf]  ;;  %v10913_v51 = vld [vmem:[%s26465_s1 + $0x1a4] sm:$0xf0] }
  0x52   :  { %2317 = vmatpush.bf16.msra.mxu2 %v11716_v13  ;;  %v16955_v13 = vld [vmem:[%s26466_s0 + $0x50] sm:$0x10]  ;;  %v10925_v32 = vld [vmem:[%s26465_s1 + $0x1bc] sm:$0xf0] }
  0x53   :  { %2331 = vmatpush.bf16.msra.mxu3 %v11812_v18  ;;  %v16956_v18 = vld [vmem:[%s26466_s0 + $0x58] sm:$0x10]  ;;  %v18931_v31 = vor.u32 %v16955_v13, %v10687_v12  ;;  %v16967_v12 = vld [vmem:[%s26465_s1 + $0x4c] sm:$0xf]  ;;  %v11859_v53 = vld [vmem:[%s26465_s1 + $0x900] sm:$0xf] }
  0x54   :  { %2290 = vmatpush.bf16.msra.mxu0 %v11512_v24  ;;  %v10697_v24 = vld [vmem:[%s26466_s0 + $0x5c] sm:$0x10]  ;;  %v18942_v35 = vor.u32 %v16956_v18, %v10695_v16  ;;  %v10841_v16 = vld [vmem:[%s26465_s1 + $0x114] sm:$0xf0]  ;;  %v17015_v18 = vld [vmem:[%s26465_s1 + $0x1cc] sm:$0xf] }
  0x55   :  { %2304 = vmatpush.bf16.msra.mxu1 %v11608_v25  ;;  %v10796_v25 = vor.u32 %v16979_v4, %v10793_v5  ;;  %v17018_v4 = vld [vmem:[%s26465_s1 + $0x1e4] sm:$0xf]  ;;  %v10949_v5 = vld [vmem:[%s26465_s1 + $0x1ec] sm:$0xf0] }
  0x56   :  { %2318 = vmatpush.bf16.msra.mxu2 %v11704_v26  ;;  %v10892_v26 = vor.u32 %v17003_v6, %v10889_v7  ;;  %v10760_v7 = vor.u32 %v16970_v62, %v10757_v0  ;;  %v10952_v13 = vor.u32 %v17018_v4, %v10949_v5  ;;  %v10901_v0 = vld [vmem:[%s26465_s1 + $0x18c] sm:$0xf0]  ;;  %v17075_v4 = vld [vmem:[%s26465_s1 + $0x3ac] sm:$0xf]  ;;  %v11177_v5 = vld [vmem:[%s26465_s1 + $0x3b4] sm:$0xf0] }
  0x57   :  { %2332 = vmatpush.bf16.msra.mxu3 %v11800_v30  ;;  %v10988_v30 = vor.u32 %v17027_v8, %v10985_v11  ;;  %v17256_v11 = vld [vmem:[%s26465_s1 + $0x950] sm:$0xf0] }
  0x58   :  { %2291 = vmatpush.bf16.msra.mxu0 %v11500_v36  ;;  %v18944_v36 = vor.u32 %v16949_v19, %v10689_v22  ;;  %v10937_v19 = vld [vmem:[%s26465_s1 + $0x1d4] sm:$0xf0] }
  0x59   :  { %2305 = vmatpush.bf16.msra.mxu1 %v11596_v38  ;;  %v10973_v38 = vld [vmem:[%s26465_s1 + $0x21c] sm:$0xf0] }
  0x5a   :  { %2319 = vmatpush.bf16.msra.mxu2 %v11692_v40  ;;  %v18952_v40 = vor.u32 %v16950_v23, %v10697_v24  ;;  %v10976_v50 = vor.u32 %v17024_v37, %v10973_v38  ;;  %v11883_v23 = vld [vmem:[%s26465_s1 + $0x930] sm:$0xf]  ;;  %v17253_v24 = vld [vmem:[%s26465_s1 + $0x938] sm:$0xf0]  ;;  %v10832_v37 = vor.u32 %v16988_v28, %v10829_v29  ;;  %v11871_v38 = vld [vmem:[%s26465_s1 + $0x918] sm:$0xf] }
  0x5b   :  { %2333 = vmatpush.bf16.msra.mxu3 %v11788_v46  ;;  %v11919_v46 = vld [vmem:[%s26465_s1 + $0x978] sm:$0xf]  ;;  %v11884_v33 = vor.u32 %v17253_v24, %v11883_v23  ;;  %v17072_v23 = vld [vmem:[%s26465_s1 + $0x394] sm:$0xf]  ;;  %v11261_v28 = vld [vmem:[%s26465_s1 + $0x45c] sm:$0xf0] }
  0x5c   :  { %2292 = vmatpush.bf16.msra.mxu0 %v11488_v54  ;;  %v17021_v54 = vld [vmem:[%s26465_s1 + $0x1fc] sm:$0xf]  ;;  %v11920_v56 = vor.u32 %v17262_v48, %v11919_v46  ;;  %v10721_v46 = vld [vmem:[%s26465_s1 + $0x24] sm:$0xf0]  ;;  %v17120_v29 = vld [vmem:[%s26465_s1 + $0x514] sm:$0xf] }
  0x5d   :  { %2306 = vmatpush.bf16.msra.mxu1 %v11584_v60  ;;  %v11907_v60 = vld [vmem:[%s26465_s1 + $0x960] sm:$0xf]  ;;  %v10964_v63 = vor.u32 %v17021_v54, %v10961_v55  ;;  %v16985_v48 = vld [vmem:[%s26465_s1 + $0xdc] sm:$0xf]  ;;  %v17247_v54 = vld [vmem:[%s26465_s1 + $0x908] sm:$0xf0] }
  0x5e   :  { %2320 = vmatpush.bf16.msra.mxu2 %v11680_v61  ;;  %v17259_v61 = vld [vmem:[%s26465_s1 + $0x968] sm:$0xf0]  ;;  %v16958_v55 = vld [vmem:[%s26465_s1 + $0x4] sm:$0xf] }
  0x5f   :  { %2334 = vmatpush.bf16.msra.mxu3 %v11776_v2  ;;  %v16994_v2 = vld [vmem:[%s26465_s1 + $0x124] sm:$0xf]  ;;  %v11908_v6 = vor.u32 %v17259_v61, %v11907_v60  ;;  %v10805_v61 = vld [vmem:[%s26465_s1 + $0xcc] sm:$0xf0] }
  0x60   :  { %2293 = vmatpush.bf16.msra.mxu0 %v11476_v9  ;;  %v10856_v8 = vor.u32 %v16994_v2, %v10853_v3  ;;  %v11895_v9 = vld [vmem:[%s26465_s1 + $0x948] sm:$0xf]  ;;  %v16982_v60 = vld [vmem:[%s26465_s1 + $0xc4] sm:$0xf]  ;;  %v17051_v2 = vld [vmem:[%s26465_s1 + $0x2ec] sm:$0xf] }
  0x61   :  { %2307 = vmatpush.bf16.msra.mxu1 %v11572_v14  ;;  %v10745_v14 = vld [vmem:[%s26465_s1 + $0x54] sm:$0xf0] }
  0x62   :  { %2321 = vmatpush.bf16.msra.mxu2 %v11668_v15  ;;  %v16991_v15 = vld [vmem:[%s26465_s1 + $0x10c] sm:$0xf]  ;;  %v11081_v3 = vld [vmem:[%s26465_s1 + $0x2f4] sm:$0xf0] }
  0x63   :  { %2335 = vmatpush.bf16.msra.mxu3 %v11764_v20  ;;  %2294 = vmatmul.bf16.vlgmr.msra.gmra.mxu0 %v18931_v31  ;;  %v11896_v20 = vor.u32 %v17256_v11, %v11895_v9  ;;  %v10844_v22 = vor.u32 %v16991_v15, %v10841_v16  ;;  %v17123_v9 = vld [vmem:[%s26465_s1 + $0x52c] sm:$0xf]  ;;  %v16957_v15 = vld [vmem:[%s26466_s0 + $0x60] sm:$0x10] }
  0x64   :  { %2342 = vmatpush.bf16.msrb.mxu0 %v11944_v21  ;;  %2308 = vmatmul.bf16.vlgmr.msra.gmra.mxu1 %v18944_v36  ;;  %v10748_v21 = vor.u32 %v16967_v12, %v10745_v14  ;;  %v10808_v12 = vor.u32 %v16982_v60, %v10805_v61  ;;  %v10703_v14 = vld [vmem:[%s26466_s0 + $0x30] sm:$0xf]  ;;  %v17090_v60 = vld [vmem:[%s26465_s1 + $0x424] sm:$0xf] }
  0x65   :  { %2356 = vmatpush.bf16.msrb.mxu1 %v10796_v25  ;;  %2322 = vmatmul.bf16.vlgmr.msra.gmra.mxu2 %v18942_v35  ;;  %v16964_v25 = vld [vmem:[%s26465_s1 + $0x34] sm:$0xf]  ;;  %v11237_v61 = vld [vmem:[%s26465_s1 + $0x42c] sm:$0xf0] }
  0x66   :  { %2370 = vmatpush.bf16.msrb.mxu2 %v10892_v26  ;;  %2336 = vmatmul.bf16.vlgmr.msra.gmra.mxu3 %v18952_v40  ;;  %v10940_v26 = vor.u32 %v17015_v18, %v10937_v19  ;;  %v10736_v34 = vor.u32 %v16964_v25, %v10733_v27  ;;  %v11084_v18 = vor.u32 %v17051_v2, %v11081_v3  ;;  %v17096_v27 = vld [vmem:[%s26465_s1 + $0x454] sm:$0xf] }
  0x67   :  { %2384 = vmatpush.bf16.msrb.mxu3 %v10988_v30  ;;  %v17012_v30 = vld [vmem:[%s26465_s1 + $0x1b4] sm:$0xf]  ;;  %v11180_v19 = vor.u32 %v17075_v4, %v11177_v5  ;;  %v19141_v25 = vor.u32 %v16957_v15, %v10703_v14  ;;  %v11240_v3 = vor.u32 %v17090_v60, %v11237_v61  ;;  %v17039_v4 = vld [vmem:[%s26465_s1 + $0x28c] sm:$0xf]  ;;  %v11033_v5 = vld [vmem:[%s26465_s1 + $0x294] sm:$0xf0] }
  0x68   :  { %2343 = vmatpush.bf16.msrb.mxu0 %v11932_v41  ;;  %v17250_v41 = vld [vmem:[%s26465_s1 + $0x920] sm:$0xf0]  ;;  %v11036_v14 = vor.u32 %v17039_v4, %v11033_v5  ;;  %v11285_v60 = vld [vmem:[%s26465_s1 + $0x48c] sm:$0xf0]  ;;  %v17147_v61 = vld [vmem:[%s26465_s1 + $0x5ec] sm:$0xf] }
  0x69   :  { %2357 = vmatpush.bf16.msrb.mxu1 %v10784_v42  ;;  %v16961_v42 = vld [vmem:[%s26465_s1 + $0x1c] sm:$0xf]  ;;  %v11872_v52 = vor.u32 %v17250_v41, %v11871_v38  ;;  %v11057_v38 = vld [vmem:[%s26465_s1 + $0x2c4] sm:$0xf0]  ;;  %v11657_v4 = vld [vmem:[%s26465_s1 + $0x774] sm:$0xf0] }
  0x6a   :  { %2371 = vmatpush.bf16.msrb.mxu2 %v10880_v45  ;;  %v10928_v45 = vor.u32 %v17012_v30, %v10925_v32  ;;  %v11357_v30 = vld [vmem:[%s26465_s1 + $0x51c] sm:$0xf0]  ;;  %v17069_v41 = vld [vmem:[%s26465_s1 + $0x37c] sm:$0xf] }
  0x6b   :  { %2385 = vmatpush.bf16.msrb.mxu3 %v10976_v50  ;;  %v17009_v50 = vld [vmem:[%s26465_s1 + $0x19c] sm:$0xf] }
  0x6c   :  { %2344 = vmatpush.bf16.msrb.mxu0 %v11920_v56  ;;  %v10724_v56 = vor.u32 %v16961_v42, %v10721_v46  ;;  %v10916_v62 = vor.u32 %v17009_v50, %v10913_v51  ;;  %v11360_v42 = vor.u32 %v17120_v29, %v11357_v30  ;;  %v17093_v46 = vld [vmem:[%s26465_s1 + $0x43c] sm:$0xf]  ;;  %v11345_v50 = vld [vmem:[%s26465_s1 + $0x504] sm:$0xf0] }
  0x6d   :  { %2358 = vmatpush.bf16.msrb.mxu1 %v10772_v57  ;;  %v10820_v57 = vor.u32 %v16985_v48, %v10817_v49  ;;  %v11249_v48 = vld [vmem:[%s26465_s1 + $0x444] sm:$0xf0]  ;;  %v17117_v49 = vld [vmem:[%s26465_s1 + $0x4fc] sm:$0xf] }
  0x6e   :  { %2372 = vmatpush.bf16.msrb.mxu2 %v10868_v59  ;;  %v10709_v59 = vld [vmem:[%s26465_s1 + $0xc] sm:$0xf0] }
  0x6f   :  { %2386 = vmatpush.bf16.msrb.mxu3 %v10964_v63  ;;  %v17006_v63 = vld [vmem:[%s26465_s1 + $0x184] sm:$0xf]  ;;  %v10712_v11 = vor.u32 %v16958_v55, %v10709_v59  ;;  %v11045_v55 = vld [vmem:[%s26465_s1 + $0x2ac] sm:$0xf0] }
  0x70   :  { %2345 = vmatpush.bf16.msrb.mxu0 %v11908_v6  ;;  %v11860_v6 = vor.u32 %v17247_v54, %v11859_v53  ;;  %v10904_v16 = vor.u32 %v17006_v63, %v10901_v0  ;;  %v11252_v53 = vor.u32 %v17093_v46, %v11249_v48  ;;  %v17042_v54 = vld [vmem:[%s26465_s1 + $0x2a4] sm:$0xf]  ;;  %v11141_v59 = vld [vmem:[%s26465_s1 + $0x36c] sm:$0xf0]  ;;  %v11297_v46 = vld [vmem:[%s26465_s1 + $0x4a4] sm:$0xf0] }
  0x71   :  { %2359 = vmatpush.bf16.msrb.mxu1 %v10760_v7  ;;  %v17099_v7 = vld [vmem:[%s26465_s1 + $0x46c] sm:$0xf]  ;;  %v11333_v63 = vld [vmem:[%s26465_s1 + $0x4ec] sm:$0xf0]  ;;  %v11048_v0 = vor.u32 %v17042_v54, %v11045_v55  ;;  %v17078_v55 = vld [vmem:[%s26465_s1 + $0x3c4] sm:$0xf] }
  0x72   :  { %2373 = vmatpush.bf16.msrb.mxu2 %v10856_v8  ;;  %v11273_v8 = vld [vmem:[%s26465_s1 + $0x474] sm:$0xf0]  ;;  %v11093_v54 = vld [vmem:[%s26465_s1 + $0x30c] sm:$0xf0] }
  0x73   :  { %2387 = vmatpush.bf16.msrb.mxu3 %v10952_v13  ;;  %v11369_v13 = vld [vmem:[%s26465_s1 + $0x534] sm:$0xf0] }
  0x74   :  { %2346 = vmatpush.bf16.msrb.mxu0 %v11896_v20  ;;  %v11276_v20 = vor.u32 %v17099_v7, %v11273_v8  ;;  %v11372_v24 = vor.u32 %v17123_v9, %v11369_v13  ;;  %v11129_v8 = vld [vmem:[%s26465_s1 + $0x354] sm:$0xf0]  ;;  %v17087_v9 = vld [vmem:[%s26465_s1 + $0x40c] sm:$0xf] }
  0x75   :  { %2360 = vmatpush.bf16.msrb.mxu1 %v10748_v21  ;;  %v17048_v21 = vld [vmem:[%s26465_s1 + $0x2d4] sm:$0xf]  ;;  %v11321_v13 = vld [vmem:[%s26465_s1 + $0x4d4] sm:$0xf0] }
  0x76   :  { %2374 = vmatpush.bf16.msrb.mxu2 %v10844_v22  ;;  %v11069_v22 = vld [vmem:[%s26465_s1 + $0x2dc] sm:$0xf0] }
  0x77   :  { %2388 = vmatpush.bf16.msrb.mxu3 %v10940_v26  ;;  %v11165_v26 = vld [vmem:[%s26465_s1 + $0x39c] sm:$0xf0]  ;;  %v11072_v32 = vor.u32 %v17048_v21, %v11069_v22 }
  0x78   :  { %2347 = vmatpush.bf16.msrb.mxu0 %v11884_v33  ;;  %v11168_v33 = vor.u32 %v17072_v23, %v11165_v26  ;;  %v11117_v22 = vld [vmem:[%s26465_s1 + $0x33c] sm:$0xf0]  ;;  %v17084_v23 = vld [vmem:[%s26465_s1 + $0x3f4] sm:$0xf] }
  0x79   :  { %2361 = vmatpush.bf16.msrb.mxu1 %v10736_v34  ;;  %v11264_v34 = vor.u32 %v17096_v27, %v11261_v28  ;;  %v17108_v26 = vld [vmem:[%s26465_s1 + $0x4b4] sm:$0xf]  ;;  %v11309_v27 = vld [vmem:[%s26465_s1 + $0x4bc] sm:$0xf0] }
  0x7a   :  { %2375 = vmatpush.bf16.msrb.mxu2 %v10832_v37  ;;  %v17045_v37 = vld [vmem:[%s26465_s1 + $0x2bc] sm:$0xf] }
  0x7b   :  { %2389 = vmatpush.bf16.msrb.mxu3 %v10928_v45  ;;  %v11153_v45 = vld [vmem:[%s26465_s1 + $0x384] sm:$0xf0]  ;;  %v11060_v51 = vor.u32 %v17045_v37, %v11057_v38  ;;  %v11312_v37 = vor.u32 %v17108_v26, %v11309_v27 }
  0x7c   :  { %2348 = vmatpush.bf16.msrb.mxu0 %v11872_v52  ;;  %v11156_v52 = vor.u32 %v17069_v41, %v11153_v45  ;;  %v11105_v38 = vld [vmem:[%s26465_s1 + $0x324] sm:$0xf0]  ;;  %v17081_v41 = vld [vmem:[%s26465_s1 + $0x3dc] sm:$0xf] }
  0x7d   :  { %2362 = vmatpush.bf16.msrb.mxu1 %v10724_v56  ;;  %v17066_v56 = vld [vmem:[%s26465_s1 + $0x364] sm:$0xf]  ;;  %v17105_v45 = vld [vmem:[%s26465_s1 + $0x49c] sm:$0xf] }
  0x7e   :  { %2376 = vmatpush.bf16.msrb.mxu2 %v10820_v57  ;;  %v11348_v57 = vor.u32 %v17117_v49, %v11345_v50  ;;  %v11144_v2 = vor.u32 %v17066_v56, %v11141_v59  ;;  %v17030_v49 = vld [vmem:[%s26465_s1 + $0x244] sm:$0xf]  ;;  %v10997_v50 = vld [vmem:[%s26465_s1 + $0x24c] sm:$0xf0]  ;;  %v11300_v56 = vor.u32 %v17105_v45, %v11297_v46 }
  0x7f   :  { %2390 = vmatpush.bf16.msrb.mxu3 %v10916_v62  ;;  %v17114_v62 = vld [vmem:[%s26465_s1 + $0x4e4] sm:$0xf] }
  0x80   :  { %2349 = vmatpush.bf16.msrb.mxu0 %v11860_v6  ;;  %v17063_v6 = vld [vmem:[%s26465_s1 + $0x34c] sm:$0xf]  ;;  %v11336_v7 = vor.u32 %v17114_v62, %v11333_v63  ;;  %v17102_v59 = vld [vmem:[%s26465_s1 + $0x484] sm:$0xf]  ;;  %v11465_v62 = vld [vmem:[%s26465_s1 + $0x5f4] sm:$0xf0] }
  0x81   :  { %2363 = vmatpush.bf16.msrb.mxu1 %v10712_v11  ;;  %v11225_v11 = vld [vmem:[%s26465_s1 + $0x414] sm:$0xf0]  ;;  %v11132_v15 = vor.u32 %v17063_v6, %v11129_v8  ;;  %v17171_v63 = vld [vmem:[%s26465_s1 + $0x6ac] sm:$0xf] }
  0x82   :  { %2377 = vmatpush.bf16.msrb.mxu2 %v10808_v12  ;;  %v17111_v12 = vld [vmem:[%s26465_s1 + $0x4cc] sm:$0xf]  ;;  %v11753_v8 = vld [vmem:[%s26465_s1 + $0x834] sm:$0xf0] }
  0x83   :  { %2391 = vmatpush.bf16.msrb.mxu3 %v10904_v16  ;;  %2350 = vmatmul.bf16.vlgmr.msrb.gmra.mxu0 %v19141_v25  ;;  %v11228_v16 = vor.u32 %v17087_v9, %v11225_v11  ;;  %v11324_v21 = vor.u32 %v17111_v12, %v11321_v13  ;;  %v11288_v9 = vor.u32 %v17102_v59, %v11285_v60 }
  0x84   :  { %2398 = vmatpush.bf16.msra.mxu0 %v11084_v18  ;;  %2364 = vmatmul.bf16.vlgmr.msrb.gmra.mxu1 %v18481_v58  ;;  %v17036_v18 = vld [vmem:[%s26465_s1 + $0x274] sm:$0xf]  ;;  %v11468_v11 = vor.u32 %v17147_v61, %v11465_v62  ;;  %v17135_v61 = vld [vmem:[%s26465_s1 + $0x58c] sm:$0xf]  ;;  %v11417_v62 = vld [vmem:[%s26465_s1 + $0x594] sm:$0xf0] }
  0x85   :  { %2412 = vmatpush.bf16.msra.mxu1 %v11180_v19  ;;  %2378 = vmatmul.bf16.vlgmr.msrb.gmra.mxu2 %v18517_v10  ;;  %v11021_v19 = vld [vmem:[%s26465_s1 + $0x27c] sm:$0xf0] }
  0x86   :  { %2426 = vmatpush.bf16.msra.mxu2 %v11276_v20  ;;  %2392 = vmatmul.bf16.vlgmr.msrb.gmra.mxu3 %v18495_v1  ;;  %v17060_v20 = vld [vmem:[%s26465_s1 + $0x334] sm:$0xf]  ;;  %v11024_v28 = vor.u32 %v17036_v18, %v11021_v19  ;;  %v11549_v19 = vld [vmem:[%s26465_s1 + $0x69c] sm:$0xf0] }
  0x87   :  { %2440 = vmatpush.bf16.msra.mxu3 %v11372_v24  ;;  %v11213_v24 = vld [vmem:[%s26465_s1 + $0x3fc] sm:$0xf0]  ;;  %v11120_v29 = vor.u32 %v17060_v20, %v11117_v22  ;;  %v17192_v20 = vld [vmem:[%s26465_s1 + $0x754] sm:$0xf] }
  0x88   :  { %2399 = vmatpush.bf16.msra.mxu0 %v11072_v32  ;;  %v11216_v30 = vor.u32 %v17084_v23, %v11213_v24  ;;  %v17033_v32 = vld [vmem:[%s26465_s1 + $0x25c] sm:$0xf]  ;;  %v17216_v22 = vld [vmem:[%s26465_s1 + $0x814] sm:$0xf]  ;;  %v11741_v23 = vld [vmem:[%s26465_s1 + $0x81c] sm:$0xf0] }
  0x89   :  { %2413 = vmatpush.bf16.msra.mxu1 %v11168_v33  ;;  %v11009_v33 = vld [vmem:[%s26465_s1 + $0x264] sm:$0xf0] }
  0x8a   :  { %2427 = vmatpush.bf16.msra.mxu2 %v11264_v34  ;;  %v17057_v34 = vld [vmem:[%s26465_s1 + $0x31c] sm:$0xf]  ;;  %v11012_v48 = vor.u32 %v17033_v32, %v11009_v33  ;;  %v11744_v32 = vor.u32 %v17216_v22, %v11741_v23  ;;  %v11537_v33 = vld [vmem:[%s26465_s1 + $0x684] sm:$0xf0]  ;;  %v17204_v23 = vld [vmem:[%s26465_s1 + $0x7b4] sm:$0xf] }
  0x8b   :  { %2441 = vmatpush.bf16.msra.mxu3 %v11360_v42  ;;  %v11201_v42 = vld [vmem:[%s26465_s1 + $0x3e4] sm:$0xf0] }
  0x8c   :  { %2400 = vmatpush.bf16.msra.mxu0 %v11060_v51  ;;  %v11108_v51 = vor.u32 %v17057_v34, %v11105_v38  ;;  %v17189_v34 = vld [vmem:[%s26465_s1 + $0x73c] sm:$0xf] }
  0x8d   :  { %2414 = vmatpush.bf16.msra.mxu1 %v11156_v52  ;;  %v11204_v52 = vor.u32 %v17081_v41, %v11201_v42  ;;  %v17213_v38 = vld [vmem:[%s26465_s1 + $0x7fc] sm:$0xf]  ;;  %v11729_v41 = vld [vmem:[%s26465_s1 + $0x804] sm:$0xf0] }
  0x8e   :  { %2428 = vmatpush.bf16.msra.mxu2 %v11252_v53  ;;  %v17054_v53 = vld [vmem:[%s26465_s1 + $0x304] sm:$0xf] }
  0x8f   :  { %2442 = vmatpush.bf16.msra.mxu3 %v11348_v57  ;;  %v11189_v57 = vld [vmem:[%s26465_s1 + $0x3cc] sm:$0xf0]  ;;  %v11096_v5 = vor.u32 %v17054_v53, %v11093_v54  ;;  %v17186_v53 = vld [vmem:[%s26465_s1 + $0x724] sm:$0xf] }
  0x90   :  { %2401 = vmatpush.bf16.msra.mxu0 %v11048_v0  ;;  %v11000_v0 = vor.u32 %v17030_v49, %v10997_v50  ;;  %v11192_v6 = vor.u32 %v17078_v55, %v11189_v57  ;;  %v11429_v49 = vld [vmem:[%s26465_s1 + $0x5ac] sm:$0xf0]  ;;  %v17162_v50 = vld [vmem:[%s26465_s1 + $0x664] sm:$0xf] }
  0x91   :  { %2415 = vmatpush.bf16.msra.mxu1 %v11144_v2  ;;  %v11561_v2 = vld [vmem:[%s26465_s1 + $0x6b4] sm:$0xf0]  ;;  %v11621_v54 = vld [vmem:[%s26465_s1 + $0x72c] sm:$0xf0]  ;;  %v17210_v55 = vld [vmem:[%s26465_s1 + $0x7e4] sm:$0xf] }
  0x92   :  { %2429 = vmatpush.bf16.msra.mxu2 %v11240_v3  ;;  %v17195_v3 = vld [vmem:[%s26465_s1 + $0x76c] sm:$0xf]  ;;  %v11564_v12 = vor.u32 %v17171_v63, %v11561_v2  ;;  %v11624_v60 = vor.u32 %v17186_v53, %v11621_v54  ;;  %v11513_v2 = vld [vmem:[%s26465_s1 + $0x654] sm:$0xf0]  ;;  %v17150_v54 = vld [vmem:[%s26465_s1 + $0x604] sm:$0xf] }
  0x93   :  { %2443 = vmatpush.bf16.msra.mxu3 %v11336_v7  ;;  %v17219_v7 = vld [vmem:[%s26465_s1 + $0x82c] sm:$0xf]  ;;  %v11660_v13 = vor.u32 %v17195_v3, %v11657_v4  ;;  %v11609_v4 = vld [vmem:[%s26465_s1 + $0x714] sm:$0xf0] }
  0x94   :  { %2402 = vmatpush.bf16.msra.mxu0 %v11036_v14  ;;  %v17144_v14 = vld [vmem:[%s26465_s1 + $0x5d4] sm:$0xf]  ;;  %v11756_v18 = vor.u32 %v17219_v7, %v11753_v8  ;;  %v17159_v63 = vld [vmem:[%s26465_s1 + $0x64c] sm:$0xf] }
  0x95   :  { %2416 = vmatpush.bf16.msra.mxu1 %v11132_v15  ;;  %v11453_v15 = vld [vmem:[%s26465_s1 + $0x5dc] sm:$0xf0]  ;;  %v17183_v3 = vld [vmem:[%s26465_s1 + $0x70c] sm:$0xf] }
  0x96   :  { %2430 = vmatpush.bf16.msra.mxu2 %v11228_v16  ;;  %v17168_v16 = vld [vmem:[%s26465_s1 + $0x694] sm:$0xf]  ;;  %v11456_v24 = vor.u32 %v17144_v14, %v11453_v15  ;;  %v11405_v15 = vld [vmem:[%s26465_s1 + $0x57c] sm:$0xf0] }
  0x97   :  { %2444 = vmatpush.bf16.msra.mxu3 %v11324_v21  ;;  %v11645_v21 = vld [vmem:[%s26465_s1 + $0x75c] sm:$0xf0]  ;;  %v11552_v26 = vor.u32 %v17168_v16, %v11549_v19  ;;  %v17132_v14 = vld [vmem:[%s26465_s1 + $0x574] sm:$0xf] }
  0x98   :  { %2403 = vmatpush.bf16.msra.mxu0 %v11024_v28  ;;  %v11648_v27 = vor.u32 %v17192_v20, %v11645_v21  ;;  %v17141_v28 = vld [vmem:[%s26465_s1 + $0x5bc] sm:$0xf]  ;;  %v17156_v16 = vld [vmem:[%s26465_s1 + $0x634] sm:$0xf]  ;;  %v11501_v19 = vld [vmem:[%s26465_s1 + $0x63c] sm:$0xf0] }
  0x99   :  { %2417 = vmatpush.bf16.msra.mxu1 %v11120_v29  ;;  %v11441_v29 = vld [vmem:[%s26465_s1 + $0x5c4] sm:$0xf0]  ;;  %v17180_v20 = vld [vmem:[%s26465_s1 + $0x6f4] sm:$0xf]  ;;  %v11597_v21 = vld [vmem:[%s26465_s1 + $0x6fc] sm:$0xf0] }
  0x9a   :  { %2431 = vmatpush.bf16.msra.mxu2 %v11216_v30  ;;  %v17165_v30 = vld [vmem:[%s26465_s1 + $0x67c] sm:$0xf]  ;;  %v11444_v42 = vor.u32 %v17141_v28, %v11441_v29  ;;  %v11504_v28 = vor.u32 %v17156_v16, %v11501_v19  ;;  %v11600_v29 = vor.u32 %v17180_v20, %v11597_v21  ;;  %v17240_v16 = vld [vmem:[%s26465_s1 + $0x8d4] sm:$0xf]  ;;  %v11933_v21 = vld [vmem:[%s26465_s1 + $0x99c] sm:$0xf0] }
  0x9b   :  { %2445 = vmatpush.bf16.msra.mxu3 %v11312_v37  ;;  %v11633_v37 = vld [vmem:[%s26465_s1 + $0x744] sm:$0xf0]  ;;  %v11540_v45 = vor.u32 %v17165_v30, %v11537_v33  ;;  %v17129_v30 = vld [vmem:[%s26465_s1 + $0x55c] sm:$0xf]  ;;  %v17264_v19 = vld [vmem:[%s26465_s1 + $0x994] sm:$0xf] }
  0x9c   :  { %2404 = vmatpush.bf16.msra.mxu0 %v11012_v48  ;;  %v11636_v46 = vor.u32 %v17189_v34, %v11633_v37  ;;  %v17138_v48 = vld [vmem:[%s26465_s1 + $0x5a4] sm:$0xf]  ;;  %v17153_v33 = vld [vmem:[%s26465_s1 + $0x61c] sm:$0xf]  ;;  %v11489_v37 = vld [vmem:[%s26465_s1 + $0x624] sm:$0xf0] }
  0x9d   :  { %2418 = vmatpush.bf16.msra.mxu1 %v11108_v51  ;;  %v11732_v51 = vor.u32 %v17213_v38, %v11729_v41  ;;  %v11432_v57 = vor.u32 %v17138_v48, %v11429_v49  ;;  %v17177_v38 = vld [vmem:[%s26465_s1 + $0x6dc] sm:$0xf]  ;;  %v11585_v41 = vld [vmem:[%s26465_s1 + $0x6e4] sm:$0xf0] }
  0x9e   :  { %2432 = vmatpush.bf16.msra.mxu2 %v11204_v52  ;;  %v11525_v52 = vld [vmem:[%s26465_s1 + $0x66c] sm:$0xf0]  ;;  %v11588_v53 = vor.u32 %v17177_v38, %v11585_v41  ;;  %v11921_v38 = vld [vmem:[%s26465_s1 + $0x984] sm:$0xf0]  ;;  %v10775_v41 = vld [vmem:[%s26465_s1 + $0x80] sm:$0xf] }
  0x9f   :  { %2446 = vmatpush.bf16.msra.mxu3 %v11300_v56  ;;  %v11717_v56 = vld [vmem:[%s26465_s1 + $0x7ec] sm:$0xf0]  ;;  %v11528_v59 = vor.u32 %v17162_v50, %v11525_v52  ;;  %v17126_v50 = vld [vmem:[%s26465_s1 + $0x544] sm:$0xf]  ;;  %v11492_v52 = vor.u32 %v17153_v33, %v11489_v37  ;;  %v11825_v33 = vld [vmem:[%s26465_s1 + $0x8c4] sm:$0xf0] }
  0xa0   :  { %2405 = vmatpush.bf16.msra.mxu0 %v11000_v0  ;;  %v11720_v0 = vor.u32 %v17210_v55, %v11717_v56  ;;  %v2183_v7 = vpop.f32.mrf.mxu0  ;;  %v11477_v55 = vld [vmem:[%s26465_s1 + $0x60c] sm:$0xf0]  ;;  %v17174_v56 = vld [vmem:[%s26465_s1 + $0x6c4] sm:$0xf] }
  0xa1   :  { %2419 = vmatpush.bf16.msra.mxu1 %v11096_v5  ;;  %v17207_v5 = vld [vmem:[%s26465_s1 + $0x7cc] sm:$0xf]  ;;  %v2197_v8 = vpop.f32.mrf.mxu1 }
  0xa2   :  { %2433 = vmatpush.bf16.msra.mxu2 %v11192_v6  ;;  %v11705_v6 = vld [vmem:[%s26465_s1 + $0x7d4] sm:$0xf0] }
  0xa3   :  { %2447 = vmatpush.bf16.msra.mxu3 %v11288_v9  ;;  %2406 = vmatmul.bf16.vlgmr.msra.gmra.mxu0 %v18531_v17  ;;  %v11420_v9 = vor.u32 %v17135_v61, %v11417_v62  ;;  %v11669_v61 = vld [vmem:[%s26465_s1 + $0x78c] sm:$0xf0]  ;;  %v17243_v62 = vld [vmem:[%s26465_s1 + $0x8ec] sm:$0xf] }
  0xa4   :  { %2454 = vmatpush.bf16.msrb.mxu0 %v11468_v11  ;;  %2420 = vmatmul.bf16.vlgmr.msra.gmra.mxu1 %v18703_v39  ;;  %v2198_v11 = vadd.f32 %v2197_v8, %v2183_v7  ;;  %v10895_v8 = vld [vmem:[%s26465_s1 + $0x170] sm:$0xf] }
  0xa5   :  { %2468 = vmatpush.bf16.msrb.mxu1 %v11564_v12  ;;  %2434 = vmatmul.bf16.vlgmr.msra.gmra.mxu2 %v18716_v44  ;;  %v11516_v12 = vor.u32 %v17159_v63, %v11513_v2  ;;  %v11849_v63 = vld [vmem:[%s26465_s1 + $0x8f4] sm:$0xf0] }
  0xa6   :  { %2482 = vmatpush.bf16.msrb.mxu2 %v11660_v13  ;;  %2448 = vmatmul.bf16.vlgmr.msra.gmra.mxu3 %v18714_v43  ;;  %v11612_v13 = vor.u32 %v17183_v3, %v11609_v4  ;;  %v11945_v3 = vld [vmem:[%s26465_s1 + $0x9b4] sm:$0xf0]  ;;  %v10799_v4 = vld [vmem:[%s26465_s1 + $0xb0] sm:$0xf] }
  0xa7   :  { %2496 = vmatpush.bf16.msrb.mxu3 %v11756_v18  ;;  %v11708_v18 = vor.u32 %v17207_v5, %v11705_v6  ;;  %v16981_v5 = vld [vmem:[%s26465_s1 + $0xb8] sm:$0xf0]  ;;  %v11480_v6 = vor.u32 %v17150_v54, %v11477_v55  ;;  %v11813_v54 = vld [vmem:[%s26465_s1 + $0x8ac] sm:$0xf0]  ;;  %v17258_v55 = vld [vmem:[%s26465_s1 + $0x964] sm:$0xf] }
  0xa8   :  { %2455 = vmatpush.bf16.msrb.mxu0 %v11456_v24  ;;  %v2211_v22 = vpop.f32.mrf.mxu2  ;;  %v11693_v24 = vld [vmem:[%s26465_s1 + $0x7bc] sm:$0xf0] }
  0xa9   :  { %2469 = vmatpush.bf16.msrb.mxu1 %v11552_v26  ;;  %v2212_v26 = vadd.f32 %v2211_v22, %v2198_v11  ;;  %v11696_v34 = vor.u32 %v17204_v23, %v11693_v24  ;;  %v10787_v22 = vld [vmem:[%s26465_s1 + $0x98] sm:$0xf]  ;;  %v16978_v23 = vld [vmem:[%s26465_s1 + $0xa0] sm:$0xf0] }
  0xaa   :  { %2483 = vmatpush.bf16.msrb.mxu2 %v11648_v27  ;;  %v11408_v27 = vor.u32 %v17132_v14, %v11405_v15  ;;  %v10800_v14 = vor.u32 %v16981_v5, %v10799_v4  ;;  %v19528_v15 = vpop.f32.mrf.mxu0  ;;  %v10883_v24 = vld [vmem:[%s26465_s1 + $0x158] sm:$0xf] }
  0xab   :  { %2497 = vmatpush.bf16.msrb.mxu3 %v11744_v32  ;;  %v11393_v32 = vld [vmem:[%s26465_s1 + $0x564] sm:$0xf0] }
  0xac   :  { %2456 = vmatpush.bf16.msrb.mxu0 %v11444_v42  ;;  %v2225_v42 = vpop.f32.mrf.mxu3  ;;  %v11396_v49 = vor.u32 %v17129_v30, %v11393_v32  ;;  %v10788_v30 = vor.u32 %v16978_v23, %v10787_v22  ;;  %v17237_v32 = vld [vmem:[%s26465_s1 + $0x8bc] sm:$0xf]  ;;  %v17228_v22 = vld [vmem:[%s26465_s1 + $0x874] sm:$0xf]  ;;  %v11789_v23 = vld [vmem:[%s26465_s1 + $0x87c] sm:$0xf0] }
  0xad   :  { %2470 = vmatpush.bf16.msrb.mxu1 %v11540_v45  ;;  %v17201_v45 = vld [vmem:[%s26465_s1 + $0x79c] sm:$0xf]  ;;  %v19478_v48 = vadd.f32 %v2225_v42, %v2212_v26  ;;  %v17002_v26 = vld [vmem:[%s26465_s1 + $0x160] sm:$0xf0]  ;;  %v16975_v42 = vld [vmem:[%s26465_s1 + $0x88] sm:$0xf0] }
  0xae   :  { %2484 = vmatpush.bf16.msrb.mxu2 %v11636_v46  ;;  %v11681_v46 = vld [vmem:[%s26465_s1 + $0x7a4] sm:$0xf0]  ;;  %v10884_v37 = vor.u32 %v17002_v26, %v10883_v24  ;;  %v17252_v24 = vld [vmem:[%s26465_s1 + $0x934] sm:$0xf] }
  0xaf   :  { %2498 = vmatpush.bf16.msrb.mxu3 %v11732_v51  ;;  %v11381_v51 = vld [vmem:[%s26465_s1 + $0x54c] sm:$0xf0] }
  0xb0   :  { %2457 = vmatpush.bf16.msrb.mxu0 %v11432_v57  ;;  %v11684_v57 = vor.u32 %v17201_v45, %v11681_v46  ;;  %v11384_v2 = vor.u32 %v17126_v50, %v11381_v51  ;;  %v10871_v45 = vld [vmem:[%s26465_s1 + $0x140] sm:$0xf]  ;;  %v16999_v46 = vld [vmem:[%s26465_s1 + $0x148] sm:$0xf0]  ;;  %v19584_v50 = vpop.f32.mrf.mxu2 }
  0xb1   :  { %2471 = vmatpush.bf16.msrb.mxu1 %v11528_v59  ;;  %v11573_v59 = vld [vmem:[%s26465_s1 + $0x6cc] sm:$0xf0] }
  0xb2   :  { %2485 = vmatpush.bf16.msrb.mxu2 %v11624_v60  ;;  %v17198_v60 = vld [vmem:[%s26465_s1 + $0x784] sm:$0xf]  ;;  %v11576_v7 = vor.u32 %v17174_v56, %v11573_v59  ;;  %v10872_v56 = vor.u32 %v16999_v46, %v10871_v45  ;;  %v11909_v59 = vld [vmem:[%s26465_s1 + $0x96c] sm:$0xf0] }
  0xb3   :  { %2499 = vmatpush.bf16.msrb.mxu3 %v11720_v0  ;;  %v17267_v0 = vld [vmem:[%s26465_s1 + $0x9ac] sm:$0xf]  ;;  %v11672_v11 = vor.u32 %v17198_v60, %v11669_v61  ;;  %v10763_v60 = vld [vmem:[%s26465_s1 + $0x68] sm:$0xf]  ;;  %v16972_v61 = vld [vmem:[%s26465_s1 + $0x70] sm:$0xf0]  ;;  %v11912_v4 = vor.u32 %v17258_v55, %v11909_v59 }
  0xb4   :  { %2458 = vmatpush.bf16.msrb.mxu0 %v11420_v9  ;;  %v17005_v9 = vld [vmem:[%s26465_s1 + $0x178] sm:$0xf0]  ;;  %v10764_v5 = vor.u32 %v16972_v61, %v10763_v60  ;;  %v10727_v55 = vld [vmem:[%s26465_s1 + $0x20] sm:$0xf]  ;;  %v16987_v60 = vld [vmem:[%s26465_s1 + $0xe8] sm:$0xf0] }
  0xb5   :  { %2472 = vmatpush.bf16.msrb.mxu1 %v11516_v12  ;;  %v11852_v12 = vor.u32 %v17243_v62, %v11849_v63  ;;  %v10896_v20 = vor.u32 %v17005_v9, %v10895_v8  ;;  %v10859_v63 = vld [vmem:[%s26465_s1 + $0x128] sm:$0xf]  ;;  %v11801_v8 = vld [vmem:[%s26465_s1 + $0x894] sm:$0xf0]  ;;  %v17255_v9 = vld [vmem:[%s26465_s1 + $0x94c] sm:$0xf] }
  0xb6   :  { %2486 = vmatpush.bf16.msrb.mxu2 %v11612_v13  ;;  %v11948_v13 = vor.u32 %v17267_v0, %v11945_v3  ;;  %v16996_v0 = vld [vmem:[%s26465_s1 + $0x130] sm:$0xf0]  ;;  %v10823_v59 = vld [vmem:[%s26465_s1 + $0xe0] sm:$0xf] }
  0xb7   :  { %2500 = vmatpush.bf16.msrb.mxu3 %v11708_v18  ;;  %v11837_v18 = vld [vmem:[%s26465_s1 + $0x8dc] sm:$0xf0] }
  0xb8   :  { %2459 = vmatpush.bf16.msrb.mxu0 %v11408_v27  ;;  %v19554_v27 = vpop.f32.mrf.mxu1 }
  0xb9   :  { %2473 = vmatpush.bf16.msrb.mxu1 %v11504_v28  ;;  %v11840_v28 = vor.u32 %v17240_v16, %v11837_v18  ;;  %v10847_v16 = vld [vmem:[%s26465_s1 + $0x110] sm:$0xf]  ;;  %v16993_v18 = vld [vmem:[%s26465_s1 + $0x118] sm:$0xf0] }
  0xba   :  { %2487 = vmatpush.bf16.msrb.mxu2 %v11600_v29  ;;  %v11936_v29 = vor.u32 %v17264_v19, %v11933_v21  ;;  %v10848_v26 = vor.u32 %v16993_v18, %v10847_v16  ;;  %v11183_v16 = vld [vmem:[%s26465_s1 + $0x3b0] sm:$0xf]  ;;  %v17077_v18 = vld [vmem:[%s26465_s1 + $0x3b8] sm:$0xf0] }
  0xbb   :  { %2501 = vmatpush.bf16.msrb.mxu3 %v11696_v34  ;;  %v17261_v34 = vld [vmem:[%s26465_s1 + $0x97c] sm:$0xf] }
  0xbc   :  { %2460 = vmatpush.bf16.msrb.mxu0 %v11396_v49  ;;  %v11828_v49 = vor.u32 %v17237_v32, %v11825_v33  ;;  %v11924_v51 = vor.u32 %v17261_v34, %v11921_v38  ;;  %v16966_v32 = vld [vmem:[%s26465_s1 + $0x40] sm:$0xf0]  ;;  %v10835_v34 = vld [vmem:[%s26465_s1 + $0xf8] sm:$0xf] }
  0xbd   :  { %2474 = vmatpush.bf16.msrb.mxu1 %v11492_v52  ;;  %v10776_v52 = vor.u32 %v16975_v42, %v10775_v41  ;;  %v11792_v41 = vor.u32 %v17228_v22, %v11789_v23  ;;  %v17101_v22 = vld [vmem:[%s26465_s1 + $0x478] sm:$0xf0] }
  0xbe   :  { %2488 = vmatpush.bf16.msrb.mxu2 %v11588_v53  ;;  %v17234_v53 = vld [vmem:[%s26465_s1 + $0x8a4] sm:$0xf] }
  0xbf   :  { %2502 = vmatpush.bf16.msrb.mxu3 %v11684_v57  ;;  %v19595_v57 = vpop.f32.mrf.mxu3  ;;  %v11816_v3 = vor.u32 %v17234_v53, %v11813_v54  ;;  %v11873_v54 = vld [vmem:[%s26465_s1 + $0x924] sm:$0xf0] }
  0xc0   :  { %2461 = vmatpush.bf16.msrb.mxu0 %v11384_v2  ;;  %v2239_v62 = vpop.f32.mrf.mxu0 }
  0xc1   :  { %2475 = vmatpush.bf16.msrb.mxu1 %v11480_v6  ;;  %v2240_v2 = vadd.f32 %v2239_v62, %v19478_v48  ;;  %v2253_v6 = vpop.f32.mrf.mxu1  ;;  %v10860_v48 = vor.u32 %v16996_v0, %v10859_v63  ;;  %v17222_v62 = vld [vmem:[%s26465_s1 + $0x844] sm:$0xf]  ;;  %v11765_v63 = vld [vmem:[%s26465_s1 + $0x84c] sm:$0xf0] }
  0xc2   :  { %2489 = vmatpush.bf16.msrb.mxu2 %v11576_v7  ;;  %v17231_v7 = vld [vmem:[%s26465_s1 + $0x88c] sm:$0xf] }
  0xc3   :  { %2503 = vmatpush.bf16.msrb.mxu3 %v11672_v11  ;;  %2462 = vmatmul.bf16.vlgmr.msrb.gmra.mxu0 %v18724_v47  ;;  %v2254_v11 = vadd.f32 %v2253_v6, %v2240_v2  ;;  %v11804_v19 = vor.u32 %v17231_v7, %v11801_v8  ;;  %v10824_v6 = vor.u32 %v16987_v60, %v10823_v59  ;;  %v16960_v7 = vld [vmem:[%s26465_s1 + $0x10] sm:$0xf0]  ;;  %v10811_v8 = vld [vmem:[%s26465_s1 + $0xc8] sm:$0xf]  ;;  %v17047_v60 = vld [vmem:[%s26465_s1 + $0x2c8] sm:$0xf0] }
  0xc4   :  { %2510 = vmatpush.bf16.msra.mxu0 %v11852_v12  ;;  %2476 = vmatmul.bf16.vlgmr.msrb.gmra.mxu1 %v18931_v31  ;;  %v11897_v12 = vld [vmem:[%s26465_s1 + $0x954] sm:$0xf0] }
  0xc5   :  { %2524 = vmatpush.bf16.msra.mxu1 %v11948_v13  ;;  %2490 = vmatmul.bf16.vlgmr.msrb.gmra.mxu2 %v18944_v36  ;;  %v10751_v13 = vld [vmem:[%s26465_s1 + $0x50] sm:$0xf] }
  0xc6   :  { %2538 = vmatpush.bf16.msra.mxu2 %v10800_v14  ;;  %2504 = vmatmul.bf16.vlgmr.msrb.gmra.mxu3 %v18942_v35  ;;  %v16969_v14 = vld [vmem:[%s26465_s1 + $0x58] sm:$0xf0] }
  0xc7   :  { %2552 = vmatpush.bf16.msra.mxu3 %v10896_v20  ;;  %v11900_v20 = vor.u32 %v17255_v9, %v11897_v12  ;;  %v10752_v21 = vor.u32 %v16969_v14, %v10751_v13  ;;  %v16984_v9 = vld [vmem:[%s26465_s1 + $0xd0] sm:$0xf0]  ;;  %v11087_v12 = vld [vmem:[%s26465_s1 + $0x2f0] sm:$0xf]  ;;  %v11768_v13 = vor.u32 %v17222_v62, %v11765_v63  ;;  %v17053_v14 = vld [vmem:[%s26465_s1 + $0x2f8] sm:$0xf0] }
  0xc8   :  { %2511 = vmatpush.bf16.msra.mxu0 %v11840_v28  ;;  %v2267_v28 = vpop.f32.mrf.mxu2  ;;  %v10812_v23 = vor.u32 %v16984_v9, %v10811_v8  ;;  %v17071_v62 = vld [vmem:[%s26465_s1 + $0x388] sm:$0xf0]  ;;  %v11255_v63 = vld [vmem:[%s26465_s1 + $0x440] sm:$0xf] }
  0xc9   :  { %2525 = vmatpush.bf16.msra.mxu1 %v11936_v29  ;;  %v11885_v29 = vld [vmem:[%s26465_s1 + $0x93c] sm:$0xf0]  ;;  %v2268_v33 = vadd.f32 %v2267_v28, %v2254_v11  ;;  %v2281_v38 = vpop.f32.mrf.mxu3  ;;  %v17029_v11 = vld [vmem:[%s26465_s1 + $0x238] sm:$0xf0]  ;;  %v11184_v28 = vor.u32 %v17077_v18, %v11183_v16  ;;  %v11243_v16 = vld [vmem:[%s26465_s1 + $0x428] sm:$0xf] }
  0xca   :  { %2539 = vmatpush.bf16.msra.mxu2 %v10788_v30  ;;  %v10739_v30 = vld [vmem:[%s26465_s1 + $0x38] sm:$0xf]  ;;  %v11888_v45 = vor.u32 %v17252_v24, %v11885_v29  ;;  %v17092_v18 = vld [vmem:[%s26465_s1 + $0x430] sm:$0xf0] }
  0xcb   :  { %2553 = vmatpush.bf16.msra.mxu3 %v10884_v37  ;;  %v16990_v37 = vld [vmem:[%s26465_s1 + $0x100] sm:$0xf0]  ;;  %v19661_v42 = vadd.f32 %v2281_v38, %v2268_v33  ;;  %v10740_v46 = vor.u32 %v16966_v32, %v10739_v30  ;;  %v10979_v29 = vld [vmem:[%s26465_s1 + $0x218] sm:$0xf] }
  0xcc   :  { %2512 = vmatpush.bf16.msra.mxu0 %v11828_v49  ;;  %v17225_v49 = vld [vmem:[%s26465_s1 + $0x85c] sm:$0xf]  ;;  %v10836_v53 = vor.u32 %v16990_v37, %v10835_v34  ;;  %v17026_v30 = vld [vmem:[%s26465_s1 + $0x220] sm:$0xf0]  ;;  %v11075_v32 = vld [vmem:[%s26465_s1 + $0x2d8] sm:$0xf] }
  0xcd   :  { %2526 = vmatpush.bf16.msra.mxu1 %v11924_v51  ;;  %v11777_v51 = vld [vmem:[%s26465_s1 + $0x864] sm:$0xf0]  ;;  %v17050_v34 = vld [vmem:[%s26465_s1 + $0x2e0] sm:$0xf0]  ;;  %v11171_v37 = vld [vmem:[%s26465_s1 + $0x398] sm:$0xf] }
  0xce   :  { %2540 = vmatpush.bf16.msra.mxu2 %v10776_v52  ;;  %v17249_v52 = vld [vmem:[%s26465_s1 + $0x91c] sm:$0xf]  ;;  %v11780_v61 = vor.u32 %v17225_v49, %v11777_v51  ;;  %v17074_v38 = vld [vmem:[%s26465_s1 + $0x3a0] sm:$0xf0]  ;;  %v19761_v49 = vpop.f32.mrf.mxu1  ;;  %v10980_v51 = vor.u32 %v17026_v30, %v10979_v29 }
  0xcf   :  { %2554 = vmatpush.bf16.msra.mxu3 %v10872_v56  ;;  %v16963_v56 = vld [vmem:[%s26465_s1 + $0x28] sm:$0xf0]  ;;  %v11876_v0 = vor.u32 %v17249_v52, %v11873_v54  ;;  %26470 = vst [vmem:[#allocation3_spill] sm:$0xff] %v19761_v49  ;;  %v11076_v52 = vor.u32 %v17050_v34, %v11075_v32  ;;  %v10967_v54 = vld [vmem:[%s26465_s1 + $0x200] sm:$0xf] }
  0xd0   :  { %2513 = vmatpush.bf16.msra.mxu0 %v11816_v3  ;;  %v10728_v2 = vor.u32 %v16963_v56, %v10727_v55  ;;  %v17246_v3 = vld [vmem:[%s26465_s1 + $0x904] sm:$0xf]  ;;  %v17023_v55 = vld [vmem:[%s26465_s1 + $0x208] sm:$0xf0]  ;;  %v11063_v56 = vld [vmem:[%s26465_s1 + $0x2c0] sm:$0xf]  ;;  %v19800_v8 = vpop.f32.mrf.mxu2 }
  0xd1   :  { %2527 = vmatpush.bf16.msra.mxu1 %v11912_v4  ;;  %v11861_v4 = vld [vmem:[%s26465_s1 + $0x90c] sm:$0xf0]  ;;  %26471 = vst [vmem:[#allocation4_spill] sm:$0xff] %v19800_v8  ;;  %v17041_v30 = vld [vmem:[%s26465_s1 + $0x298] sm:$0xf0] }
  0xd2   :  { %2541 = vmatpush.bf16.msra.mxu2 %v10764_v5  ;;  %v10715_v5 = vld [vmem:[%s26465_s1 + $0x8] sm:$0xf]  ;;  %v11135_v32 = vld [vmem:[%s26465_s1 + $0x350] sm:$0xf] }
  0xd3   :  { %2555 = vmatpush.bf16.msra.mxu3 %v10860_v48  ;;  %v10991_v48 = vld [vmem:[%s26465_s1 + $0x230] sm:$0xf] }
  0xd4   :  { %2514 = vmatpush.bf16.msra.mxu0 %v11804_v19  ;;  %v11864_v19 = vor.u32 %v17246_v3, %v11861_v4  ;;  %v10992_v24 = vor.u32 %v17029_v11, %v10991_v48  ;;  %v11064_v3 = vor.u32 %v17047_v60, %v11063_v56  ;;  %v17044_v48 = vld [vmem:[%s26465_s1 + $0x2b0] sm:$0xf0]  ;;  %v11147_v11 = vld [vmem:[%s26465_s1 + $0x368] sm:$0xf]  ;;  %v11231_v34 = vld [vmem:[%s26465_s1 + $0x410] sm:$0xf] }
  0xd5   :  { %2528 = vmatpush.bf16.msra.mxu1 %v11900_v20  ;;  %v10716_v20 = vor.u32 %v16960_v7, %v10715_v5  ;;  %v10955_v5 = vld [vmem:[%s26465_s1 + $0x1e8] sm:$0xf]  ;;  %v17038_v56 = vld [vmem:[%s26465_s1 + $0x280] sm:$0xf0] }
  0xd6   :  { %2542 = vmatpush.bf16.msra.mxu2 %v10752_v21  ;;  %v11279_v21 = vld [vmem:[%s26465_s1 + $0x470] sm:$0xf]  ;;  %v11051_v7 = vld [vmem:[%s26465_s1 + $0x2a8] sm:$0xf]  ;;  %v17062_v60 = vld [vmem:[%s26465_s1 + $0x340] sm:$0xf0] }
  0xd7   :  { %2556 = vmatpush.bf16.msra.mxu3 %v10848_v26  ;;  %v11088_v26 = vor.u32 %v17053_v14, %v11087_v12  ;;  %v11280_v33 = vor.u32 %v17101_v22, %v11279_v21  ;;  %v17068_v12 = vld [vmem:[%s26465_s1 + $0x370] sm:$0xf0]  ;;  %v11052_v22 = vor.u32 %v17044_v48, %v11051_v7  ;;  %v17011_v7 = vld [vmem:[%s26465_s1 + $0x1a8] sm:$0xf0] }
  0xd8   :  { %2515 = vmatpush.bf16.msra.mxu0 %v11792_v41  ;;  %v19753_v41 = vpop.f32.mrf.mxu0 }
  0xd9   :  { %2529 = vmatpush.bf16.msra.mxu1 %v11888_v45  ;;  %26469 = vst [vmem:[#allocation2_spill] sm:$0xff] %v19753_v41  ;;  %v11267_v45 = vld [vmem:[%s26465_s1 + $0x458] sm:$0xf] }
  0xda   :  { %2543 = vmatpush.bf16.msra.mxu2 %v10740_v46  ;;  %v17098_v46 = vld [vmem:[%s26465_s1 + $0x460] sm:$0xf0] }
  0xdb   :  { %2557 = vmatpush.bf16.msra.mxu3 %v10836_v53  ;;  %v11172_v53 = vor.u32 %v17074_v38, %v11171_v37  ;;  %v11268_v59 = vor.u32 %v17098_v46, %v11267_v45  ;;  %v17089_v37 = vld [vmem:[%s26465_s1 + $0x418] sm:$0xf0] }
  0xdc   :  { %2516 = vmatpush.bf16.msra.mxu0 %v11780_v61  ;;  %v11159_v61 = vld [vmem:[%s26465_s1 + $0x380] sm:$0xf] }
  0xdd   :  { %2530 = vmatpush.bf16.msra.mxu1 %v11876_v0  ;;  %v17095_v0 = vld [vmem:[%s26465_s1 + $0x448] sm:$0xf0]  ;;  %v11160_v4 = vor.u32 %v17071_v62, %v11159_v61 }
  0xde   :  { %2544 = vmatpush.bf16.msra.mxu2 %v10728_v2  ;;  %v10968_v2 = vor.u32 %v17023_v55, %v10967_v54  ;;  %v11256_v9 = vor.u32 %v17095_v0, %v11255_v63  ;;  %v11232_v54 = vor.u32 %v17089_v37, %v11231_v34  ;;  %v11219_v63 = vld [vmem:[%s26465_s1 + $0x3f8] sm:$0xf]  ;;  %v17086_v0 = vld [vmem:[%s26465_s1 + $0x400] sm:$0xf0]  ;;  %v17125_v34 = vld [vmem:[%s26465_s1 + $0x538] sm:$0xf0] }
  0xdf   :  { %2558 = vmatpush.bf16.msra.mxu3 %v10824_v6  ;;  %v17020_v6 = vld [vmem:[%s26465_s1 + $0x1f0] sm:$0xf0]  ;;  %v11220_v48 = vor.u32 %v17086_v0, %v11219_v63  ;;  %v11471_v37 = vld [vmem:[%s26465_s1 + $0x5f0] sm:$0xf]  ;;  %v17122_v63 = vld [vmem:[%s26465_s1 + $0x520] sm:$0xf0] }
  0xe0   :  { %2517 = vmatpush.bf16.msra.mxu0 %v11768_v13  ;;  %v19811_v13 = vpop.f32.mrf.mxu3  ;;  %v2295_v14 = vpop.f32.mrf.mxu0  ;;  %v11459_v0 = vld [vmem:[%s26465_s1 + $0x5d8] sm:$0xf] }
  0xe1   :  { %2531 = vmatpush.bf16.msra.mxu1 %v11864_v19  ;;  %26472 = vst [vmem:[#allocation5_spill] sm:$0xff] %v19811_v13  ;;  %v2296_v19 = vadd.f32 %v2295_v14, %v19661_v42  ;;  %v2309_v21 = vpop.f32.mrf.mxu1  ;;  %v11244_v42 = vor.u32 %v17092_v18, %v11243_v16  ;;  %v17059_v14 = vld [vmem:[%s26465_s1 + $0x328] sm:$0xf0]  ;;  %v11207_v16 = vld [vmem:[%s26465_s1 + $0x3e0] sm:$0xf] }
  0xe2   :  { %2545 = vmatpush.bf16.msra.mxu2 %v10716_v20  ;;  %v10956_v20 = vor.u32 %v17020_v6, %v10955_v5  ;;  %v10919_v6 = vld [vmem:[%s26465_s1 + $0x1a0] sm:$0xf]  ;;  %v17083_v18 = vld [vmem:[%s26465_s1 + $0x3e8] sm:$0xf0] }
  0xe3   :  { %2559 = vmatpush.bf16.msra.mxu3 %v10812_v23  ;;  %2518 = vmatmul.bf16.vlgmr.msra.gmra.mxu0 %v18952_v40  ;;  %v11148_v23 = vor.u32 %v17068_v12, %v11147_v11  ;;  %v2310_v29 = vadd.f32 %v2309_v21, %v2296_v19  ;;  %v17035_v11 = vld [vmem:[%s26465_s1 + $0x268] sm:$0xf0]  ;;  %v11111_v12 = vld [vmem:[%s26465_s1 + $0x320] sm:$0xf]  ;;  %v10920_v19 = vor.u32 %v17011_v7, %v10919_v6  ;;  %v17008_v21 = vld [vmem:[%s26465_s1 + $0x190] sm:$0xf0] }
  0xe4   :  { %2566 = vmatpush.bf16.msrb.mxu0 %v10992_v24  ;;  %2532 = vmatmul.bf16.vlgmr.msra.gmra.mxu1 %v19141_v25  ;;  %v10943_v24 = vld [vmem:[%s26465_s1 + $0x1d0] sm:$0xf]  ;;  %v17170_v6 = vld [vmem:[%s26465_s1 + $0x6a0] sm:$0xf0] }
  0xe5   :  { %2580 = vmatpush.bf16.msrb.mxu1 %v11088_v26  ;;  %2546 = vmatmul.bf16.vlgmr.msra.gmra.mxu2 %v18481_v58  ;;  %v17017_v26 = vld [vmem:[%s26465_s1 + $0x1d8] sm:$0xf0] }
  0xe6   :  { %2594 = vmatpush.bf16.msrb.mxu2 %v11184_v28  ;;  %2560 = vmatmul.bf16.vlgmr.msra.gmra.mxu3 %v18517_v10  ;;  %v11039_v28 = vld [vmem:[%s26465_s1 + $0x290] sm:$0xf]  ;;  %v10944_v38 = vor.u32 %v17017_v26, %v10943_v24  ;;  %v11003_v24 = vld [vmem:[%s26465_s1 + $0x248] sm:$0xf]  ;;  %v17032_v26 = vld [vmem:[%s26465_s1 + $0x250] sm:$0xf0] }
  0xe7   :  { %2608 = vmatpush.bf16.msrb.mxu3 %v11280_v33  ;;  %v17065_v33 = vld [vmem:[%s26465_s1 + $0x358] sm:$0xf0]  ;;  %v11040_v45 = vor.u32 %v17041_v30, %v11039_v28  ;;  %v11099_v28 = vld [vmem:[%s26465_s1 + $0x308] sm:$0xf] }
  0xe8   :  { %2567 = vmatpush.bf16.msrb.mxu0 %v10980_v51  ;;  %v11136_v46 = vor.u32 %v17065_v33, %v11135_v32  ;;  %v10931_v51 = vld [vmem:[%s26465_s1 + $0x1b8] sm:$0xf]  ;;  %v2323_v55 = vpop.f32.mrf.mxu2  ;;  %v11195_v30 = vld [vmem:[%s26465_s1 + $0x3c8] sm:$0xf]  ;;  %v17080_v32 = vld [vmem:[%s26465_s1 + $0x3d0] sm:$0xf0]  ;;  %v19960_v7 = vpop.f32.mrf.mxu0 }
  0xe9   :  { %2581 = vmatpush.bf16.msrb.mxu1 %v11076_v52  ;;  %v17014_v52 = vld [vmem:[%s26465_s1 + $0x1c0] sm:$0xf0]  ;;  %v2324_v61 = vadd.f32 %v2323_v55, %v2310_v29  ;;  %v2337_v62 = vpop.f32.mrf.mxu3  ;;  %v17056_v29 = vld [vmem:[%s26465_s1 + $0x310] sm:$0xf0]  ;;  %v11375_v33 = vld [vmem:[%s26465_s1 + $0x530] sm:$0xf] }
  0xea   :  { %2595 = vmatpush.bf16.msrb.mxu2 %v11172_v53  ;;  %v11027_v53 = vld [vmem:[%s26465_s1 + $0x278] sm:$0xf]  ;;  %v17197_v55 = vld [vmem:[%s26465_s1 + $0x778] sm:$0xf0]  ;;  %26473 = vst [vmem:[#allocation6_spill] sm:$0xff] %v19960_v7 }
  0xeb   :  { %2609 = vmatpush.bf16.msrb.mxu3 %v11268_v59  ;;  %v11123_v59 = vld [vmem:[%s26465_s1 + $0x338] sm:$0xf] }
  0xec   :  { %2568 = vmatpush.bf16.msrb.mxu0 %v10968_v2  ;;  %v10932_v2 = vor.u32 %v17014_v52, %v10931_v51  ;;  %v11124_v5 = vor.u32 %v17062_v60, %v11123_v59  ;;  %v17173_v51 = vld [vmem:[%s26465_s1 + $0x6b8] sm:$0xf0]  ;;  %v11004_v52 = vor.u32 %v17032_v26, %v11003_v24  ;;  %v11376_v59 = vor.u32 %v17125_v34, %v11375_v33  ;;  %v11639_v24 = vld [vmem:[%s26465_s1 + $0x740] sm:$0xf]  ;;  %v17191_v26 = vld [vmem:[%s26465_s1 + $0x748] sm:$0xf0]  ;;  %v20005_v34 = vpop.f32.mrf.mxu1 }
  0xed   :  { %2582 = vmatpush.bf16.msrb.mxu1 %v11064_v3  ;;  %v19868_v3 = vadd.f32 %v2337_v62, %v2324_v61  ;;  %v11363_v62 = vld [vmem:[%s26465_s1 + $0x518] sm:$0xf]  ;;  %v11435_v33 = vld [vmem:[%s26465_s1 + $0x5a8] sm:$0xf]  ;;  %26474 = vst [vmem:[#allocation7_spill] sm:$0xff] %v20005_v34 }
  0xee   :  { %2596 = vmatpush.bf16.msrb.mxu2 %v11160_v4  ;;  %v11028_v4 = vor.u32 %v17038_v56, %v11027_v53  ;;  %v11100_v53 = vor.u32 %v17056_v29, %v11099_v28  ;;  %v11196_v56 = vor.u32 %v17080_v32, %v11195_v30  ;;  %v11339_v30 = vld [vmem:[%s26465_s1 + $0x4e8] sm:$0xf]  ;;  %v17116_v32 = vld [vmem:[%s26465_s1 + $0x4f0] sm:$0xf0] }
  0xef   :  { %2610 = vmatpush.bf16.msrb.mxu3 %v11256_v9  ;;  %v11015_v9 = vld [vmem:[%s26465_s1 + $0x260] sm:$0xf] }
  0xf0   :  { %2569 = vmatpush.bf16.msrb.mxu0 %v10956_v20  ;;  %v10907_v20 = vld [vmem:[%s26465_s1 + $0x188] sm:$0xf] }
  0xf1   :  { %2583 = vmatpush.bf16.msrb.mxu1 %v11052_v22  ;;  %v11016_v22 = vor.u32 %v17035_v11, %v11015_v9  ;;  %v11651_v9 = vld [vmem:[%s26465_s1 + $0x758] sm:$0xf]  ;;  %v11364_v11 = vor.u32 %v17122_v63, %v11363_v62  ;;  %v11327_v62 = vld [vmem:[%s26465_s1 + $0x4d0] sm:$0xf]  ;;  %v17113_v63 = vld [vmem:[%s26465_s1 + $0x4d8] sm:$0xf0] }
  0xf2   :  { %2597 = vmatpush.bf16.msrb.mxu2 %v11148_v23  ;;  %v11112_v23 = vor.u32 %v17059_v14, %v11111_v12 }
  0xf3   :  { %2611 = vmatpush.bf16.msrb.mxu3 %v11244_v42  ;;  %v11208_v42 = vor.u32 %v17083_v18, %v11207_v16  ;;  %v11351_v16 = vld [vmem:[%s26465_s1 + $0x500] sm:$0xf]  ;;  %v17119_v18 = vld [vmem:[%s26465_s1 + $0x508] sm:$0xf0] }
  0xf4   :  { %2570 = vmatpush.bf16.msrb.mxu0 %v10944_v38  ;;  %v10908_v38 = vor.u32 %v17008_v21, %v10907_v20  ;;  %v17143_v21 = vld [vmem:[%s26465_s1 + $0x5c8] sm:$0xf0]  ;;  %v11352_v28 = vor.u32 %v17119_v18, %v11351_v16  ;;  %v17110_v16 = vld [vmem:[%s26465_s1 + $0x4c0] sm:$0xf0]  ;;  %v11411_v18 = vld [vmem:[%s26465_s1 + $0x578] sm:$0xf] }
  0xf5   :  { %2584 = vmatpush.bf16.msrb.mxu1 %v11040_v45  ;;  %v17149_v45 = vld [vmem:[%s26465_s1 + $0x5f8] sm:$0xf0] }
  0xf6   :  { %2598 = vmatpush.bf16.msrb.mxu2 %v11136_v46  ;;  %v11567_v46 = vld [vmem:[%s26465_s1 + $0x6b0] sm:$0xf]  ;;  %v11472_v60 = vor.u32 %v17149_v45, %v11471_v37  ;;  %v20007_v37 = vpop.f32.mrf.mxu2  ;;  %v17140_v45 = vld [vmem:[%s26465_s1 + $0x5b0] sm:$0xf0] }
  0xf7   :  { %2612 = vmatpush.bf16.msrb.mxu3 %v11232_v54  ;;  %v11663_v54 = vld [vmem:[%s26465_s1 + $0x770] sm:$0xf]  ;;  %v11568_v61 = vor.u32 %v17173_v51, %v11567_v46  ;;  %26475 = vst [vmem:[#allocation8_spill] sm:$0xff] %v20007_v37  ;;  %v11531_v46 = vld [vmem:[%s26465_s1 + $0x668] sm:$0xf] }
  0xf8   :  { %2571 = vmatpush.bf16.msrb.mxu0 %v10932_v2  ;;  %v11664_v2 = vor.u32 %v17197_v55, %v11663_v54  ;;  %v17164_v51 = vld [vmem:[%s26465_s1 + $0x670] sm:$0xf0]  ;;  %v20024_v55 = vpop.f32.mrf.mxu3 }
  0xf9   :  { %2585 = vmatpush.bf16.msrb.mxu1 %v11028_v4  ;;  %v17146_v4 = vld [vmem:[%s26465_s1 + $0x5e0] sm:$0xf0]  ;;  %v17188_v54 = vld [vmem:[%s26465_s1 + $0x730] sm:$0xf0]  ;;  %26476 = vst [vmem:[#allocation9_spill] sm:$0xff] %v20024_v55 }
  0xfa   :  { %2599 = vmatpush.bf16.msrb.mxu2 %v11124_v5  ;;  %v11555_v5 = vld [vmem:[%s26465_s1 + $0x698] sm:$0xf]  ;;  %v11460_v12 = vor.u32 %v17146_v4, %v11459_v0  ;;  %v11423_v0 = vld [vmem:[%s26465_s1 + $0x590] sm:$0xf] }
  0xfb   :  { %2613 = vmatpush.bf16.msrb.mxu3 %v11220_v48  ;;  %v17194_v48 = vld [vmem:[%s26465_s1 + $0x760] sm:$0xf0]  ;;  %v11556_v14 = vor.u32 %v17170_v6, %v11555_v5  ;;  %v11519_v4 = vld [vmem:[%s26465_s1 + $0x650] sm:$0xf]  ;;  %v17161_v5 = vld [vmem:[%s26465_s1 + $0x658] sm:$0xf0] }
  0xfc   :  { %2572 = vmatpush.bf16.msrb.mxu0 %v10920_v19  ;;  %v11447_v19 = vld [vmem:[%s26465_s1 + $0x5c0] sm:$0xf]  ;;  %v11652_v20 = vor.u32 %v17194_v48, %v11651_v9  ;;  %v11615_v6 = vld [vmem:[%s26465_s1 + $0x710] sm:$0xf]  ;;  %v17185_v9 = vld [vmem:[%s26465_s1 + $0x718] sm:$0xf0]  ;;  %v11328_v48 = vor.u32 %v17113_v63, %v11327_v62 }
  0xfd   :  { %2586 = vmatpush.bf16.msrb.mxu1 %v11016_v22  ;;  %v11543_v22 = vld [vmem:[%s26465_s1 + $0x680] sm:$0xf]  ;;  %v11291_v63 = vld [vmem:[%s26465_s1 + $0x488] sm:$0xf] }
  0xfe   :  { %2600 = vmatpush.bf16.msrb.mxu2 %v11112_v23  ;;  %v17167_v23 = vld [vmem:[%s26465_s1 + $0x688] sm:$0xf0] }
  0xff   :  { %2614 = vmatpush.bf16.msrb.mxu3 %v11208_v42  ;;  %v11448_v42 = vor.u32 %v17143_v21, %v11447_v19  ;;  %v11544_v29 = vor.u32 %v17167_v23, %v11543_v22  ;;  %v11616_v19 = vor.u32 %v17185_v9, %v11615_v6  ;;  %v11507_v21 = vld [vmem:[%s26465_s1 + $0x638] sm:$0xf]  ;;  %v17158_v22 = vld [vmem:[%s26465_s1 + $0x640] sm:$0xf0]  ;;  %v11483_v6 = vld [vmem:[%s26465_s1 + $0x608] sm:$0xf] }
 0x100   :  { %2573 = vmatpush.bf16.msrb.mxu0 %v10908_v38  ;;  %v11640_v38 = vor.u32 %v17191_v26, %v11639_v24  ;;  %v11603_v26 = vld [vmem:[%s26465_s1 + $0x6f8] sm:$0xf] }
 0x101   :  { %2587 = vmatpush.bf16.msrb.mxu1 %v11004_v52  ;;  %v2351_v52 = vpop.f32.mrf.mxu0  ;;  %v2365_v23 = vpop.f32.mrf.mxu1 }
 0x102   :  { %2601 = vmatpush.bf16.msrb.mxu2 %v11100_v53  ;;  %v11627_v53 = vld [vmem:[%s26465_s1 + $0x728] sm:$0xf] }
 0x103   :  { %2615 = vmatpush.bf16.msrb.mxu3 %v11196_v56  ;;  %2574 = vmatmul.bf16.vlgmr.msrb.gmra.mxu0 %v18495_v1  ;;  %v20027_v56 = vadd.f32 %v2351_v52, %v19868_v3  ;;  %v11628_v3 = vor.u32 %v17188_v54, %v11627_v53  ;;  %v17131_v53 = vld [vmem:[%s26465_s1 + $0x568] sm:$0xf0]  ;;  %v11495_v54 = vld [vmem:[%s26465_s1 + $0x620] sm:$0xf] }
 0x104   :  { %2622 = vmatpush.bf16.msra.mxu0 %v11376_v59  ;;  %2588 = vmatmul.bf16.vlgmr.msrb.gmra.mxu1 %v18531_v17  ;;  %v11340_v59 = vor.u32 %v17116_v32, %v11339_v30 }
 0x105   :  { %2636 = vmatpush.bf16.msra.mxu1 %v11472_v60  ;;  %2602 = vmatmul.bf16.vlgmr.msrb.gmra.mxu2 %v18703_v39  ;;  %v11436_v60 = vor.u32 %v17140_v45, %v11435_v33  ;;  %v11508_v33 = vor.u32 %v17158_v22, %v11507_v21  ;;  %v17107_v45 = vld [vmem:[%s26465_s1 + $0x4a8] sm:$0xf0]  ;;  %v11951_v21 = vld [vmem:[%s26465_s1 + $0x9b0] sm:$0xf]  ;;  %v17269_v22 = vld [vmem:[%s26465_s1 + $0x9b8] sm:$0xf0] }
 0x106   :  { %2650 = vmatpush.bf16.msra.mxu2 %v11568_v61  ;;  %2616 = vmatmul.bf16.vlgmr.msrb.gmra.mxu3 %v18716_v44  ;;  %v11532_v61 = vor.u32 %v17164_v51, %v11531_v46  ;;  %v11399_v46 = vld [vmem:[%s26465_s1 + $0x560] sm:$0xf] }
 0x107   :  { %2664 = vmatpush.bf16.msra.mxu3 %v11664_v2  ;;  %v17137_v2 = vld [vmem:[%s26465_s1 + $0x598] sm:$0xf0] }
 0x108   :  { %2623 = vmatpush.bf16.msra.mxu0 %v11364_v11  ;;  %v11424_v11 = vor.u32 %v17137_v2, %v11423_v0  ;;  %v2379_v24 = vpop.f32.mrf.mxu2  ;;  %v17104_v0 = vld [vmem:[%s26465_s1 + $0x490] sm:$0xf0] }
 0x109   :  { %2637 = vmatpush.bf16.msra.mxu1 %v11460_v12  ;;  %v11520_v12 = vor.u32 %v17161_v5, %v11519_v4  ;;  %v2393_v30 = vpop.f32.mrf.mxu3  ;;  %v11387_v4 = vld [vmem:[%s26465_s1 + $0x548] sm:$0xf]  ;;  %v17128_v5 = vld [vmem:[%s26465_s1 + $0x550] sm:$0xf0] }
 0x10a   :  { %2651 = vmatpush.bf16.msra.mxu2 %v11556_v14  ;;  %v11315_v14 = vld [vmem:[%s26465_s1 + $0x4b8] sm:$0xf] }
 0x10b   :  { %2665 = vmatpush.bf16.msra.mxu3 %v11652_v20  ;;  %v17134_v20 = vld [vmem:[%s26465_s1 + $0x580] sm:$0xf0] }
 0x10c   :  { %2624 = vmatpush.bf16.msra.mxu0 %v11352_v28  ;;  %v17182_v28 = vld [vmem:[%s26465_s1 + $0x700] sm:$0xf0]  ;;  %v11412_v32 = vor.u32 %v17134_v20, %v11411_v18  ;;  %v11855_v18 = vld [vmem:[%s26465_s1 + $0x8f0] sm:$0xf]  ;;  %v17245_v20 = vld [vmem:[%s26465_s1 + $0x8f8] sm:$0xf0] }
 0x10d   :  { %2638 = vmatpush.bf16.msra.mxu1 %v11448_v42  ;;  %v2380_v42 = vadd.f32 %v2379_v24, %v2365_v23  ;;  %v11604_v52 = vor.u32 %v17182_v28, %v11603_v26  ;;  %v11388_v23 = vor.u32 %v17128_v5, %v11387_v4  ;;  %v12455_v26 = vld [vmem:[%s26465_s1 + $0xa68] sm:$0xf]  ;;  %v17292_v28 = vld [vmem:[%s26465_s1 + $0xa70] sm:$0xf0]  ;;  %v17215_v4 = vld [vmem:[%s26465_s1 + $0x808] sm:$0xf0] }
 0x10e   :  { %2652 = vmatpush.bf16.msra.mxu2 %v11544_v29  ;;  %v11316_v29 = vor.u32 %v17110_v16, %v11315_v14  ;;  %v11759_v14 = vld [vmem:[%s26465_s1 + $0x830] sm:$0xf]  ;;  %v17221_v16 = vld [vmem:[%s26465_s1 + $0x838] sm:$0xf0]  ;;  %v11831_v5 = vld [vmem:[%s26465_s1 + $0x8c0] sm:$0xf] }
 0x10f   :  { %2666 = vmatpush.bf16.msra.mxu3 %v11640_v38  ;;  %v11303_v38 = vld [vmem:[%s26465_s1 + $0x4a0] sm:$0xf]  ;;  %v20086_v51 = vadd.f32 %v2393_v30, %v2380_v42  ;;  %v11856_v30 = vor.u32 %v17245_v20, %v11855_v18 }
 0x110   :  { %2625 = vmatpush.bf16.msra.mxu0 %v11340_v59  ;;  %v17155_v59 = vld [vmem:[%s26465_s1 + $0x628] sm:$0xf0]  ;;  %v11304_v62 = vor.u32 %v17107_v45, %v11303_v38  ;;  %v17218_v38 = vld [vmem:[%s26465_s1 + $0x820] sm:$0xf0]  ;;  %v11843_v45 = vld [vmem:[%s26465_s1 + $0x8d8] sm:$0xf]  ;;  %v20207_v18 = vpop.f32.mrf.mxu2 }
 0x111   :  { %2639 = vmatpush.bf16.msra.mxu1 %v11436_v60  ;;  %v11591_v60 = vld [vmem:[%s26465_s1 + $0x6e0] sm:$0xf]  ;;  %v11496_v2 = vor.u32 %v17155_v59, %v11495_v54  ;;  %v17266_v54 = vld [vmem:[%s26465_s1 + $0x9a0] sm:$0xf0]  ;;  %v20169_v59 = vpop.f32.mrf.mxu0 }
 0x112   :  { %2653 = vmatpush.bf16.msra.mxu2 %v11532_v61  ;;  %v17179_v61 = vld [vmem:[%s26465_s1 + $0x6e8] sm:$0xf0]  ;;  %26477 = vst [vmem:[#allocation10_spill] sm:$0xff] %v20169_v59 }
 0x113   :  { %2667 = vmatpush.bf16.msra.mxu3 %v11628_v3  ;;  %v11400_v3 = vor.u32 %v17131_v53, %v11399_v46  ;;  %v11592_v9 = vor.u32 %v17179_v61, %v11591_v60  ;;  %v12456_v46 = vor.u32 %v17292_v28, %v12455_v26  ;;  %v11939_v53 = vld [vmem:[%s26465_s1 + $0x998] sm:$0xf]  ;;  %v12443_v60 = vld [vmem:[%s26465_s1 + $0xa50] sm:$0xf]  ;;  %v17289_v61 = vld [vmem:[%s26465_s1 + $0xa58] sm:$0xf0]  ;;  %v20218_v26 = vpop.f32.mrf.mxu3 }
 0x114   :  { %2626 = vmatpush.bf16.msra.mxu0 %v11328_v48  ;;  %v17152_v48 = vld [vmem:[%s26465_s1 + $0x610] sm:$0xf0] }
 0x115   :  { %2640 = vmatpush.bf16.msra.mxu1 %v11424_v11  ;;  %v11579_v11 = vld [vmem:[%s26465_s1 + $0x6c8] sm:$0xf]  ;;  %v11484_v24 = vor.u32 %v17152_v48, %v11483_v6  ;;  %v12444_v6 = vor.u32 %v17289_v61, %v12443_v60  ;;  %v11927_v48 = vld [vmem:[%s26465_s1 + $0x980] sm:$0xf]  ;;  %v17236_v28 = vld [vmem:[%s26465_s1 + $0x8b0] sm:$0xf0] }
 0x116   :  { %2654 = vmatpush.bf16.msra.mxu2 %v11520_v12  ;;  %v17176_v12 = vld [vmem:[%s26465_s1 + $0x6d0] sm:$0xf0]  ;;  %v17209_v60 = vld [vmem:[%s26465_s1 + $0x7d8] sm:$0xf0]  ;;  %v11807_v61 = vld [vmem:[%s26465_s1 + $0x890] sm:$0xf] }
 0x117   :  { %2668 = vmatpush.bf16.msra.mxu3 %v11616_v19  ;;  %v11292_v19 = vor.u32 %v17104_v0, %v11291_v63  ;;  %v11580_v42 = vor.u32 %v17176_v12, %v11579_v11  ;;  %v17263_v11 = vld [vmem:[%s26465_s1 + $0x988] sm:$0xf0]  ;;  %v12431_v12 = vld [vmem:[%s26465_s1 + $0xa38] sm:$0xf] }
 0x118   :  { %2627 = vmatpush.bf16.msra.mxu0 %v11316_v29  ;;  %v11760_v29 = vor.u32 %v17221_v16, %v11759_v14  ;;  %v17286_v14 = vld [vmem:[%s26465_s1 + $0xa40] sm:$0xf0]  ;;  %v11928_v20 = vor.u32 %v17263_v11, %v11927_v48  ;;  %v11699_v11 = vld [vmem:[%s26465_s1 + $0x7b8] sm:$0xf] }
 0x119   :  { %2641 = vmatpush.bf16.msra.mxu1 %v11412_v32  ;;  %v11952_v32 = vor.u32 %v17269_v22, %v11951_v21  ;;  %v11723_v21 = vld [vmem:[%s26465_s1 + $0x7e8] sm:$0xf]  ;;  %v17212_v22 = vld [vmem:[%s26465_s1 + $0x7f0] sm:$0xf0] }
 0x11a   :  { %2655 = vmatpush.bf16.msra.mxu2 %v11508_v33  ;;  %v11747_v33 = vld [vmem:[%s26465_s1 + $0x818] sm:$0xf] }
 0x11b   :  { %2669 = vmatpush.bf16.msra.mxu3 %v11604_v52  ;;  %v17242_v52 = vld [vmem:[%s26465_s1 + $0x8e0] sm:$0xf0]  ;;  %v11748_v63 = vor.u32 %v17218_v38, %v11747_v33  ;;  %v17283_v33 = vld [vmem:[%s26465_s1 + $0xa28] sm:$0xf0] }
 0x11c   :  { %2628 = vmatpush.bf16.msra.mxu0 %v11304_v62  ;;  %v20177_v62 = vpop.f32.mrf.mxu1  ;;  %v11844_v0 = vor.u32 %v17242_v52, %v11843_v45  ;;  %v11724_v45 = vor.u32 %v17212_v22, %v11723_v21  ;;  %v11891_v21 = vld [vmem:[%s26465_s1 + $0x938] sm:$0xf]  ;;  %v17254_v22 = vld [vmem:[%s26465_s1 + $0x940] sm:$0xf0] }
 0x11d   :  { %2642 = vmatpush.bf16.msra.mxu1 %v11400_v3  ;;  %v11940_v3 = vor.u32 %v17266_v54, %v11939_v53  ;;  %v11711_v54 = vld [vmem:[%s26465_s1 + $0x7d0] sm:$0xf] }
 0x11e   :  { %2656 = vmatpush.bf16.msra.mxu2 %v11496_v2  ;;  %v11735_v2 = vld [vmem:[%s26465_s1 + $0x800] sm:$0xf] }
 0x11f   :  { %2670 = vmatpush.bf16.msra.mxu3 %v11592_v9  ;;  %v17239_v9 = vld [vmem:[%s26465_s1 + $0x8c8] sm:$0xf0]  ;;  %v11736_v16 = vor.u32 %v17215_v4, %v11735_v2  ;;  %v17257_v2 = vld [vmem:[%s26465_s1 + $0x958] sm:$0xf0]  ;;  %v12407_v4 = vld [vmem:[%s26465_s1 + $0xa08] sm:$0xf] }
 0x120   :  { %2629 = vmatpush.bf16.msra.mxu0 %v11292_v19  ;;  %v11832_v19 = vor.u32 %v17239_v9, %v11831_v5  ;;  %v17280_v5 = vld [vmem:[%s26465_s1 + $0xa10] sm:$0xf0] }
 0x121   :  { %2643 = vmatpush.bf16.msra.mxu1 %v11388_v23  ;;  %v11819_v23 = vld [vmem:[%s26465_s1 + $0x8a8] sm:$0xf] }
 0x122   :  { %2657 = vmatpush.bf16.msra.mxu2 %v11484_v24  ;;  %v12432_v24 = vor.u32 %v17286_v14, %v12431_v12  ;;  %v17206_v12 = vld [vmem:[%s26465_s1 + $0x7c0] sm:$0xf0]  ;;  %v11795_v14 = vld [vmem:[%s26465_s1 + $0x878] sm:$0xf] }
 0x123   :  { %2671 = vmatpush.bf16.msra.mxu3 %v11580_v42  ;;  %2630 = vmatmul.bf16.vlgmr.msra.gmra.mxu0 %v18714_v43  ;;  %v11915_v42 = vld [vmem:[%s26465_s1 + $0x968] sm:$0xf] }
 0x124   :  { %2678 = vmatpush.bf16.msrb.mxu0 %v11760_v29  ;;  %2644 = vmatmul.bf16.vlgmr.msra.gmra.mxu1 %v18724_v47  ;;  %v17260_v29 = vld [vmem:[%s26465_s1 + $0x970] sm:$0xf0]  ;;  %v2421_v53 = vpop.f32.mrf.mxu1 }
 0x125   :  { %2692 = vmatpush.bf16.msrb.mxu1 %v11856_v30  ;;  %2658 = vmatmul.bf16.vlgmr.msra.gmra.mxu2 %v18931_v31  ;;  %v2407_v30 = vpop.f32.mrf.mxu0  ;;  %v11916_v52 = vor.u32 %v17260_v29, %v11915_v42  ;;  %v11700_v29 = vor.u32 %v17206_v12, %v11699_v11  ;;  %v17248_v11 = vld [vmem:[%s26465_s1 + $0x910] sm:$0xf0]  ;;  %v12371_v12 = vld [vmem:[%s26465_s1 + $0x9c0] sm:$0xf] }
 0x126   :  { %2706 = vmatpush.bf16.msrb.mxu2 %v11952_v32  ;;  %2672 = vmatmul.bf16.vlgmr.msra.gmra.mxu3 %v18944_v36  ;;  %v12419_v32 = vld [vmem:[%s26465_s1 + $0xa20] sm:$0xf]  ;;  %v2408_v38 = vadd.f32 %v2407_v30, %v20086_v51 }
 0x127   :  { %4801 = vmatpush.bf16.msrb.mxu3 %v12456_v46  ;;  %v11820_v46 = vor.u32 %v17236_v28, %v11819_v23  ;;  %v12420_v51 = vor.u32 %v17283_v33, %v12419_v32  ;;  %v17277_v28 = vld [vmem:[%s26465_s1 + $0x9f8] sm:$0xf0]  ;;  %v11892_v33 = vor.u32 %v17254_v22, %v11891_v21  ;;  %v17340_v22 = vld [vmem:[%s26465_s1 + $0xbf0] sm:$0xf0] }
 0x128   :  { %2679 = vmatpush.bf16.msrb.mxu0 %v11748_v63  ;;  %v2422_v63 = vadd.f32 %v2421_v53, %v2408_v38  ;;  %v11687_v38 = vld [vmem:[%s26465_s1 + $0x7a0] sm:$0xf]  ;;  %v17227_v53 = vld [vmem:[%s26465_s1 + $0x868] sm:$0xf0] }
 0x129   :  { %2693 = vmatpush.bf16.msrb.mxu1 %v11844_v0  ;;  %v17233_v0 = vld [vmem:[%s26465_s1 + $0x898] sm:$0xf0]  ;;  %v2449_v42 = vpop.f32.mrf.mxu3 }
 0x12a   :  { %2707 = vmatpush.bf16.msrb.mxu2 %v11940_v3  ;;  %v11903_v3 = vld [vmem:[%s26465_s1 + $0x950] sm:$0xf]  ;;  %v11808_v9 = vor.u32 %v17233_v0, %v11807_v61  ;;  %v12383_v61 = vld [vmem:[%s26465_s1 + $0x9d8] sm:$0xf]  ;;  %v11675_v0 = vld [vmem:[%s26465_s1 + $0x788] sm:$0xf] }
 0x12b   :  { %4802 = vmatpush.bf16.msrb.mxu3 %v12444_v6  ;;  %v11712_v6 = vor.u32 %v17209_v60, %v11711_v54  ;;  %v11904_v48 = vor.u32 %v17257_v2, %v11903_v3  ;;  %v11879_v54 = vld [vmem:[%s26465_s1 + $0x920] sm:$0xf]  ;;  %v17251_v60 = vld [vmem:[%s26465_s1 + $0x928] sm:$0xf0]  ;;  %v17200_v3 = vld [vmem:[%s26465_s1 + $0x790] sm:$0xf0] }
 0x12c   :  { %2680 = vmatpush.bf16.msrb.mxu0 %v11736_v16  ;;  %v12408_v16 = vor.u32 %v17280_v5, %v12407_v4  ;;  %v11880_v4 = vor.u32 %v17251_v60, %v11879_v54  ;;  %v11771_v5 = vld [vmem:[%s26465_s1 + $0x848] sm:$0xf]  ;;  %v11676_v21 = vor.u32 %v17200_v3, %v11675_v0  ;;  %v12635_v54 = vld [vmem:[%s26465_s1 + $0xbd0] sm:$0xf] }
 0x12d   :  { %2694 = vmatpush.bf16.msrb.mxu1 %v11832_v19  ;;  %v2435_v19 = vpop.f32.mrf.mxu2  ;;  %v20376_v0 = vpop.f32.mrf.mxu0  ;;  %v12827_v3 = vld [vmem:[%s26465_s1 + $0xd50] sm:$0xf] }
 0x12e   :  { %2708 = vmatpush.bf16.msrb.mxu2 %v11928_v20  ;;  %v17230_v20 = vld [vmem:[%s26465_s1 + $0x880] sm:$0xf0]  ;;  %v2436_v23 = vadd.f32 %v2435_v19, %v2422_v63  ;;  %v17316_v19 = vld [vmem:[%s26465_s1 + $0xb30] sm:$0xf0]  ;;  %26478 = vst [vmem:[#allocation11_spill] sm:$0xff] %v20376_v0 }
 0x12f   :  { %4803 = vmatpush.bf16.msrb.mxu3 %v12432_v24  ;;  %v12395_v24 = vld [vmem:[%s26465_s1 + $0x9f0] sm:$0xf]  ;;  %v11796_v32 = vor.u32 %v17230_v20, %v11795_v14  ;;  %v17271_v14 = vld [vmem:[%s26465_s1 + $0x9c8] sm:$0xf0]  ;;  %v12647_v20 = vld [vmem:[%s26465_s1 + $0xbe8] sm:$0xf] }
 0x130   :  { %2681 = vmatpush.bf16.msrb.mxu0 %v11724_v45  ;;  %v20284_v30 = vadd.f32 %v2449_v42, %v2436_v23  ;;  %v17203_v45 = vld [vmem:[%s26465_s1 + $0x7a8] sm:$0xf0]  ;;  %v12743_v23 = vld [vmem:[%s26465_s1 + $0xca8] sm:$0xf] }
 0x131   :  { %2695 = vmatpush.bf16.msrb.mxu1 %v11820_v46  ;;  %v11783_v46 = vld [vmem:[%s26465_s1 + $0x860] sm:$0xf]  ;;  %v11688_v63 = vor.u32 %v17203_v45, %v11687_v38  ;;  %v12648_v45 = vor.u32 %v17340_v22, %v12647_v20  ;;  %v17358_v20 = vld [vmem:[%s26465_s1 + $0xc80] sm:$0xf0] }
 0x132   :  { %2709 = vmatpush.bf16.msrb.mxu2 %v11916_v52  ;;  %v12396_v52 = vor.u32 %v17277_v28, %v12395_v24  ;;  %v11784_v2 = vor.u32 %v17227_v53, %v11783_v46  ;;  %v17364_v24 = vld [vmem:[%s26465_s1 + $0xcb0] sm:$0xf0]  ;;  %v17313_v53 = vld [vmem:[%s26465_s1 + $0xb18] sm:$0xf0]  ;;  %v17382_v22 = vld [vmem:[%s26465_s1 + $0xd40] sm:$0xf0] }
 0x133   :  { %4804 = vmatpush.bf16.msrb.mxu3 %v12420_v51  ;;  %v17274_v51 = vld [vmem:[%s26465_s1 + $0x9e0] sm:$0xf0]  ;;  %v12744_v46 = vor.u32 %v17364_v24, %v12743_v23 }
 0x134   :  { %2682 = vmatpush.bf16.msrb.mxu0 %v11712_v6  ;;  %v17224_v6 = vld [vmem:[%s26465_s1 + $0x850] sm:$0xf0] }
 0x135   :  { %2696 = vmatpush.bf16.msrb.mxu1 %v11808_v9  ;;  %v11867_v9 = vld [vmem:[%s26465_s1 + $0x908] sm:$0xf]  ;;  %v11772_v28 = vor.u32 %v17224_v6, %v11771_v5 }
 0x136   :  { %2710 = vmatpush.bf16.msrb.mxu2 %v11904_v48  ;;  %v12384_v48 = vor.u32 %v17274_v51, %v12383_v61  ;;  %v11868_v42 = vor.u32 %v17248_v11, %v11867_v9  ;;  %v17337_v61 = vld [vmem:[%s26465_s1 + $0xbd8] sm:$0xf0]  ;;  %v12731_v51 = vld [vmem:[%s26465_s1 + $0xc90] sm:$0xf]  ;;  %v17310_v11 = vld [vmem:[%s26465_s1 + $0xb00] sm:$0xf0] }
 0x137   :  { %4805 = vmatpush.bf16.msrb.mxu3 %v12408_v16  ;;  %v12551_v16 = vld [vmem:[%s26465_s1 + $0xb28] sm:$0xf]  ;;  %v12636_v6 = vor.u32 %v17337_v61, %v12635_v54  ;;  %v17379_v61 = vld [vmem:[%s26465_s1 + $0xd28] sm:$0xf0] }
 0x138   :  { %2683 = vmatpush.bf16.msrb.mxu0 %v11700_v29  ;;  %v12839_v29 = vld [vmem:[%s26465_s1 + $0xd68] sm:$0xf]  ;;  %v12552_v38 = vor.u32 %v17316_v19, %v12551_v16  ;;  %v17334_v16 = vld [vmem:[%s26465_s1 + $0xbc0] sm:$0xf0]  ;;  %v12719_v19 = vld [vmem:[%s26465_s1 + $0xc78] sm:$0xf] }
 0x139   :  { %2697 = vmatpush.bf16.msrb.mxu1 %v11796_v32  ;;  %v17388_v32 = vld [vmem:[%s26465_s1 + $0xd70] sm:$0xf0] }
 0x13a   :  { %2711 = vmatpush.bf16.msrb.mxu2 %v11892_v33  ;;  %v12372_v33 = vor.u32 %v17271_v14, %v12371_v12  ;;  %v12840_v60 = vor.u32 %v17388_v32, %v12839_v29  ;;  %v12623_v12 = vld [vmem:[%s26465_s1 + $0xbb8] sm:$0xf]  ;;  %v17307_v29 = vld [vmem:[%s26465_s1 + $0xae8] sm:$0xf0]  ;;  %v12611_v32 = vld [vmem:[%s26465_s1 + $0xba0] sm:$0xf] }
 0x13b   :  { %4806 = vmatpush.bf16.msrb.mxu3 %v12396_v52  ;;  %v12539_v52 = vld [vmem:[%s26465_s1 + $0xb10] sm:$0xf]  ;;  %v12624_v24 = vor.u32 %v17334_v16, %v12623_v12  ;;  %v17328_v12 = vld [vmem:[%s26465_s1 + $0xb90] sm:$0xf0] }
 0x13c   :  { %2684 = vmatpush.bf16.msrb.mxu0 %v11688_v63  ;;  %v17361_v63 = vld [vmem:[%s26465_s1 + $0xc98] sm:$0xf0]  ;;  %v12540_v5 = vor.u32 %v17313_v53, %v12539_v52  ;;  %v17355_v52 = vld [vmem:[%s26465_s1 + $0xc68] sm:$0xf0]  ;;  %v20434_v53 = vpop.f32.mrf.mxu3  ;;  %v17352_v16 = vld [vmem:[%s26465_s1 + $0xc50] sm:$0xf0] }
 0x13d   :  { %2698 = vmatpush.bf16.msrb.mxu1 %v11784_v2  ;;  %v17385_v2 = vld [vmem:[%s26465_s1 + $0xd58] sm:$0xf0]  ;;  %v12732_v9 = vor.u32 %v17361_v63, %v12731_v51  ;;  %26481 = vst [vmem:[#allocation14_spill] sm:$0xff] %v20434_v53 }
 0x13e   :  { %2712 = vmatpush.bf16.msrb.mxu2 %v11880_v4  ;;  %v20384_v4 = vpop.f32.mrf.mxu1  ;;  %v12828_v14 = vor.u32 %v17385_v2, %v12827_v3 }
 0x13f   :  { %4807 = vmatpush.bf16.msrb.mxu3 %v12384_v48  ;;  %26479 = vst [vmem:[#allocation12_spill] sm:$0xff] %v20384_v4  ;;  %v12527_v48 = vld [vmem:[%s26465_s1 + $0xaf8] sm:$0xf] }
 0x140   :  { %2685 = vmatpush.bf16.msrb.mxu0 %v11676_v21  ;;  %v12815_v21 = vld [vmem:[%s26465_s1 + $0xd38] sm:$0xf]  ;;  %v12528_v23 = vor.u32 %v17310_v11, %v12527_v48  ;;  %v2463_v54 = vpop.f32.mrf.mxu0  ;;  %v12599_v48 = vld [vmem:[%s26465_s1 + $0xb88] sm:$0xf] }
 0x141   :  { %2699 = vmatpush.bf16.msrb.mxu1 %v11772_v28  ;;  %v12720_v28 = vor.u32 %v17358_v20, %v12719_v19  ;;  %v2464_v51 = vadd.f32 %v2463_v54, %v20284_v30  ;;  %v12791_v19 = vld [vmem:[%s26465_s1 + $0xd08] sm:$0xf]  ;;  %v17376_v20 = vld [vmem:[%s26465_s1 + $0xd10] sm:$0xf0] }
 0x142   :  { %2713 = vmatpush.bf16.msrb.mxu2 %v11868_v42  ;;  %v12515_v42 = vld [vmem:[%s26465_s1 + $0xae0] sm:$0xf] }
 0x143   :  { %4808 = vmatpush.bf16.msrb.mxu3 %v12372_v33  ;;  %2686 = vmatmul.bf16.vlgmr.msrb.gmra.mxu0 %v18942_v35  ;;  %v20423_v33 = vpop.f32.mrf.mxu2  ;;  %v12516_v63 = vor.u32 %v17307_v29, %v12515_v42  ;;  %v12587_v42 = vld [vmem:[%s26465_s1 + $0xb70] sm:$0xf]  ;;  %v12792_v29 = vor.u32 %v17376_v20, %v12791_v19  ;;  %v12467_v20 = vld [vmem:[%s26465_s1 + $0xa80] sm:$0xf] }
 0x144   :  { %4815 = vmatpush.bf16.msra.mxu0 %v12552_v38  ;;  %2700 = vmatmul.bf16.vlgmr.msrb.gmra.mxu1 %v18952_v40  ;;  %26480 = vst [vmem:[#allocation13_spill] sm:$0xff] %v20423_v33  ;;  %v12816_v38 = vor.u32 %v17382_v22, %v12815_v21  ;;  %v12600_v22 = vor.u32 %v17328_v12, %v12599_v48  ;;  %v17346_v12 = vld [vmem:[%s26465_s1 + $0xc20] sm:$0xf0] }
 0x145   :  { %4829 = vmatpush.bf16.msra.mxu1 %v12648_v45  ;;  %2714 = vmatmul.bf16.vlgmr.msrb.gmra.mxu2 %v19141_v25  ;;  %v17331_v45 = vld [vmem:[%s26465_s1 + $0xba8] sm:$0xf0] }
 0x146   :  { %4843 = vmatpush.bf16.msra.mxu2 %v12744_v46  ;;  %4809 = vmatmul.bf16.vlgmr.msrb.gmra.mxu3 %v18481_v58  ;;  %v12707_v46 = vld [vmem:[%s26465_s1 + $0xc60] sm:$0xf]  ;;  %v2477_v3 = vpop.f32.mrf.mxu1  ;;  %v12612_v2 = vor.u32 %v17331_v45, %v12611_v32  ;;  %v12683_v45 = vld [vmem:[%s26465_s1 + $0xc30] sm:$0xf] }
 0x147   :  { %4857 = vmatpush.bf16.msra.mxu3 %v12840_v60  ;;  %v12803_v60 = vld [vmem:[%s26465_s1 + $0xd20] sm:$0xf]  ;;  %v2478_v11 = vadd.f32 %v2477_v3, %v2464_v51 }
 0x148   :  { %4816 = vmatpush.bf16.msra.mxu0 %v12540_v5  ;;  %v12708_v5 = vor.u32 %v17355_v52, %v12707_v46  ;;  %v12804_v30 = vor.u32 %v17379_v61, %v12803_v60  ;;  %v17349_v46 = vld [vmem:[%s26465_s1 + $0xc38] sm:$0xf0]  ;;  %v12779_v60 = vld [vmem:[%s26465_s1 + $0xcf0] sm:$0xf] }
 0x149   :  { %4830 = vmatpush.bf16.msra.mxu1 %v12636_v6  ;;  %v12503_v6 = vld [vmem:[%s26465_s1 + $0xac8] sm:$0xf]  ;;  %v2505_v54 = vpop.f32.mrf.mxu3  ;;  %v17373_v61 = vld [vmem:[%s26465_s1 + $0xcf8] sm:$0xf0] }
 0x14a   :  { %4844 = vmatpush.bf16.msra.mxu2 %v12732_v9  ;;  %v17304_v9 = vld [vmem:[%s26465_s1 + $0xad0] sm:$0xf0]  ;;  %v12780_v48 = vor.u32 %v17373_v61, %v12779_v60 }
 0x14b   :  { %4858 = vmatpush.bf16.msra.mxu3 %v12828_v14  ;;  %v12695_v14 = vld [vmem:[%s26465_s1 + $0xc48] sm:$0xf]  ;;  %v12504_v21 = vor.u32 %v17304_v9, %v12503_v6  ;;  %v2491_v32 = vpop.f32.mrf.mxu2  ;;  %v17298_v6 = vld [vmem:[%s26465_s1 + $0xaa0] sm:$0xf0]  ;;  %v12575_v9 = vld [vmem:[%s26465_s1 + $0xb58] sm:$0xf] }
 0x14c   :  { %4817 = vmatpush.bf16.msra.mxu0 %v12528_v23  ;;  %v12696_v23 = vor.u32 %v17352_v16, %v12695_v14  ;;  %v2492_v52 = vadd.f32 %v2491_v32, %v2478_v11  ;;  %v12671_v11 = vld [vmem:[%s26465_s1 + $0xc18] sm:$0xf]  ;;  %v17370_v16 = vld [vmem:[%s26465_s1 + $0xce0] sm:$0xf0]  ;;  %v17343_v32 = vld [vmem:[%s26465_s1 + $0xc08] sm:$0xf0] }
 0x14d   :  { %4831 = vmatpush.bf16.msra.mxu1 %v12624_v24  ;;  %v12491_v24 = vld [vmem:[%s26465_s1 + $0xab0] sm:$0xf]  ;;  %v12767_v14 = vld [vmem:[%s26465_s1 + $0xcd8] sm:$0xf]  ;;  %v17436_v61 = vld [vmem:[%s26465_s1 + $0xef0] sm:$0xf0] }
 0x14e   :  { %4845 = vmatpush.bf16.msra.mxu2 %v12720_v28  ;;  %v17301_v28 = vld [vmem:[%s26465_s1 + $0xab8] sm:$0xf0] }
 0x14f   :  { %4859 = vmatpush.bf16.msra.mxu3 %v12816_v38  ;;  %v17325_v38 = vld [vmem:[%s26465_s1 + $0xb78] sm:$0xf0]  ;;  %v12492_v51 = vor.u32 %v17301_v28, %v12491_v24  ;;  %v12563_v24 = vld [vmem:[%s26465_s1 + $0xb40] sm:$0xf]  ;;  %v17319_v28 = vld [vmem:[%s26465_s1 + $0xb48] sm:$0xf0] }
 0x150   :  { %4818 = vmatpush.bf16.msra.mxu0 %v12516_v63  ;;  %v20491_v63 = vadd.f32 %v2505_v54, %v2492_v52  ;;  %v12588_v3 = vor.u32 %v17325_v38, %v12587_v42  ;;  %v12659_v42 = vld [vmem:[%s26465_s1 + $0xc00] sm:$0xf]  ;;  %v17412_v52 = vld [vmem:[%s26465_s1 + $0xe30] sm:$0xf0]  ;;  %v13031_v54 = vld [vmem:[%s26465_s1 + $0xee8] sm:$0xf] }
 0x151   :  { %4832 = vmatpush.bf16.msra.mxu1 %v12612_v2  ;;  %v12684_v2 = vor.u32 %v17349_v46, %v12683_v45  ;;  %v12755_v38 = vld [vmem:[%s26465_s1 + $0xcc0] sm:$0xf]  ;;  %v17367_v45 = vld [vmem:[%s26465_s1 + $0xcc8] sm:$0xf0]  ;;  %v12935_v46 = vld [vmem:[%s26465_s1 + $0xe28] sm:$0xf] }
 0x152   :  { %4846 = vmatpush.bf16.msra.mxu2 %v12708_v5  ;;  %v12479_v5 = vld [vmem:[%s26465_s1 + $0xa98] sm:$0xf] }
 0x153   :  { %4860 = vmatpush.bf16.msra.mxu3 %v12804_v30  ;;  %v17322_v30 = vld [vmem:[%s26465_s1 + $0xb60] sm:$0xf0]  ;;  %v12480_v19 = vor.u32 %v17298_v6, %v12479_v5  ;;  %v12660_v5 = vor.u32 %v17343_v32, %v12659_v42  ;;  %v13223_v6 = vld [vmem:[%s26465_s1 + $0x1068] sm:$0xf]  ;;  %v17481_v42 = vld [vmem:[%s26465_s1 + $0x1058] sm:$0xf0] }
 0x154   :  { %4819 = vmatpush.bf16.msra.mxu0 %v12504_v21  ;;  %v17295_v21 = vld [vmem:[%s26465_s1 + $0xa88] sm:$0xf0] }
 0x155   :  { %4833 = vmatpush.bf16.msra.mxu1 %v12600_v22  ;;  %v12576_v22 = vor.u32 %v17322_v30, %v12575_v9  ;;  %v12468_v60 = vor.u32 %v17295_v21, %v12467_v20  ;;  %v17484_v9 = vld [vmem:[%s26465_s1 + $0x1070] sm:$0xf0]  ;;  %v12936_v30 = vor.u32 %v17412_v52, %v12935_v46  ;;  %v17433_v21 = vld [vmem:[%s26465_s1 + $0xed8] sm:$0xf0]  ;;  %v12911_v46 = vld [vmem:[%s26465_s1 + $0xdf8] sm:$0xf] }
 0x156   :  { %4847 = vmatpush.bf16.msra.mxu2 %v12696_v23  ;;  %v12672_v23 = vor.u32 %v17346_v12, %v12671_v11  ;;  %v13032_v11 = vor.u32 %v17436_v61, %v13031_v54  ;;  %v13224_v20 = vor.u32 %v17484_v9, %v13223_v6  ;;  %v17406_v52 = vld [vmem:[%s26465_s1 + $0xe00] sm:$0xf0]  ;;  %v13007_v54 = vld [vmem:[%s26465_s1 + $0xeb8] sm:$0xf] }
 0x157   :  { %4861 = vmatpush.bf16.msra.mxu3 %v12792_v29  ;;  %v12768_v29 = vor.u32 %v17370_v16, %v12767_v14  ;;  %v12923_v14 = vld [vmem:[%s26465_s1 + $0xe10] sm:$0xf]  ;;  %v17409_v16 = vld [vmem:[%s26465_s1 + $0xe18] sm:$0xf0]  ;;  %v17430_v61 = vld [vmem:[%s26465_s1 + $0xec0] sm:$0xf0]  ;;  %v12912_v6 = vor.u32 %v17406_v52, %v12911_v46 }
 0x158   :  { %4820 = vmatpush.bf16.msra.mxu0 %v12492_v51  ;;  %v13127_v51 = vld [vmem:[%s26465_s1 + $0xfa8] sm:$0xf]  ;;  %v12924_v32 = vor.u32 %v17409_v16, %v12923_v14  ;;  %v13008_v9 = vor.u32 %v17430_v61, %v13007_v54  ;;  %v20630_v14 = vpop.f32.mrf.mxu2 }
 0x159   :  { %4834 = vmatpush.bf16.msra.mxu1 %v12588_v3  ;;  %v17460_v3 = vld [vmem:[%s26465_s1 + $0xfb0] sm:$0xf0]  ;;  %26484 = vst [vmem:[#allocation17_spill] sm:$0xff] %v20630_v14  ;;  %v12887_v54 = vld [vmem:[%s26465_s1 + $0xdc8] sm:$0xf] }
 0x15a   :  { %4848 = vmatpush.bf16.msra.mxu2 %v12684_v2  ;;  %v12564_v2 = vor.u32 %v17319_v28, %v12563_v24  ;;  %v13128_v12 = vor.u32 %v17460_v3, %v13127_v51  ;;  %v20583_v24 = vpop.f32.mrf.mxu0  ;;  %v13211_v28 = vld [vmem:[%s26465_s1 + $0x1050] sm:$0xf]  ;;  %v13103_v51 = vld [vmem:[%s26465_s1 + $0xf78] sm:$0xf]  ;;  %v17454_v3 = vld [vmem:[%s26465_s1 + $0xf80] sm:$0xf0] }
 0x15b   :  { %4862 = vmatpush.bf16.msra.mxu3 %v12780_v48  ;;  %v12756_v48 = vor.u32 %v17367_v45, %v12755_v38  ;;  %26482 = vst [vmem:[#allocation15_spill] sm:$0xff] %v20583_v24  ;;  %v12983_v61 = vld [vmem:[%s26465_s1 + $0xe88] sm:$0xf] }
 0x15c   :  { %4821 = vmatpush.bf16.msra.mxu0 %v12480_v19  ;;  %v13019_v19 = vld [vmem:[%s26465_s1 + $0xed0] sm:$0xf] }
 0x15d   :  { %4835 = vmatpush.bf16.msra.mxu1 %v12576_v22  ;;  %v13115_v22 = vld [vmem:[%s26465_s1 + $0xf90] sm:$0xf]  ;;  %v13020_v38 = vor.u32 %v17433_v21, %v13019_v19  ;;  %v17427_v19 = vld [vmem:[%s26465_s1 + $0xea8] sm:$0xf0] }
 0x15e   :  { %4849 = vmatpush.bf16.msra.mxu2 %v12672_v23  ;;  %v17457_v23 = vld [vmem:[%s26465_s1 + $0xf98] sm:$0xf0]  ;;  %v17451_v21 = vld [vmem:[%s26465_s1 + $0xf68] sm:$0xf0] }
 0x15f   :  { %4863 = vmatpush.bf16.msra.mxu3 %v12768_v29  ;;  %v20591_v29 = vpop.f32.mrf.mxu1  ;;  %v13116_v45 = vor.u32 %v17457_v23, %v13115_v22  ;;  %v20641_v22 = vpop.f32.mrf.mxu3 }
 0x160   :  { %4822 = vmatpush.bf16.msra.mxu0 %v12468_v60  ;;  %26483 = vst [vmem:[#allocation16_spill] sm:$0xff] %v20591_v29  ;;  %v13212_v60 = vor.u32 %v17481_v42, %v13211_v28  ;;  %v13187_v28 = vld [vmem:[%s26465_s1 + $0x1020] sm:$0xf]  ;;  %v17475_v42 = vld [vmem:[%s26465_s1 + $0x1028] sm:$0xf0] }
 0x161   :  { %4836 = vmatpush.bf16.msra.mxu1 %v12564_v2  ;;  %v13199_v2 = vld [vmem:[%s26465_s1 + $0x1038] sm:$0xf]  ;;  %26485 = vst [vmem:[#allocation18_spill] sm:$0xff] %v20641_v22 }
 0x162   :  { %4850 = vmatpush.bf16.msra.mxu2 %v12660_v5  ;;  %v17478_v5 = vld [vmem:[%s26465_s1 + $0x1040] sm:$0xf0]  ;;  %v2519_v23 = vpop.f32.mrf.mxu0 }
 0x163   :  { %4864 = vmatpush.bf16.msra.mxu3 %v12756_v48  ;;  %4823 = vmatmul.bf16.vlgmr.msra.gmra.mxu0 %v18517_v10  ;;  %v13104_v48 = vor.u32 %v17454_v3, %v13103_v51  ;;  %v13200_v16 = vor.u32 %v17478_v5, %v13199_v2  ;;  %v17424_v3 = vld [vmem:[%s26465_s1 + $0xe90] sm:$0xf0]  ;;  %v13079_v2 = vld [vmem:[%s26465_s1 + $0xf48] sm:$0xf] }
 0x164   :  { %4871 = vmatpush.bf16.msrb.mxu0 %v12936_v30  ;;  %4837 = vmatmul.bf16.vlgmr.msra.gmra.mxu1 %v18495_v1  ;;  %v12899_v30 = vld [vmem:[%s26465_s1 + $0xde0] sm:$0xf]  ;;  %v17448_v5 = vld [vmem:[%s26465_s1 + $0xf50] sm:$0xf0] }
 0x165   :  { %4885 = vmatpush.bf16.msrb.mxu1 %v13032_v11  ;;  %4851 = vmatmul.bf16.vlgmr.msra.gmra.mxu2 %v18531_v17  ;;  %v17403_v11 = vld [vmem:[%s26465_s1 + $0xde8] sm:$0xf0] }
 0x166   :  { %4899 = vmatpush.bf16.msrb.mxu2 %v13128_v12  ;;  %4865 = vmatmul.bf16.vlgmr.msra.gmra.mxu3 %v18703_v39  ;;  %v12995_v12 = vld [vmem:[%s26465_s1 + $0xea0] sm:$0xf] }
 0x167   :  { %4913 = vmatpush.bf16.msrb.mxu3 %v13224_v20  ;;  %v13091_v20 = vld [vmem:[%s26465_s1 + $0xf60] sm:$0xf]  ;;  %v12996_v46 = vor.u32 %v17427_v19, %v12995_v12  ;;  %v12875_v12 = vld [vmem:[%s26465_s1 + $0xdb0] sm:$0xf] }
 0x168   :  { %4872 = vmatpush.bf16.msrb.mxu0 %v12924_v32  ;;  %v2520_v32 = vadd.f32 %v2519_v23, %v20491_v63  ;;  %v13092_v52 = vor.u32 %v17451_v21, %v13091_v20  ;;  %v13188_v63 = vor.u32 %v17475_v42, %v13187_v28  ;;  %v12971_v19 = vld [vmem:[%s26465_s1 + $0xe70] sm:$0xf]  ;;  %v17421_v21 = vld [vmem:[%s26465_s1 + $0xe78] sm:$0xf0] }
 0x169   :  { %4886 = vmatpush.bf16.msrb.mxu1 %v13020_v38  ;;  %v12900_v38 = vor.u32 %v17403_v11, %v12899_v30  ;;  %v12984_v30 = vor.u32 %v17424_v3, %v12983_v61  ;;  %v13080_v11 = vor.u32 %v17448_v5, %v13079_v2  ;;  %v13067_v23 = vld [vmem:[%s26465_s1 + $0xf30] sm:$0xf]  ;;  %v17445_v28 = vld [vmem:[%s26465_s1 + $0xf38] sm:$0xf0]  ;;  %v12863_v61 = vld [vmem:[%s26465_s1 + $0xd98] sm:$0xf] }
 0x16a   :  { %4900 = vmatpush.bf16.msrb.mxu2 %v13116_v45  ;;  %v2533_v45 = vpop.f32.mrf.mxu1  ;;  %v13163_v42 = vld [vmem:[%s26465_s1 + $0xff0] sm:$0xf]  ;;  %v12959_v3 = vld [vmem:[%s26465_s1 + $0xe58] sm:$0xf]  ;;  %v17418_v5 = vld [vmem:[%s26465_s1 + $0xe60] sm:$0xf0] }
 0x16b   :  { %4914 = vmatpush.bf16.msrb.mxu3 %v13212_v60  ;;  %v17400_v60 = vld [vmem:[%s26465_s1 + $0xdd0] sm:$0xf0]  ;;  %v20659_v51 = vadd.f32 %v2533_v45, %v2520_v32  ;;  %v17469_v32 = vld [vmem:[%s26465_s1 + $0xff8] sm:$0xf0]  ;;  %v2561_v45 = vpop.f32.mrf.mxu3 }
 0x16c   :  { %4873 = vmatpush.bf16.msrb.mxu0 %v12912_v6  ;;  %v13175_v6 = vld [vmem:[%s26465_s1 + $0x1008] sm:$0xf]  ;;  %v13164_v2 = vor.u32 %v17469_v32, %v13163_v42  ;;  %v17439_v32 = vld [vmem:[%s26465_s1 + $0xf08] sm:$0xf0] }
 0x16d   :  { %4887 = vmatpush.bf16.msrb.mxu1 %v13008_v9  ;;  %v17472_v9 = vld [vmem:[%s26465_s1 + $0x1010] sm:$0xf0] }
 0x16e   :  { %4901 = vmatpush.bf16.msrb.mxu2 %v13104_v48  ;;  %v12888_v48 = vor.u32 %v17400_v60, %v12887_v54  ;;  %v13176_v20 = vor.u32 %v17472_v9, %v13175_v6  ;;  %v12972_v54 = vor.u32 %v17421_v21, %v12971_v19  ;;  %v13068_v60 = vor.u32 %v17445_v28, %v13067_v23  ;;  %v13055_v6 = vld [vmem:[%s26465_s1 + $0xf18] sm:$0xf]  ;;  %v17442_v9 = vld [vmem:[%s26465_s1 + $0xf20] sm:$0xf0]  ;;  %v12947_v21 = vld [vmem:[%s26465_s1 + $0xe40] sm:$0xf] }
 0x16f   :  { %4915 = vmatpush.bf16.msrb.mxu3 %v13200_v16  ;;  %v17397_v16 = vld [vmem:[%s26465_s1 + $0xdb8] sm:$0xf0]  ;;  %v12960_v19 = vor.u32 %v17418_v5, %v12959_v3  ;;  %v17415_v23 = vld [vmem:[%s26465_s1 + $0xe48] sm:$0xf0]  ;;  %v13043_v28 = vld [vmem:[%s26465_s1 + $0xf00] sm:$0xf] }
 0x170   :  { %4874 = vmatpush.bf16.msrb.mxu0 %v12900_v38  ;;  %v2547_v38 = vpop.f32.mrf.mxu2  ;;  %v13511_v3 = vld [vmem:[%s26465_s1 + $0x12a8] sm:$0xf]  ;;  %v12948_v5 = vor.u32 %v17415_v23, %v12947_v21  ;;  %v13403_v21 = vld [vmem:[%s26465_s1 + $0x11d0] sm:$0xf] }
 0x171   :  { %4888 = vmatpush.bf16.msrb.mxu1 %v12996_v46  ;;  %v12876_v46 = vor.u32 %v17397_v16, %v12875_v12  ;;  %v12851_v12 = vld [vmem:[%s26465_s1 + $0xd80] sm:$0xf]  ;;  %v17391_v16 = vld [vmem:[%s26465_s1 + $0xd88] sm:$0xf0] }
 0x172   :  { %4902 = vmatpush.bf16.msrb.mxu2 %v13092_v52  ;;  %v20700_v52 = vadd.f32 %v2561_v45, %v2547_v38  ;;  %v13139_v38 = vld [vmem:[%s26465_s1 + $0xfc0] sm:$0xf]  ;;  %v17463_v45 = vld [vmem:[%s26465_s1 + $0xfc8] sm:$0xf0] }
 0x173   :  { %4916 = vmatpush.bf16.msrb.mxu3 %v13188_v63  ;;  %v17394_v63 = vld [vmem:[%s26465_s1 + $0xda0] sm:$0xf0] }
 0x174   :  { %4875 = vmatpush.bf16.msrb.mxu0 %v12888_v48  ;;  %v13151_v48 = vld [vmem:[%s26465_s1 + $0xfd8] sm:$0xf] }
 0x175   :  { %4889 = vmatpush.bf16.msrb.mxu1 %v12984_v30  ;;  %v17466_v30 = vld [vmem:[%s26465_s1 + $0xfe0] sm:$0xf0] }
 0x176   :  { %4903 = vmatpush.bf16.msrb.mxu2 %v13080_v11  ;;  %v12864_v11 = vor.u32 %v17394_v63, %v12863_v61  ;;  %v13152_v42 = vor.u32 %v17466_v30, %v13151_v48  ;;  %v12852_v61 = vor.u32 %v17391_v16, %v12851_v12  ;;  %v17532_v63 = vld [vmem:[%s26465_s1 + $0x11f0] sm:$0xf0]  ;;  %v13140_v30 = vor.u32 %v17463_v45, %v13139_v38  ;;  %v20792_v38 = vpop.f32.mrf.mxu0  ;;  %v13595_v45 = vld [vmem:[%s26465_s1 + $0x1350] sm:$0xf] }
 0x177   :  { %4917 = vmatpush.bf16.msrb.mxu3 %v13176_v20  ;;  %v13056_v20 = vor.u32 %v17442_v9, %v13055_v6  ;;  %v13044_v6 = vor.u32 %v17439_v32, %v13043_v28  ;;  %v13607_v9 = vld [vmem:[%s26465_s1 + $0x1368] sm:$0xf]  ;;  %v17580_v48 = vld [vmem:[%s26465_s1 + $0x1370] sm:$0xf0]  ;;  %v17529_v28 = vld [vmem:[%s26465_s1 + $0x11d8] sm:$0xf0] }
 0x178   :  { %4876 = vmatpush.bf16.msrb.mxu0 %v12876_v46  ;;  %v13319_v46 = vld [vmem:[%s26465_s1 + $0x1128] sm:$0xf]  ;;  %v13608_v23 = vor.u32 %v17580_v48, %v13607_v9  ;;  %v17553_v32 = vld [vmem:[%s26465_s1 + $0x1298] sm:$0xf0]  ;;  %26486 = vst [vmem:[#allocation19_spill] sm:$0xff] %v20792_v38 }
 0x179   :  { %4890 = vmatpush.bf16.msrb.mxu1 %v12972_v54  ;;  %v17508_v54 = vld [vmem:[%s26465_s1 + $0x1130] sm:$0xf0]  ;;  %v17526_v9 = vld [vmem:[%s26465_s1 + $0x11c0] sm:$0xf0]  ;;  %v13487_v48 = vld [vmem:[%s26465_s1 + $0x1278] sm:$0xf] }
 0x17a   :  { %4904 = vmatpush.bf16.msrb.mxu2 %v13068_v60  ;;  %v13415_v60 = vld [vmem:[%s26465_s1 + $0x11e8] sm:$0xf] }
 0x17b   :  { %4918 = vmatpush.bf16.msrb.mxu3 %v13164_v2  ;;  %v17556_v2 = vld [vmem:[%s26465_s1 + $0x12b0] sm:$0xf0]  ;;  %v13416_v12 = vor.u32 %v17532_v63, %v13415_v60  ;;  %v20800_v60 = vpop.f32.mrf.mxu1 }
 0x17c   :  { %4877 = vmatpush.bf16.msrb.mxu0 %v12864_v11  ;;  %v13320_v11 = vor.u32 %v17508_v54, %v13319_v46  ;;  %v13512_v16 = vor.u32 %v17556_v2, %v13511_v3  ;;  %v17577_v46 = vld [vmem:[%s26465_s1 + $0x1358] sm:$0xf0]  ;;  %26487 = vst [vmem:[#allocation20_spill] sm:$0xff] %v20800_v60  ;;  %v13295_v3 = vld [vmem:[%s26465_s1 + $0x10f8] sm:$0xf] }
 0x17d   :  { %4891 = vmatpush.bf16.msrb.mxu1 %v12960_v19  ;;  %v13307_v19 = vld [vmem:[%s26465_s1 + $0x1110] sm:$0xf]  ;;  %v17502_v2 = vld [vmem:[%s26465_s1 + $0x1100] sm:$0xf0] }
 0x17e   :  { %4905 = vmatpush.bf16.msrb.mxu2 %v13056_v20  ;;  %v17505_v20 = vld [vmem:[%s26465_s1 + $0x1118] sm:$0xf0] }
 0x17f   :  { %4919 = vmatpush.bf16.msrb.mxu3 %v13152_v42  ;;  %v13499_v42 = vld [vmem:[%s26465_s1 + $0x1290] sm:$0xf]  ;;  %v13308_v54 = vor.u32 %v17505_v20, %v13307_v19  ;;  %v20830_v19 = vpop.f32.mrf.mxu2 }
 0x180   :  { %4878 = vmatpush.bf16.msrb.mxu0 %v12852_v61  ;;  %v13404_v61 = vor.u32 %v17529_v28, %v13403_v21  ;;  %v13500_v63 = vor.u32 %v17553_v32, %v13499_v42  ;;  %26488 = vst [vmem:[#allocation21_spill] sm:$0xff] %v20830_v19  ;;  %v17499_v28 = vld [vmem:[%s26465_s1 + $0x10e8] sm:$0xf0]  ;;  %v13379_v42 = vld [vmem:[%s26465_s1 + $0x11a0] sm:$0xf] }
 0x181   :  { %4892 = vmatpush.bf16.msrb.mxu1 %v12948_v5  ;;  %v13391_v5 = vld [vmem:[%s26465_s1 + $0x11b8] sm:$0xf] }
 0x182   :  { %4906 = vmatpush.bf16.msrb.mxu2 %v13044_v6  ;;  %v13596_v6 = vor.u32 %v17577_v46, %v13595_v45  ;;  %v13392_v20 = vor.u32 %v17526_v9, %v13391_v5  ;;  %v20841_v45 = vpop.f32.mrf.mxu3  ;;  %v17523_v46 = vld [vmem:[%s26465_s1 + $0x11a8] sm:$0xf0] }
 0x183   :  { %4920 = vmatpush.bf16.msrb.mxu3 %v13140_v30  ;;  %4879 = vmatmul.bf16.vlgmr.msrb.gmra.mxu0 %v18716_v44  ;;  %v17550_v30 = vld [vmem:[%s26465_s1 + $0x1280] sm:$0xf0]  ;;  %26489 = vst [vmem:[#allocation22_spill] sm:$0xff] %v20841_v45  ;;  %v13380_v9 = vor.u32 %v17523_v46, %v13379_v42  ;;  %v13559_v42 = vld [vmem:[%s26465_s1 + $0x1308] sm:$0xf] }
 0x184   :  { %4927 = vmatpush.bf16.msra.mxu0 %v13320_v11  ;;  %4893 = vmatmul.bf16.vlgmr.msrb.gmra.mxu1 %v18714_v43  ;;  %v13583_v11 = vld [vmem:[%s26465_s1 + $0x1338] sm:$0xf]  ;;  %v13488_v21 = vor.u32 %v17550_v30, %v13487_v48  ;;  %v2589_v30 = vpop.f32.mrf.mxu1 }
 0x185   :  { %4941 = vmatpush.bf16.msra.mxu1 %v13416_v12  ;;  %4907 = vmatmul.bf16.vlgmr.msrb.gmra.mxu2 %v18724_v47  ;;  %v17574_v12 = vld [vmem:[%s26465_s1 + $0x1340] sm:$0xf0] }
 0x186   :  { %4955 = vmatpush.bf16.msra.mxu2 %v13512_v16  ;;  %4921 = vmatmul.bf16.vlgmr.msrb.gmra.mxu3 %v18931_v31  ;;  %v13296_v16 = vor.u32 %v17502_v2, %v13295_v3  ;;  %v13584_v32 = vor.u32 %v17574_v12, %v13583_v11  ;;  %v13571_v3 = vld [vmem:[%s26465_s1 + $0x1320] sm:$0xf]  ;;  %v17571_v2 = vld [vmem:[%s26465_s1 + $0x1328] sm:$0xf0]  ;;  %v13271_v11 = vld [vmem:[%s26465_s1 + $0x10c8] sm:$0xf] }
 0x187   :  { %4969 = vmatpush.bf16.msra.mxu3 %v13608_v23  ;;  %v13283_v23 = vld [vmem:[%s26465_s1 + $0x10e0] sm:$0xf]  ;;  %v17496_v12 = vld [vmem:[%s26465_s1 + $0x10d0] sm:$0xf0] }
 0x188   :  { %4928 = vmatpush.bf16.msra.mxu0 %v13308_v54  ;;  %v13475_v54 = vld [vmem:[%s26465_s1 + $0x1260] sm:$0xf]  ;;  %v13272_v46 = vor.u32 %v17496_v12, %v13271_v11  ;;  %v13547_v12 = vld [vmem:[%s26465_s1 + $0x12f0] sm:$0xf] }
 0x189   :  { %4942 = vmatpush.bf16.msra.mxu1 %v13404_v61  ;;  %v17547_v61 = vld [vmem:[%s26465_s1 + $0x1268] sm:$0xf0] }
 0x18a   :  { %4956 = vmatpush.bf16.msra.mxu2 %v13500_v63  ;;  %v2575_v63 = vpop.f32.mrf.mxu0  ;;  %v13476_v48 = vor.u32 %v17547_v61, %v13475_v54 }
 0x18b   :  { %4970 = vmatpush.bf16.msra.mxu3 %v13596_v6  ;;  %v2576_v5 = vadd.f32 %v2575_v63, %v20700_v52  ;;  %v13284_v6 = vor.u32 %v17499_v28, %v13283_v23  ;;  %v13572_v52 = vor.u32 %v17571_v2, %v13571_v3  ;;  %v17544_v28 = vld [vmem:[%s26465_s1 + $0x1250] sm:$0xf0]  ;;  %v13259_v63 = vld [vmem:[%s26465_s1 + $0x10b0] sm:$0xf]  ;;  %v17493_v3 = vld [vmem:[%s26465_s1 + $0x10b8] sm:$0xf0] }
 0x18c   :  { %4929 = vmatpush.bf16.msra.mxu0 %v13296_v16  ;;  %v13367_v16 = vld [vmem:[%s26465_s1 + $0x1188] sm:$0xf]  ;;  %v13355_v2 = vld [vmem:[%s26465_s1 + $0x1170] sm:$0xf] }
 0x18d   :  { %4943 = vmatpush.bf16.msra.mxu1 %v13392_v20  ;;  %v2590_v23 = vadd.f32 %v2589_v30, %v2576_v5  ;;  %v17520_v20 = vld [vmem:[%s26465_s1 + $0x1190] sm:$0xf0]  ;;  %v17541_v30 = vld [vmem:[%s26465_s1 + $0x1238] sm:$0xf0] }
 0x18e   :  { %4957 = vmatpush.bf16.msra.mxu2 %v13488_v21  ;;  %v13463_v21 = vld [vmem:[%s26465_s1 + $0x1248] sm:$0xf]  ;;  %v13368_v54 = vor.u32 %v17520_v20, %v13367_v16  ;;  %v17565_v16 = vld [vmem:[%s26465_s1 + $0x12f8] sm:$0xf0]  ;;  %v13260_v20 = vor.u32 %v17493_v3, %v13259_v63  ;;  %v17538_v3 = vld [vmem:[%s26465_s1 + $0x1220] sm:$0xf0] }
 0x18f   :  { %4971 = vmatpush.bf16.msra.mxu3 %v13584_v32  ;;  %v17568_v32 = vld [vmem:[%s26465_s1 + $0x1310] sm:$0xf0]  ;;  %v13464_v61 = vor.u32 %v17544_v28, %v13463_v21  ;;  %v13548_v63 = vor.u32 %v17565_v16, %v13547_v12  ;;  %v13331_v12 = vld [vmem:[%s26465_s1 + $0x1140] sm:$0xf]  ;;  %v17511_v16 = vld [vmem:[%s26465_s1 + $0x1148] sm:$0xf0] }
 0x190   :  { %4930 = vmatpush.bf16.msra.mxu0 %v13284_v6  ;;  %v13560_v5 = vor.u32 %v17568_v32, %v13559_v42  ;;  %v2603_v6 = vpop.f32.mrf.mxu2  ;;  %v17490_v32 = vld [vmem:[%s26465_s1 + $0x10a0] sm:$0xf0] }
 0x191   :  { %4944 = vmatpush.bf16.msra.mxu1 %v13380_v9  ;;  %v17517_v9 = vld [vmem:[%s26465_s1 + $0x1178] sm:$0xf0]  ;;  %v2604_v11 = vadd.f32 %v2603_v6, %v2590_v23  ;;  %v13247_v23 = vld [vmem:[%s26465_s1 + $0x1098] sm:$0xf] }
 0x192   :  { %4958 = vmatpush.bf16.msra.mxu2 %v13476_v48  ;;  %v13451_v48 = vld [vmem:[%s26465_s1 + $0x1230] sm:$0xf]  ;;  %v13356_v28 = vor.u32 %v17517_v9, %v13355_v2  ;;  %v13535_v2 = vld [vmem:[%s26465_s1 + $0x12d8] sm:$0xf]  ;;  %v13248_v6 = vor.u32 %v17490_v32, %v13247_v23  ;;  %v13235_v9 = vld [vmem:[%s26465_s1 + $0x1080] sm:$0xf] }
 0x193   :  { %4972 = vmatpush.bf16.msra.mxu3 %v13572_v52  ;;  %v2617_v52 = vpop.f32.mrf.mxu3  ;;  %v13452_v42 = vor.u32 %v17541_v30, %v13451_v48  ;;  %v17487_v48 = vld [vmem:[%s26465_s1 + $0x1088] sm:$0xf0] }
 0x194   :  { %4931 = vmatpush.bf16.msra.mxu0 %v13272_v46  ;;  %v20907_v21 = vadd.f32 %v2617_v52, %v2604_v11  ;;  %v13343_v46 = vld [vmem:[%s26465_s1 + $0x1158] sm:$0xf]  ;;  %v13427_v52 = vld [vmem:[%s26465_s1 + $0x1200] sm:$0xf]  ;;  %v17559_v23 = vld [vmem:[%s26465_s1 + $0x12c8] sm:$0xf0] }
 0x195   :  { %4945 = vmatpush.bf16.msra.mxu1 %v13368_v54  ;;  %v17514_v54 = vld [vmem:[%s26465_s1 + $0x1160] sm:$0xf0]  ;;  %v17291_v32 = vld [vmem:[%s26465_s1 + $0xa6c] sm:$0xf] }
 0x196   :  { %4959 = vmatpush.bf16.msra.mxu2 %v13464_v61  ;;  %v13439_v61 = vld [vmem:[%s26465_s1 + $0x1218] sm:$0xf]  ;;  %v13344_v30 = vor.u32 %v17514_v54, %v13343_v46  ;;  %v13236_v54 = vor.u32 %v17487_v48, %v13235_v9 }
 0x197   :  { %4973 = vmatpush.bf16.msra.mxu3 %v13560_v5  ;;  %v17562_v5 = vld [vmem:[%s26465_s1 + $0x12e0] sm:$0xf0]  ;;  %v13440_v11 = vor.u32 %v17538_v3, %v13439_v61  ;;  %v12457_v46 = vld [vmem:[%s26465_s1 + $0xa74] sm:$0xf0]  ;;  %v17339_v3 = vld [vmem:[%s26465_s1 + $0xbec] sm:$0xf] }
 0x198   :  { %4932 = vmatpush.bf16.msra.mxu0 %v13260_v20  ;;  %v13536_v20 = vor.u32 %v17562_v5, %v13535_v2  ;;  %v12553_v61 = vld [vmem:[%s26465_s1 + $0xb34] sm:$0xf0]  ;;  %v13332_v5 = vor.u32 %v17511_v16, %v13331_v12  ;;  %v12460_v19 = vor.u32 %v17291_v32, %v12457_v46  ;;  %v17312_v12 = vld [vmem:[%s26465_s1 + $0xb14] sm:$0xf]  ;;  %v12733_v32 = vld [vmem:[%s26465_s1 + $0xc9c] sm:$0xf0]  ;;  %v21007_v46 = vpop.f32.mrf.mxu1 }
 0x199   :  { %4946 = vmatpush.bf16.msra.mxu1 %v13356_v28  ;;  %v17535_v28 = vld [vmem:[%s26465_s1 + $0x1208] sm:$0xf0]  ;;  %v12649_v2 = vld [vmem:[%s26465_s1 + $0xbf4] sm:$0xf0]  ;;  %26491 = vst [vmem:[#allocation24_spill] sm:$0xff] %v21007_v46 }
 0x19a   :  { %4960 = vmatpush.bf16.msra.mxu2 %v13452_v42  ;;  %v13523_v42 = vld [vmem:[%s26465_s1 + $0x12c0] sm:$0xf]  ;;  %v13428_v45 = vor.u32 %v17535_v28, %v13427_v52  ;;  %v12745_v9 = vld [vmem:[%s26465_s1 + $0xcb4] sm:$0xf0]  ;;  %v12652_v38 = vor.u32 %v17339_v3, %v12649_v2  ;;  %v12433_v3 = vld [vmem:[%s26465_s1 + $0xa44] sm:$0xf0] }
 0x19b   :  { %4974 = vmatpush.bf16.msra.mxu3 %v13548_v63  ;;  %v17315_v63 = vld [vmem:[%s26465_s1 + $0xb2c] sm:$0xf]  ;;  %v13524_v48 = vor.u32 %v17559_v23, %v13523_v42  ;;  %v12541_v52 = vld [vmem:[%s26465_s1 + $0xb1c] sm:$0xf0]  ;;  %v20999_v42 = vpop.f32.mrf.mxu0  ;;  %v17360_v23 = vld [vmem:[%s26465_s1 + $0xc94] sm:$0xf] }
 0x19c   :  { %4933 = vmatpush.bf16.msra.mxu0 %v13248_v6  ;;  %v17363_v6 = vld [vmem:[%s26465_s1 + $0xcac] sm:$0xf]  ;;  %v12556_v60 = vor.u32 %v17315_v63, %v12553_v61  ;;  %v12637_v28 = vld [vmem:[%s26465_s1 + $0xbdc] sm:$0xf0]  ;;  %26490 = vst [vmem:[#allocation23_spill] sm:$0xff] %v20999_v42 }
 0x19d   :  { %4947 = vmatpush.bf16.msra.mxu1 %v13344_v30  ;;  %v17288_v30 = vld [vmem:[%s26465_s1 + $0xa54] sm:$0xf]  ;;  %v12748_v16 = vor.u32 %v17363_v6, %v12745_v9  ;;  %v17309_v2 = vld [vmem:[%s26465_s1 + $0xafc] sm:$0xf]  ;;  %v12721_v9 = vld [vmem:[%s26465_s1 + $0xc84] sm:$0xf0] }
 0x19e   :  { %4961 = vmatpush.bf16.msra.mxu2 %v13440_v11  ;;  %v12445_v11 = vld [vmem:[%s26465_s1 + $0xa5c] sm:$0xf0]  ;;  %v17357_v6 = vld [vmem:[%s26465_s1 + $0xc7c] sm:$0xf] }
 0x19f   :  { %4975 = vmatpush.bf16.msra.mxu3 %v13536_v20  ;;  %v17336_v20 = vld [vmem:[%s26465_s1 + $0xbd4] sm:$0xf]  ;;  %v12448_v63 = vor.u32 %v17288_v30, %v12445_v11 }
 0x1a0   :  { %4934 = vmatpush.bf16.msra.mxu0 %v13236_v54  ;;  %v12544_v54 = vor.u32 %v17312_v12, %v12541_v52  ;;  %v12640_v61 = vor.u32 %v17336_v20, %v12637_v28  ;;  %v17282_v12 = vld [vmem:[%s26465_s1 + $0xa24] sm:$0xf]  ;;  %v21046_v20 = vpop.f32.mrf.mxu2  ;;  %v12724_v28 = vor.u32 %v17357_v6, %v12721_v9  ;;  %v17279_v6 = vld [vmem:[%s26465_s1 + $0xa0c] sm:$0xf]  ;;  %v12409_v9 = vld [vmem:[%s26465_s1 + $0xa14] sm:$0xf0] }
 0x1a1   :  { %4948 = vmatpush.bf16.msra.mxu1 %v13332_v5  ;;  %v12625_v5 = vld [vmem:[%s26465_s1 + $0xbc4] sm:$0xf0]  ;;  %v17306_v52 = vld [vmem:[%s26465_s1 + $0xae4] sm:$0xf]  ;;  %26492 = vst [vmem:[#allocation25_spill] sm:$0xff] %v21046_v20 }
 0x1a2   :  { %4962 = vmatpush.bf16.msra.mxu2 %v13428_v45  ;;  %v17285_v45 = vld [vmem:[%s26465_s1 + $0xa3c] sm:$0xf] }
 0x1a3   :  { %4976 = vmatpush.bf16.msra.mxu3 %v13524_v48  ;;  %4935 = vmatmul.bf16.vlgmr.msra.gmra.mxu0 %v18944_v36  ;;  %v12436_v48 = vor.u32 %v17285_v45, %v12433_v3  ;;  %v17354_v45 = vld [vmem:[%s26465_s1 + $0xc64] sm:$0xf]  ;;  %v12709_v3 = vld [vmem:[%s26465_s1 + $0xc6c] sm:$0xf0] }
 0x1a4   :  { %4983 = vmatpush.bf16.msrb.mxu0 %v12460_v19  ;;  %v12736_v19 = vor.u32 %v17360_v23, %v12733_v32  ;;  %4949 = vmatmul.bf16.vlgmr.msra.gmra.mxu1 %v18942_v35  ;;  %v12517_v23 = vld [vmem:[%s26465_s1 + $0xaec] sm:$0xf0]  ;;  %v17330_v32 = vld [vmem:[%s26465_s1 + $0xba4] sm:$0xf] }
 0x1a5   :  { %4997 = vmatpush.bf16.msrb.mxu1 %v12556_v60  ;;  %v17333_v60 = vld [vmem:[%s26465_s1 + $0xbbc] sm:$0xf]  ;;  %4963 = vmatmul.bf16.vlgmr.msra.gmra.mxu2 %v18952_v40 }
 0x1a6   :  { %5011 = vmatpush.bf16.msrb.mxu2 %v12652_v38  ;;  %v12529_v38 = vld [vmem:[%s26465_s1 + $0xb04] sm:$0xf0]  ;;  %4977 = vmatmul.bf16.vlgmr.msra.gmra.mxu3 %v19141_v25  ;;  %v12628_v11 = vor.u32 %v17333_v60, %v12625_v5  ;;  %v12520_v60 = vor.u32 %v17306_v52, %v12517_v23  ;;  %v17351_v52 = vld [vmem:[%s26465_s1 + $0xc4c] sm:$0xf]  ;;  %v12412_v23 = vor.u32 %v17279_v6, %v12409_v9 }
 0x1a7   :  { %5025 = vmatpush.bf16.msrb.mxu3 %v12748_v16  ;;  %v12532_v30 = vor.u32 %v17309_v2, %v12529_v38  ;;  %v12421_v16 = vld [vmem:[%s26465_s1 + $0xa2c] sm:$0xf0]  ;;  %v2645_v38 = vpop.f32.mrf.mxu1 }
 0x1a8   :  { %4984 = vmatpush.bf16.msrb.mxu0 %v12448_v63  ;;  %v12613_v63 = vld [vmem:[%s26465_s1 + $0xbac] sm:$0xf0] }
 0x1a9   :  { %4998 = vmatpush.bf16.msrb.mxu1 %v12544_v54  ;;  %v21057_v54 = vpop.f32.mrf.mxu3  ;;  %v12616_v5 = vor.u32 %v17330_v32, %v12613_v63 }
 0x1aa   :  { %5012 = vmatpush.bf16.msrb.mxu2 %v12640_v61  ;;  %26493 = vst [vmem:[#allocation26_spill] sm:$0xff] %v21057_v54  ;;  %v2631_v61 = vpop.f32.mrf.mxu0 }
 0x1ab   :  { %5026 = vmatpush.bf16.msrb.mxu3 %v12736_v19  ;;  %v2632_v2 = vadd.f32 %v2631_v61, %v20907_v21  ;;  %v12424_v19 = vor.u32 %v17282_v12, %v12421_v16  ;;  %v12712_v21 = vor.u32 %v17354_v45, %v12709_v3  ;;  %v12601_v16 = vld [vmem:[%s26465_s1 + $0xb94] sm:$0xf0]  ;;  %v17276_v61 = vld [vmem:[%s26465_s1 + $0x9f4] sm:$0xf]  ;;  %v12397_v45 = vld [vmem:[%s26465_s1 + $0x9fc] sm:$0xf0] }
 0x1ac   :  { %4985 = vmatpush.bf16.msrb.mxu0 %v12436_v48  ;;  %v17303_v48 = vld [vmem:[%s26465_s1 + $0xacc] sm:$0xf]  ;;  %v17300_v3 = vld [vmem:[%s26465_s1 + $0xab4] sm:$0xf] }
 0x1ad   :  { %4999 = vmatpush.bf16.msrb.mxu1 %v12532_v30  ;;  %v2646_v12 = vadd.f32 %v2645_v38, %v2632_v2  ;;  %v12505_v30 = vld [vmem:[%s26465_s1 + $0xad4] sm:$0xf0]  ;;  %v12493_v38 = vld [vmem:[%s26465_s1 + $0xabc] sm:$0xf0] }
 0x1ae   :  { %5013 = vmatpush.bf16.msrb.mxu2 %v12628_v11  ;;  %v17327_v11 = vld [vmem:[%s26465_s1 + $0xb8c] sm:$0xf]  ;;  %v12508_v32 = vor.u32 %v17303_v48, %v12505_v30  ;;  %v17348_v48 = vld [vmem:[%s26465_s1 + $0xc34] sm:$0xf]  ;;  %v12400_v30 = vor.u32 %v17276_v61, %v12397_v45  ;;  %v12577_v61 = vld [vmem:[%s26465_s1 + $0xb64] sm:$0xf0] }
 0x1af   :  { %5027 = vmatpush.bf16.msrb.mxu3 %v12724_v28  ;;  %v12697_v28 = vld [vmem:[%s26465_s1 + $0xc54] sm:$0xf0]  ;;  %v12604_v63 = vor.u32 %v17327_v11, %v12601_v16  ;;  %v12496_v16 = vor.u32 %v17300_v3, %v12493_v38  ;;  %v17345_v45 = vld [vmem:[%s26465_s1 + $0xc1c] sm:$0xf]  ;;  %v12673_v3 = vld [vmem:[%s26465_s1 + $0xc24] sm:$0xf0] }
 0x1b0   :  { %4986 = vmatpush.bf16.msrb.mxu0 %v12424_v19  ;;  %v12700_v2 = vor.u32 %v17351_v52, %v12697_v28  ;;  %v2659_v19 = vpop.f32.mrf.mxu2  ;;  %v12385_v28 = vld [vmem:[%s26465_s1 + $0x9e4] sm:$0xf0]  ;;  %v17270_v38 = vld [vmem:[%s26465_s1 + $0x9c4] sm:$0xf] }
 0x1b1   :  { %5000 = vmatpush.bf16.msrb.mxu1 %v12520_v60  ;;  %v17324_v60 = vld [vmem:[%s26465_s1 + $0xb74] sm:$0xf]  ;;  %v2660_v6 = vadd.f32 %v2659_v19, %v2646_v12  ;;  %v2673_v9 = vpop.f32.mrf.mxu3  ;;  %v17273_v12 = vld [vmem:[%s26465_s1 + $0x9dc] sm:$0xf] }
 0x1b2   :  { %5014 = vmatpush.bf16.msrb.mxu2 %v12616_v5  ;;  %v12589_v5 = vld [vmem:[%s26465_s1 + $0xb7c] sm:$0xf0]  ;;  %v17297_v19 = vld [vmem:[%s26465_s1 + $0xa9c] sm:$0xf] }
 0x1b3   :  { %5028 = vmatpush.bf16.msrb.mxu3 %v12712_v21  ;;  %v12685_v21 = vld [vmem:[%s26465_s1 + $0xc3c] sm:$0xf0]  ;;  %v21114_v11 = vadd.f32 %v2673_v9, %v2660_v6  ;;  %v12592_v52 = vor.u32 %v17324_v60, %v12589_v5  ;;  %v12373_v60 = vld [vmem:[%s26465_s1 + $0x9cc] sm:$0xf0]  ;;  %v17294_v9 = vld [vmem:[%s26465_s1 + $0xa84] sm:$0xf] }
 0x1b4   :  { %4987 = vmatpush.bf16.msrb.mxu0 %v12412_v23  ;;  %v12688_v23 = vor.u32 %v17348_v48, %v12685_v21  ;;  %v12469_v48 = vld [vmem:[%s26465_s1 + $0xa8c] sm:$0xf0]  ;;  %v17318_v21 = vld [vmem:[%s26465_s1 + $0xb44] sm:$0xf] }
 0x1b5   :  { %5001 = vmatpush.bf16.msrb.mxu1 %v12508_v32  ;;  %v12481_v32 = vld [vmem:[%s26465_s1 + $0xaa4] sm:$0xf0] }
 0x1b6   :  { %5015 = vmatpush.bf16.msrb.mxu2 %v12604_v63  ;;  %v17321_v63 = vld [vmem:[%s26465_s1 + $0xb5c] sm:$0xf]  ;;  %v12484_v5 = vor.u32 %v17297_v19, %v12481_v32  ;;  %v12841_v19 = vld [vmem:[%s26465_s1 + $0xd74] sm:$0xf0]  ;;  %v12376_v32 = vor.u32 %v17270_v38, %v12373_v60 }
 0x1b7   :  { %5029 = vmatpush.bf16.msrb.mxu3 %v12700_v2  ;;  %v12388_v2 = vor.u32 %v17273_v12, %v12385_v28  ;;  %v12580_v6 = vor.u32 %v17321_v63, %v12577_v61  ;;  %v12661_v12 = vld [vmem:[%s26465_s1 + $0xc0c] sm:$0xf0]  ;;  %v17387_v28 = vld [vmem:[%s26465_s1 + $0xd6c] sm:$0xf]  ;;  %v12937_v63 = vld [vmem:[%s26465_s1 + $0xe34] sm:$0xf0] }
 0x1b8   :  { %4988 = vmatpush.bf16.msrb.mxu0 %v12400_v30  ;;  %v12676_v30 = vor.u32 %v17345_v45, %v12673_v3  ;;  %v17435_v61 = vld [vmem:[%s26465_s1 + $0xeec] sm:$0xf]  ;;  %v13033_v45 = vld [vmem:[%s26465_s1 + $0xef4] sm:$0xf0]  ;;  %v12472_v3 = vor.u32 %v17294_v9, %v12469_v48  ;;  %v12844_v20 = vor.u32 %v17387_v28, %v12841_v19  ;;  %v17408_v9 = vld [vmem:[%s26465_s1 + $0xe14] sm:$0xf]  ;;  %v21214_v19 = vpop.f32.mrf.mxu1 }
 0x1b9   :  { %5002 = vmatpush.bf16.msrb.mxu1 %v12496_v16  ;;  %v12565_v16 = vld [vmem:[%s26465_s1 + $0xb4c] sm:$0xf0]  ;;  %v13129_v38 = vld [vmem:[%s26465_s1 + $0xfb4] sm:$0xf0]  ;;  %v13036_v42 = vor.u32 %v17435_v61, %v13033_v45  ;;  %v13117_v28 = vld [vmem:[%s26465_s1 + $0xf9c] sm:$0xf0] }
 0x1ba   :  { %5016 = vmatpush.bf16.msrb.mxu2 %v12592_v52  ;;  %v17342_v52 = vld [vmem:[%s26465_s1 + $0xc04] sm:$0xf]  ;;  %v12568_v54 = vor.u32 %v17318_v21, %v12565_v16  ;;  %v12925_v21 = vld [vmem:[%s26465_s1 + $0xe1c] sm:$0xf0]  ;;  %26495 = vst [vmem:[#allocation28_spill] sm:$0xff] %v21214_v19 }
 0x1bb   :  { %5030 = vmatpush.bf16.msrb.mxu3 %v12688_v23  ;;  %v17411_v23 = vld [vmem:[%s26465_s1 + $0xe2c] sm:$0xf]  ;;  %v12664_v60 = vor.u32 %v17342_v52, %v12661_v12  ;;  %v13021_v16 = vld [vmem:[%s26465_s1 + $0xedc] sm:$0xf0]  ;;  %v21206_v52 = vpop.f32.mrf.mxu0  ;;  %v17456_v12 = vld [vmem:[%s26465_s1 + $0xf94] sm:$0xf] }
 0x1bc   :  { %4989 = vmatpush.bf16.msrb.mxu0 %v12388_v2  ;;  %v17459_v2 = vld [vmem:[%s26465_s1 + $0xfac] sm:$0xf]  ;;  %v12940_v46 = vor.u32 %v17411_v23, %v12937_v63  ;;  %26494 = vst [vmem:[#allocation27_spill] sm:$0xff] %v21206_v52  ;;  %v12817_v61 = vld [vmem:[%s26465_s1 + $0xd44] sm:$0xf0] }
 0x1bd   :  { %5003 = vmatpush.bf16.msrb.mxu1 %v12484_v5  ;;  %v17384_v5 = vld [vmem:[%s26465_s1 + $0xd54] sm:$0xf]  ;;  %v13132_v48 = vor.u32 %v17459_v2, %v13129_v38  ;;  %v17405_v45 = vld [vmem:[%s26465_s1 + $0xdfc] sm:$0xf]  ;;  %v13105_v38 = vld [vmem:[%s26465_s1 + $0xf84] sm:$0xf0] }
 0x1be   :  { %5017 = vmatpush.bf16.msrb.mxu2 %v12580_v6  ;;  %v12829_v6 = vld [vmem:[%s26465_s1 + $0xd5c] sm:$0xf0]  ;;  %v17453_v2 = vld [vmem:[%s26465_s1 + $0xf7c] sm:$0xf] }
 0x1bf   :  { %5031 = vmatpush.bf16.msrb.mxu3 %v12676_v30  ;;  %v17432_v30 = vld [vmem:[%s26465_s1 + $0xed4] sm:$0xf]  ;;  %v12832_v23 = vor.u32 %v17384_v5, %v12829_v6 }
 0x1c0   :  { %4990 = vmatpush.bf16.msrb.mxu0 %v12376_v32  ;;  %v12928_v32 = vor.u32 %v17408_v9, %v12925_v21  ;;  %v13024_v63 = vor.u32 %v17432_v30, %v13021_v16  ;;  %v17378_v9 = vld [vmem:[%s26465_s1 + $0xd24] sm:$0xf]  ;;  %v21253_v30 = vpop.f32.mrf.mxu2  ;;  %v13108_v16 = vor.u32 %v17453_v2, %v13105_v38  ;;  %v12793_v2 = vld [vmem:[%s26465_s1 + $0xd14] sm:$0xf0]  ;;  %v17399_v38 = vld [vmem:[%s26465_s1 + $0xdcc] sm:$0xf] }
 0x1c1   :  { %5004 = vmatpush.bf16.msrb.mxu1 %v12472_v3  ;;  %v13120_v3 = vor.u32 %v17456_v12, %v13117_v28  ;;  %v17402_v21 = vld [vmem:[%s26465_s1 + $0xde4] sm:$0xf]  ;;  %26496 = vst [vmem:[#allocation29_spill] sm:$0xff] %v21253_v30  ;;  %v12901_v12 = vld [vmem:[%s26465_s1 + $0xdec] sm:$0xf0] }
 0x1c2   :  { %5018 = vmatpush.bf16.msrb.mxu2 %v12568_v54  ;;  %v17381_v54 = vld [vmem:[%s26465_s1 + $0xd3c] sm:$0xf]  ;;  %v17426_v28 = vld [vmem:[%s26465_s1 + $0xea4] sm:$0xf] }
 0x1c3   :  { %5032 = vmatpush.bf16.msrb.mxu3 %v12664_v60  ;;  %4991 = vmatmul.bf16.vlgmr.msrb.gmra.mxu0 %v18481_v58  ;;  %v12820_v60 = vor.u32 %v17381_v54, %v12817_v61  ;;  %v13093_v54 = vld [vmem:[%s26465_s1 + $0xf6c] sm:$0xf0] }
 0x1c4   :  { %5039 = vmatpush.bf16.msra.mxu0 %v12844_v20  ;;  %v13009_v20 = vld [vmem:[%s26465_s1 + $0xec4] sm:$0xf0]  ;;  %5005 = vmatmul.bf16.vlgmr.msrb.gmra.mxu1 %v18517_v10 }
 0x1c5   :  { %5053 = vmatpush.bf16.msra.mxu1 %v12940_v46  ;;  %v17429_v46 = vld [vmem:[%s26465_s1 + $0xebc] sm:$0xf]  ;;  %5019 = vmatmul.bf16.vlgmr.msrb.gmra.mxu2 %v18495_v1 }
 0x1c6   :  { %5067 = vmatpush.bf16.msra.mxu2 %v13036_v42  ;;  %v12913_v42 = vld [vmem:[%s26465_s1 + $0xe04] sm:$0xf0]  ;;  %5033 = vmatmul.bf16.vlgmr.msrb.gmra.mxu3 %v18531_v17  ;;  %v13012_v6 = vor.u32 %v17429_v46, %v13009_v20  ;;  %v17375_v20 = vld [vmem:[%s26465_s1 + $0xd0c] sm:$0xf] }
 0x1c7   :  { %5081 = vmatpush.bf16.msra.mxu3 %v13132_v48  ;;  %v12916_v5 = vor.u32 %v17405_v45, %v12913_v42  ;;  %v12805_v48 = vld [vmem:[%s26465_s1 + $0xd2c] sm:$0xf0]  ;;  %v12904_v42 = vor.u32 %v17402_v21, %v12901_v12  ;;  %v13081_v21 = vld [vmem:[%s26465_s1 + $0xf54] sm:$0xf0] }
 0x1c8   :  { %5040 = vmatpush.bf16.msra.mxu0 %v12832_v23  ;;  %v12997_v23 = vld [vmem:[%s26465_s1 + $0xeac] sm:$0xf0]  ;;  %v12808_v45 = vor.u32 %v17378_v9, %v12805_v48  ;;  %v12985_v9 = vld [vmem:[%s26465_s1 + $0xe94] sm:$0xf0]  ;;  %v17447_v48 = vld [vmem:[%s26465_s1 + $0xf4c] sm:$0xf] }
 0x1c9   :  { %5054 = vmatpush.bf16.msra.mxu1 %v12928_v32  ;;  %v2687_v32 = vpop.f32.mrf.mxu0  ;;  %v13000_v46 = vor.u32 %v17426_v28, %v12997_v23  ;;  %v17372_v23 = vld [vmem:[%s26465_s1 + $0xcf4] sm:$0xf] }
 0x1ca   :  { %5068 = vmatpush.bf16.msra.mxu2 %v13024_v63  ;;  %v17450_v63 = vld [vmem:[%s26465_s1 + $0xf64] sm:$0xf]  ;;  %v2688_v61 = vadd.f32 %v2687_v32, %v21114_v11  ;;  %v12781_v32 = vld [vmem:[%s26465_s1 + $0xcfc] sm:$0xf0] }
 0x1cb   :  { %5082 = vmatpush.bf16.msra.mxu3 %v13120_v3  ;;  %v2701_v3 = vpop.f32.mrf.mxu1  ;;  %v13096_v11 = vor.u32 %v17450_v63, %v13093_v54  ;;  %v17396_v63 = vld [vmem:[%s26465_s1 + $0xdb4] sm:$0xf]  ;;  %v13084_v54 = vor.u32 %v17447_v48, %v13081_v21  ;;  %v21330_v48 = vpop.f32.mrf.mxu3 }
 0x1cc   :  { %5041 = vmatpush.bf16.msra.mxu0 %v12820_v60  ;;  %v2702_v60 = vadd.f32 %v2701_v3, %v2688_v61  ;;  %v2715_v61 = vpop.f32.mrf.mxu2  ;;  %v17420_v3 = vld [vmem:[%s26465_s1 + $0xe74] sm:$0xf]  ;;  %26497 = vst [vmem:[#allocation30_spill] sm:$0xff] %v21330_v48 }
 0x1cd   :  { %5055 = vmatpush.bf16.msra.mxu1 %v12916_v5  ;;  %v12889_v5 = vld [vmem:[%s26465_s1 + $0xdd4] sm:$0xf0] }
 0x1ce   :  { %5069 = vmatpush.bf16.msra.mxu2 %v13012_v6  ;;  %v17423_v6 = vld [vmem:[%s26465_s1 + $0xe8c] sm:$0xf]  ;;  %v12892_v12 = vor.u32 %v17399_v38, %v12889_v5  ;;  %v12784_v38 = vor.u32 %v17372_v23, %v12781_v32  ;;  %v17441_v23 = vld [vmem:[%s26465_s1 + $0xf1c] sm:$0xf]  ;;  %v13057_v32 = vld [vmem:[%s26465_s1 + $0xf24] sm:$0xf0] }
 0x1cf   :  { %5083 = vmatpush.bf16.msra.mxu3 %v13108_v16  ;;  %v12796_v16 = vor.u32 %v17375_v20, %v12793_v2  ;;  %v12988_v28 = vor.u32 %v17423_v6, %v12985_v9  ;;  %v17444_v20 = vld [vmem:[%s26465_s1 + $0xf34] sm:$0xf]  ;;  %v13069_v2 = vld [vmem:[%s26465_s1 + $0xf3c] sm:$0xf0]  ;;  %v17369_v6 = vld [vmem:[%s26465_s1 + $0xcdc] sm:$0xf] }
 0x1d0   :  { %5042 = vmatpush.bf16.msra.mxu0 %v12808_v45  ;;  %v12877_v45 = vld [vmem:[%s26465_s1 + $0xdbc] sm:$0xf0]  ;;  %v17393_v9 = vld [vmem:[%s26465_s1 + $0xd9c] sm:$0xf]  ;;  %v13072_v21 = vor.u32 %v17444_v20, %v13069_v2  ;;  %v12853_v20 = vld [vmem:[%s26465_s1 + $0xd8c] sm:$0xf0] }
 0x1d1   :  { %5056 = vmatpush.bf16.msra.mxu1 %v12904_v42  ;;  %v12973_v42 = vld [vmem:[%s26465_s1 + $0xe7c] sm:$0xf0]  ;;  %v17414_v2 = vld [vmem:[%s26465_s1 + $0xe44] sm:$0xf] }
 0x1d2   :  { %5070 = vmatpush.bf16.msra.mxu2 %v13000_v46  ;;  %v21313_v46 = vadd.f32 %v2715_v61, %v2702_v60  ;;  %v12976_v5 = vor.u32 %v17420_v3, %v12973_v42  ;;  %v12769_v60 = vld [vmem:[%s26465_s1 + $0xce4] sm:$0xf0]  ;;  %v12757_v61 = vld [vmem:[%s26465_s1 + $0xccc] sm:$0xf0]  ;;  %v17390_v42 = vld [vmem:[%s26465_s1 + $0xd84] sm:$0xf] }
 0x1d3   :  { %5084 = vmatpush.bf16.msra.mxu3 %v13096_v11  ;;  %v12880_v11 = vor.u32 %v17396_v63, %v12877_v45  ;;  %v12772_v63 = vor.u32 %v17369_v6, %v12769_v60  ;;  %v13045_v6 = vld [vmem:[%s26465_s1 + $0xf0c] sm:$0xf0]  ;;  %v17483_v60 = vld [vmem:[%s26465_s1 + $0x106c] sm:$0xf]  ;;  %v4810_v19 = vpop.f32.mrf.mxu3 }
 0x1d4   :  { %5043 = vmatpush.bf16.msra.mxu0 %v12796_v16  ;;  %v12865_v16 = vld [vmem:[%s26465_s1 + $0xda4] sm:$0xf0] }
 0x1d5   :  { %5057 = vmatpush.bf16.msra.mxu1 %v12892_v12  ;;  %v17417_v12 = vld [vmem:[%s26465_s1 + $0xe5c] sm:$0xf]  ;;  %v12868_v45 = vor.u32 %v17393_v9, %v12865_v16  ;;  %v13225_v9 = vld [vmem:[%s26465_s1 + $0x1074] sm:$0xf0] }
 0x1d6   :  { %5071 = vmatpush.bf16.msra.mxu2 %v12988_v28  ;;  %v12961_v28 = vld [vmem:[%s26465_s1 + $0xe64] sm:$0xf0]  ;;  %v13228_v30 = vor.u32 %v17483_v60, %v13225_v9  ;;  %v13501_v60 = vld [vmem:[%s26465_s1 + $0x129c] sm:$0xf0] }
 0x1d7   :  { %5085 = vmatpush.bf16.msra.mxu3 %v13084_v54  ;;  %v17366_v54 = vld [vmem:[%s26465_s1 + $0xcc4] sm:$0xf]  ;;  %v12964_v3 = vor.u32 %v17417_v12, %v12961_v28  ;;  %v13321_v12 = vld [vmem:[%s26465_s1 + $0x1134] sm:$0xf0]  ;;  %v17531_v28 = vld [vmem:[%s26465_s1 + $0x11ec] sm:$0xf] }
 0x1d8   :  { %5044 = vmatpush.bf16.msra.mxu0 %v12784_v38  ;;  %v13060_v38 = vor.u32 %v17441_v23, %v13057_v32  ;;  %v12760_v16 = vor.u32 %v17366_v54, %v12757_v61  ;;  %v13417_v23 = vld [vmem:[%s26465_s1 + $0x11f4] sm:$0xf0]  ;;  %v12856_v32 = vor.u32 %v17390_v42, %v12853_v20  ;;  %v17504_v42 = vld [vmem:[%s26465_s1 + $0x1114] sm:$0xf] }
 0x1d9   :  { %5058 = vmatpush.bf16.msra.mxu1 %v12880_v11  ;;  %v12949_v11 = vld [vmem:[%s26465_s1 + $0xe4c] sm:$0xf0]  ;;  %v13513_v54 = vld [vmem:[%s26465_s1 + $0x12b4] sm:$0xf0]  ;;  %v13420_v59 = vor.u32 %v17531_v28, %v13417_v23  ;;  %v13201_v28 = vld [vmem:[%s26465_s1 + $0x1044] sm:$0xf0] }
 0x1da   :  { %5072 = vmatpush.bf16.msra.mxu2 %v12976_v5  ;;  %v17438_v5 = vld [vmem:[%s26465_s1 + $0xf04] sm:$0xf]  ;;  %v12952_v48 = vor.u32 %v17414_v2, %v12949_v11  ;;  %v13309_v2 = vld [vmem:[%s26465_s1 + $0x111c] sm:$0xf0]  ;;  %v17501_v23 = vld [vmem:[%s26465_s1 + $0x10fc] sm:$0xf] }
 0x1db   :  { %5086 = vmatpush.bf16.msra.mxu3 %v13072_v21  ;;  %v17507_v21 = vld [vmem:[%s26465_s1 + $0x112c] sm:$0xf]  ;;  %v13048_v61 = vor.u32 %v17438_v5, %v13045_v6  ;;  %v13405_v11 = vld [vmem:[%s26465_s1 + $0x11dc] sm:$0xf0]  ;;  %v21413_v5 = vpop.f32.mrf.mxu0  ;;  %v17552_v6 = vld [vmem:[%s26465_s1 + $0x1294] sm:$0xf] }
 0x1dc   :  { %5045 = vmatpush.bf16.msra.mxu0 %v12772_v63  ;;  %v17555_v63 = vld [vmem:[%s26465_s1 + $0x12ac] sm:$0xf]  ;;  %v13324_v52 = vor.u32 %v17507_v21, %v13321_v12  ;;  %26498 = vst [vmem:[#allocation31_spill] sm:$0xff] %v21413_v5  ;;  %v21421_v21 = vpop.f32.mrf.mxu1 }
 0x1dd   :  { %5059 = vmatpush.bf16.msra.mxu1 %v12868_v45  ;;  %v17480_v45 = vld [vmem:[%s26465_s1 + $0x1054] sm:$0xf]  ;;  %v13516_v20 = vor.u32 %v17555_v63, %v13513_v54  ;;  %26499 = vst [vmem:[#allocation32_spill] sm:$0xff] %v21421_v21  ;;  %v17549_v63 = vld [vmem:[%s26465_s1 + $0x127c] sm:$0xf] }
 0x1de   :  { %5073 = vmatpush.bf16.msra.mxu2 %v12964_v3  ;;  %v13213_v3 = vld [vmem:[%s26465_s1 + $0x105c] sm:$0xf0]  ;;  %v13489_v54 = vld [vmem:[%s26465_s1 + $0x1284] sm:$0xf0] }
 0x1df   :  { %5087 = vmatpush.bf16.msra.mxu3 %v13060_v38  ;;  %v17528_v38 = vld [vmem:[%s26465_s1 + $0x11d4] sm:$0xf]  ;;  %v13216_v9 = vor.u32 %v17480_v45, %v13213_v3 }
 0x1e0   :  { %5046 = vmatpush.bf16.msra.mxu0 %v12760_v16  ;;  %v13312_v16 = vor.u32 %v17504_v42, %v13309_v2  ;;  %v13408_v12 = vor.u32 %v17528_v38, %v13405_v11  ;;  %v17474_v42 = vld [vmem:[%s26465_s1 + $0x1024] sm:$0xf]  ;;  %v21460_v38 = vpop.f32.mrf.mxu2  ;;  %v13492_v11 = vor.u32 %v17549_v63, %v13489_v54  ;;  %v17471_v63 = vld [vmem:[%s26465_s1 + $0x100c] sm:$0xf]  ;;  %v13177_v54 = vld [vmem:[%s26465_s1 + $0x1014] sm:$0xf0] }
 0x1e1   :  { %5060 = vmatpush.bf16.msra.mxu1 %v12856_v32  ;;  %v13393_v32 = vld [vmem:[%s26465_s1 + $0x11c4] sm:$0xf0]  ;;  %v17498_v2 = vld [vmem:[%s26465_s1 + $0x10e4] sm:$0xf]  ;;  %26500 = vst [vmem:[#allocation33_spill] sm:$0xff] %v21460_v38 }
 0x1e2   :  { %5074 = vmatpush.bf16.msra.mxu2 %v12952_v48  ;;  %v17477_v48 = vld [vmem:[%s26465_s1 + $0x103c] sm:$0xf]  ;;  %v17495_v38 = vld [vmem:[%s26465_s1 + $0x10cc] sm:$0xf] }
 0x1e3   :  { %5088 = vmatpush.bf16.msra.mxu3 %v13048_v61  ;;  %5047 = vmatmul.bf16.vlgmr.msra.gmra.mxu0 %v18703_v39  ;;  %v13204_v61 = vor.u32 %v17477_v48, %v13201_v28  ;;  %v17546_v48 = vld [vmem:[%s26465_s1 + $0x1264] sm:$0xf]  ;;  %v13477_v28 = vld [vmem:[%s26465_s1 + $0x126c] sm:$0xf0] }
 0x1e4   :  { %5095 = vmatpush.bf16.msrb.mxu0 %v13228_v30  ;;  %v13504_v30 = vor.u32 %v17552_v6, %v13501_v60  ;;  %5061 = vmatmul.bf16.vlgmr.msra.gmra.mxu1 %v18716_v44  ;;  %v21462_v6 = vpop.f32.mrf.mxu3  ;;  %v13285_v60 = vld [vmem:[%s26465_s1 + $0x10ec] sm:$0xf0] }
 0x1e5   :  { %5109 = vmatpush.bf16.msrb.mxu1 %v13324_v52  ;;  %v17525_v52 = vld [vmem:[%s26465_s1 + $0x11bc] sm:$0xf]  ;;  %5075 = vmatmul.bf16.vlgmr.msra.gmra.mxu2 %v18714_v43 }
 0x1e6   :  { %5123 = vmatpush.bf16.msrb.mxu2 %v13420_v59  ;;  %v13297_v59 = vld [vmem:[%s26465_s1 + $0x1104] sm:$0xf0]  ;;  %5089 = vmatmul.bf16.vlgmr.msra.gmra.mxu3 %v18724_v47  ;;  %v13396_v3 = vor.u32 %v17525_v52, %v13393_v32  ;;  %v4838_v32 = vpop.f32.mrf.mxu1 }
 0x1e7   :  { %5137 = vmatpush.bf16.msrb.mxu3 %v13516_v20  ;;  %v13300_v45 = vor.u32 %v17501_v23, %v13297_v59  ;;  %v13189_v20 = vld [vmem:[%s26465_s1 + $0x102c] sm:$0xf0]  ;;  %v13288_v59 = vor.u32 %v17498_v2, %v13285_v60  ;;  %v13465_v2 = vld [vmem:[%s26465_s1 + $0x1254] sm:$0xf0] }
 0x1e8   :  { %5096 = vmatpush.bf16.msrb.mxu0 %v13216_v9  ;;  %v17522_v9 = vld [vmem:[%s26465_s1 + $0x11a4] sm:$0xf] }
 0x1e9   :  { %5110 = vmatpush.bf16.msrb.mxu1 %v13312_v16  ;;  %v13381_v16 = vld [vmem:[%s26465_s1 + $0x11ac] sm:$0xf0] }
 0x1ea   :  { %5124 = vmatpush.bf16.msrb.mxu2 %v13408_v12  ;;  %v4824_v12 = vpop.f32.mrf.mxu0  ;;  %v13384_v52 = vor.u32 %v17522_v9, %v13381_v16  ;;  %v17468_v16 = vld [vmem:[%s26465_s1 + $0xff4] sm:$0xf] }
 0x1eb   :  { %5138 = vmatpush.bf16.msrb.mxu3 %v13504_v30  ;;  %v4825_v23 = vadd.f32 %v4824_v12, %v4810_v19  ;;  %v13192_v30 = vor.u32 %v17474_v42, %v13189_v20  ;;  %v13480_v19 = vor.u32 %v17546_v48, %v13477_v28  ;;  %v13369_v42 = vld [vmem:[%s26465_s1 + $0x1194] sm:$0xf0]  ;;  %v17543_v20 = vld [vmem:[%s26465_s1 + $0x124c] sm:$0xf]  ;;  %v13165_v12 = vld [vmem:[%s26465_s1 + $0xffc] sm:$0xf0] }
 0x1ec   :  { %5097 = vmatpush.bf16.msrb.mxu0 %v13204_v61  ;;  %v17492_v48 = vld [vmem:[%s26465_s1 + $0x10b4] sm:$0xf]  ;;  %v13468_v28 = vor.u32 %v17543_v20, %v13465_v2  ;;  %v13153_v20 = vld [vmem:[%s26465_s1 + $0xfe4] sm:$0xf0]  ;;  %v17489_v2 = vld [vmem:[%s26465_s1 + $0x109c] sm:$0xf] }
 0x1ed   :  { %5111 = vmatpush.bf16.msrb.mxu1 %v13300_v45  ;;  %v4839_v61 = vadd.f32 %v4838_v32, %v4825_v23  ;;  %v13273_v45 = vld [vmem:[%s26465_s1 + $0x10d4] sm:$0xf0]  ;;  %v4852_v23 = vpop.f32.mrf.mxu2  ;;  %v17540_v32 = vld [vmem:[%s26465_s1 + $0x1234] sm:$0xf] }
 0x1ee   :  { %5125 = vmatpush.bf16.msrb.mxu2 %v13396_v3  ;;  %v17519_v3 = vld [vmem:[%s26465_s1 + $0x118c] sm:$0xf]  ;;  %v13276_v60 = vor.u32 %v17495_v38, %v13273_v45  ;;  %v13261_v38 = vld [vmem:[%s26465_s1 + $0x10bc] sm:$0xf0] }
 0x1ef   :  { %5139 = vmatpush.bf16.msrb.mxu3 %v13492_v11  ;;  %v13180_v11 = vor.u32 %v17471_v63, %v13177_v54  ;;  %v13372_v9 = vor.u32 %v17519_v3, %v13369_v42  ;;  %v13453_v63 = vld [vmem:[%s26465_s1 + $0x123c] sm:$0xf0]  ;;  %v4866_v54 = vpop.f32.mrf.mxu3  ;;  %v13264_v3 = vor.u32 %v17492_v48, %v13261_v38  ;;  %v13441_v48 = vld [vmem:[%s26465_s1 + $0x1224] sm:$0xf0]  ;;  %v13141_v38 = vld [vmem:[%s26465_s1 + $0xfcc] sm:$0xf0] }
 0x1f0   :  { %5098 = vmatpush.bf16.msrb.mxu0 %v13192_v30  ;;  %v17516_v30 = vld [vmem:[%s26465_s1 + $0x1174] sm:$0xf] }
 0x1f1   :  { %5112 = vmatpush.bf16.msrb.mxu1 %v13288_v59  ;;  %v13357_v59 = vld [vmem:[%s26465_s1 + $0x117c] sm:$0xf0] }
 0x1f2   :  { %5126 = vmatpush.bf16.msrb.mxu2 %v13384_v52  ;;  %v4853_v52 = vadd.f32 %v4852_v23, %v4839_v61  ;;  %v13360_v42 = vor.u32 %v17516_v30, %v13357_v59  ;;  %v17465_v61 = vld [vmem:[%s26465_s1 + $0xfdc] sm:$0xf]  ;;  %v17462_v23 = vld [vmem:[%s26465_s1 + $0xfc4] sm:$0xf] }
 0x1f3   :  { %5140 = vmatpush.bf16.msrb.mxu3 %v13480_v19  ;;  %v13168_v19 = vor.u32 %v17468_v16, %v13165_v12  ;;  %v13345_v16 = vld [vmem:[%s26465_s1 + $0x1164] sm:$0xf0]  ;;  %v17537_v12 = vld [vmem:[%s26465_s1 + $0x121c] sm:$0xf] }
 0x1f4   :  { %5099 = vmatpush.bf16.msrb.mxu0 %v13180_v11  ;;  %v21527_v45 = vadd.f32 %v4866_v54, %v4853_v52  ;;  %v13456_v11 = vor.u32 %v17540_v32, %v13453_v63  ;;  %v17486_v52 = vld [vmem:[%s26465_s1 + $0x1084] sm:$0xf]  ;;  %v13237_v32 = vld [vmem:[%s26465_s1 + $0x108c] sm:$0xf0]  ;;  %v13444_v54 = vor.u32 %v17537_v12, %v13441_v48 }
 0x1f5   :  { %5113 = vmatpush.bf16.msrb.mxu1 %v13276_v60  ;;  %v13249_v60 = vld [vmem:[%s26465_s1 + $0x10a4] sm:$0xf0]  ;;  %v17510_v63 = vld [vmem:[%s26465_s1 + $0x1144] sm:$0xf]  ;;  %v13240_v12 = vor.u32 %v17486_v52, %v13237_v32  ;;  %v12451_v52 = vld [vmem:[%s26465_s1 + $0xa58] sm:$0xf] }
 0x1f6   :  { %5127 = vmatpush.bf16.msrb.mxu2 %v13372_v9  ;;  %v17513_v9 = vld [vmem:[%s26465_s1 + $0x115c] sm:$0xf]  ;;  %v13252_v30 = vor.u32 %v17489_v2, %v13249_v60  ;;  %v12463_v2 = vld [vmem:[%s26465_s1 + $0xa70] sm:$0xf] }
 0x1f7   :  { %5141 = vmatpush.bf16.msrb.mxu3 %v13468_v28  ;;  %v13156_v28 = vor.u32 %v17465_v61, %v13153_v20  ;;  %v13348_v59 = vor.u32 %v17513_v9, %v13345_v16  ;;  %v17579_v61 = vld [vmem:[%s26465_s1 + $0x136c] sm:$0xf]  ;;  %v13609_v20 = vld [vmem:[%s26465_s1 + $0x1374] sm:$0xf0]  ;;  %v17293_v60 = vld [vmem:[%s26465_s1 + $0xa78] sm:$0xf0] }
 0x1f8   :  { %5100 = vmatpush.bf16.msrb.mxu0 %v13168_v19  ;;  %v13333_v19 = vld [vmem:[%s26465_s1 + $0x114c] sm:$0xf0]  ;;  %v17317_v16 = vld [vmem:[%s26465_s1 + $0xb38] sm:$0xf0]  ;;  %v13612_v21 = vor.u32 %v17579_v61, %v13609_v20  ;;  %v12464_v5 = vor.u32 %v17293_v60, %v12463_v2  ;;  %v17338_v61 = vld [vmem:[%s26465_s1 + $0xbe0] sm:$0xf0]  ;;  %v21627_v20 = vpop.f32.mrf.mxu1 }
 0x1f9   :  { %5114 = vmatpush.bf16.msrb.mxu1 %v13264_v3  ;;  %v17534_v3 = vld [vmem:[%s26465_s1 + $0x1204] sm:$0xf]  ;;  %v12559_v9 = vld [vmem:[%s26465_s1 + $0xb30] sm:$0xf]  ;;  %v13336_v48 = vor.u32 %v17510_v63, %v13333_v19 }
 0x1fa   :  { %5128 = vmatpush.bf16.msrb.mxu2 %v13360_v42  ;;  %v13429_v42 = vld [vmem:[%s26465_s1 + $0x120c] sm:$0xf0]  ;;  %v12560_v22 = vor.u32 %v17317_v16, %v12559_v9  ;;  %v17290_v63 = vld [vmem:[%s26465_s1 + $0xa60] sm:$0xf0]  ;;  %v17573_v9 = vld [vmem:[%s26465_s1 + $0x133c] sm:$0xf] }
 0x1fb   :  { %5142 = vmatpush.bf16.msrb.mxu3 %v13456_v11  ;;  %v13144_v11 = vor.u32 %v17462_v23, %v13141_v38  ;;  %v17341_v23 = vld [vmem:[%s26465_s1 + $0xbf8] sm:$0xf0]  ;;  %v13432_v38 = vor.u32 %v17534_v3, %v13429_v42  ;;  %v17314_v19 = vld [vmem:[%s26465_s1 + $0xb20] sm:$0xf0]  ;;  %v21619_v3 = vpop.f32.mrf.mxu0  ;;  %v12643_v42 = vld [vmem:[%s26465_s1 + $0xbd8] sm:$0xf] }
 0x1fc   :  { %5101 = vmatpush.bf16.msrb.mxu0 %v13156_v28  ;;  %v12655_v28 = vld [vmem:[%s26465_s1 + $0xbf0] sm:$0xf]  ;;  %v13585_v16 = vld [vmem:[%s26465_s1 + $0x1344] sm:$0xf0] }
 0x1fd   :  { %5115 = vmatpush.bf16.msrb.mxu1 %v13252_v30  ;;  %v17576_v30 = vld [vmem:[%s26465_s1 + $0x1354] sm:$0xf]  ;;  %v12656_v32 = vor.u32 %v17341_v23, %v12655_v28  ;;  %v12631_v28 = vld [vmem:[%s26465_s1 + $0xbc0] sm:$0xf]  ;;  %v17335_v23 = vld [vmem:[%s26465_s1 + $0xbc8] sm:$0xf0] }
 0x1fe   :  { %5129 = vmatpush.bf16.msrb.mxu2 %v13348_v59  ;;  %v13597_v59 = vld [vmem:[%s26465_s1 + $0x135c] sm:$0xf0] }
 0x1ff   :  { %5143 = vmatpush.bf16.msrb.mxu3 %v13444_v54  ;;  %v12547_v54 = vld [vmem:[%s26465_s1 + $0xb18] sm:$0xf]  ;;  %v13600_v2 = vor.u32 %v17576_v30, %v13597_v59 }
 0x200   :  { %5102 = vmatpush.bf16.msrb.mxu0 %v13144_v11  ;;  %v12452_v11 = vor.u32 %v17290_v63, %v12451_v52  ;;  %v12548_v60 = vor.u32 %v17314_v19, %v12547_v54  ;;  %v17570_v52 = vld [vmem:[%s26465_s1 + $0x1324] sm:$0xf]  ;;  %v12427_v63 = vld [vmem:[%s26465_s1 + $0xa28] sm:$0xf]  ;;  %v21666_v54 = vpop.f32.mrf.mxu2  ;;  %v12632_v19 = vor.u32 %v17335_v23, %v12631_v28  ;;  %v17567_v28 = vld [vmem:[%s26465_s1 + $0x130c] sm:$0xf] }
 0x201   :  { %5116 = vmatpush.bf16.msrb.mxu1 %v13240_v12  ;;  %v12439_v12 = vld [vmem:[%s26465_s1 + $0xa40] sm:$0xf]  ;;  %v13561_v23 = vld [vmem:[%s26465_s1 + $0x1314] sm:$0xf0] }
 0x202   :  { %5130 = vmatpush.bf16.msrb.mxu2 %v13336_v48  ;;  %v17311_v48 = vld [vmem:[%s26465_s1 + $0xb08] sm:$0xf0] }
 0x203   :  { %5144 = vmatpush.bf16.msrb.mxu3 %v13432_v38  ;;  %5103 = vmatmul.bf16.vlgmr.msrb.gmra.mxu0 %v18931_v31  ;;  %v13588_v38 = vor.u32 %v17573_v9, %v13585_v16  ;;  %v12619_v9 = vld [vmem:[%s26465_s1 + $0xba8] sm:$0xf]  ;;  %v17332_v16 = vld [vmem:[%s26465_s1 + $0xbb0] sm:$0xf0] }
 0x204   :  { %5151 = vmatpush.bf16.msra.mxu0 %v13612_v21  ;;  %v12644_v21 = vor.u32 %v17338_v61, %v12643_v42  ;;  %5117 = vmatmul.bf16.vlgmr.msrb.gmra.mxu1 %v18944_v36  ;;  %v17284_v42 = vld [vmem:[%s26465_s1 + $0xa30] sm:$0xf0]  ;;  %v12523_v61 = vld [vmem:[%s26465_s1 + $0xae8] sm:$0xf] }
 0x205   :  { %5165 = vmatpush.bf16.msra.mxu1 %v12464_v5  ;;  %v12535_v5 = vld [vmem:[%s26465_s1 + $0xb00] sm:$0xf]  ;;  %5131 = vmatmul.bf16.vlgmr.msrb.gmra.mxu2 %v18942_v35 }
 0x206   :  { %5179 = vmatpush.bf16.msra.mxu2 %v12560_v22  ;;  %v17287_v22 = vld [vmem:[%s26465_s1 + $0xa48] sm:$0xf0]  ;;  %5145 = vmatmul.bf16.vlgmr.msrb.gmra.mxu3 %v18952_v40  ;;  %v12536_v59 = vor.u32 %v17311_v48, %v12535_v5  ;;  %v12428_v5 = vor.u32 %v17284_v42, %v12427_v63  ;;  %v12607_v63 = vld [vmem:[%s26465_s1 + $0xb90] sm:$0xf]  ;;  %v13564_v42 = vor.u32 %v17567_v28, %v13561_v23 }
 0x207   :  { %5193 = vmatpush.bf16.msra.mxu3 %v12656_v32  ;;  %v12440_v30 = vor.u32 %v17287_v22, %v12439_v12  ;;  %v13573_v32 = vld [vmem:[%s26465_s1 + $0x132c] sm:$0xf0]  ;;  %v4894_v22 = vpop.f32.mrf.mxu1 }
 0x208   :  { %5152 = vmatpush.bf16.msra.mxu0 %v13600_v2  ;;  %v17308_v2 = vld [vmem:[%s26465_s1 + $0xaf0] sm:$0xf0] }
 0x209   :  { %5166 = vmatpush.bf16.msra.mxu1 %v12452_v11  ;;  %v21677_v11 = vpop.f32.mrf.mxu3  ;;  %v12524_v48 = vor.u32 %v17308_v2, %v12523_v61 }
 0x20a   :  { %5180 = vmatpush.bf16.msra.mxu2 %v12548_v60  ;;  %v4880_v60 = vpop.f32.mrf.mxu0 }
 0x20b   :  { %5194 = vmatpush.bf16.msra.mxu3 %v12644_v21  ;;  %v4881_v12 = vadd.f32 %v4880_v60, %v21527_v45  ;;  %v13576_v21 = vor.u32 %v17570_v52, %v13573_v32  ;;  %v12620_v45 = vor.u32 %v17332_v16, %v12619_v9  ;;  %v17305_v32 = vld [vmem:[%s26465_s1 + $0xad8] sm:$0xf0]  ;;  %v17564_v60 = vld [vmem:[%s26465_s1 + $0x12f4] sm:$0xf]  ;;  %v13549_v9 = vld [vmem:[%s26465_s1 + $0x12fc] sm:$0xf0] }
 0x20c   :  { %5153 = vmatpush.bf16.msra.mxu0 %v13588_v38  ;;  %v12415_v38 = vld [vmem:[%s26465_s1 + $0xa10] sm:$0xf]  ;;  %v12403_v16 = vld [vmem:[%s26465_s1 + $0x9f8] sm:$0xf] }
 0x20d   :  { %5167 = vmatpush.bf16.msra.mxu1 %v12440_v30  ;;  %v4895_v52 = vadd.f32 %v4894_v22, %v4881_v12  ;;  %v17281_v30 = vld [vmem:[%s26465_s1 + $0xa18] sm:$0xf0]  ;;  %v17278_v22 = vld [vmem:[%s26465_s1 + $0xa00] sm:$0xf0] }
 0x20e   :  { %5181 = vmatpush.bf16.msra.mxu2 %v12536_v59  ;;  %v12511_v59 = vld [vmem:[%s26465_s1 + $0xad0] sm:$0xf]  ;;  %v12416_v61 = vor.u32 %v17281_v30, %v12415_v38  ;;  %v12595_v38 = vld [vmem:[%s26465_s1 + $0xb78] sm:$0xf]  ;;  %v13552_v30 = vor.u32 %v17564_v60, %v13549_v9  ;;  %v17299_v60 = vld [vmem:[%s26465_s1 + $0xaa8] sm:$0xf0] }
 0x20f   :  { %5195 = vmatpush.bf16.msra.mxu3 %v12632_v19  ;;  %v17329_v19 = vld [vmem:[%s26465_s1 + $0xb98] sm:$0xf0]  ;;  %v12512_v2 = vor.u32 %v17305_v32, %v12511_v59  ;;  %v12404_v32 = vor.u32 %v17278_v22, %v12403_v16  ;;  %v12583_v9 = vld [vmem:[%s26465_s1 + $0xb60] sm:$0xf]  ;;  %v17323_v16 = vld [vmem:[%s26465_s1 + $0xb68] sm:$0xf0] }
 0x210   :  { %5154 = vmatpush.bf16.msra.mxu0 %v13576_v21  ;;  %v12608_v12 = vor.u32 %v17329_v19, %v12607_v63  ;;  %v4908_v21 = vpop.f32.mrf.mxu2  ;;  %v13537_v19 = vld [vmem:[%s26465_s1 + $0x12e4] sm:$0xf0]  ;;  %v17558_v22 = vld [vmem:[%s26465_s1 + $0x12c4] sm:$0xf] }
 0x211   :  { %5168 = vmatpush.bf16.msra.mxu1 %v12428_v5  ;;  %v12499_v5 = vld [vmem:[%s26465_s1 + $0xab8] sm:$0xf]  ;;  %v4909_v28 = vadd.f32 %v4908_v21, %v4895_v52  ;;  %v4922_v23 = vpop.f32.mrf.mxu3  ;;  %v17561_v52 = vld [vmem:[%s26465_s1 + $0x12dc] sm:$0xf]  ;;  %v12391_v21 = vld [vmem:[%s26465_s1 + $0x9e0] sm:$0xf] }
 0x212   :  { %5182 = vmatpush.bf16.msra.mxu2 %v12524_v48  ;;  %v17302_v48 = vld [vmem:[%s26465_s1 + $0xac0] sm:$0xf0] }
 0x213   :  { %5196 = vmatpush.bf16.msra.mxu3 %v12620_v45  ;;  %v17326_v45 = vld [vmem:[%s26465_s1 + $0xb80] sm:$0xf0]  ;;  %v21734_v59 = vadd.f32 %v4922_v23, %v4909_v28  ;;  %v12500_v63 = vor.u32 %v17302_v48, %v12499_v5  ;;  %v13525_v5 = vld [vmem:[%s26465_s1 + $0x12cc] sm:$0xf0]  ;;  %v12379_v23 = vld [vmem:[%s26465_s1 + $0x9c8] sm:$0xf] }
 0x214   :  { %5155 = vmatpush.bf16.msra.mxu0 %v13564_v42  ;;  %v12596_v42 = vor.u32 %v17326_v45, %v12595_v38  ;;  %v17272_v38 = vld [vmem:[%s26465_s1 + $0x9d0] sm:$0xf0]  ;;  %v12475_v45 = vld [vmem:[%s26465_s1 + $0xa88] sm:$0xf] }
 0x215   :  { %5169 = vmatpush.bf16.msra.mxu1 %v12416_v61  ;;  %v17275_v61 = vld [vmem:[%s26465_s1 + $0x9e8] sm:$0xf0] }
 0x216   :  { %5183 = vmatpush.bf16.msra.mxu2 %v12512_v2  ;;  %v12487_v2 = vld [vmem:[%s26465_s1 + $0xaa0] sm:$0xf]  ;;  %v12392_v48 = vor.u32 %v17275_v61, %v12391_v21  ;;  %v17365_v21 = vld [vmem:[%s26465_s1 + $0xcb8] sm:$0xf0]  ;;  %v13528_v61 = vor.u32 %v17558_v22, %v13525_v5 }
 0x217   :  { %5197 = vmatpush.bf16.msra.mxu3 %v12608_v12  ;;  %v13540_v12 = vor.u32 %v17561_v52, %v13537_v19  ;;  %v12488_v28 = vor.u32 %v17299_v60, %v12487_v2  ;;  %v17320_v52 = vld [vmem:[%s26465_s1 + $0xb50] sm:$0xf0]  ;;  %v12751_v19 = vld [vmem:[%s26465_s1 + $0xcb0] sm:$0xf]  ;;  %v17389_v2 = vld [vmem:[%s26465_s1 + $0xd78] sm:$0xf0] }
 0x218   :  { %5156 = vmatpush.bf16.msra.mxu0 %v13552_v30  ;;  %v12584_v30 = vor.u32 %v17323_v16, %v12583_v9  ;;  %v12943_v60 = vld [vmem:[%s26465_s1 + $0xe30] sm:$0xf]  ;;  %v17413_v9 = vld [vmem:[%s26465_s1 + $0xe38] sm:$0xf0]  ;;  %v12380_v16 = vor.u32 %v17272_v38, %v12379_v23  ;;  %v12752_v14 = vor.u32 %v17365_v21, %v12751_v19  ;;  %v12835_v23 = vld [vmem:[%s26465_s1 + $0xd58] sm:$0xf]  ;;  %v21834_v21 = vpop.f32.mrf.mxu1 }
 0x219   :  { %5170 = vmatpush.bf16.msra.mxu1 %v12404_v32  ;;  %v17296_v32 = vld [vmem:[%s26465_s1 + $0xa90] sm:$0xf0]  ;;  %v17437_v22 = vld [vmem:[%s26465_s1 + $0xef8] sm:$0xf0]  ;;  %v12944_v29 = vor.u32 %v17413_v9, %v12943_v60  ;;  %v17434_v19 = vld [vmem:[%s26465_s1 + $0xee0] sm:$0xf0] }
 0x21a   :  { %5184 = vmatpush.bf16.msra.mxu2 %v12500_v63  ;;  %v12571_v63 = vld [vmem:[%s26465_s1 + $0xb48] sm:$0xf]  ;;  %v12476_v55 = vor.u32 %v17296_v32, %v12475_v45  ;;  %v17386_v45 = vld [vmem:[%s26465_s1 + $0xd60] sm:$0xf0]  ;;  %26502 = vst [vmem:[#allocation35_spill] sm:$0xff] %v21834_v21 }
 0x21b   :  { %5198 = vmatpush.bf16.msra.mxu3 %v12596_v42  ;;  %v12847_v42 = vld [vmem:[%s26465_s1 + $0xd70] sm:$0xf]  ;;  %v12572_v5 = vor.u32 %v17320_v52, %v12571_v63  ;;  %v17410_v32 = vld [vmem:[%s26465_s1 + $0xe20] sm:$0xf0]  ;;  %v21826_v63 = vpop.f32.mrf.mxu0  ;;  %v13027_v52 = vld [vmem:[%s26465_s1 + $0xed8] sm:$0xf] }
 0x21c   :  { %5157 = vmatpush.bf16.msra.mxu0 %v13540_v12  ;;  %v13039_v12 = vld [vmem:[%s26465_s1 + $0xef0] sm:$0xf]  ;;  %v12848_v37 = vor.u32 %v17389_v2, %v12847_v42  ;;  %26501 = vst [vmem:[#allocation34_spill] sm:$0xff] %v21826_v63  ;;  %v17359_v60 = vld [vmem:[%s26465_s1 + $0xc88] sm:$0xf0] }
 0x21d   :  { %5171 = vmatpush.bf16.msra.mxu1 %v12392_v48  ;;  %v12739_v48 = vld [vmem:[%s26465_s1 + $0xc98] sm:$0xf]  ;;  %v13040_v38 = vor.u32 %v17437_v22, %v13039_v12  ;;  %v12823_v9 = vld [vmem:[%s26465_s1 + $0xd40] sm:$0xf]  ;;  %v17431_v22 = vld [vmem:[%s26465_s1 + $0xec8] sm:$0xf0] }
 0x21e   :  { %5185 = vmatpush.bf16.msra.mxu2 %v12488_v28  ;;  %v17362_v28 = vld [vmem:[%s26465_s1 + $0xca0] sm:$0xf0]  ;;  %v13015_v12 = vld [vmem:[%s26465_s1 + $0xec0] sm:$0xf] }
 0x21f   :  { %5199 = vmatpush.bf16.msra.mxu3 %v12584_v30  ;;  %v12931_v30 = vld [vmem:[%s26465_s1 + $0xe18] sm:$0xf]  ;;  %v12740_v42 = vor.u32 %v17362_v28, %v12739_v48 }
 0x220   :  { %5158 = vmatpush.bf16.msra.mxu0 %v13528_v61  ;;  %v12836_v61 = vor.u32 %v17386_v45, %v12835_v23  ;;  %v12932_v2 = vor.u32 %v17410_v32, %v12931_v30  ;;  %v12715_v23 = vld [vmem:[%s26465_s1 + $0xc68] sm:$0xf]  ;;  %v21873_v30 = vpop.f32.mrf.mxu2  ;;  %v13016_v32 = vor.u32 %v17431_v22, %v13015_v12  ;;  %v12703_v12 = vld [vmem:[%s26465_s1 + $0xc50] sm:$0xf]  ;;  %v17353_v22 = vld [vmem:[%s26465_s1 + $0xc58] sm:$0xf0] }
 0x221   :  { %5172 = vmatpush.bf16.msra.mxu1 %v12380_v16  ;;  %v17407_v16 = vld [vmem:[%s26465_s1 + $0xe08] sm:$0xf0]  ;;  %v12811_v45 = vld [vmem:[%s26465_s1 + $0xd28] sm:$0xf]  ;;  %26503 = vst [vmem:[#allocation36_spill] sm:$0xff] %v21873_v30 }
 0x222   :  { %5186 = vmatpush.bf16.msra.mxu2 %v12476_v55  ;;  %v12727_v55 = vld [vmem:[%s26465_s1 + $0xc80] sm:$0xf] }
 0x223   :  { %5200 = vmatpush.bf16.msra.mxu3 %v12572_v5  ;;  %5159 = vmatmul.bf16.vlgmr.msra.gmra.mxu0 %v19141_v25  ;;  %v12728_v5 = vor.u32 %v17359_v60, %v12727_v55  ;;  %v13003_v55 = vld [vmem:[%s26465_s1 + $0xea8] sm:$0xf]  ;;  %v17428_v60 = vld [vmem:[%s26465_s1 + $0xeb0] sm:$0xf0] }
 0x224   :  { %5207 = vmatpush.bf16.msrb.mxu0 %v12752_v14  ;;  %v13028_v14 = vor.u32 %v17434_v19, %v13027_v52  ;;  %5173 = vmatmul.bf16.vlgmr.msra.gmra.mxu1 %v18481_v58  ;;  %v17380_v52 = vld [vmem:[%s26465_s1 + $0xd30] sm:$0xf0]  ;;  %v12907_v19 = vld [vmem:[%s26465_s1 + $0xde8] sm:$0xf] }
 0x225   :  { %5221 = vmatpush.bf16.msrb.mxu1 %v12848_v37  ;;  %v17383_v37 = vld [vmem:[%s26465_s1 + $0xd48] sm:$0xf0]  ;;  %5187 = vmatmul.bf16.vlgmr.msra.gmra.mxu2 %v18517_v10 }
 0x226   :  { %5235 = vmatpush.bf16.msrb.mxu2 %v12944_v29  ;;  %v12919_v29 = vld [vmem:[%s26465_s1 + $0xe00] sm:$0xf]  ;;  %5201 = vmatmul.bf16.vlgmr.msra.gmra.mxu3 %v18495_v1  ;;  %v12824_v48 = vor.u32 %v17383_v37, %v12823_v9  ;;  %v4950_v37 = vpop.f32.mrf.mxu1 }
 0x227   :  { %5249 = vmatpush.bf16.msrb.mxu3 %v13040_v38  ;;  %v12920_v28 = vor.u32 %v17407_v16, %v12919_v29  ;;  %v17356_v38 = vld [vmem:[%s26465_s1 + $0xc70] sm:$0xf0]  ;;  %v12812_v29 = vor.u32 %v17380_v52, %v12811_v45  ;;  %v12991_v45 = vld [vmem:[%s26465_s1 + $0xe90] sm:$0xf]  ;;  %v12704_v52 = vor.u32 %v17353_v22, %v12703_v12 }
 0x228   :  { %5208 = vmatpush.bf16.msrb.mxu0 %v12740_v42  ;;  %v17404_v42 = vld [vmem:[%s26465_s1 + $0xdf0] sm:$0xf0] }
 0x229   :  { %5222 = vmatpush.bf16.msrb.mxu1 %v12836_v61  ;;  %v21884_v61 = vpop.f32.mrf.mxu3  ;;  %v12908_v16 = vor.u32 %v17404_v42, %v12907_v19 }
 0x22a   :  { %5236 = vmatpush.bf16.msrb.mxu2 %v12932_v2  ;;  %26504 = vst [vmem:[#allocation37_spill] sm:$0xff] %v21884_v61  ;;  %v4936_v2 = vpop.f32.mrf.mxu0 }
 0x22b   :  { %5250 = vmatpush.bf16.msrb.mxu3 %v13028_v14  ;;  %v4937_v9 = vadd.f32 %v4936_v2, %v21734_v59  ;;  %v12716_v14 = vor.u32 %v17356_v38, %v12715_v23  ;;  %v13004_v59 = vor.u32 %v17428_v60, %v13003_v55  ;;  %v17401_v38 = vld [vmem:[%s26465_s1 + $0xdd8] sm:$0xf0]  ;;  %v12691_v2 = vld [vmem:[%s26465_s1 + $0xc38] sm:$0xf]  ;;  %v17350_v55 = vld [vmem:[%s26465_s1 + $0xc40] sm:$0xf0] }
 0x22c   :  { %5209 = vmatpush.bf16.msrb.mxu0 %v12728_v5  ;;  %v12799_v5 = vld [vmem:[%s26465_s1 + $0xd10] sm:$0xf]  ;;  %v12787_v60 = vld [vmem:[%s26465_s1 + $0xcf8] sm:$0xf] }
 0x22d   :  { %5223 = vmatpush.bf16.msrb.mxu1 %v12824_v48  ;;  %v4951_v23 = vadd.f32 %v4950_v37, %v4937_v9  ;;  %v17377_v48 = vld [vmem:[%s26465_s1 + $0xd18] sm:$0xf0]  ;;  %v17374_v37 = vld [vmem:[%s26465_s1 + $0xd00] sm:$0xf0] }
 0x22e   :  { %5237 = vmatpush.bf16.msrb.mxu2 %v12920_v28  ;;  %v12895_v28 = vld [vmem:[%s26465_s1 + $0xdd0] sm:$0xf]  ;;  %v12800_v19 = vor.u32 %v17377_v48, %v12799_v5  ;;  %v12979_v5 = vld [vmem:[%s26465_s1 + $0xe78] sm:$0xf]  ;;  %v12692_v48 = vor.u32 %v17350_v55, %v12691_v2  ;;  %v17395_v2 = vld [vmem:[%s26465_s1 + $0xda8] sm:$0xf0] }
 0x22f   :  { %5251 = vmatpush.bf16.msrb.mxu3 %v13016_v32  ;;  %v17425_v32 = vld [vmem:[%s26465_s1 + $0xe98] sm:$0xf0]  ;;  %v12896_v42 = vor.u32 %v17401_v38, %v12895_v28  ;;  %v12788_v38 = vor.u32 %v17374_v37, %v12787_v60  ;;  %v12967_v60 = vld [vmem:[%s26465_s1 + $0xe60] sm:$0xf] }
 0x230   :  { %5210 = vmatpush.bf16.msrb.mxu0 %v12716_v14  ;;  %v12992_v9 = vor.u32 %v17425_v32, %v12991_v45  ;;  %v4964_v14 = vpop.f32.mrf.mxu2  ;;  %v17347_v32 = vld [vmem:[%s26465_s1 + $0xc28] sm:$0xf0] }
 0x231   :  { %5224 = vmatpush.bf16.msrb.mxu1 %v12812_v29  ;;  %v12883_v29 = vld [vmem:[%s26465_s1 + $0xdb8] sm:$0xf]  ;;  %v4965_v12 = vadd.f32 %v4964_v14, %v4951_v23  ;;  %v4978_v22 = vpop.f32.mrf.mxu3  ;;  %v12679_v23 = vld [vmem:[%s26465_s1 + $0xc20] sm:$0xf] }
 0x232   :  { %5238 = vmatpush.bf16.msrb.mxu2 %v12908_v16  ;;  %v17398_v16 = vld [vmem:[%s26465_s1 + $0xdc0] sm:$0xf0]  ;;  %v12775_v14 = vld [vmem:[%s26465_s1 + $0xce0] sm:$0xf]  ;;  %v12680_v37 = vor.u32 %v17347_v32, %v12679_v23  ;;  %v17416_v32 = vld [vmem:[%s26465_s1 + $0xe50] sm:$0xf0] }
 0x233   :  { %5252 = vmatpush.bf16.msrb.mxu3 %v13004_v59  ;;  %v17422_v59 = vld [vmem:[%s26465_s1 + $0xe80] sm:$0xf0]  ;;  %v21941_v28 = vadd.f32 %v4978_v22, %v4965_v12  ;;  %v12884_v45 = vor.u32 %v17398_v16, %v12883_v29  ;;  %v12667_v29 = vld [vmem:[%s26465_s1 + $0xc08] sm:$0xf]  ;;  %v17344_v16 = vld [vmem:[%s26465_s1 + $0xc10] sm:$0xf0] }
 0x234   :  { %5211 = vmatpush.bf16.msrb.mxu0 %v12704_v52  ;;  %v12980_v52 = vor.u32 %v17422_v59, %v12979_v5  ;;  %v12763_v5 = vld [vmem:[%s26465_s1 + $0xcc8] sm:$0xf]  ;;  %v17368_v59 = vld [vmem:[%s26465_s1 + $0xcd0] sm:$0xf0] }
 0x235   :  { %5225 = vmatpush.bf16.msrb.mxu1 %v12800_v19  ;;  %v17371_v19 = vld [vmem:[%s26465_s1 + $0xce8] sm:$0xf0]  ;;  %v12764_v55 = vor.u32 %v17368_v59, %v12763_v5  ;;  %v13219_v5 = vld [vmem:[%s26465_s1 + $0x1058] sm:$0xf] }
 0x236   :  { %5239 = vmatpush.bf16.msrb.mxu2 %v12896_v42  ;;  %v12871_v42 = vld [vmem:[%s26465_s1 + $0xda0] sm:$0xf]  ;;  %v12776_v12 = vor.u32 %v17371_v19, %v12775_v14  ;;  %v13135_v14 = vld [vmem:[%s26465_s1 + $0xfb0] sm:$0xf] }
 0x237   :  { %5253 = vmatpush.bf16.msrb.mxu3 %v12992_v9  ;;  %v17419_v9 = vld [vmem:[%s26465_s1 + $0xe68] sm:$0xf0]  ;;  %v12872_v22 = vor.u32 %v17395_v2, %v12871_v42  ;;  %v13231_v19 = vld [vmem:[%s26465_s1 + $0x1070] sm:$0xf]  ;;  %v12668_v42 = vor.u32 %v17344_v16, %v12667_v29  ;;  %v17485_v2 = vld [vmem:[%s26465_s1 + $0x1078] sm:$0xf0] }
 0x238   :  { %5212 = vmatpush.bf16.msrb.mxu0 %v12692_v48  ;;  %v12859_v48 = vld [vmem:[%s26465_s1 + $0xd88] sm:$0xf]  ;;  %v12968_v23 = vor.u32 %v17419_v9, %v12967_v60  ;;  %v13327_v60 = vld [vmem:[%s26465_s1 + $0x1130] sm:$0xf]  ;;  %v17509_v9 = vld [vmem:[%s26465_s1 + $0x1138] sm:$0xf0]  ;;  %v13232_v7 = vor.u32 %v17485_v2, %v13231_v19 }
 0x239   :  { %5226 = vmatpush.bf16.msrb.mxu1 %v12788_v38  ;;  %v17392_v38 = vld [vmem:[%s26465_s1 + $0xd90] sm:$0xf0]  ;;  %v17533_v29 = vld [vmem:[%s26465_s1 + $0x11f8] sm:$0xf0]  ;;  %v13328_v61 = vor.u32 %v17509_v9, %v13327_v60  ;;  %v17455_v2 = vld [vmem:[%s26465_s1 + $0xf88] sm:$0xf0] }
 0x23a   :  { %5240 = vmatpush.bf16.msrb.mxu2 %v12884_v45  ;;  %v12955_v45 = vld [vmem:[%s26465_s1 + $0xe48] sm:$0xf]  ;;  %v12860_v34 = vor.u32 %v17392_v38, %v12859_v48  ;;  %v17482_v48 = vld [vmem:[%s26465_s1 + $0x1060] sm:$0xf0]  ;;  %v13207_v60 = vld [vmem:[%s26465_s1 + $0x1040] sm:$0xf] }
 0x23b   :  { %5254 = vmatpush.bf16.msrb.mxu3 %v12980_v52  ;;  %v17461_v52 = vld [vmem:[%s26465_s1 + $0xfb8] sm:$0xf0]  ;;  %v12956_v16 = vor.u32 %v17416_v32, %v12955_v45  ;;  %v17506_v38 = vld [vmem:[%s26465_s1 + $0x1120] sm:$0xf0]  ;;  %v13411_v45 = vld [vmem:[%s26465_s1 + $0x11d8] sm:$0xf] }
 0x23c   :  { %5213 = vmatpush.bf16.msrb.mxu0 %v12680_v37  ;;  %v13423_v37 = vld [vmem:[%s26465_s1 + $0x11f0] sm:$0xf]  ;;  %v13136_v24 = vor.u32 %v17461_v52, %v13135_v14  ;;  %v17530_v32 = vld [vmem:[%s26465_s1 + $0x11e0] sm:$0xf0]  ;;  %v22041_v14 = vpop.f32.mrf.mxu0  ;;  %v22043_v52 = vpop.f32.mrf.mxu1  ;;  %v17503_v9 = vld [vmem:[%s26465_s1 + $0x1108] sm:$0xf0] }
 0x23d   :  { %5227 = vmatpush.bf16.msrb.mxu1 %v12776_v12  ;;  %v13123_v12 = vld [vmem:[%s26465_s1 + $0xf98] sm:$0xf]  ;;  %v13424_v59 = vor.u32 %v17533_v29, %v13423_v37  ;;  %26505 = vst [vmem:[#allocation38_spill] sm:$0xff] %v22041_v14  ;;  %v13399_v37 = vld [vmem:[%s26465_s1 + $0x11c0] sm:$0xf] }
 0x23e   :  { %5241 = vmatpush.bf16.msrb.mxu2 %v12872_v22  ;;  %v17458_v22 = vld [vmem:[%s26465_s1 + $0xfa0] sm:$0xf0]  ;;  %26506 = vst [vmem:[#allocation39_spill] sm:$0xff] %v22043_v52  ;;  %v17527_v29 = vld [vmem:[%s26465_s1 + $0x11c8] sm:$0xf0] }
 0x23f   :  { %5255 = vmatpush.bf16.msrb.mxu3 %v12968_v23  ;;  %v13315_v23 = vld [vmem:[%s26465_s1 + $0x1118] sm:$0xf]  ;;  %v13124_v19 = vor.u32 %v17458_v22, %v13123_v12 }
 0x240   :  { %5214 = vmatpush.bf16.msrb.mxu0 %v12668_v42  ;;  %v13220_v42 = vor.u32 %v17482_v48, %v13219_v5  ;;  %v13099_v5 = vld [vmem:[%s26465_s1 + $0xf68] sm:$0xf] }
 0x241   :  { %5228 = vmatpush.bf16.msrb.mxu1 %v12764_v55  ;;  %v13316_v55 = vor.u32 %v17506_v38, %v13315_v23  ;;  %v13195_v48 = vld [vmem:[%s26465_s1 + $0x1028] sm:$0xf]  ;;  %v22082_v23 = vpop.f32.mrf.mxu2  ;;  %v13400_v38 = vor.u32 %v17527_v29, %v13399_v37  ;;  %v17449_v37 = vld [vmem:[%s26465_s1 + $0xf58] sm:$0xf0]  ;;  %v13183_v29 = vld [vmem:[%s26465_s1 + $0x1010] sm:$0xf] }
 0x242   :  { %5242 = vmatpush.bf16.msrb.mxu2 %v12860_v34  ;;  %v13111_v34 = vld [vmem:[%s26465_s1 + $0xf80] sm:$0xf]  ;;  %26507 = vst [vmem:[#allocation40_spill] sm:$0xff] %v22082_v23 }
 0x243   :  { %5256 = vmatpush.bf16.msrb.mxu3 %v12956_v16  ;;  %5215 = vmatmul.bf16.vlgmr.msrb.gmra.mxu0 %v18531_v17  ;;  %v13112_v16 = vor.u32 %v17455_v2, %v13111_v34  ;;  %v17524_v34 = vld [vmem:[%s26465_s1 + $0x11b0] sm:$0xf0]  ;;  %v13159_v23 = vld [vmem:[%s26465_s1 + $0xfe0] sm:$0xf] }
 0x244   :  { %5263 = vmatpush.bf16.msra.mxu0 %v13136_v24  ;;  %v13412_v24 = vor.u32 %v17530_v32, %v13411_v45  ;;  %5229 = vmatmul.bf16.vlgmr.msrb.gmra.mxu1 %v18703_v39  ;;  %v17476_v45 = vld [vmem:[%s26465_s1 + $0x1030] sm:$0xf0]  ;;  %v13291_v32 = vld [vmem:[%s26465_s1 + $0x10e8] sm:$0xf] }
 0x245   :  { %5277 = vmatpush.bf16.msra.mxu1 %v13232_v7  ;;  %v17479_v7 = vld [vmem:[%s26465_s1 + $0x1048] sm:$0xf0]  ;;  %5243 = vmatmul.bf16.vlgmr.msrb.gmra.mxu2 %v18716_v44 }
 0x246   :  { %5291 = vmatpush.bf16.msra.mxu2 %v13328_v61  ;;  %v13303_v61 = vld [vmem:[%s26465_s1 + $0x1100] sm:$0xf]  ;;  %5257 = vmatmul.bf16.vlgmr.msrb.gmra.mxu3 %v18714_v43  ;;  %v13208_v12 = vor.u32 %v17479_v7, %v13207_v60  ;;  %v4992_v60 = vpop.f32.mrf.mxu0  ;;  %v13196_v7 = vor.u32 %v17476_v45, %v13195_v48  ;;  %v13375_v48 = vld [vmem:[%s26465_s1 + $0x1190] sm:$0xf] }
 0x247   :  { %5305 = vmatpush.bf16.msra.mxu3 %v13424_v59  ;;  %v13304_v22 = vor.u32 %v17503_v9, %v13303_v61  ;;  %v17452_v59 = vld [vmem:[%s26465_s1 + $0xf70] sm:$0xf0]  ;;  %v13087_v9 = vld [vmem:[%s26465_s1 + $0xf50] sm:$0xf] }
 0x248   :  { %5264 = vmatpush.bf16.msra.mxu0 %v13124_v19  ;;  %v17500_v19 = vld [vmem:[%s26465_s1 + $0x10f0] sm:$0xf0]  ;;  %v13100_v2 = vor.u32 %v17452_v59, %v13099_v5  ;;  %v17497_v59 = vld [vmem:[%s26465_s1 + $0x10d8] sm:$0xf0]  ;;  %v13088_v45 = vor.u32 %v17449_v37, %v13087_v9  ;;  %v13363_v37 = vld [vmem:[%s26465_s1 + $0x1178] sm:$0xf] }
 0x249   :  { %5278 = vmatpush.bf16.msra.mxu1 %v13220_v42  ;;  %v22093_v42 = vpop.f32.mrf.mxu3  ;;  %v13292_v61 = vor.u32 %v17500_v19, %v13291_v32  ;;  %v5020_v9 = vpop.f32.mrf.mxu2 }
 0x24a   :  { %5292 = vmatpush.bf16.msra.mxu2 %v13316_v55  ;;  %26508 = vst [vmem:[#allocation41_spill] sm:$0xff] %v22093_v42  ;;  %v13387_v55 = vld [vmem:[%s26465_s1 + $0x11a8] sm:$0xf]  ;;  %v17443_v42 = vld [vmem:[%s26465_s1 + $0xf28] sm:$0xf0] }
 0x24b   :  { %5306 = vmatpush.bf16.msra.mxu3 %v13412_v24  ;;  %v5006_v24 = vpop.f32.mrf.mxu1  ;;  %v13388_v5 = vor.u32 %v17524_v34, %v13387_v55  ;;  %v13075_v55 = vld [vmem:[%s26465_s1 + $0xf38] sm:$0xf]  ;;  %v17446_v34 = vld [vmem:[%s26465_s1 + $0xf40] sm:$0xf0] }
 0x24c   :  { %5265 = vmatpush.bf16.msra.mxu0 %v13112_v16  ;;  %v5007_v16 = vadd.f32 %v5006_v24, %v4992_v60  ;;  %v13171_v60 = vld [vmem:[%s26465_s1 + $0xff8] sm:$0xf] }
 0x24d   :  { %5279 = vmatpush.bf16.msra.mxu1 %v13208_v12  ;;  %v17473_v12 = vld [vmem:[%s26465_s1 + $0x1018] sm:$0xf0] }
 0x24e   :  { %5293 = vmatpush.bf16.msra.mxu2 %v13304_v22  ;;  %v13279_v22 = vld [vmem:[%s26465_s1 + $0x10d0] sm:$0xf]  ;;  %v13184_v32 = vor.u32 %v17473_v12, %v13183_v29  ;;  %v17518_v29 = vld [vmem:[%s26465_s1 + $0x1180] sm:$0xf0]  ;;  %v13076_v12 = vor.u32 %v17446_v34, %v13075_v55  ;;  %v17491_v55 = vld [vmem:[%s26465_s1 + $0x10a8] sm:$0xf0]  ;;  %v22223_v13 = vpop.f32.mrf.mxu0 }
 0x24f   :  { %5307 = vmatpush.bf16.msra.mxu3 %v13400_v38  ;;  %v17521_v38 = vld [vmem:[%s26465_s1 + $0x1198] sm:$0xf0]  ;;  %v13280_v19 = vor.u32 %v17497_v59, %v13279_v22  ;;  %v13351_v34 = vld [vmem:[%s26465_s1 + $0x1160] sm:$0xf] }
 0x250   :  { %5266 = vmatpush.bf16.msra.mxu0 %v13100_v2  ;;  %v13376_v24 = vor.u32 %v17521_v38, %v13375_v48  ;;  %v17470_v2 = vld [vmem:[%s26465_s1 + $0x1000] sm:$0xf0]  ;;  %v13063_v38 = vld [vmem:[%s26465_s1 + $0xf20] sm:$0xf] }
 0x251   :  { %5280 = vmatpush.bf16.msra.mxu1 %v13196_v7  ;;  %v13267_v7 = vld [vmem:[%s26465_s1 + $0x10b8] sm:$0xf]  ;;  %v5034_v22 = vpop.f32.mrf.mxu3  ;;  %v13172_v59 = vor.u32 %v17470_v2, %v13171_v60  ;;  %v17515_v60 = vld [vmem:[%s26465_s1 + $0x1168] sm:$0xf0]  ;;  %v13051_v2 = vld [vmem:[%s26465_s1 + $0xf08] sm:$0xf] }
 0x252   :  { %5294 = vmatpush.bf16.msra.mxu2 %v13292_v61  ;;  %v17494_v61 = vld [vmem:[%s26465_s1 + $0x10c0] sm:$0xf0] }
 0x253   :  { %5308 = vmatpush.bf16.msra.mxu3 %v13388_v5  ;;  %v5021_v5 = vadd.f32 %v5020_v9, %v5007_v16  ;;  %v13268_v48 = vor.u32 %v17494_v61, %v13267_v7  ;;  %v17440_v7 = vld [vmem:[%s26465_s1 + $0xf10] sm:$0xf0] }
 0x254   :  { %5267 = vmatpush.bf16.msra.mxu0 %v13088_v45  ;;  %v13364_v45 = vor.u32 %v17518_v29, %v13363_v37  ;;  %v13147_v37 = vld [vmem:[%s26465_s1 + $0xfc8] sm:$0xf] }
 0x255   :  { %5281 = vmatpush.bf16.msra.mxu1 %v13184_v32  ;;  %v22158_v16 = vadd.f32 %v5034_v22, %v5021_v5  ;;  %v17467_v32 = vld [vmem:[%s26465_s1 + $0xfe8] sm:$0xf0]  ;;  %v13243_v29 = vld [vmem:[%s26465_s1 + $0x1088] sm:$0xf]  ;;  %v13352_v5 = vor.u32 %v17515_v60, %v13351_v34  ;;  %v17512_v22 = vld [vmem:[%s26465_s1 + $0x1150] sm:$0xf0] }
 0x256   :  { %5295 = vmatpush.bf16.msra.mxu2 %v13280_v19  ;;  %v13255_v19 = vld [vmem:[%s26465_s1 + $0x10a0] sm:$0xf]  ;;  %v13160_v61 = vor.u32 %v17467_v32, %v13159_v23  ;;  %v13339_v23 = vld [vmem:[%s26465_s1 + $0x1148] sm:$0xf]  ;;  %v17581_v32 = vld [vmem:[%s26465_s1 + $0x1378] sm:$0xf0] }
 0x257   :  { %5309 = vmatpush.bf16.msra.mxu3 %v13376_v24  ;;  %v13064_v24 = vor.u32 %v17443_v42, %v13063_v38  ;;  %v13256_v9 = vor.u32 %v17491_v55, %v13255_v19  ;;  %v17464_v42 = vld [vmem:[%s26465_s1 + $0xfd0] sm:$0xf0]  ;;  %v13615_v38 = vld [vmem:[%s26465_s1 + $0x1370] sm:$0xf]  ;;  %v14119_v19 = vld [vmem:[%s26465_s1 + $0x1428] sm:$0xf] }
 0x258   :  { %5268 = vmatpush.bf16.msra.mxu0 %v13076_v12  ;;  %v17488_v12 = vld [vmem:[%s26465_s1 + $0x1090] sm:$0xf0]  ;;  %v13148_v34 = vor.u32 %v17464_v42, %v13147_v37  ;;  %v13616_v14 = vor.u32 %v17581_v32, %v13615_v38  ;;  %v13603_v37 = vld [vmem:[%s26465_s1 + $0x1358] sm:$0xf]  ;;  %v13495_v32 = vld [vmem:[%s26465_s1 + $0x1280] sm:$0xf] }
 0x259   :  { %5282 = vmatpush.bf16.msra.mxu1 %v13172_v59  ;;  %v13519_v59 = vld [vmem:[%s26465_s1 + $0x12b0] sm:$0xf]  ;;  %v17604_v55 = vld [vmem:[%s26465_s1 + $0x1430] sm:$0xf0]  ;;  %v13244_v60 = vor.u32 %v17488_v12, %v13243_v29  ;;  %v17578_v29 = vld [vmem:[%s26465_s1 + $0x1360] sm:$0xf0] }
 0x25a   :  { %5296 = vmatpush.bf16.msra.mxu2 %v13268_v48  ;;  %v17557_v48 = vld [vmem:[%s26465_s1 + $0x12b8] sm:$0xf0]  ;;  %v14120_v53 = vor.u32 %v17604_v55, %v14119_v19  ;;  %v13604_v38 = vor.u32 %v17578_v29, %v13603_v37  ;;  %v17551_v19 = vld [vmem:[%s26465_s1 + $0x1288] sm:$0xf0]  ;;  %v13591_v55 = vld [vmem:[%s26465_s1 + $0x1340] sm:$0xf] }
 0x25b   :  { %5310 = vmatpush.bf16.msra.mxu3 %v13364_v45  ;;  %v13052_v45 = vor.u32 %v17440_v7, %v13051_v2  ;;  %v17628_v2 = vld [vmem:[%s26465_s1 + $0x14f0] sm:$0xf0]  ;;  %v13340_v7 = vor.u32 %v17512_v22, %v13339_v23  ;;  %v13520_v52 = vor.u32 %v17557_v48, %v13519_v59  ;;  %v17601_v12 = vld [vmem:[%s26465_s1 + $0x1418] sm:$0xf0]  ;;  %v14203_v23 = vld [vmem:[%s26465_s1 + $0x14d0] sm:$0xf]  ;;  %v22249_v59 = vpop.f32.mrf.mxu1 }
 0x25c   :  { %5269 = vmatpush.bf16.msra.mxu0 %v13064_v24  ;;  %v14215_v24 = vld [vmem:[%s26465_s1 + $0x14e8] sm:$0xf]  ;;  %v17625_v22 = vld [vmem:[%s26465_s1 + $0x14d8] sm:$0xf0] }
 0x25d   :  { %5283 = vmatpush.bf16.msra.mxu1 %v13160_v61  ;;  %v13507_v61 = vld [vmem:[%s26465_s1 + $0x1298] sm:$0xf]  ;;  %v14216_v42 = vor.u32 %v17628_v2, %v14215_v24  ;;  %v17622_v24 = vld [vmem:[%s26465_s1 + $0x14c0] sm:$0xf0]  ;;  %v13496_v2 = vor.u32 %v17551_v19, %v13495_v32  ;;  %v13483_v37 = vld [vmem:[%s26465_s1 + $0x1268] sm:$0xf] }
 0x25e   :  { %5297 = vmatpush.bf16.msra.mxu2 %v13256_v9  ;;  %v17554_v9 = vld [vmem:[%s26465_s1 + $0x12a0] sm:$0xf0]  ;;  %v13579_v29 = vld [vmem:[%s26465_s1 + $0x1328] sm:$0xf]  ;;  %v17619_v32 = vld [vmem:[%s26465_s1 + $0x14a8] sm:$0xf0] }
 0x25f   :  { %5311 = vmatpush.bf16.msra.mxu3 %v13352_v5  ;;  %v14107_v5 = vld [vmem:[%s26465_s1 + $0x1410] sm:$0xf]  ;;  %v13508_v48 = vor.u32 %v17554_v9, %v13507_v61 }
 0x260   :  { %5270 = vmatpush.bf16.msra.mxu0 %v13052_v45  ;;  %v14108_v45 = vor.u32 %v17601_v12, %v14107_v5  ;;  %v22290_v12 = vpop.f32.mrf.mxu3 }
 0x261   :  { %5284 = vmatpush.bf16.msra.mxu1 %v13148_v34  ;;  %v17598_v34 = vld [vmem:[%s26465_s1 + $0x1400] sm:$0xf0]  ;;  %26509 = vst [vmem:[#allocation42_spill] sm:$0xff] %v22290_v12 }
 0x262   :  { %5298 = vmatpush.bf16.msra.mxu2 %v13244_v60  ;;  %v14191_v60 = vld [vmem:[%s26465_s1 + $0x14b8] sm:$0xf] }
 0x263   :  { %5312 = vmatpush.bf16.msra.mxu3 %v13340_v7  ;;  %5271 = vmatmul.bf16.vlgmr.msra.gmra.mxu0 %v18724_v47  ;;  %v22279_v7 = vpop.f32.mrf.mxu2  ;;  %v14192_v5 = vor.u32 %v17622_v24, %v14191_v60  ;;  %v17545_v60 = vld [vmem:[%s26465_s1 + $0x1258] sm:$0xf0]  ;;  %v13567_v24 = vld [vmem:[%s26465_s1 + $0x1310] sm:$0xf] }
 0x264   :  { %5319 = vmatpush.bf16.msrb.mxu0 %v13520_v52  ;;  %v14204_v52 = vor.u32 %v17625_v22, %v14203_v23  ;;  %5285 = vmatmul.bf16.vlgmr.msra.gmra.mxu1 %v18931_v31  ;;  %v17572_v23 = vld [vmem:[%s26465_s1 + $0x1330] sm:$0xf0]  ;;  %v14083_v22 = vld [vmem:[%s26465_s1 + $0x13e0] sm:$0xf] }
 0x265   :  { %5333 = vmatpush.bf16.msrb.mxu1 %v13616_v14  ;;  %v14095_v14 = vld [vmem:[%s26465_s1 + $0x13f8] sm:$0xf]  ;;  %5299 = vmatmul.bf16.vlgmr.msra.gmra.mxu2 %v18944_v36 }
 0x266   :  { %7434 = vmatpush.bf16.msrb.mxu2 %v14120_v53  ;;  %v17575_v53 = vld [vmem:[%s26465_s1 + $0x1348] sm:$0xf0]  ;;  %5313 = vmatmul.bf16.vlgmr.msra.gmra.mxu3 %v18942_v35  ;;  %v14096_v9 = vor.u32 %v17598_v34, %v14095_v14  ;;  %v5062_v14 = vpop.f32.mrf.mxu1  ;;  %v13471_v34 = vld [vmem:[%s26465_s1 + $0x1250] sm:$0xf] }
 0x267   :  { %7448 = vmatpush.bf16.msrb.mxu3 %v14216_v42  ;;  %v13592_v61 = vor.u32 %v17575_v53, %v13591_v55  ;;  %v17548_v42 = vld [vmem:[%s26465_s1 + $0x1270] sm:$0xf0] }
 0x268   :  { %5320 = vmatpush.bf16.msrb.mxu0 %v13508_v48  ;;  %v17595_v48 = vld [vmem:[%s26465_s1 + $0x13e8] sm:$0xf0]  ;;  %v13484_v55 = vor.u32 %v17548_v42, %v13483_v37  ;;  %v17592_v37 = vld [vmem:[%s26465_s1 + $0x13d0] sm:$0xf0]  ;;  %v14167_v42 = vld [vmem:[%s26465_s1 + $0x1488] sm:$0xf] }
 0x269   :  { %5334 = vmatpush.bf16.msrb.mxu1 %v13604_v38  ;;  %v5048_v38 = vpop.f32.mrf.mxu0  ;;  %v14084_v53 = vor.u32 %v17595_v48, %v14083_v22  ;;  %v13459_v48 = vld [vmem:[%s26465_s1 + $0x1238] sm:$0xf] }
 0x26a   :  { %7435 = vmatpush.bf16.msrb.mxu2 %v14108_v45  ;;  %v14179_v45 = vld [vmem:[%s26465_s1 + $0x14a0] sm:$0xf]  ;;  %v5049_v19 = vadd.f32 %v5048_v38, %v22158_v16  ;;  %v17542_v38 = vld [vmem:[%s26465_s1 + $0x1240] sm:$0xf0] }
 0x26b   :  { %7449 = vmatpush.bf16.msrb.mxu3 %v14204_v52  ;;  %v13580_v52 = vor.u32 %v17572_v23, %v13579_v29  ;;  %v14180_v16 = vor.u32 %v17619_v32, %v14179_v45  ;;  %v17616_v29 = vld [vmem:[%s26465_s1 + $0x1490] sm:$0xf0]  ;;  %v13555_v45 = vld [vmem:[%s26465_s1 + $0x12f8] sm:$0xf] }
 0x26c   :  { %5321 = vmatpush.bf16.msrb.mxu0 %v13496_v2  ;;  %v5063_v2 = vadd.f32 %v5062_v14, %v5049_v19  ;;  %v14168_v32 = vor.u32 %v17616_v29, %v14167_v42  ;;  %v5076_v19 = vpop.f32.mrf.mxu2  ;;  %v17539_v42 = vld [vmem:[%s26465_s1 + $0x1228] sm:$0xf0]  ;;  %v13543_v29 = vld [vmem:[%s26465_s1 + $0x12e0] sm:$0xf] }
 0x26d   :  { %5335 = vmatpush.bf16.msrb.mxu1 %v13592_v61  ;;  %v17569_v61 = vld [vmem:[%s26465_s1 + $0x1318] sm:$0xf0] }
 0x26e   :  { %7436 = vmatpush.bf16.msrb.mxu2 %v14096_v9  ;;  %v14071_v9 = vld [vmem:[%s26465_s1 + $0x13c8] sm:$0xf]  ;;  %v13568_v23 = vor.u32 %v17569_v61, %v13567_v24  ;;  %v5077_v14 = vadd.f32 %v5076_v19, %v5063_v2  ;;  %v5090_v24 = vpop.f32.mrf.mxu3  ;;  %v13447_v2 = vld [vmem:[%s26465_s1 + $0x1220] sm:$0xf] }
 0x26f   :  { %7450 = vmatpush.bf16.msrb.mxu3 %v14192_v5  ;;  %v13472_v5 = vor.u32 %v17545_v60, %v13471_v34  ;;  %v14072_v22 = vor.u32 %v17592_v37, %v14071_v9  ;;  %v14155_v34 = vld [vmem:[%s26465_s1 + $0x1470] sm:$0xf]  ;;  %v17613_v60 = vld [vmem:[%s26465_s1 + $0x1478] sm:$0xf0]  ;;  %v13435_v19 = vld [vmem:[%s26465_s1 + $0x1208] sm:$0xf] }
 0x270   :  { %5322 = vmatpush.bf16.msrb.mxu0 %v13484_v55  ;;  %v17566_v55 = vld [vmem:[%s26465_s1 + $0x1300] sm:$0xf0]  ;;  %v22356_v61 = vadd.f32 %v5090_v24, %v5077_v14  ;;  %v13531_v14 = vld [vmem:[%s26465_s1 + $0x12c8] sm:$0xf] }
 0x271   :  { %5336 = vmatpush.bf16.msrb.mxu1 %v13580_v52  ;;  %v14059_v52 = vld [vmem:[%s26465_s1 + $0x13b0] sm:$0xf]  ;;  %v13556_v9 = vor.u32 %v17566_v55, %v13555_v45  ;;  %v17610_v45 = vld [vmem:[%s26465_s1 + $0x1460] sm:$0xf0]  ;;  %v17536_v55 = vld [vmem:[%s26465_s1 + $0x1210] sm:$0xf0] }
 0x272   :  { %7437 = vmatpush.bf16.msrb.mxu2 %v14084_v53  ;;  %v17589_v53 = vld [vmem:[%s26465_s1 + $0x13b8] sm:$0xf0] }
 0x273   :  { %7451 = vmatpush.bf16.msrb.mxu3 %v14180_v16  ;;  %v13460_v16 = vor.u32 %v17542_v38, %v13459_v48  ;;  %v14060_v37 = vor.u32 %v17589_v53, %v14059_v52  ;;  %v17586_v48 = vld [vmem:[%s26465_s1 + $0x13a0] sm:$0xf0]  ;;  %v14143_v38 = vld [vmem:[%s26465_s1 + $0x1458] sm:$0xf] }
 0x274   :  { %5323 = vmatpush.bf16.msrb.mxu0 %v13472_v5  ;;  %v14156_v5 = vor.u32 %v17613_v60, %v14155_v34  ;;  %v17560_v34 = vld [vmem:[%s26465_s1 + $0x12d0] sm:$0xf0]  ;;  %v14035_v60 = vld [vmem:[%s26465_s1 + $0x1380] sm:$0xf]  ;;  %v14144_v24 = vor.u32 %v17610_v45, %v14143_v38 }
 0x275   :  { %5337 = vmatpush.bf16.msrb.mxu1 %v13568_v23  ;;  %v17563_v23 = vld [vmem:[%s26465_s1 + $0x12e8] sm:$0xf0]  ;;  %v13532_v38 = vor.u32 %v17560_v34, %v13531_v14  ;;  %v14395_v14 = vld [vmem:[%s26465_s1 + $0x1650] sm:$0xf] }
 0x276   :  { %7438 = vmatpush.bf16.msrb.mxu2 %v14072_v22  ;;  %v14047_v22 = vld [vmem:[%s26465_s1 + $0x1398] sm:$0xf]  ;;  %v13544_v52 = vor.u32 %v17563_v23, %v13543_v29  ;;  %v14407_v29 = vld [vmem:[%s26465_s1 + $0x1668] sm:$0xf]  ;;  %v17676_v23 = vld [vmem:[%s26465_s1 + $0x1670] sm:$0xf0] }
 0x277   :  { %7452 = vmatpush.bf16.msrb.mxu3 %v14168_v32  ;;  %v13448_v32 = vor.u32 %v17539_v42, %v13447_v2  ;;  %v14048_v53 = vor.u32 %v17586_v48, %v14047_v22  ;;  %v14311_v2 = vld [vmem:[%s26465_s1 + $0x15a8] sm:$0xf]  ;;  %v17652_v42 = vld [vmem:[%s26465_s1 + $0x15b0] sm:$0xf0]  ;;  %v14408_v33 = vor.u32 %v17676_v23, %v14407_v29 }
 0x278   :  { %5324 = vmatpush.bf16.msrb.mxu0 %v13460_v16  ;;  %v17583_v16 = vld [vmem:[%s26465_s1 + $0x1388] sm:$0xf0]  ;;  %v14503_v22 = vld [vmem:[%s26465_s1 + $0x1728] sm:$0xf]  ;;  %v17700_v48 = vld [vmem:[%s26465_s1 + $0x1730] sm:$0xf0]  ;;  %v14312_v30 = vor.u32 %v17652_v42, %v14311_v2  ;;  %v22456_v42 = vpop.f32.mrf.mxu1 }
 0x279   :  { %5338 = vmatpush.bf16.msrb.mxu1 %v13556_v9  ;;  %v14131_v9 = vld [vmem:[%s26465_s1 + $0x1440] sm:$0xf]  ;;  %v14036_v45 = vor.u32 %v17583_v16, %v14035_v60  ;;  %v14504_v8 = vor.u32 %v17700_v48, %v14503_v22  ;;  %v17673_v60 = vld [vmem:[%s26465_s1 + $0x1658] sm:$0xf0]  ;;  %26511 = vst [vmem:[#allocation44_spill] sm:$0xff] %v22456_v42 }
 0x27a   :  { %7439 = vmatpush.bf16.msrb.mxu2 %v14060_v37  ;;  %v17607_v37 = vld [vmem:[%s26465_s1 + $0x1448] sm:$0xf0]  ;;  %v17697_v16 = vld [vmem:[%s26465_s1 + $0x1718] sm:$0xf0]  ;;  %v14287_v22 = vld [vmem:[%s26465_s1 + $0x1578] sm:$0xf] }
 0x27b   :  { %7453 = vmatpush.bf16.msrb.mxu3 %v14156_v5  ;;  %v13436_v5 = vor.u32 %v17536_v55, %v13435_v19  ;;  %v17724_v19 = vld [vmem:[%s26465_s1 + $0x17f0] sm:$0xf0]  ;;  %v14132_v55 = vor.u32 %v17607_v37, %v14131_v9  ;;  %v22448_v9 = vpop.f32.mrf.mxu0  ;;  %v14587_v37 = vld [vmem:[%s26465_s1 + $0x17d0] sm:$0xf]  ;;  %v17721_v2 = vld [vmem:[%s26465_s1 + $0x17d8] sm:$0xf0] }
 0x27c   :  { %5325 = vmatpush.bf16.msrb.mxu0 %v13448_v32  ;;  %v14599_v32 = vld [vmem:[%s26465_s1 + $0x17e8] sm:$0xf]  ;;  %26510 = vst [vmem:[#allocation43_spill] sm:$0xff] %v22448_v9  ;;  %v17646_v48 = vld [vmem:[%s26465_s1 + $0x1580] sm:$0xf0] }
 0x27d   :  { %5339 = vmatpush.bf16.msrb.mxu1 %v13544_v52  ;;  %v14299_v52 = vld [vmem:[%s26465_s1 + $0x1590] sm:$0xf]  ;;  %v14600_v34 = vor.u32 %v17724_v19, %v14599_v32  ;;  %v14575_v32 = vld [vmem:[%s26465_s1 + $0x17b8] sm:$0xf]  ;;  %v17718_v19 = vld [vmem:[%s26465_s1 + $0x17c0] sm:$0xf0] }
 0x27e   :  { %7440 = vmatpush.bf16.msrb.mxu2 %v14048_v53  ;;  %v17649_v53 = vld [vmem:[%s26465_s1 + $0x1598] sm:$0xf0] }
 0x27f   :  { %7454 = vmatpush.bf16.msrb.mxu3 %v14144_v24  ;;  %v14491_v24 = vld [vmem:[%s26465_s1 + $0x1710] sm:$0xf]  ;;  %v14300_v29 = vor.u32 %v17649_v53, %v14299_v52 }
 0x280   :  { %5326 = vmatpush.bf16.msrb.mxu0 %v13436_v5  ;;  %v14396_v5 = vor.u32 %v17673_v60, %v14395_v14  ;;  %v14492_v23 = vor.u32 %v17697_v16, %v14491_v24  ;;  %v14275_v14 = vld [vmem:[%s26465_s1 + $0x1560] sm:$0xf]  ;;  %v22495_v24 = vpop.f32.mrf.mxu2  ;;  %v14576_v16 = vor.u32 %v17718_v19, %v14575_v32  ;;  %v14263_v32 = vld [vmem:[%s26465_s1 + $0x1548] sm:$0xf]  ;;  %v17640_v19 = vld [vmem:[%s26465_s1 + $0x1550] sm:$0xf0] }
 0x281   :  { %5340 = vmatpush.bf16.msrb.mxu1 %v13532_v38  ;;  %v14383_v38 = vld [vmem:[%s26465_s1 + $0x1638] sm:$0xf]  ;;  %v14371_v60 = vld [vmem:[%s26465_s1 + $0x1620] sm:$0xf]  ;;  %26512 = vst [vmem:[#allocation45_spill] sm:$0xff] %v22495_v24 }
 0x282   :  { %7441 = vmatpush.bf16.msrb.mxu2 %v14036_v45  ;;  %v17694_v45 = vld [vmem:[%s26465_s1 + $0x1700] sm:$0xf0] }
 0x283   :  { %7455 = vmatpush.bf16.msrb.mxu3 %v14132_v55  ;;  %5327 = vmatmul.bf16.vlgmr.msrb.gmra.mxu0 %v18952_v40  ;;  %v14288_v55 = vor.u32 %v17646_v48, %v14287_v22  ;;  %v14563_v22 = vld [vmem:[%s26465_s1 + $0x17a0] sm:$0xf]  ;;  %v17715_v48 = vld [vmem:[%s26465_s1 + $0x17a8] sm:$0xf0] }
 0x284   :  { %7462 = vmatpush.bf16.msra.mxu0 %v14312_v30  ;;  %v14588_v30 = vor.u32 %v17721_v2, %v14587_v37  ;;  %5341 = vmatmul.bf16.vlgmr.msrb.gmra.mxu1 %v19141_v25  ;;  %v17667_v37 = vld [vmem:[%s26465_s1 + $0x1628] sm:$0xf0]  ;;  %v14467_v2 = vld [vmem:[%s26465_s1 + $0x16e0] sm:$0xf] }
 0x285   :  { %7476 = vmatpush.bf16.msra.mxu1 %v14408_v33  ;;  %v14479_v33 = vld [vmem:[%s26465_s1 + $0x16f8] sm:$0xf]  ;;  %7442 = vmatmul.bf16.vlgmr.msrb.gmra.mxu2 %v18481_v58 }
 0x286   :  { %7490 = vmatpush.bf16.msra.mxu2 %v14504_v8  ;;  %v17670_v8 = vld [vmem:[%s26465_s1 + $0x1640] sm:$0xf0]  ;;  %7456 = vmatmul.bf16.vlgmr.msrb.gmra.mxu3 %v18517_v10  ;;  %v14480_v53 = vor.u32 %v17694_v45, %v14479_v33  ;;  %v14372_v33 = vor.u32 %v17667_v37, %v14371_v60  ;;  %v14551_v60 = vld [vmem:[%s26465_s1 + $0x1788] sm:$0xf]  ;;  %v14264_v37 = vor.u32 %v17640_v19, %v14263_v32 }
 0x287   :  { %7504 = vmatpush.bf16.msra.mxu3 %v14600_v34  ;;  %v14384_v52 = vor.u32 %v17670_v8, %v14383_v38  ;;  %v17643_v34 = vld [vmem:[%s26465_s1 + $0x1568] sm:$0xf0]  ;;  %v5118_v8 = vpop.f32.mrf.mxu1 }
 0x288   :  { %7463 = vmatpush.bf16.msra.mxu0 %v14300_v29  ;;  %v17691_v29 = vld [vmem:[%s26465_s1 + $0x16e8] sm:$0xf0] }
 0x289   :  { %7477 = vmatpush.bf16.msra.mxu1 %v14396_v5  ;;  %v22506_v5 = vpop.f32.mrf.mxu3  ;;  %v14468_v45 = vor.u32 %v17691_v29, %v14467_v2 }
 0x28a   :  { %7491 = vmatpush.bf16.msra.mxu2 %v14492_v23  ;;  %26513 = vst [vmem:[#allocation46_spill] sm:$0xff] %v22506_v5  ;;  %v5104_v23 = vpop.f32.mrf.mxu0 }
 0x28b   :  { %7505 = vmatpush.bf16.msra.mxu3 %v14588_v30  ;;  %v5105_v38 = vadd.f32 %v5104_v23, %v22356_v61  ;;  %v14276_v30 = vor.u32 %v17643_v34, %v14275_v14  ;;  %v14564_v61 = vor.u32 %v17715_v48, %v14563_v22  ;;  %v17688_v34 = vld [vmem:[%s26465_s1 + $0x16d0] sm:$0xf0]  ;;  %v14251_v23 = vld [vmem:[%s26465_s1 + $0x1530] sm:$0xf]  ;;  %v17637_v22 = vld [vmem:[%s26465_s1 + $0x1538] sm:$0xf0] }
 0x28c   :  { %7464 = vmatpush.bf16.msra.mxu0 %v14288_v55  ;;  %v14359_v55 = vld [vmem:[%s26465_s1 + $0x1608] sm:$0xf]  ;;  %v14347_v48 = vld [vmem:[%s26465_s1 + $0x15f0] sm:$0xf] }
 0x28d   :  { %7478 = vmatpush.bf16.msra.mxu1 %v14384_v52  ;;  %v5119_v14 = vadd.f32 %v5118_v8, %v5105_v38  ;;  %v17664_v52 = vld [vmem:[%s26465_s1 + $0x1610] sm:$0xf0]  ;;  %v17661_v8 = vld [vmem:[%s26465_s1 + $0x15f8] sm:$0xf0] }
 0x28e   :  { %7492 = vmatpush.bf16.msra.mxu2 %v14480_v53  ;;  %v14455_v53 = vld [vmem:[%s26465_s1 + $0x16c8] sm:$0xf]  ;;  %v14360_v2 = vor.u32 %v17664_v52, %v14359_v55  ;;  %v14539_v55 = vld [vmem:[%s26465_s1 + $0x1770] sm:$0xf]  ;;  %v14252_v52 = vor.u32 %v17637_v22, %v14251_v23  ;;  %v17682_v23 = vld [vmem:[%s26465_s1 + $0x16a0] sm:$0xf0] }
 0x28f   :  { %7506 = vmatpush.bf16.msra.mxu3 %v14576_v16  ;;  %v17712_v16 = vld [vmem:[%s26465_s1 + $0x1790] sm:$0xf0]  ;;  %v14456_v29 = vor.u32 %v17688_v34, %v14455_v53  ;;  %v14348_v34 = vor.u32 %v17661_v8, %v14347_v48  ;;  %v14527_v22 = vld [vmem:[%s26465_s1 + $0x1758] sm:$0xf]  ;;  %v17706_v48 = vld [vmem:[%s26465_s1 + $0x1760] sm:$0xf0] }
 0x290   :  { %7465 = vmatpush.bf16.msra.mxu0 %v14276_v30  ;;  %v14552_v38 = vor.u32 %v17712_v16, %v14551_v60  ;;  %v5132_v30 = vpop.f32.mrf.mxu2  ;;  %v17634_v16 = vld [vmem:[%s26465_s1 + $0x1520] sm:$0xf0]  ;;  %v14227_v8 = vld [vmem:[%s26465_s1 + $0x1500] sm:$0xf] }
 0x291   :  { %7479 = vmatpush.bf16.msra.mxu1 %v14372_v33  ;;  %v14443_v33 = vld [vmem:[%s26465_s1 + $0x16b0] sm:$0xf]  ;;  %v5133_v32 = vadd.f32 %v5132_v30, %v5119_v14  ;;  %v5146_v19 = vpop.f32.mrf.mxu3  ;;  %v14239_v14 = vld [vmem:[%s26465_s1 + $0x1518] sm:$0xf] }
 0x292   :  { %7493 = vmatpush.bf16.msra.mxu2 %v14468_v45  ;;  %v17685_v45 = vld [vmem:[%s26465_s1 + $0x16b8] sm:$0xf0]  ;;  %v14335_v30 = vld [vmem:[%s26465_s1 + $0x15d8] sm:$0xf] }
 0x293   :  { %7507 = vmatpush.bf16.msra.mxu3 %v14564_v61  ;;  %v17709_v61 = vld [vmem:[%s26465_s1 + $0x1778] sm:$0xf0]  ;;  %v22563_v53 = vadd.f32 %v5146_v19, %v5133_v32  ;;  %v14444_v60 = vor.u32 %v17685_v45, %v14443_v33  ;;  %v17631_v33 = vld [vmem:[%s26465_s1 + $0x1508] sm:$0xf0]  ;;  %v14323_v19 = vld [vmem:[%s26465_s1 + $0x15c0] sm:$0xf] }
 0x294   :  { %7466 = vmatpush.bf16.msra.mxu0 %v14264_v37  ;;  %v14540_v37 = vor.u32 %v17709_v61, %v14539_v55  ;;  %v17655_v55 = vld [vmem:[%s26465_s1 + $0x15c8] sm:$0xf0]  ;;  %v14419_v61 = vld [vmem:[%s26465_s1 + $0x1680] sm:$0xf] }
 0x295   :  { %7480 = vmatpush.bf16.msra.mxu1 %v14360_v2  ;;  %v17658_v2 = vld [vmem:[%s26465_s1 + $0x15e0] sm:$0xf0] }
 0x296   :  { %7494 = vmatpush.bf16.msra.mxu2 %v14456_v29  ;;  %v14431_v29 = vld [vmem:[%s26465_s1 + $0x1698] sm:$0xf]  ;;  %v14336_v45 = vor.u32 %v17658_v2, %v14335_v30  ;;  %v17748_v30 = vld [vmem:[%s26465_s1 + $0x18b0] sm:$0xf0]  ;;  %v14228_v2 = vor.u32 %v17631_v33, %v14227_v8 }
 0x297   :  { %7508 = vmatpush.bf16.msra.mxu3 %v14552_v38  ;;  %v14240_v38 = vor.u32 %v17634_v16, %v14239_v14  ;;  %v14432_v32 = vor.u32 %v17682_v23, %v14431_v29  ;;  %v17703_v14 = vld [vmem:[%s26465_s1 + $0x1748] sm:$0xf0]  ;;  %v14695_v16 = vld [vmem:[%s26465_s1 + $0x18a8] sm:$0xf]  ;;  %v17772_v29 = vld [vmem:[%s26465_s1 + $0x1970] sm:$0xf0] }
 0x298   :  { %7467 = vmatpush.bf16.msra.mxu0 %v14252_v52  ;;  %v14528_v52 = vor.u32 %v17706_v48, %v14527_v22  ;;  %v14887_v23 = vld [vmem:[%s26465_s1 + $0x1a28] sm:$0xf]  ;;  %v17796_v22 = vld [vmem:[%s26465_s1 + $0x1a30] sm:$0xf0]  ;;  %v14324_v48 = vor.u32 %v17655_v55, %v14323_v19  ;;  %v14696_v24 = vor.u32 %v17748_v30, %v14695_v16  ;;  %v14779_v19 = vld [vmem:[%s26465_s1 + $0x1950] sm:$0xf] }
 0x299   :  { %7481 = vmatpush.bf16.msra.mxu1 %v14348_v34  ;;  %v17679_v34 = vld [vmem:[%s26465_s1 + $0x1688] sm:$0xf0]  ;;  %v17820_v8 = vld [vmem:[%s26465_s1 + $0x1af0] sm:$0xf0]  ;;  %v14888_v21 = vor.u32 %v17796_v22, %v14887_v23  ;;  %v17817_v16 = vld [vmem:[%s26465_s1 + $0x1ad8] sm:$0xf0] }
 0x29a   :  { %7495 = vmatpush.bf16.msra.mxu2 %v14444_v60  ;;  %v14515_v60 = vld [vmem:[%s26465_s1 + $0x1740] sm:$0xf]  ;;  %v14420_v5 = vor.u32 %v17679_v34, %v14419_v61  ;;  %v17769_v61 = vld [vmem:[%s26465_s1 + $0x1958] sm:$0xf0]  ;;  %v14767_v23 = vld [vmem:[%s26465_s1 + $0x1938] sm:$0xf] }
 0x29b   :  { %7509 = vmatpush.bf16.msra.mxu3 %v14540_v37  ;;  %v14791_v37 = vld [vmem:[%s26465_s1 + $0x1968] sm:$0xf]  ;;  %v14516_v33 = vor.u32 %v17703_v14, %v14515_v60  ;;  %v17793_v34 = vld [vmem:[%s26465_s1 + $0x1a18] sm:$0xf0]  ;;  %v22655_v60 = vpop.f32.mrf.mxu0  ;;  %v14971_v14 = vld [vmem:[%s26465_s1 + $0x1ad0] sm:$0xf] }
 0x29c   :  { %7468 = vmatpush.bf16.msra.mxu0 %v14240_v38  ;;  %v14983_v38 = vld [vmem:[%s26465_s1 + $0x1ae8] sm:$0xf]  ;;  %v14792_v42 = vor.u32 %v17772_v29, %v14791_v37  ;;  %26514 = vst [vmem:[#allocation47_spill] sm:$0xff] %v22655_v60  ;;  %v14780_v37 = vor.u32 %v17769_v61, %v14779_v19  ;;  %v14671_v29 = vld [vmem:[%s26465_s1 + $0x1878] sm:$0xf]  ;;  %v22700_v61 = vpop.f32.mrf.mxu1 }
 0x29d   :  { %7482 = vmatpush.bf16.msra.mxu1 %v14336_v45  ;;  %v14683_v45 = vld [vmem:[%s26465_s1 + $0x1890] sm:$0xf]  ;;  %v14984_v55 = vor.u32 %v17820_v8, %v14983_v38  ;;  %v17790_v22 = vld [vmem:[%s26465_s1 + $0x1a00] sm:$0xf0]  ;;  %v17739_v19 = vld [vmem:[%s26465_s1 + $0x1868] sm:$0xf0] }
 0x29e   :  { %7496 = vmatpush.bf16.msra.mxu2 %v14432_v32  ;;  %v17745_v32 = vld [vmem:[%s26465_s1 + $0x1898] sm:$0xf0]  ;;  %v17814_v38 = vld [vmem:[%s26465_s1 + $0x1ac0] sm:$0xf0]  ;;  %26515 = vst [vmem:[#allocation48_spill] sm:$0xff] %v22700_v61 }
 0x29f   :  { %7510 = vmatpush.bf16.msra.mxu3 %v14528_v52  ;;  %v14875_v52 = vld [vmem:[%s26465_s1 + $0x1a10] sm:$0xf]  ;;  %v14684_v30 = vor.u32 %v17745_v32, %v14683_v45  ;;  %v14659_v32 = vld [vmem:[%s26465_s1 + $0x1860] sm:$0xf] }
 0x2a0   :  { %7469 = vmatpush.bf16.msra.mxu0 %v14228_v2  ;;  %v14876_v2 = vor.u32 %v17793_v34, %v14875_v52  ;;  %v22702_v52 = vpop.f32.mrf.mxu2 }
 0x2a1   :  { %7483 = vmatpush.bf16.msra.mxu1 %v14324_v48  ;;  %v14959_v48 = vld [vmem:[%s26465_s1 + $0x1ab8] sm:$0xf]  ;;  %26516 = vst [vmem:[#allocation49_spill] sm:$0xff] %v22702_v52 }
 0x2a2   :  { %7497 = vmatpush.bf16.msra.mxu2 %v14420_v5  ;;  %v17742_v5 = vld [vmem:[%s26465_s1 + $0x1880] sm:$0xf0]  ;;  %v14960_v34 = vor.u32 %v17814_v38, %v14959_v48  ;;  %v17736_v48 = vld [vmem:[%s26465_s1 + $0x1850] sm:$0xf0]  ;;  %v14743_v38 = vld [vmem:[%s26465_s1 + $0x1908] sm:$0xf] }
 0x2a3   :  { %7511 = vmatpush.bf16.msra.mxu3 %v14516_v33  ;;  %7470 = vmatmul.bf16.vlgmr.msra.gmra.mxu0 %v18495_v1  ;;  %v14672_v8 = vor.u32 %v17742_v5, %v14671_v29  ;;  %v17811_v29 = vld [vmem:[%s26465_s1 + $0x1aa8] sm:$0xf0]  ;;  %v22719_v5 = vpop.f32.mrf.mxu3  ;;  %v14719_v52 = vld [vmem:[%s26465_s1 + $0x18d8] sm:$0xf] }
 0x2a4   :  { %7518 = vmatpush.bf16.msrb.mxu0 %v14696_v24  ;;  %v14972_v24 = vor.u32 %v17817_v16, %v14971_v14  ;;  %7484 = vmatmul.bf16.vlgmr.msra.gmra.mxu1 %v18531_v17  ;;  %v17763_v14 = vld [vmem:[%s26465_s1 + $0x1928] sm:$0xf0]  ;;  %v14851_v16 = vld [vmem:[%s26465_s1 + $0x19e0] sm:$0xf]  ;;  %26517 = vst [vmem:[#allocation50_spill] sm:$0xff] %v22719_v5 }
 0x2a5   :  { %7532 = vmatpush.bf16.msrb.mxu1 %v14792_v42  ;;  %v14863_v42 = vld [vmem:[%s26465_s1 + $0x19f8] sm:$0xf]  ;;  %7498 = vmatmul.bf16.vlgmr.msra.gmra.mxu2 %v18703_v39  ;;  %v17730_v5 = vld [vmem:[%s26465_s1 + $0x1820] sm:$0xf0] }
 0x2a6   :  { %7546 = vmatpush.bf16.msrb.mxu2 %v14888_v21  ;;  %v17766_v21 = vld [vmem:[%s26465_s1 + $0x1940] sm:$0xf0]  ;;  %7512 = vmatmul.bf16.vlgmr.msra.gmra.mxu3 %v18716_v44  ;;  %v14864_v45 = vor.u32 %v17790_v22, %v14863_v42  ;;  %v14647_v22 = vld [vmem:[%s26465_s1 + $0x1848] sm:$0xf] }
 0x2a7   :  { %7560 = vmatpush.bf16.msrb.mxu3 %v14984_v55  ;;  %v14768_v33 = vor.u32 %v17766_v21, %v14767_v23  ;;  %v14755_v55 = vld [vmem:[%s26465_s1 + $0x1920] sm:$0xf] }
 0x2a8   :  { %7519 = vmatpush.bf16.msrb.mxu0 %v14684_v30  ;;  %v17787_v30 = vld [vmem:[%s26465_s1 + $0x19e8] sm:$0xf0]  ;;  %v14756_v21 = vor.u32 %v17763_v14, %v14755_v55  ;;  %v17808_v55 = vld [vmem:[%s26465_s1 + $0x1a90] sm:$0xf0] }
 0x2a9   :  { %7533 = vmatpush.bf16.msrb.mxu1 %v14780_v37  ;;  %v5160_v37 = vpop.f32.mrf.mxu0  ;;  %v14852_v42 = vor.u32 %v17787_v30, %v14851_v16  ;;  %v14635_v30 = vld [vmem:[%s26465_s1 + $0x1830] sm:$0xf] }
 0x2aa   :  { %7547 = vmatpush.bf16.msrb.mxu2 %v14876_v2  ;;  %v14947_v2 = vld [vmem:[%s26465_s1 + $0x1aa0] sm:$0xf]  ;;  %v22722_v23 = vadd.f32 %v5160_v37, %v22563_v53  ;;  %v17733_v37 = vld [vmem:[%s26465_s1 + $0x1838] sm:$0xf0]  ;;  %v14623_v53 = vld [vmem:[%s26465_s1 + $0x1818] sm:$0xf] }
 0x2ab   :  { %7561 = vmatpush.bf16.msrb.mxu3 %v14972_v24  ;;  %v14660_v24 = vor.u32 %v17739_v19, %v14659_v32  ;;  %v17784_v32 = vld [vmem:[%s26465_s1 + $0x19d0] sm:$0xf0]  ;;  %v14935_v19 = vld [vmem:[%s26465_s1 + $0x1a88] sm:$0xf] }
 0x2ac   :  { %7520 = vmatpush.bf16.msrb.mxu0 %v14672_v8  ;;  %v14948_v8 = vor.u32 %v17811_v29, %v14947_v2  ;;  %v14731_v2 = vld [vmem:[%s26465_s1 + $0x18f0] sm:$0xf]  ;;  %v14936_v29 = vor.u32 %v17808_v55, %v14935_v19 }
 0x2ad   :  { %7534 = vmatpush.bf16.msrb.mxu1 %v14768_v33  ;;  %v17760_v33 = vld [vmem:[%s26465_s1 + $0x1910] sm:$0xf0] }
 0x2ae   :  { %7548 = vmatpush.bf16.msrb.mxu2 %v14864_v45  ;;  %v14839_v45 = vld [vmem:[%s26465_s1 + $0x19c8] sm:$0xf]  ;;  %v14744_v14 = vor.u32 %v17760_v33, %v14743_v38  ;;  %v14923_v38 = vld [vmem:[%s26465_s1 + $0x1a70] sm:$0xf] }
 0x2af   :  { %7562 = vmatpush.bf16.msrb.mxu3 %v14960_v34  ;;  %v14648_v34 = vor.u32 %v17736_v48, %v14647_v22  ;;  %v14840_v16 = vor.u32 %v17784_v32, %v14839_v45  ;;  %v5174_v22 = vpop.f32.mrf.mxu1  ;;  %v5188_v48 = vpop.f32.mrf.mxu2  ;;  %v14636_v45 = vor.u32 %v17733_v37, %v14635_v30  ;;  %v17778_v30 = vld [vmem:[%s26465_s1 + $0x19a0] sm:$0xf0]  ;;  %v14911_v37 = vld [vmem:[%s26465_s1 + $0x1a58] sm:$0xf] }
 0x2b0   :  { %7521 = vmatpush.bf16.msrb.mxu0 %v14660_v24  ;;  %v17757_v24 = vld [vmem:[%s26465_s1 + $0x18f8] sm:$0xf0]  ;;  %v5189_v33 = vadd.f32 %v5188_v48, %v5174_v22  ;;  %v5202_v32 = vpop.f32.mrf.mxu3 }
 0x2b1   :  { %7535 = vmatpush.bf16.msrb.mxu1 %v14756_v21  ;;  %v14827_v21 = vld [vmem:[%s26465_s1 + $0x19b0] sm:$0xf]  ;;  %v14732_v19 = vor.u32 %v17757_v24, %v14731_v2  ;;  %v17802_v2 = vld [vmem:[%s26465_s1 + $0x1a60] sm:$0xf0]  ;;  %v14611_v24 = vld [vmem:[%s26465_s1 + $0x1800] sm:$0xf] }
 0x2b2   :  { %7549 = vmatpush.bf16.msrb.mxu2 %v14852_v42  ;;  %v17781_v42 = vld [vmem:[%s26465_s1 + $0x19b8] sm:$0xf0]  ;;  %v22783_v22 = vadd.f32 %v5202_v32, %v5189_v33  ;;  %v17775_v33 = vld [vmem:[%s26465_s1 + $0x1988] sm:$0xf0]  ;;  %v15079_v32 = vld [vmem:[%s26465_s1 + $0x1ba8] sm:$0xf] }
 0x2b3   :  { %7563 = vmatpush.bf16.msrb.mxu3 %v14948_v8  ;;  %v17805_v8 = vld [vmem:[%s26465_s1 + $0x1a78] sm:$0xf0]  ;;  %v14828_v55 = vor.u32 %v17781_v42, %v14827_v21  ;;  %v17727_v21 = vld [vmem:[%s26465_s1 + $0x1808] sm:$0xf0] }
 0x2b4   :  { %7522 = vmatpush.bf16.msrb.mxu0 %v14648_v34  ;;  %v14924_v34 = vor.u32 %v17805_v8, %v14923_v38  ;;  %v14707_v38 = vld [vmem:[%s26465_s1 + $0x18c0] sm:$0xf]  ;;  %v14912_v8 = vor.u32 %v17802_v2, %v14911_v37 }
 0x2b5   :  { %7536 = vmatpush.bf16.msrb.mxu1 %v14744_v14  ;;  %v17754_v14 = vld [vmem:[%s26465_s1 + $0x18e0] sm:$0xf0] }
 0x2b6   :  { %7550 = vmatpush.bf16.msrb.mxu2 %v14840_v16  ;;  %v14815_v16 = vld [vmem:[%s26465_s1 + $0x1998] sm:$0xf]  ;;  %v14720_v42 = vor.u32 %v17754_v14, %v14719_v52  ;;  %v14899_v52 = vld [vmem:[%s26465_s1 + $0x1a40] sm:$0xf]  ;;  %v17868_v14 = vld [vmem:[%s26465_s1 + $0x1c70] sm:$0xf0] }
 0x2b7   :  { %7564 = vmatpush.bf16.msrb.mxu3 %v14936_v29  ;;  %v14624_v29 = vor.u32 %v17730_v5, %v14623_v53  ;;  %v14816_v48 = vor.u32 %v17778_v30, %v14815_v16  ;;  %v17751_v5 = vld [vmem:[%s26465_s1 + $0x18c8] sm:$0xf0]  ;;  %v14803_v53 = vld [vmem:[%s26465_s1 + $0x1980] sm:$0xf]  ;;  %v15271_v16 = vld [vmem:[%s26465_s1 + $0x1d28] sm:$0xf] }
 0x2b8   :  { %7523 = vmatpush.bf16.msrb.mxu0 %v14636_v45  ;;  %v17799_v45 = vld [vmem:[%s26465_s1 + $0x1a48] sm:$0xf0]  ;;  %v17892_v30 = vld [vmem:[%s26465_s1 + $0x1d30] sm:$0xf0]  ;;  %v14708_v37 = vor.u32 %v17751_v5, %v14707_v38  ;;  %v14804_v2 = vor.u32 %v17775_v33, %v14803_v53  ;;  %v15163_v38 = vld [vmem:[%s26465_s1 + $0x1c50] sm:$0xf] }
 0x2b9   :  { %7537 = vmatpush.bf16.msrb.mxu1 %v14732_v19  ;;  %v17844_v19 = vld [vmem:[%s26465_s1 + $0x1bb0] sm:$0xf0]  ;;  %v15272_v4 = vor.u32 %v17892_v30, %v15271_v16  ;;  %v17865_v53 = vld [vmem:[%s26465_s1 + $0x1c58] sm:$0xf0]  ;;  %v15055_v16 = vld [vmem:[%s26465_s1 + $0x1b78] sm:$0xf] }
 0x2ba   :  { %7551 = vmatpush.bf16.msrb.mxu2 %v14828_v55  ;;  %v15175_v55 = vld [vmem:[%s26465_s1 + $0x1c68] sm:$0xf]  ;;  %v15080_v61 = vor.u32 %v17844_v19, %v15079_v32  ;;  %v17889_v33 = vld [vmem:[%s26465_s1 + $0x1d18] sm:$0xf0]  ;;  %v14109_v32 = vld [vmem:[%s26465_s1 + $0x141c] sm:$0xf0]  ;;  %v22874_v19 = vpop.f32.mrf.mxu1 }
 0x2bb   :  { %7565 = vmatpush.bf16.msrb.mxu3 %v14924_v34  ;;  %v14612_v34 = vor.u32 %v17727_v21, %v14611_v24  ;;  %v14121_v24 = vld [vmem:[%s26465_s1 + $0x1434] sm:$0xf0]  ;;  %v14900_v21 = vor.u32 %v17799_v45, %v14899_v52  ;;  %v15176_v60 = vor.u32 %v17868_v14, %v15175_v55  ;;  %v22866_v52 = vpop.f32.mrf.mxu0  ;;  %v17600_v45 = vld [vmem:[%s26465_s1 + $0x1414] sm:$0xf]  ;;  %26519 = vst [vmem:[#allocation52_spill] sm:$0xff] %v22874_v19 }
 0x2bc   :  { %7524 = vmatpush.bf16.msrb.mxu0 %v14624_v29  ;;  %v17603_v29 = vld [vmem:[%s26465_s1 + $0x142c] sm:$0xf]  ;;  %26518 = vst [vmem:[#allocation51_spill] sm:$0xff] %v22866_v52  ;;  %v17838_v30 = vld [vmem:[%s26465_s1 + $0x1b80] sm:$0xf0] }
 0x2bd   :  { %7538 = vmatpush.bf16.msrb.mxu1 %v14720_v42  ;;  %v15067_v42 = vld [vmem:[%s26465_s1 + $0x1b90] sm:$0xf]  ;;  %v14124_v5 = vor.u32 %v17603_v29, %v14121_v24  ;;  %v17597_v29 = vld [vmem:[%s26465_s1 + $0x13fc] sm:$0xf]  ;;  %v14097_v24 = vld [vmem:[%s26465_s1 + $0x1404] sm:$0xf0] }
 0x2be   :  { %7552 = vmatpush.bf16.msrb.mxu2 %v14816_v48  ;;  %v17841_v48 = vld [vmem:[%s26465_s1 + $0x1b98] sm:$0xf0] }
 0x2bf   :  { %7566 = vmatpush.bf16.msrb.mxu3 %v14912_v8  ;;  %v15259_v8 = vld [vmem:[%s26465_s1 + $0x1d10] sm:$0xf]  ;;  %v15068_v55 = vor.u32 %v17841_v48, %v15067_v42  ;;  %v22904_v42 = vpop.f32.mrf.mxu2 }
 0x2c0   :  { %7525 = vmatpush.bf16.msrb.mxu0 %v14612_v34  ;;  %v15164_v34 = vor.u32 %v17865_v53, %v15163_v38  ;;  %v15260_v14 = vor.u32 %v17889_v33, %v15259_v8  ;;  %26520 = vst [vmem:[#allocation53_spill] sm:$0xff] %v22904_v42  ;;  %v17835_v53 = vld [vmem:[%s26465_s1 + $0x1b68] sm:$0xf0]  ;;  %v15139_v8 = vld [vmem:[%s26465_s1 + $0x1c20] sm:$0xf]  ;;  %v14100_v33 = vor.u32 %v17597_v29, %v14097_v24 }
 0x2c1   :  { %7539 = vmatpush.bf16.msrb.mxu1 %v14708_v37  ;;  %v15151_v37 = vld [vmem:[%s26465_s1 + $0x1c38] sm:$0xf]  ;;  %v15031_v29 = vld [vmem:[%s26465_s1 + $0x1b48] sm:$0xf]  ;;  %v17832_v24 = vld [vmem:[%s26465_s1 + $0x1b50] sm:$0xf0] }
 0x2c2   :  { %7553 = vmatpush.bf16.msrb.mxu2 %v14804_v2  ;;  %v17886_v2 = vld [vmem:[%s26465_s1 + $0x1d00] sm:$0xf0] }
 0x2c3   :  { %7567 = vmatpush.bf16.msrb.mxu3 %v14900_v21  ;;  %7526 = vmatmul.bf16.vlgmr.msrb.gmra.mxu0 %v18714_v43  ;;  %v15056_v21 = vor.u32 %v17838_v30, %v15055_v16  ;;  %v17594_v16 = vld [vmem:[%s26465_s1 + $0x13e4] sm:$0xf]  ;;  %v14085_v30 = vld [vmem:[%s26465_s1 + $0x13ec] sm:$0xf0] }
 0x2c4   :  { %7574 = vmatpush.bf16.msra.mxu0 %v15080_v61  ;;  %v14112_v61 = vor.u32 %v17600_v45, %v14109_v32  ;;  %7540 = vmatmul.bf16.vlgmr.msrb.gmra.mxu1 %v18724_v47  ;;  %v22915_v45 = vpop.f32.mrf.mxu3  ;;  %v17859_v32 = vld [vmem:[%s26465_s1 + $0x1c28] sm:$0xf0] }
 0x2c5   :  { %7588 = vmatpush.bf16.msra.mxu1 %v15176_v60  ;;  %v15247_v60 = vld [vmem:[%s26465_s1 + $0x1cf8] sm:$0xf]  ;;  %7554 = vmatmul.bf16.vlgmr.msrb.gmra.mxu2 %v18931_v31  ;;  %26521 = vst [vmem:[#allocation54_spill] sm:$0xff] %v22915_v45 }
 0x2c6   :  { %7602 = vmatpush.bf16.msra.mxu2 %v15272_v4  ;;  %v17862_v4 = vld [vmem:[%s26465_s1 + $0x1c40] sm:$0xf0]  ;;  %7568 = vmatmul.bf16.vlgmr.msrb.gmra.mxu3 %v18944_v36  ;;  %v15248_v38 = vor.u32 %v17886_v2, %v15247_v60  ;;  %v5230_v2 = vpop.f32.mrf.mxu1 }
 0x2c7   :  { %7616 = vmatpush.bf16.msra.mxu3 %v14124_v5  ;;  %v15152_v48 = vor.u32 %v17862_v4, %v15151_v37  ;;  %v15043_v5 = vld [vmem:[%s26465_s1 + $0x1b60] sm:$0xf]  ;;  %v15140_v4 = vor.u32 %v17859_v32, %v15139_v8  ;;  %v17591_v8 = vld [vmem:[%s26465_s1 + $0x13cc] sm:$0xf]  ;;  %v15032_v32 = vor.u32 %v17832_v24, %v15031_v29  ;;  %v17588_v24 = vld [vmem:[%s26465_s1 + $0x13b4] sm:$0xf] }
 0x2c8   :  { %7575 = vmatpush.bf16.msra.mxu0 %v15068_v55  ;;  %v15235_v55 = vld [vmem:[%s26465_s1 + $0x1ce0] sm:$0xf] }
 0x2c9   :  { %7589 = vmatpush.bf16.msra.mxu1 %v15164_v34  ;;  %v17883_v34 = vld [vmem:[%s26465_s1 + $0x1ce8] sm:$0xf0] }
 0x2ca   :  { %7603 = vmatpush.bf16.msra.mxu2 %v15260_v14  ;;  %v5216_v14 = vpop.f32.mrf.mxu0  ;;  %v15236_v60 = vor.u32 %v17883_v34, %v15235_v55 }
 0x2cb   :  { %7617 = vmatpush.bf16.msra.mxu3 %v14112_v61  ;;  %v5217_v37 = vadd.f32 %v5216_v14, %v22783_v22  ;;  %v15044_v61 = vor.u32 %v17835_v53, %v15043_v5  ;;  %v14088_v22 = vor.u32 %v17594_v16, %v14085_v30  ;;  %v17880_v53 = vld [vmem:[%s26465_s1 + $0x1cd0] sm:$0xf0]  ;;  %v15019_v14 = vld [vmem:[%s26465_s1 + $0x1b30] sm:$0xf]  ;;  %v17829_v16 = vld [vmem:[%s26465_s1 + $0x1b38] sm:$0xf0] }
 0x2cc   :  { %7576 = vmatpush.bf16.msra.mxu0 %v15056_v21  ;;  %v15127_v21 = vld [vmem:[%s26465_s1 + $0x1c08] sm:$0xf]  ;;  %v15115_v30 = vld [vmem:[%s26465_s1 + $0x1bf0] sm:$0xf] }
 0x2cd   :  { %7590 = vmatpush.bf16.msra.mxu1 %v15152_v48  ;;  %v5231_v5 = vadd.f32 %v5230_v2, %v5217_v37  ;;  %v17856_v48 = vld [vmem:[%s26465_s1 + $0x1c10] sm:$0xf0]  ;;  %v17877_v2 = vld [vmem:[%s26465_s1 + $0x1cb8] sm:$0xf0] }
 0x2ce   :  { %7604 = vmatpush.bf16.msra.mxu2 %v15248_v38  ;;  %v15223_v38 = vld [vmem:[%s26465_s1 + $0x1cc8] sm:$0xf]  ;;  %v15128_v55 = vor.u32 %v17856_v48, %v15127_v21  ;;  %v14061_v21 = vld [vmem:[%s26465_s1 + $0x13bc] sm:$0xf0]  ;;  %v15020_v48 = vor.u32 %v17829_v16, %v15019_v14  ;;  %v17874_v16 = vld [vmem:[%s26465_s1 + $0x1ca0] sm:$0xf0] }
 0x2cf   :  { %7618 = vmatpush.bf16.msra.mxu3 %v14100_v33  ;;  %v14073_v33 = vld [vmem:[%s26465_s1 + $0x13d4] sm:$0xf0]  ;;  %v15224_v34 = vor.u32 %v17880_v53, %v15223_v38  ;;  %v14064_v14 = vor.u32 %v17588_v24, %v14061_v21  ;;  %v15091_v24 = vld [vmem:[%s26465_s1 + $0x1bc0] sm:$0xf]  ;;  %v17847_v21 = vld [vmem:[%s26465_s1 + $0x1bc8] sm:$0xf0] }
 0x2d0   :  { %7577 = vmatpush.bf16.msra.mxu0 %v15044_v61  ;;  %v14076_v37 = vor.u32 %v17591_v8, %v14073_v33  ;;  %v5244_v61 = vpop.f32.mrf.mxu2  ;;  %v17826_v33 = vld [vmem:[%s26465_s1 + $0x1b20] sm:$0xf0] }
 0x2d1   :  { %7591 = vmatpush.bf16.msra.mxu1 %v15140_v4  ;;  %v17853_v4 = vld [vmem:[%s26465_s1 + $0x1bf8] sm:$0xf0]  ;;  %v5245_v29 = vadd.f32 %v5244_v61, %v5231_v5  ;;  %v15007_v5 = vld [vmem:[%s26465_s1 + $0x1b18] sm:$0xf] }
 0x2d2   :  { %7605 = vmatpush.bf16.msra.mxu2 %v15236_v60  ;;  %v15211_v60 = vld [vmem:[%s26465_s1 + $0x1cb0] sm:$0xf]  ;;  %v15116_v53 = vor.u32 %v17853_v4, %v15115_v30  ;;  %v17585_v30 = vld [vmem:[%s26465_s1 + $0x139c] sm:$0xf]  ;;  %v15008_v61 = vor.u32 %v17826_v33, %v15007_v5  ;;  %v14995_v4 = vld [vmem:[%s26465_s1 + $0x1b00] sm:$0xf] }
 0x2d3   :  { %7619 = vmatpush.bf16.msra.mxu3 %v14088_v22  ;;  %v5258_v22 = vpop.f32.mrf.mxu3  ;;  %v15212_v8 = vor.u32 %v17877_v2, %v15211_v60  ;;  %v17823_v60 = vld [vmem:[%s26465_s1 + $0x1b08] sm:$0xf0]  ;;  %v14037_v5 = vld [vmem:[%s26465_s1 + $0x138c] sm:$0xf0] }
 0x2d4   :  { %7578 = vmatpush.bf16.msra.mxu0 %v15032_v32  ;;  %v22981_v38 = vadd.f32 %v5258_v22, %v5245_v29  ;;  %v15103_v32 = vld [vmem:[%s26465_s1 + $0x1bd8] sm:$0xf]  ;;  %v15187_v22 = vld [vmem:[%s26465_s1 + $0x1c80] sm:$0xf]  ;;  %v17627_v33 = vld [vmem:[%s26465_s1 + $0x14ec] sm:$0xf] }
 0x2d5   :  { %7592 = vmatpush.bf16.msra.mxu1 %v15128_v55  ;;  %v17850_v55 = vld [vmem:[%s26465_s1 + $0x1be0] sm:$0xf0] }
 0x2d6   :  { %7606 = vmatpush.bf16.msra.mxu2 %v15224_v34  ;;  %v15199_v34 = vld [vmem:[%s26465_s1 + $0x1c98] sm:$0xf]  ;;  %v15104_v2 = vor.u32 %v17850_v55, %v15103_v32  ;;  %v14996_v55 = vor.u32 %v17823_v60, %v14995_v4 }
 0x2d7   :  { %7620 = vmatpush.bf16.msra.mxu3 %v14076_v37  ;;  %v14049_v37 = vld [vmem:[%s26465_s1 + $0x13a4] sm:$0xf0]  ;;  %v15200_v29 = vor.u32 %v17874_v16, %v15199_v34  ;;  %v14217_v32 = vld [vmem:[%s26465_s1 + $0x14f4] sm:$0xf0]  ;;  %v17675_v16 = vld [vmem:[%s26465_s1 + $0x166c] sm:$0xf] }
 0x2d8   :  { %7579 = vmatpush.bf16.msra.mxu0 %v15020_v48  ;;  %v14052_v48 = vor.u32 %v17585_v30, %v14049_v37  ;;  %v14313_v34 = vld [vmem:[%s26465_s1 + $0x15b4] sm:$0xf0]  ;;  %v15092_v37 = vor.u32 %v17847_v21, %v15091_v24  ;;  %v14220_v42 = vor.u32 %v17627_v33, %v14217_v32  ;;  %v17648_v24 = vld [vmem:[%s26465_s1 + $0x1594] sm:$0xf]  ;;  %v14493_v33 = vld [vmem:[%s26465_s1 + $0x171c] sm:$0xf0]  ;;  %v23081_v32 = vpop.f32.mrf.mxu1 }
 0x2d9   :  { %7593 = vmatpush.bf16.msra.mxu1 %v15116_v53  ;;  %v17871_v53 = vld [vmem:[%s26465_s1 + $0x1c88] sm:$0xf0]  ;;  %v14409_v30 = vld [vmem:[%s26465_s1 + $0x1674] sm:$0xf0]  ;;  %26523 = vst [vmem:[#allocation56_spill] sm:$0xff] %v23081_v32 }
 0x2da   :  { %7607 = vmatpush.bf16.msra.mxu2 %v15212_v8  ;;  %v17582_v8 = vld [vmem:[%s26465_s1 + $0x1384] sm:$0xf]  ;;  %v15188_v45 = vor.u32 %v17871_v53, %v15187_v22  ;;  %v14505_v4 = vld [vmem:[%s26465_s1 + $0x1734] sm:$0xf0]  ;;  %v14412_v52 = vor.u32 %v17675_v16, %v14409_v30  ;;  %v14301_v22 = vld [vmem:[%s26465_s1 + $0x159c] sm:$0xf0] }
 0x2db   :  { %7621 = vmatpush.bf16.msra.mxu3 %v14064_v14  ;;  %v17651_v14 = vld [vmem:[%s26465_s1 + $0x15ac] sm:$0xf]  ;;  %v14040_v60 = vor.u32 %v17582_v8, %v14037_v5  ;;  %v14397_v53 = vld [vmem:[%s26465_s1 + $0x165c] sm:$0xf0]  ;;  %v23073_v8 = vpop.f32.mrf.mxu0  ;;  %v17696_v5 = vld [vmem:[%s26465_s1 + $0x1714] sm:$0xf] }
 0x2dc   :  { %7580 = vmatpush.bf16.msra.mxu0 %v15008_v61  ;;  %v17699_v61 = vld [vmem:[%s26465_s1 + $0x172c] sm:$0xf]  ;;  %v14316_v19 = vor.u32 %v17651_v14, %v14313_v34  ;;  %26522 = vst [vmem:[#allocation55_spill] sm:$0xff] %v23073_v8  ;;  %v14193_v16 = vld [vmem:[%s26465_s1 + $0x14c4] sm:$0xf0] }
 0x2dd   :  { %7594 = vmatpush.bf16.msra.mxu1 %v15104_v2  ;;  %v17624_v2 = vld [vmem:[%s26465_s1 + $0x14d4] sm:$0xf]  ;;  %v14508_v21 = vor.u32 %v17699_v61, %v14505_v4  ;;  %v17645_v30 = vld [vmem:[%s26465_s1 + $0x157c] sm:$0xf]  ;;  %v14481_v4 = vld [vmem:[%s26465_s1 + $0x1704] sm:$0xf0] }
 0x2de   :  { %7608 = vmatpush.bf16.msra.mxu2 %v15200_v29  ;;  %v14205_v29 = vld [vmem:[%s26465_s1 + $0x14dc] sm:$0xf0]  ;;  %v17693_v61 = vld [vmem:[%s26465_s1 + $0x16fc] sm:$0xf] }
 0x2df   :  { %7622 = vmatpush.bf16.msra.mxu3 %v14052_v48  ;;  %v17672_v48 = vld [vmem:[%s26465_s1 + $0x1654] sm:$0xf]  ;;  %v14208_v14 = vor.u32 %v17624_v2, %v14205_v29 }
 0x2e0   :  { %7581 = vmatpush.bf16.msra.mxu0 %v14996_v55  ;;  %v14304_v55 = vor.u32 %v17648_v24, %v14301_v22  ;;  %v14400_v34 = vor.u32 %v17672_v48, %v14397_v53  ;;  %v17618_v24 = vld [vmem:[%s26465_s1 + $0x14a4] sm:$0xf]  ;;  %v23120_v48 = vpop.f32.mrf.mxu2  ;;  %v14484_v53 = vor.u32 %v17693_v61, %v14481_v4  ;;  %v17615_v61 = vld [vmem:[%s26465_s1 + $0x148c] sm:$0xf]  ;;  %v14169_v4 = vld [vmem:[%s26465_s1 + $0x1494] sm:$0xf0] }
 0x2e1   :  { %7595 = vmatpush.bf16.msra.mxu1 %v15092_v37  ;;  %v14385_v37 = vld [vmem:[%s26465_s1 + $0x1644] sm:$0xf0]  ;;  %v17642_v22 = vld [vmem:[%s26465_s1 + $0x1564] sm:$0xf]  ;;  %26524 = vst [vmem:[#allocation57_spill] sm:$0xff] %v23120_v48 }
 0x2e2   :  { %7609 = vmatpush.bf16.msra.mxu2 %v15188_v45  ;;  %v17621_v45 = vld [vmem:[%s26465_s1 + $0x14bc] sm:$0xf] }
 0x2e3   :  { %7623 = vmatpush.bf16.msra.mxu3 %v14040_v60  ;;  %7582 = vmatmul.bf16.vlgmr.msra.gmra.mxu0 %v18942_v35  ;;  %v14196_v60 = vor.u32 %v17621_v45, %v14193_v16  ;;  %v17690_v45 = vld [vmem:[%s26465_s1 + $0x16e4] sm:$0xf]  ;;  %v14469_v16 = vld [vmem:[%s26465_s1 + $0x16ec] sm:$0xf0] }
 0x2e4   :  { %7630 = vmatpush.bf16.msrb.mxu0 %v14220_v42  ;;  %v14496_v42 = vor.u32 %v17696_v5, %v14493_v33  ;;  %7596 = vmatmul.bf16.vlgmr.msra.gmra.mxu1 %v18952_v40  ;;  %v14277_v5 = vld [vmem:[%s26465_s1 + $0x156c] sm:$0xf0]  ;;  %v17666_v33 = vld [vmem:[%s26465_s1 + $0x1624] sm:$0xf] }
 0x2e5   :  { %7644 = vmatpush.bf16.msrb.mxu1 %v14316_v19  ;;  %v17669_v19 = vld [vmem:[%s26465_s1 + $0x163c] sm:$0xf]  ;;  %7610 = vmatmul.bf16.vlgmr.msra.gmra.mxu2 %v19141_v25 }
 0x2e6   :  { %7658 = vmatpush.bf16.msrb.mxu2 %v14412_v52  ;;  %v14289_v52 = vld [vmem:[%s26465_s1 + $0x1584] sm:$0xf0]  ;;  %7624 = vmatmul.bf16.vlgmr.msra.gmra.mxu3 %v18481_v58  ;;  %v14388_v29 = vor.u32 %v17669_v19, %v14385_v37  ;;  %v14280_v19 = vor.u32 %v17642_v22, %v14277_v5  ;;  %v17687_v22 = vld [vmem:[%s26465_s1 + $0x16cc] sm:$0xf]  ;;  %v14172_v5 = vor.u32 %v17615_v61, %v14169_v4 }
 0x2e7   :  { %7672 = vmatpush.bf16.msrb.mxu3 %v14508_v21  ;;  %v14292_v2 = vor.u32 %v17645_v30, %v14289_v52  ;;  %v14181_v21 = vld [vmem:[%s26465_s1 + $0x14ac] sm:$0xf0]  ;;  %v5286_v52 = vpop.f32.mrf.mxu1 }
 0x2e8   :  { %7631 = vmatpush.bf16.msrb.mxu0 %v14208_v14  ;;  %v14373_v14 = vld [vmem:[%s26465_s1 + $0x162c] sm:$0xf0] }
 0x2e9   :  { %7645 = vmatpush.bf16.msrb.mxu1 %v14304_v55  ;;  %v23131_v55 = vpop.f32.mrf.mxu3  ;;  %v14376_v37 = vor.u32 %v17666_v33, %v14373_v14 }
 0x2ea   :  { %7659 = vmatpush.bf16.msrb.mxu2 %v14400_v34  ;;  %26525 = vst [vmem:[#allocation58_spill] sm:$0xff] %v23131_v55  ;;  %v5272_v34 = vpop.f32.mrf.mxu0 }
 0x2eb   :  { %7673 = vmatpush.bf16.msrb.mxu3 %v14496_v42  ;;  %v5273_v30 = vadd.f32 %v5272_v34, %v22981_v38  ;;  %v14184_v42 = vor.u32 %v17618_v24, %v14181_v21  ;;  %v14472_v38 = vor.u32 %v17690_v45, %v14469_v16  ;;  %v14361_v21 = vld [vmem:[%s26465_s1 + $0x1614] sm:$0xf0]  ;;  %v17612_v34 = vld [vmem:[%s26465_s1 + $0x1474] sm:$0xf]  ;;  %v14157_v45 = vld [vmem:[%s26465_s1 + $0x147c] sm:$0xf0] }
 0x2ec   :  { %7632 = vmatpush.bf16.msrb.mxu0 %v14196_v60  ;;  %v17639_v60 = vld [vmem:[%s26465_s1 + $0x154c] sm:$0xf]  ;;  %v17636_v16 = vld [vmem:[%s26465_s1 + $0x1534] sm:$0xf] }
 0x2ed   :  { %7646 = vmatpush.bf16.msrb.mxu1 %v14292_v2  ;;  %v5287_v24 = vadd.f32 %v5286_v52, %v5273_v30  ;;  %v14265_v2 = vld [vmem:[%s26465_s1 + $0x1554] sm:$0xf0]  ;;  %v14253_v52 = vld [vmem:[%s26465_s1 + $0x153c] sm:$0xf0] }
 0x2ee   :  { %7660 = vmatpush.bf16.msrb.mxu2 %v14388_v29  ;;  %v17663_v29 = vld [vmem:[%s26465_s1 + $0x160c] sm:$0xf]  ;;  %v14268_v33 = vor.u32 %v17639_v60, %v14265_v2  ;;  %v17684_v60 = vld [vmem:[%s26465_s1 + $0x16b4] sm:$0xf]  ;;  %v14160_v2 = vor.u32 %v17612_v34, %v14157_v45  ;;  %v14337_v34 = vld [vmem:[%s26465_s1 + $0x15e4] sm:$0xf0] }
 0x2ef   :  { %7674 = vmatpush.bf16.msrb.mxu3 %v14484_v53  ;;  %v14457_v53 = vld [vmem:[%s26465_s1 + $0x16d4] sm:$0xf0]  ;;  %v14364_v14 = vor.u32 %v17663_v29, %v14361_v21  ;;  %v14256_v21 = vor.u32 %v17636_v16, %v14253_v52  ;;  %v17681_v45 = vld [vmem:[%s26465_s1 + $0x169c] sm:$0xf]  ;;  %v14433_v16 = vld [vmem:[%s26465_s1 + $0x16a4] sm:$0xf0] }
 0x2f0   :  { %7633 = vmatpush.bf16.msrb.mxu0 %v14184_v42  ;;  %v14460_v30 = vor.u32 %v17687_v22, %v14457_v53  ;;  %v5300_v42 = vpop.f32.mrf.mxu2  ;;  %v14145_v53 = vld [vmem:[%s26465_s1 + $0x1464] sm:$0xf0]  ;;  %v17606_v52 = vld [vmem:[%s26465_s1 + $0x1444] sm:$0xf] }
 0x2f1   :  { %7647 = vmatpush.bf16.msrb.mxu1 %v14280_v19  ;;  %v17660_v19 = vld [vmem:[%s26465_s1 + $0x15f4] sm:$0xf]  ;;  %v5301_v61 = vadd.f32 %v5300_v42, %v5287_v24  ;;  %v5314_v4 = vpop.f32.mrf.mxu3  ;;  %v17609_v24 = vld [vmem:[%s26465_s1 + $0x145c] sm:$0xf] }
 0x2f2   :  { %7661 = vmatpush.bf16.msrb.mxu2 %v14376_v37  ;;  %v14349_v37 = vld [vmem:[%s26465_s1 + $0x15fc] sm:$0xf0]  ;;  %v17633_v42 = vld [vmem:[%s26465_s1 + $0x151c] sm:$0xf] }
 0x2f3   :  { %7675 = vmatpush.bf16.msrb.mxu3 %v14472_v38  ;;  %v14445_v38 = vld [vmem:[%s26465_s1 + $0x16bc] sm:$0xf0]  ;;  %v23188_v29 = vadd.f32 %v5314_v4, %v5301_v61  ;;  %v14352_v22 = vor.u32 %v17660_v19, %v14349_v37  ;;  %v14133_v19 = vld [vmem:[%s26465_s1 + $0x144c] sm:$0xf0]  ;;  %v17630_v4 = vld [vmem:[%s26465_s1 + $0x1504] sm:$0xf] }
 0x2f4   :  { %7634 = vmatpush.bf16.msrb.mxu0 %v14172_v5  ;;  %v14448_v5 = vor.u32 %v17684_v60, %v14445_v38  ;;  %v14229_v60 = vld [vmem:[%s26465_s1 + $0x150c] sm:$0xf0]  ;;  %v17654_v38 = vld [vmem:[%s26465_s1 + $0x15c4] sm:$0xf] }
 0x2f5   :  { %7648 = vmatpush.bf16.msrb.mxu1 %v14268_v33  ;;  %v14241_v33 = vld [vmem:[%s26465_s1 + $0x1524] sm:$0xf0] }
 0x2f6   :  { %7662 = vmatpush.bf16.msrb.mxu2 %v14364_v14  ;;  %v17657_v14 = vld [vmem:[%s26465_s1 + $0x15dc] sm:$0xf]  ;;  %v14244_v37 = vor.u32 %v17633_v42, %v14241_v33  ;;  %v14601_v42 = vld [vmem:[%s26465_s1 + $0x17f4] sm:$0xf0]  ;;  %v14136_v33 = vor.u32 %v17606_v52, %v14133_v19 }
 0x2f7   :  { %7676 = vmatpush.bf16.msrb.mxu3 %v14460_v30  ;;  %v14148_v30 = vor.u32 %v17609_v24, %v14145_v53  ;;  %v14340_v61 = vor.u32 %v17657_v14, %v14337_v34  ;;  %v14421_v24 = vld [vmem:[%s26465_s1 + $0x168c] sm:$0xf0]  ;;  %v17723_v53 = vld [vmem:[%s26465_s1 + $0x17ec] sm:$0xf]  ;;  %v14697_v14 = vld [vmem:[%s26465_s1 + $0x18b4] sm:$0xf0] }
 0x2f8   :  { %7635 = vmatpush.bf16.msrb.mxu0 %v14160_v2  ;;  %v14436_v2 = vor.u32 %v17681_v45, %v14433_v16  ;;  %v17771_v34 = vld [vmem:[%s26465_s1 + $0x196c] sm:$0xf]  ;;  %v14793_v45 = vld [vmem:[%s26465_s1 + $0x1974] sm:$0xf0]  ;;  %v14232_v16 = vor.u32 %v17630_v4, %v14229_v60  ;;  %v14604_v48 = vor.u32 %v17723_v53, %v14601_v42  ;;  %v17744_v4 = vld [vmem:[%s26465_s1 + $0x1894] sm:$0xf]  ;;  %v23288_v42 = vpop.f32.mrf.mxu1 }
 0x2f9   :  { %7649 = vmatpush.bf16.msrb.mxu1 %v14256_v21  ;;  %v14325_v21 = vld [vmem:[%s26465_s1 + $0x15cc] sm:$0xf0]  ;;  %v14889_v52 = vld [vmem:[%s26465_s1 + $0x1a34] sm:$0xf0]  ;;  %v14796_v8 = vor.u32 %v17771_v34, %v14793_v45  ;;  %v14877_v53 = vld [vmem:[%s26465_s1 + $0x1a1c] sm:$0xf0] }
 0x2fa   :  { %7663 = vmatpush.bf16.msrb.mxu2 %v14352_v22  ;;  %v17678_v22 = vld [vmem:[%s26465_s1 + $0x1684] sm:$0xf]  ;;  %v14328_v55 = vor.u32 %v17654_v38, %v14325_v21  ;;  %v14685_v38 = vld [vmem:[%s26465_s1 + $0x189c] sm:$0xf0]  ;;  %26527 = vst [vmem:[#allocation60_spill] sm:$0xff] %v23288_v42 }
 0x2fb   :  { %7677 = vmatpush.bf16.msrb.mxu3 %v14448_v5  ;;  %v17747_v5 = vld [vmem:[%s26465_s1 + $0x18ac] sm:$0xf]  ;;  %v14424_v19 = vor.u32 %v17678_v22, %v14421_v24  ;;  %v14781_v21 = vld [vmem:[%s26465_s1 + $0x195c] sm:$0xf0]  ;;  %v23280_v22 = vpop.f32.mrf.mxu0  ;;  %v17792_v24 = vld [vmem:[%s26465_s1 + $0x1a14] sm:$0xf] }
 0x2fc   :  { %7636 = vmatpush.bf16.msrb.mxu0 %v14148_v30  ;;  %v17795_v30 = vld [vmem:[%s26465_s1 + $0x1a2c] sm:$0xf]  ;;  %v14700_v32 = vor.u32 %v17747_v5, %v14697_v14  ;;  %26526 = vst [vmem:[#allocation59_spill] sm:$0xff] %v23280_v22  ;;  %v14577_v34 = vld [vmem:[%s26465_s1 + $0x17c4] sm:$0xf0] }
 0x2fd   :  { %7650 = vmatpush.bf16.msrb.mxu1 %v14244_v37  ;;  %v17720_v37 = vld [vmem:[%s26465_s1 + $0x17d4] sm:$0xf]  ;;  %v14892_v60 = vor.u32 %v17795_v30, %v14889_v52  ;;  %v17741_v45 = vld [vmem:[%s26465_s1 + $0x187c] sm:$0xf]  ;;  %v14865_v52 = vld [vmem:[%s26465_s1 + $0x1a04] sm:$0xf0] }
 0x2fe   :  { %7664 = vmatpush.bf16.msrb.mxu2 %v14340_v61  ;;  %v14589_v61 = vld [vmem:[%s26465_s1 + $0x17dc] sm:$0xf0]  ;;  %v17789_v30 = vld [vmem:[%s26465_s1 + $0x19fc] sm:$0xf] }
 0x2ff   :  { %7678 = vmatpush.bf16.msrb.mxu3 %v14436_v2  ;;  %v17768_v2 = vld [vmem:[%s26465_s1 + $0x1954] sm:$0xf]  ;;  %v14592_v5 = vor.u32 %v17720_v37, %v14589_v61 }
 0x300   :  { %7637 = vmatpush.bf16.msrb.mxu0 %v14136_v33  ;;  %v14688_v33 = vor.u32 %v17744_v4, %v14685_v38  ;;  %v14784_v14 = vor.u32 %v17768_v2, %v14781_v21  ;;  %v17714_v4 = vld [vmem:[%s26465_s1 + $0x17a4] sm:$0xf]  ;;  %v23327_v2 = vpop.f32.mrf.mxu2  ;;  %v14868_v21 = vor.u32 %v17789_v30, %v14865_v52  ;;  %v17711_v30 = vld [vmem:[%s26465_s1 + $0x178c] sm:$0xf]  ;;  %v14553_v52 = vld [vmem:[%s26465_s1 + $0x1794] sm:$0xf0] }
 0x301   :  { %7651 = vmatpush.bf16.msrb.mxu1 %v14232_v16  ;;  %v14769_v16 = vld [vmem:[%s26465_s1 + $0x1944] sm:$0xf0]  ;;  %v17738_v38 = vld [vmem:[%s26465_s1 + $0x1864] sm:$0xf]  ;;  %26528 = vst [vmem:[#allocation61_spill] sm:$0xff] %v23327_v2 }
 0x302   :  { %7665 = vmatpush.bf16.msrb.mxu2 %v14328_v55  ;;  %v17717_v55 = vld [vmem:[%s26465_s1 + $0x17bc] sm:$0xf] }
 0x303   :  { %7679 = vmatpush.bf16.msrb.mxu3 %v14424_v19  ;;  %7638 = vmatmul.bf16.vlgmr.msrb.gmra.mxu0 %v18517_v10  ;;  %v14580_v19 = vor.u32 %v17717_v55, %v14577_v34  ;;  %v17786_v55 = vld [vmem:[%s26465_s1 + $0x19e4] sm:$0xf]  ;;  %v14853_v34 = vld [vmem:[%s26465_s1 + $0x19ec] sm:$0xf0] }
 0x304   :  { %7686 = vmatpush.bf16.msra.mxu0 %v14604_v48  ;;  %v14880_v48 = vor.u32 %v17792_v24, %v14877_v53  ;;  %7652 = vmatmul.bf16.vlgmr.msrb.gmra.mxu1 %v18495_v1  ;;  %v14661_v24 = vld [vmem:[%s26465_s1 + $0x186c] sm:$0xf0]  ;;  %v17762_v53 = vld [vmem:[%s26465_s1 + $0x1924] sm:$0xf] }
 0x305   :  { %7700 = vmatpush.bf16.msra.mxu1 %v14700_v32  ;;  %v17765_v32 = vld [vmem:[%s26465_s1 + $0x193c] sm:$0xf]  ;;  %7666 = vmatmul.bf16.vlgmr.msrb.gmra.mxu2 %v18531_v17 }
 0x306   :  { %7714 = vmatpush.bf16.msra.mxu2 %v14796_v8  ;;  %v14673_v8 = vld [vmem:[%s26465_s1 + $0x1884] sm:$0xf0]  ;;  %7680 = vmatmul.bf16.vlgmr.msrb.gmra.mxu3 %v18703_v39  ;;  %v14772_v61 = vor.u32 %v17765_v32, %v14769_v16  ;;  %v14664_v32 = vor.u32 %v17738_v38, %v14661_v24  ;;  %v17783_v38 = vld [vmem:[%s26465_s1 + $0x19cc] sm:$0xf] }
 0x307   :  { %7728 = vmatpush.bf16.msra.mxu3 %v14892_v60  ;;  %v14676_v37 = vor.u32 %v17741_v45, %v14673_v8  ;;  %v14565_v60 = vld [vmem:[%s26465_s1 + $0x17ac] sm:$0xf0]  ;;  %v5342_v8 = vpop.f32.mrf.mxu1  ;;  %v14529_v24 = vld [vmem:[%s26465_s1 + $0x1764] sm:$0xf0] }
 0x308   :  { %7687 = vmatpush.bf16.msra.mxu0 %v14592_v5  ;;  %v14757_v5 = vld [vmem:[%s26465_s1 + $0x192c] sm:$0xf0] }
 0x309   :  { %7701 = vmatpush.bf16.msra.mxu1 %v14688_v33  ;;  %v23338_v33 = vpop.f32.mrf.mxu3  ;;  %v14760_v16 = vor.u32 %v17762_v53, %v14757_v5  ;;  %v14556_v53 = vor.u32 %v17711_v30, %v14553_v52  ;;  %v17780_v30 = vld [vmem:[%s26465_s1 + $0x19b4] sm:$0xf]  ;;  %v14829_v52 = vld [vmem:[%s26465_s1 + $0x19bc] sm:$0xf0] }
 0x30a   :  { %7715 = vmatpush.bf16.msra.mxu2 %v14784_v14  ;;  %26529 = vst [vmem:[#allocation62_spill] sm:$0xff] %v23338_v33  ;;  %v5328_v14 = vpop.f32.mrf.mxu0  ;;  %v17729_v33 = vld [vmem:[%s26465_s1 + $0x181c] sm:$0xf] }
 0x30b   :  { %7729 = vmatpush.bf16.msra.mxu3 %v14880_v48  ;;  %v5329_v45 = vadd.f32 %v5328_v14, %v23188_v29  ;;  %v14568_v48 = vor.u32 %v17714_v4, %v14565_v60  ;;  %v14856_v29 = vor.u32 %v17786_v55, %v14853_v34  ;;  %v14745_v60 = vld [vmem:[%s26465_s1 + $0x1914] sm:$0xf0]  ;;  %v17708_v55 = vld [vmem:[%s26465_s1 + $0x1774] sm:$0xf]  ;;  %v14541_v34 = vld [vmem:[%s26465_s1 + $0x177c] sm:$0xf0] }
 0x30c   :  { %7688 = vmatpush.bf16.msra.mxu0 %v14580_v19  ;;  %v17735_v19 = vld [vmem:[%s26465_s1 + $0x184c] sm:$0xf] }
 0x30d   :  { %7702 = vmatpush.bf16.msra.mxu1 %v14676_v37  ;;  %v23356_v4 = vadd.f32 %v5342_v8, %v5329_v45  ;;  %v14649_v37 = vld [vmem:[%s26465_s1 + $0x1854] sm:$0xf0]  ;;  %v17732_v45 = vld [vmem:[%s26465_s1 + $0x1834] sm:$0xf]  ;;  %v14637_v8 = vld [vmem:[%s26465_s1 + $0x183c] sm:$0xf0] }
 0x30e   :  { %7716 = vmatpush.bf16.msra.mxu2 %v14772_v61  ;;  %v17759_v61 = vld [vmem:[%s26465_s1 + $0x190c] sm:$0xf]  ;;  %v14652_v5 = vor.u32 %v17735_v19, %v14649_v37  ;;  %v7443_v19 = vpop.f32.mrf.mxu2  ;;  %v14544_v37 = vor.u32 %v17708_v55, %v14541_v34  ;;  %v14721_v55 = vld [vmem:[%s26465_s1 + $0x18e4] sm:$0xf0]  ;;  %v17777_v34 = vld [vmem:[%s26465_s1 + $0x199c] sm:$0xf] }
 0x30f   :  { %7730 = vmatpush.bf16.msra.mxu3 %v14868_v21  ;;  %v14841_v21 = vld [vmem:[%s26465_s1 + $0x19d4] sm:$0xf0]  ;;  %v14748_v14 = vor.u32 %v17759_v61, %v14745_v60  ;;  %v14640_v60 = vor.u32 %v17732_v45, %v14637_v8  ;;  %v14817_v45 = vld [vmem:[%s26465_s1 + $0x19a4] sm:$0xf0]  ;;  %v17702_v8 = vld [vmem:[%s26465_s1 + $0x1744] sm:$0xf] }
 0x310   :  { %7689 = vmatpush.bf16.msra.mxu0 %v14568_v48  ;;  %v14844_v48 = vor.u32 %v17783_v38, %v14841_v21  ;;  %v17705_v21 = vld [vmem:[%s26465_s1 + $0x175c] sm:$0xf] }
 0x311   :  { %7703 = vmatpush.bf16.msra.mxu1 %v14664_v32  ;;  %v17756_v32 = vld [vmem:[%s26465_s1 + $0x18f4] sm:$0xf] }
 0x312   :  { %7717 = vmatpush.bf16.msra.mxu2 %v14760_v16  ;;  %v14733_v16 = vld [vmem:[%s26465_s1 + $0x18fc] sm:$0xf0] }
 0x313   :  { %7731 = vmatpush.bf16.msra.mxu3 %v14856_v29  ;;  %v7457_v29 = vpop.f32.mrf.mxu3  ;;  %v14736_v38 = vor.u32 %v17756_v32, %v14733_v16  ;;  %v14517_v32 = vld [vmem:[%s26465_s1 + $0x174c] sm:$0xf0] }
 0x314   :  { %7690 = vmatpush.bf16.msra.mxu0 %v14556_v53  ;;  %v23399_v61 = vadd.f32 %v7457_v29, %v7443_v19  ;;  %v14832_v53 = vor.u32 %v17780_v30, %v14829_v52  ;;  %v17726_v52 = vld [vmem:[%s26465_s1 + $0x1804] sm:$0xf]  ;;  %v14820_v29 = vor.u32 %v17777_v34, %v14817_v45  ;;  %v15177_v34 = vld [vmem:[%s26465_s1 + $0x1c74] sm:$0xf0] }
 0x315   :  { %7704 = vmatpush.bf16.msra.mxu1 %v14652_v5  ;;  %v14625_v5 = vld [vmem:[%s26465_s1 + $0x1824] sm:$0xf0]  ;;  %v17750_v19 = vld [vmem:[%s26465_s1 + $0x18c4] sm:$0xf] }
 0x316   :  { %7718 = vmatpush.bf16.msra.mxu2 %v14748_v14  ;;  %v17753_v14 = vld [vmem:[%s26465_s1 + $0x18dc] sm:$0xf]  ;;  %v14628_v16 = vor.u32 %v17729_v33, %v14625_v5  ;;  %v17774_v33 = vld [vmem:[%s26465_s1 + $0x1984] sm:$0xf]  ;;  %v14520_v5 = vor.u32 %v17702_v8, %v14517_v32  ;;  %v15273_v8 = vld [vmem:[%s26465_s1 + $0x1d34] sm:$0xf0] }
 0x317   :  { %7732 = vmatpush.bf16.msra.mxu3 %v14844_v48  ;;  %v14532_v48 = vor.u32 %v17705_v21, %v14529_v24  ;;  %v14724_v30 = vor.u32 %v17753_v14, %v14721_v55  ;;  %v14613_v24 = vld [vmem:[%s26465_s1 + $0x180c] sm:$0xf0]  ;;  %v14985_v21 = vld [vmem:[%s26465_s1 + $0x1af4] sm:$0xf0]  ;;  %v17867_v55 = vld [vmem:[%s26465_s1 + $0x1c6c] sm:$0xf] }
 0x318   :  { %7691 = vmatpush.bf16.msra.mxu0 %v14544_v37  ;;  %v14709_v37 = vld [vmem:[%s26465_s1 + $0x18cc] sm:$0xf0]  ;;  %v15081_v14 = vld [vmem:[%s26465_s1 + $0x1bb4] sm:$0xf0]  ;;  %v14616_v45 = vor.u32 %v17726_v52, %v14613_v24  ;;  %v15180_v49 = vor.u32 %v17867_v55, %v15177_v34  ;;  %v17840_v52 = vld [vmem:[%s26465_s1 + $0x1b94] sm:$0xf] }
 0x319   :  { %7705 = vmatpush.bf16.msra.mxu1 %v14640_v60  ;;  %v14805_v60 = vld [vmem:[%s26465_s1 + $0x198c] sm:$0xf0]  ;;  %v14712_v2 = vor.u32 %v17750_v19, %v14709_v37  ;;  %v15069_v19 = vld [vmem:[%s26465_s1 + $0x1b9c] sm:$0xf0]  ;;  %v14961_v55 = vld [vmem:[%s26465_s1 + $0x1ac4] sm:$0xf0] }
 0x31a   :  { %7719 = vmatpush.bf16.msra.mxu2 %v14736_v38  ;;  %v17819_v38 = vld [vmem:[%s26465_s1 + $0x1aec] sm:$0xf]  ;;  %v14808_v32 = vor.u32 %v17774_v33, %v14805_v60  ;;  %v15165_v37 = vld [vmem:[%s26465_s1 + $0x1c5c] sm:$0xf0]  ;;  %v23491_v33 = vpop.f32.mrf.mxu0  ;;  %v17888_v60 = vld [vmem:[%s26465_s1 + $0x1d14] sm:$0xf] }
 0x31b   :  { %7733 = vmatpush.bf16.msra.mxu3 %v14832_v53  ;;  %v17843_v53 = vld [vmem:[%s26465_s1 + $0x1bac] sm:$0xf]  ;;  %v14988_v42 = vor.u32 %v17819_v38, %v14985_v21  ;;  %26530 = vst [vmem:[#allocation63_spill] sm:$0xff] %v23491_v33  ;;  %v15261_v38 = vld [vmem:[%s26465_s1 + $0x1d1c] sm:$0xf0] }
 0x31c   :  { %7692 = vmatpush.bf16.msra.mxu0 %v14532_v48  ;;  %v17891_v48 = vld [vmem:[%s26465_s1 + $0x1d2c] sm:$0xf]  ;;  %v15084_v22 = vor.u32 %v17843_v53, %v15081_v14  ;;  %v23499_v53 = vpop.f32.mrf.mxu1  ;;  %v17837_v34 = vld [vmem:[%s26465_s1 + $0x1b7c] sm:$0xf] }
 0x31d   :  { %7706 = vmatpush.bf16.msra.mxu1 %v14628_v16  ;;  %v17816_v16 = vld [vmem:[%s26465_s1 + $0x1ad4] sm:$0xf]  ;;  %v15276_v24 = vor.u32 %v17891_v48, %v15273_v8  ;;  %26531 = vst [vmem:[#allocation64_spill] sm:$0xff] %v23499_v53  ;;  %v17885_v48 = vld [vmem:[%s26465_s1 + $0x1cfc] sm:$0xf] }
 0x31e   :  { %7720 = vmatpush.bf16.msra.mxu2 %v14724_v30  ;;  %v14973_v30 = vld [vmem:[%s26465_s1 + $0x1adc] sm:$0xf0]  ;;  %v15249_v8 = vld [vmem:[%s26465_s1 + $0x1d04] sm:$0xf0] }
 0x31f   :  { %7734 = vmatpush.bf16.msra.mxu3 %v14820_v29  ;;  %v17864_v29 = vld [vmem:[%s26465_s1 + $0x1c54] sm:$0xf]  ;;  %v14976_v21 = vor.u32 %v17816_v16, %v14973_v30  ;;  %v23529_v16 = vpop.f32.mrf.mxu2 }
 0x320   :  { %7693 = vmatpush.bf16.msra.mxu0 %v14520_v5  ;;  %v15072_v5 = vor.u32 %v17840_v52, %v15069_v19  ;;  %v15168_v14 = vor.u32 %v17864_v29, %v15165_v37  ;;  %v14949_v19 = vld [vmem:[%s26465_s1 + $0x1aac] sm:$0xf0]  ;;  %v17834_v29 = vld [vmem:[%s26465_s1 + $0x1b64] sm:$0xf]  ;;  %v15252_v37 = vor.u32 %v17885_v48, %v15249_v8  ;;  %v17807_v48 = vld [vmem:[%s26465_s1 + $0x1a8c] sm:$0xf] }
 0x321   :  { %7707 = vmatpush.bf16.msra.mxu1 %v14616_v45  ;;  %v15153_v45 = vld [vmem:[%s26465_s1 + $0x1c44] sm:$0xf0]  ;;  %v14937_v8 = vld [vmem:[%s26465_s1 + $0x1a94] sm:$0xf0] }
 0x322   :  { %7721 = vmatpush.bf16.msra.mxu2 %v14712_v2  ;;  %v17813_v2 = vld [vmem:[%s26465_s1 + $0x1abc] sm:$0xf] }
 0x323   :  { %7735 = vmatpush.bf16.msra.mxu3 %v14808_v32  ;;  %7694 = vmatmul.bf16.vlgmr.msra.gmra.mxu0 %v18716_v44  ;;  %v14964_v32 = vor.u32 %v17813_v2, %v14961_v55  ;;  %v17882_v2 = vld [vmem:[%s26465_s1 + $0x1ce4] sm:$0xf]  ;;  %v15237_v55 = vld [vmem:[%s26465_s1 + $0x1cec] sm:$0xf0] }
 0x324   :  { %7742 = vmatpush.bf16.msrb.mxu0 %v14988_v42  ;;  %v15264_v42 = vor.u32 %v17888_v60, %v15261_v38  ;;  %7708 = vmatmul.bf16.vlgmr.msra.gmra.mxu1 %v18714_v43  ;;  %v23540_v60 = vpop.f32.mrf.mxu3  ;;  %v15045_v38 = vld [vmem:[%s26465_s1 + $0x1b6c] sm:$0xf0] }
 0x325   :  { %7756 = vmatpush.bf16.msrb.mxu1 %v15084_v22  ;;  %v17861_v22 = vld [vmem:[%s26465_s1 + $0x1c3c] sm:$0xf]  ;;  %7722 = vmatmul.bf16.vlgmr.msra.gmra.mxu2 %v18724_v47 }
 0x326   :  { %7770 = vmatpush.bf16.msrb.mxu2 %v15180_v49  ;;  %v15057_v49 = vld [vmem:[%s26465_s1 + $0x1b84] sm:$0xf0]  ;;  %7736 = vmatmul.bf16.vlgmr.msra.gmra.mxu3 %v18931_v31  ;;  %v15156_v52 = vor.u32 %v17861_v22, %v15153_v45  ;;  %v7485_v45 = vpop.f32.mrf.mxu1 }
 0x327   :  { %7784 = vmatpush.bf16.msrb.mxu3 %v15276_v24  ;;  %v15060_v30 = vor.u32 %v17837_v34, %v15057_v49  ;;  %v17810_v24 = vld [vmem:[%s26465_s1 + $0x1aa4] sm:$0xf]  ;;  %v15048_v49 = vor.u32 %v17834_v29, %v15045_v38  ;;  %v17879_v29 = vld [vmem:[%s26465_s1 + $0x1ccc] sm:$0xf]  ;;  %v14940_v38 = vor.u32 %v17807_v48, %v14937_v8  ;;  %v17876_v8 = vld [vmem:[%s26465_s1 + $0x1cb4] sm:$0xf] }
 0x328   :  { %7743 = vmatpush.bf16.msrb.mxu0 %v14976_v21  ;;  %v17858_v21 = vld [vmem:[%s26465_s1 + $0x1c24] sm:$0xf] }
 0x329   :  { %7757 = vmatpush.bf16.msrb.mxu1 %v15072_v5  ;;  %v15141_v5 = vld [vmem:[%s26465_s1 + $0x1c2c] sm:$0xf0] }
 0x32a   :  { %7771 = vmatpush.bf16.msrb.mxu2 %v15168_v14  ;;  %v7471_v14 = vpop.f32.mrf.mxu0  ;;  %v15144_v22 = vor.u32 %v17858_v21, %v15141_v5 }
 0x32b   :  { %7785 = vmatpush.bf16.msrb.mxu3 %v15264_v42  ;;  %v7472_v34 = vadd.f32 %v7471_v14, %v23399_v61  ;;  %v14952_v42 = vor.u32 %v17810_v24, %v14949_v19  ;;  %v15240_v61 = vor.u32 %v17882_v2, %v15237_v55  ;;  %v15129_v19 = vld [vmem:[%s26465_s1 + $0x1c14] sm:$0xf0]  ;;  %v17804_v14 = vld [vmem:[%s26465_s1 + $0x1a74] sm:$0xf]  ;;  %v14925_v2 = vld [vmem:[%s26465_s1 + $0x1a7c] sm:$0xf0] }
 0x32c   :  { %7744 = vmatpush.bf16.msrb.mxu0 %v14964_v32  ;;  %v17831_v32 = vld [vmem:[%s26465_s1 + $0x1b4c] sm:$0xf]  ;;  %v17828_v55 = vld [vmem:[%s26465_s1 + $0x1b34] sm:$0xf] }
 0x32d   :  { %7758 = vmatpush.bf16.msrb.mxu1 %v15060_v30  ;;  %v7486_v24 = vadd.f32 %v7485_v45, %v7472_v34  ;;  %v15033_v30 = vld [vmem:[%s26465_s1 + $0x1b54] sm:$0xf0]  ;;  %v15117_v45 = vld [vmem:[%s26465_s1 + $0x1bfc] sm:$0xf0] }
 0x32e   :  { %7772 = vmatpush.bf16.msrb.mxu2 %v15156_v52  ;;  %v17855_v52 = vld [vmem:[%s26465_s1 + $0x1c0c] sm:$0xf]  ;;  %v15036_v21 = vor.u32 %v17831_v32, %v15033_v30  ;;  %v15213_v32 = vld [vmem:[%s26465_s1 + $0x1cbc] sm:$0xf0]  ;;  %v14928_v30 = vor.u32 %v17804_v14, %v14925_v2  ;;  %v15105_v2 = vld [vmem:[%s26465_s1 + $0x1be4] sm:$0xf0] }
 0x32f   :  { %7786 = vmatpush.bf16.msrb.mxu3 %v15252_v37  ;;  %v15225_v37 = vld [vmem:[%s26465_s1 + $0x1cd4] sm:$0xf0]  ;;  %v15132_v5 = vor.u32 %v17855_v52, %v15129_v19  ;;  %v15216_v14 = vor.u32 %v17876_v8, %v15213_v32  ;;  %v17822_v8 = vld [vmem:[%s26465_s1 + $0x1b04] sm:$0xf]  ;;  %v14997_v32 = vld [vmem:[%s26465_s1 + $0x1b0c] sm:$0xf0] }
 0x330   :  { %7745 = vmatpush.bf16.msrb.mxu0 %v14952_v42  ;;  %v15228_v34 = vor.u32 %v17879_v29, %v15225_v37  ;;  %v7499_v42 = vpop.f32.mrf.mxu2  ;;  %v14913_v37 = vld [vmem:[%s26465_s1 + $0x1a64] sm:$0xf0] }
 0x331   :  { %7759 = vmatpush.bf16.msrb.mxu1 %v15048_v49  ;;  %v15021_v49 = vld [vmem:[%s26465_s1 + $0x1b3c] sm:$0xf0]  ;;  %v7500_v48 = vadd.f32 %v7499_v42, %v7486_v24  ;;  %v17801_v24 = vld [vmem:[%s26465_s1 + $0x1a5c] sm:$0xf] }
 0x332   :  { %7773 = vmatpush.bf16.msrb.mxu2 %v15144_v22  ;;  %v17852_v22 = vld [vmem:[%s26465_s1 + $0x1bf4] sm:$0xf]  ;;  %v15024_v19 = vor.u32 %v17828_v55, %v15021_v49  ;;  %v17873_v55 = vld [vmem:[%s26465_s1 + $0x1c9c] sm:$0xf]  ;;  %v14916_v42 = vor.u32 %v17801_v24, %v14913_v37  ;;  %v17798_v49 = vld [vmem:[%s26465_s1 + $0x1a44] sm:$0xf] }
 0x333   :  { %7787 = vmatpush.bf16.msrb.mxu3 %v15240_v61  ;;  %v7513_v61 = vpop.f32.mrf.mxu3  ;;  %v15120_v29 = vor.u32 %v17852_v22, %v15117_v45  ;;  %v14901_v22 = vld [vmem:[%s26465_s1 + $0x1a4c] sm:$0xf0] }
 0x334   :  { %7746 = vmatpush.bf16.msrb.mxu0 %v14940_v38  ;;  %v23606_v52 = vadd.f32 %v7513_v61, %v7500_v48  ;;  %v17825_v38 = vld [vmem:[%s26465_s1 + $0x1b1c] sm:$0xf]  ;;  %v17846_v61 = vld [vmem:[%s26465_s1 + $0x1bc4] sm:$0xf]  ;;  %v15189_v24 = vld [vmem:[%s26465_s1 + $0x1c8c] sm:$0xf0] }
 0x335   :  { %7760 = vmatpush.bf16.msrb.mxu1 %v15036_v21  ;;  %v15009_v21 = vld [vmem:[%s26465_s1 + $0x1b24] sm:$0xf0]  ;;  %v14127_v37 = vld [vmem:[%s26465_s1 + $0x1430] sm:$0xf] }
 0x336   :  { %7774 = vmatpush.bf16.msrb.mxu2 %v15132_v5  ;;  %v17849_v5 = vld [vmem:[%s26465_s1 + $0x1bdc] sm:$0xf]  ;;  %v15012_v45 = vor.u32 %v17825_v38, %v15009_v21  ;;  %v14904_v21 = vor.u32 %v17798_v49, %v14901_v22 }
 0x337   :  { %7788 = vmatpush.bf16.msrb.mxu3 %v15228_v34  ;;  %v15201_v34 = vld [vmem:[%s26465_s1 + $0x1ca4] sm:$0xf0]  ;;  %v15108_v48 = vor.u32 %v17849_v5, %v15105_v2  ;;  %v17605_v38 = vld [vmem:[%s26465_s1 + $0x1438] sm:$0xf0]  ;;  %v14319_v2 = vld [vmem:[%s26465_s1 + $0x15b0] sm:$0xf] }
 0x338   :  { %7747 = vmatpush.bf16.msrb.mxu0 %v14928_v30  ;;  %v15204_v30 = vor.u32 %v17873_v55, %v15201_v34  ;;  %v17629_v5 = vld [vmem:[%s26465_s1 + $0x14f8] sm:$0xf0]  ;;  %v15000_v34 = vor.u32 %v17822_v8, %v14997_v32  ;;  %v14128_v33 = vor.u32 %v17605_v38, %v14127_v37  ;;  %v14211_v8 = vld [vmem:[%s26465_s1 + $0x14d8] sm:$0xf]  ;;  %v17674_v37 = vld [vmem:[%s26465_s1 + $0x1660] sm:$0xf0]  ;;  %v23706_v38 = vpop.f32.mrf.mxu1 }
 0x339   :  { %7761 = vmatpush.bf16.msrb.mxu1 %v15024_v19  ;;  %v15093_v19 = vld [vmem:[%s26465_s1 + $0x1bcc] sm:$0xf0]  ;;  %v17653_v55 = vld [vmem:[%s26465_s1 + $0x15b8] sm:$0xf0]  ;;  %26532 = vst [vmem:[#allocation65_spill] sm:$0xff] %v23706_v38 }
 0x33a   :  { %7775 = vmatpush.bf16.msrb.mxu2 %v15120_v29  ;;  %v17870_v29 = vld [vmem:[%s26465_s1 + $0x1c84] sm:$0xf]  ;;  %v15096_v53 = vor.u32 %v17846_v61, %v15093_v19  ;;  %v17677_v49 = vld [vmem:[%s26465_s1 + $0x1678] sm:$0xf0]  ;;  %v14320_v12 = vor.u32 %v17653_v55, %v14319_v2  ;;  %v17599_v2 = vld [vmem:[%s26465_s1 + $0x1408] sm:$0xf0] }
 0x33b   :  { %7789 = vmatpush.bf16.msrb.mxu3 %v15216_v14  ;;  %v14223_v14 = vld [vmem:[%s26465_s1 + $0x14f0] sm:$0xf]  ;;  %v15192_v22 = vor.u32 %v17870_v29, %v15189_v24  ;;  %v17626_v61 = vld [vmem:[%s26465_s1 + $0x14e0] sm:$0xf0]  ;;  %v23698_v29 = vpop.f32.mrf.mxu0  ;;  %v14403_v24 = vld [vmem:[%s26465_s1 + $0x1658] sm:$0xf] }
 0x33c   :  { %7748 = vmatpush.bf16.msrb.mxu0 %v14916_v42  ;;  %v14415_v42 = vld [vmem:[%s26465_s1 + $0x1670] sm:$0xf]  ;;  %v14224_v9 = vor.u32 %v17629_v5, %v14223_v14  ;;  %v17650_v19 = vld [vmem:[%s26465_s1 + $0x15a0] sm:$0xf0]  ;;  %v14199_v55 = vld [vmem:[%s26465_s1 + $0x14c0] sm:$0xf] }
 0x33d   :  { %7762 = vmatpush.bf16.msrb.mxu1 %v15012_v45  ;;  %v14115_v45 = vld [vmem:[%s26465_s1 + $0x1418] sm:$0xf]  ;;  %v14416_v32 = vor.u32 %v17677_v49, %v14415_v42  ;;  %v14391_v42 = vld [vmem:[%s26465_s1 + $0x1640] sm:$0xf]  ;;  %v17671_v49 = vld [vmem:[%s26465_s1 + $0x1648] sm:$0xf0] }
 0x33e   :  { %7776 = vmatpush.bf16.msrb.mxu2 %v15108_v48  ;;  %v17602_v48 = vld [vmem:[%s26465_s1 + $0x1420] sm:$0xf0] }
 0x33f   :  { %7790 = vmatpush.bf16.msrb.mxu3 %v15204_v30  ;;  %v14307_v30 = vld [vmem:[%s26465_s1 + $0x1598] sm:$0xf]  ;;  %v14116_v14 = vor.u32 %v17602_v48, %v14115_v45 }
 0x340   :  { %7749 = vmatpush.bf16.msrb.mxu0 %v14904_v21  ;;  %v14212_v21 = vor.u32 %v17626_v61, %v14211_v8  ;;  %v14308_v5 = vor.u32 %v17650_v19, %v14307_v30  ;;  %v14091_v8 = vld [vmem:[%s26465_s1 + $0x13e8] sm:$0xf]  ;;  %v23745_v30 = vpop.f32.mrf.mxu2  ;;  %v14392_v19 = vor.u32 %v17671_v49, %v14391_v42  ;;  %v14079_v42 = vld [vmem:[%s26465_s1 + $0x13d0] sm:$0xf]  ;;  %v17593_v49 = vld [vmem:[%s26465_s1 + $0x13d8] sm:$0xf0] }
 0x341   :  { %7763 = vmatpush.bf16.msrb.mxu1 %v15000_v34  ;;  %v17647_v34 = vld [vmem:[%s26465_s1 + $0x1588] sm:$0xf0]  ;;  %v14187_v61 = vld [vmem:[%s26465_s1 + $0x14a8] sm:$0xf]  ;;  %26533 = vst [vmem:[#allocation66_spill] sm:$0xff] %v23745_v30 }
 0x342   :  { %7777 = vmatpush.bf16.msrb.mxu2 %v15096_v53  ;;  %v14103_v53 = vld [vmem:[%s26465_s1 + $0x1400] sm:$0xf] }
 0x343   :  { %7791 = vmatpush.bf16.msrb.mxu3 %v15192_v22  ;;  %7750 = vmatmul.bf16.vlgmr.msrb.gmra.mxu0 %v18944_v36  ;;  %v14104_v22 = vor.u32 %v17599_v2, %v14103_v53  ;;  %v14379_v53 = vld [vmem:[%s26465_s1 + $0x1628] sm:$0xf]  ;;  %v17668_v2 = vld [vmem:[%s26465_s1 + $0x1630] sm:$0xf0] }
 0x344   :  { %7798 = vmatpush.bf16.msra.mxu0 %v14128_v33  ;;  %v14404_v33 = vor.u32 %v17674_v37, %v14403_v24  ;;  %7764 = vmatmul.bf16.vlgmr.msrb.gmra.mxu1 %v18942_v35  ;;  %v17620_v24 = vld [vmem:[%s26465_s1 + $0x14b0] sm:$0xf0]  ;;  %v14283_v37 = vld [vmem:[%s26465_s1 + $0x1568] sm:$0xf] }
 0x345   :  { %7812 = vmatpush.bf16.msra.mxu1 %v14224_v9  ;;  %v14295_v9 = vld [vmem:[%s26465_s1 + $0x1580] sm:$0xf]  ;;  %7778 = vmatmul.bf16.vlgmr.msrb.gmra.mxu2 %v18952_v40 }
 0x346   :  { %7826 = vmatpush.bf16.msra.mxu2 %v14320_v12  ;;  %v17623_v12 = vld [vmem:[%s26465_s1 + $0x14c8] sm:$0xf0]  ;;  %7792 = vmatmul.bf16.vlgmr.msrb.gmra.mxu3 %v19141_v25  ;;  %v14296_v48 = vor.u32 %v17647_v34, %v14295_v9  ;;  %v14188_v9 = vor.u32 %v17620_v24, %v14187_v61  ;;  %v14367_v61 = vld [vmem:[%s26465_s1 + $0x1610] sm:$0xf]  ;;  %v14080_v24 = vor.u32 %v17593_v49, %v14079_v42 }
 0x347   :  { %7840 = vmatpush.bf16.msra.mxu3 %v14416_v32  ;;  %v14200_v45 = vor.u32 %v17623_v12, %v14199_v55  ;;  %v17596_v32 = vld [vmem:[%s26465_s1 + $0x13f0] sm:$0xf0]  ;;  %v7541_v12 = vpop.f32.mrf.mxu1 }
 0x348   :  { %7799 = vmatpush.bf16.msra.mxu0 %v14116_v14  ;;  %v17644_v14 = vld [vmem:[%s26465_s1 + $0x1570] sm:$0xf0] }
 0x349   :  { %7813 = vmatpush.bf16.msra.mxu1 %v14212_v21  ;;  %v23756_v21 = vpop.f32.mrf.mxu3  ;;  %v14284_v34 = vor.u32 %v17644_v14, %v14283_v37 }
 0x34a   :  { %7827 = vmatpush.bf16.msra.mxu2 %v14308_v5  ;;  %26534 = vst [vmem:[#allocation67_spill] sm:$0xff] %v23756_v21  ;;  %v7527_v5 = vpop.f32.mrf.mxu0 }
 0x34b   :  { %7841 = vmatpush.bf16.msra.mxu3 %v14404_v33  ;;  %v7528_v55 = vadd.f32 %v7527_v5, %v23606_v52  ;;  %v14092_v33 = vor.u32 %v17596_v32, %v14091_v8  ;;  %v14380_v52 = vor.u32 %v17668_v2, %v14379_v53  ;;  %v17641_v32 = vld [vmem:[%s26465_s1 + $0x1558] sm:$0xf0]  ;;  %v14067_v5 = vld [vmem:[%s26465_s1 + $0x13b8] sm:$0xf]  ;;  %v17590_v53 = vld [vmem:[%s26465_s1 + $0x13c0] sm:$0xf0] }
 0x34c   :  { %7800 = vmatpush.bf16.msra.mxu0 %v14104_v22  ;;  %v14175_v22 = vld [vmem:[%s26465_s1 + $0x1490] sm:$0xf]  ;;  %v14163_v2 = vld [vmem:[%s26465_s1 + $0x1478] sm:$0xf] }
 0x34d   :  { %7814 = vmatpush.bf16.msra.mxu1 %v14200_v45  ;;  %v7542_v8 = vadd.f32 %v7541_v12, %v7528_v55  ;;  %v17617_v45 = vld [vmem:[%s26465_s1 + $0x1498] sm:$0xf0]  ;;  %v17614_v12 = vld [vmem:[%s26465_s1 + $0x1480] sm:$0xf0] }
 0x34e   :  { %7828 = vmatpush.bf16.msra.mxu2 %v14296_v48  ;;  %v14271_v48 = vld [vmem:[%s26465_s1 + $0x1550] sm:$0xf]  ;;  %v14176_v37 = vor.u32 %v17617_v45, %v14175_v22  ;;  %v14355_v22 = vld [vmem:[%s26465_s1 + $0x15f8] sm:$0xf]  ;;  %v14068_v45 = vor.u32 %v17590_v53, %v14067_v5  ;;  %v17635_v5 = vld [vmem:[%s26465_s1 + $0x1528] sm:$0xf0] }
 0x34f   :  { %7842 = vmatpush.bf16.msra.mxu3 %v14392_v19  ;;  %v17665_v19 = vld [vmem:[%s26465_s1 + $0x1618] sm:$0xf0]  ;;  %v14272_v14 = vor.u32 %v17641_v32, %v14271_v48  ;;  %v14164_v32 = vor.u32 %v17614_v12, %v14163_v2  ;;  %v14343_v53 = vld [vmem:[%s26465_s1 + $0x15e0] sm:$0xf]  ;;  %v17659_v2 = vld [vmem:[%s26465_s1 + $0x15e8] sm:$0xf0] }
 0x350   :  { %7801 = vmatpush.bf16.msra.mxu0 %v14092_v33  ;;  %v14368_v55 = vor.u32 %v17665_v19, %v14367_v61  ;;  %v7555_v33 = vpop.f32.mrf.mxu2  ;;  %v17587_v19 = vld [vmem:[%s26465_s1 + $0x13a8] sm:$0xf0]  ;;  %v14043_v12 = vld [vmem:[%s26465_s1 + $0x1388] sm:$0xf] }
 0x351   :  { %7815 = vmatpush.bf16.msra.mxu1 %v14188_v9  ;;  %v14259_v9 = vld [vmem:[%s26465_s1 + $0x1538] sm:$0xf]  ;;  %v7556_v42 = vadd.f32 %v7555_v33, %v7542_v8  ;;  %v7569_v49 = vpop.f32.mrf.mxu3  ;;  %v14055_v8 = vld [vmem:[%s26465_s1 + $0x13a0] sm:$0xf] }
 0x352   :  { %7829 = vmatpush.bf16.msra.mxu2 %v14284_v34  ;;  %v17638_v34 = vld [vmem:[%s26465_s1 + $0x1540] sm:$0xf0]  ;;  %v14151_v33 = vld [vmem:[%s26465_s1 + $0x1460] sm:$0xf] }
 0x353   :  { %7843 = vmatpush.bf16.msra.mxu3 %v14380_v52  ;;  %v17662_v52 = vld [vmem:[%s26465_s1 + $0x1600] sm:$0xf0]  ;;  %v23813_v48 = vadd.f32 %v7569_v49, %v7556_v42  ;;  %v14260_v61 = vor.u32 %v17638_v34, %v14259_v9  ;;  %v17584_v9 = vld [vmem:[%s26465_s1 + $0x1390] sm:$0xf0]  ;;  %v14139_v49 = vld [vmem:[%s26465_s1 + $0x1448] sm:$0xf] }
 0x354   :  { %7802 = vmatpush.bf16.msra.mxu0 %v14080_v24  ;;  %v14356_v24 = vor.u32 %v17662_v52, %v14355_v22  ;;  %v17608_v22 = vld [vmem:[%s26465_s1 + $0x1450] sm:$0xf0]  ;;  %v14235_v52 = vld [vmem:[%s26465_s1 + $0x1508] sm:$0xf] }
 0x355   :  { %7816 = vmatpush.bf16.msra.mxu1 %v14176_v37  ;;  %v17611_v37 = vld [vmem:[%s26465_s1 + $0x1468] sm:$0xf0] }
 0x356   :  { %7830 = vmatpush.bf16.msra.mxu2 %v14272_v14  ;;  %v14247_v14 = vld [vmem:[%s26465_s1 + $0x1520] sm:$0xf]  ;;  %v14152_v34 = vor.u32 %v17611_v37, %v14151_v33  ;;  %v17701_v33 = vld [vmem:[%s26465_s1 + $0x1738] sm:$0xf0]  ;;  %v14044_v37 = vor.u32 %v17584_v9, %v14043_v12 }
 0x357   :  { %7844 = vmatpush.bf16.msra.mxu3 %v14368_v55  ;;  %v14056_v55 = vor.u32 %v17587_v19, %v14055_v8  ;;  %v14248_v42 = vor.u32 %v17635_v5, %v14247_v14  ;;  %v17656_v8 = vld [vmem:[%s26465_s1 + $0x15d0] sm:$0xf0]  ;;  %v14511_v19 = vld [vmem:[%s26465_s1 + $0x1730] sm:$0xf]  ;;  %v17725_v14 = vld [vmem:[%s26465_s1 + $0x17f8] sm:$0xf0] }
 0x358   :  { %7803 = vmatpush.bf16.msra.mxu0 %v14068_v45  ;;  %v14344_v45 = vor.u32 %v17659_v2, %v14343_v53  ;;  %v14703_v5 = vld [vmem:[%s26465_s1 + $0x18b0] sm:$0xf]  ;;  %v17749_v53 = vld [vmem:[%s26465_s1 + $0x18b8] sm:$0xf0]  ;;  %v14140_v2 = vor.u32 %v17608_v22, %v14139_v49  ;;  %v14512_v30 = vor.u32 %v17701_v33, %v14511_v19  ;;  %v14595_v49 = vld [vmem:[%s26465_s1 + $0x17d8] sm:$0xf]  ;;  %v23913_v33 = vpop.f32.mrf.mxu1 }
 0x359   :  { %7817 = vmatpush.bf16.msra.mxu1 %v14164_v32  ;;  %v17632_v32 = vld [vmem:[%s26465_s1 + $0x1510] sm:$0xf0]  ;;  %v17773_v12 = vld [vmem:[%s26465_s1 + $0x1978] sm:$0xf0]  ;;  %v14704_v0 = vor.u32 %v17749_v53, %v14703_v5  ;;  %v17770_v19 = vld [vmem:[%s26465_s1 + $0x1960] sm:$0xf0] }
 0x35a   :  { %7831 = vmatpush.bf16.msra.mxu2 %v14260_v61  ;;  %v14331_v61 = vld [vmem:[%s26465_s1 + $0x15c8] sm:$0xf]  ;;  %v14236_v21 = vor.u32 %v17632_v32, %v14235_v52  ;;  %v17722_v52 = vld [vmem:[%s26465_s1 + $0x17e0] sm:$0xf0]  ;;  %26536 = vst [vmem:[#allocation69_spill] sm:$0xff] %v23913_v33 }
 0x35b   :  { %7845 = vmatpush.bf16.msra.mxu3 %v14356_v24  ;;  %v14607_v24 = vld [vmem:[%s26465_s1 + $0x17f0] sm:$0xf]  ;;  %v14332_v9 = vor.u32 %v17656_v8, %v14331_v61  ;;  %v17746_v32 = vld [vmem:[%s26465_s1 + $0x18a0] sm:$0xf0]  ;;  %v23905_v61 = vpop.f32.mrf.mxu0  ;;  %v14787_v8 = vld [vmem:[%s26465_s1 + $0x1958] sm:$0xf] }
 0x35c   :  { %7804 = vmatpush.bf16.msra.mxu0 %v14056_v55  ;;  %v14799_v55 = vld [vmem:[%s26465_s1 + $0x1970] sm:$0xf]  ;;  %v14608_v63 = vor.u32 %v17725_v14, %v14607_v24  ;;  %26535 = vst [vmem:[#allocation68_spill] sm:$0xff] %v23905_v61  ;;  %v17695_v5 = vld [vmem:[%s26465_s1 + $0x1708] sm:$0xf0] }
 0x35d   :  { %7818 = vmatpush.bf16.msra.mxu1 %v14152_v34  ;;  %v14499_v34 = vld [vmem:[%s26465_s1 + $0x1718] sm:$0xf]  ;;  %v14800_v22 = vor.u32 %v17773_v12, %v14799_v55  ;;  %v14583_v53 = vld [vmem:[%s26465_s1 + $0x17c0] sm:$0xf]  ;;  %v17767_v12 = vld [vmem:[%s26465_s1 + $0x1948] sm:$0xf0] }
 0x35e   :  { %7832 = vmatpush.bf16.msra.mxu2 %v14248_v42  ;;  %v17698_v42 = vld [vmem:[%s26465_s1 + $0x1720] sm:$0xf0]  ;;  %v14775_v55 = vld [vmem:[%s26465_s1 + $0x1940] sm:$0xf] }
 0x35f   :  { %7846 = vmatpush.bf16.msra.mxu3 %v14344_v45  ;;  %v14691_v45 = vld [vmem:[%s26465_s1 + $0x1898] sm:$0xf]  ;;  %v14500_v24 = vor.u32 %v17698_v42, %v14499_v34 }
 0x360   :  { %7805 = vmatpush.bf16.msra.mxu0 %v14044_v37  ;;  %v14596_v37 = vor.u32 %v17722_v52, %v14595_v49  ;;  %v14692_v14 = vor.u32 %v17746_v32, %v14691_v45  ;;  %v14475_v49 = vld [vmem:[%s26465_s1 + $0x16e8] sm:$0xf]  ;;  %v23952_v45 = vpop.f32.mrf.mxu2  ;;  %v14776_v32 = vor.u32 %v17767_v12, %v14775_v55  ;;  %v17689_v55 = vld [vmem:[%s26465_s1 + $0x16d8] sm:$0xf0]  ;;  %v14559_v12 = vld [vmem:[%s26465_s1 + $0x1790] sm:$0xf] }
 0x361   :  { %7819 = vmatpush.bf16.msra.mxu1 %v14140_v2  ;;  %v14788_v2 = vor.u32 %v17770_v19, %v14787_v8  ;;  %v14571_v52 = vld [vmem:[%s26465_s1 + $0x17a8] sm:$0xf]  ;;  %26537 = vst [vmem:[#allocation70_spill] sm:$0xff] %v23952_v45  ;;  %v17716_v8 = vld [vmem:[%s26465_s1 + $0x17b0] sm:$0xf0] }
 0x362   :  { %7833 = vmatpush.bf16.msra.mxu2 %v14236_v21  ;;  %v14487_v21 = vld [vmem:[%s26465_s1 + $0x1700] sm:$0xf]  ;;  %v14667_v19 = vld [vmem:[%s26465_s1 + $0x1868] sm:$0xf] }
 0x363   :  { %7847 = vmatpush.bf16.msra.mxu3 %v14332_v9  ;;  %7806 = vmatmul.bf16.vlgmr.msra.gmra.mxu0 %v18481_v58  ;;  %v14488_v9 = vor.u32 %v17695_v5, %v14487_v21  ;;  %v17764_v21 = vld [vmem:[%s26465_s1 + $0x1930] sm:$0xf0] }
 0x364   :  { %7854 = vmatpush.bf16.msrb.mxu0 %v14512_v30  ;;  %v17743_v30 = vld [vmem:[%s26465_s1 + $0x1888] sm:$0xf0]  ;;  %7820 = vmatmul.bf16.vlgmr.msra.gmra.mxu1 %v18517_v10 }
 0x365   :  { %7868 = vmatpush.bf16.msrb.mxu1 %v14608_v63  ;;  %v14679_v63 = vld [vmem:[%s26465_s1 + $0x1880] sm:$0xf]  ;;  %7834 = vmatmul.bf16.vlgmr.msra.gmra.mxu2 %v18495_v1 }
 0x366   :  { %7882 = vmatpush.bf16.msrb.mxu2 %v14704_v0  ;;  %v17719_v0 = vld [vmem:[%s26465_s1 + $0x17c8] sm:$0xf0]  ;;  %7848 = vmatmul.bf16.vlgmr.msra.gmra.mxu3 %v18531_v17  ;;  %v14680_v42 = vor.u32 %v17743_v30, %v14679_v63  ;;  %v14463_v30 = vld [vmem:[%s26465_s1 + $0x16d0] sm:$0xf] }
 0x367   :  { %7896 = vmatpush.bf16.msrb.mxu3 %v14800_v22  ;;  %v14584_v34 = vor.u32 %v17719_v0, %v14583_v53  ;;  %v17692_v22 = vld [vmem:[%s26465_s1 + $0x16f0] sm:$0xf0]  ;;  %v14572_v0 = vor.u32 %v17716_v8, %v14571_v52  ;;  %v17761_v52 = vld [vmem:[%s26465_s1 + $0x1918] sm:$0xf0] }
 0x368   :  { %7855 = vmatpush.bf16.msrb.mxu0 %v14500_v24  ;;  %v17740_v24 = vld [vmem:[%s26465_s1 + $0x1870] sm:$0xf0]  ;;  %v14476_v53 = vor.u32 %v17692_v22, %v14475_v49  ;;  %v17737_v49 = vld [vmem:[%s26465_s1 + $0x1858] sm:$0xf0]  ;;  %v14751_v22 = vld [vmem:[%s26465_s1 + $0x1910] sm:$0xf] }
 0x369   :  { %7869 = vmatpush.bf16.msrb.mxu1 %v14596_v37  ;;  %v7583_v37 = vpop.f32.mrf.mxu0  ;;  %v14668_v63 = vor.u32 %v17740_v24, %v14667_v19  ;;  %v14451_v24 = vld [vmem:[%s26465_s1 + $0x16b8] sm:$0xf] }
 0x36a   :  { %7883 = vmatpush.bf16.msrb.mxu2 %v14692_v14  ;;  %v14763_v14 = vld [vmem:[%s26465_s1 + $0x1928] sm:$0xf]  ;;  %v7584_v5 = vadd.f32 %v7583_v37, %v23813_v48  ;;  %v17686_v37 = vld [vmem:[%s26465_s1 + $0x16c0] sm:$0xf0] }
 0x36b   :  { %7897 = vmatpush.bf16.msrb.mxu3 %v14788_v2  ;;  %v7597_v2 = vpop.f32.mrf.mxu1  ;;  %v14764_v48 = vor.u32 %v17764_v21, %v14763_v14  ;;  %v14547_v14 = vld [vmem:[%s26465_s1 + $0x1778] sm:$0xf]  ;;  %v14752_v21 = vor.u32 %v17761_v52, %v14751_v22  ;;  %v17683_v22 = vld [vmem:[%s26465_s1 + $0x16a8] sm:$0xf0]  ;;  %v14535_v52 = vld [vmem:[%s26465_s1 + $0x1760] sm:$0xf] }
 0x36c   :  { %7856 = vmatpush.bf16.msrb.mxu0 %v14488_v9  ;;  %v7598_v9 = vadd.f32 %v7597_v2, %v7584_v5  ;;  %v7611_v5 = vpop.f32.mrf.mxu2  ;;  %v14643_v2 = vld [vmem:[%s26465_s1 + $0x1838] sm:$0xf] }
 0x36d   :  { %7870 = vmatpush.bf16.msrb.mxu1 %v14584_v34  ;;  %v17713_v34 = vld [vmem:[%s26465_s1 + $0x1798] sm:$0xf0] }
 0x36e   :  { %7884 = vmatpush.bf16.msrb.mxu2 %v14680_v42  ;;  %v14655_v42 = vld [vmem:[%s26465_s1 + $0x1850] sm:$0xf]  ;;  %v14560_v8 = vor.u32 %v17713_v34, %v14559_v12  ;;  %v14452_v12 = vor.u32 %v17686_v37, %v14451_v24  ;;  %v14727_v24 = vld [vmem:[%s26465_s1 + $0x18e0] sm:$0xf]  ;;  %v17755_v37 = vld [vmem:[%s26465_s1 + $0x18e8] sm:$0xf0] }
 0x36f   :  { %7898 = vmatpush.bf16.msrb.mxu3 %v14776_v32  ;;  %v14464_v32 = vor.u32 %v17689_v55, %v14463_v30  ;;  %v14656_v19 = vor.u32 %v17737_v49, %v14655_v42  ;;  %v14739_v30 = vld [vmem:[%s26465_s1 + $0x18f8] sm:$0xf]  ;;  %v17758_v55 = vld [vmem:[%s26465_s1 + $0x1900] sm:$0xf0] }
 0x370   :  { %7857 = vmatpush.bf16.msrb.mxu0 %v14476_v53  ;;  %v17710_v53 = vld [vmem:[%s26465_s1 + $0x1780] sm:$0xf0] }
 0x371   :  { %7871 = vmatpush.bf16.msrb.mxu1 %v14572_v0  ;;  %v17734_v0 = vld [vmem:[%s26465_s1 + $0x1840] sm:$0xf0]  ;;  %v14548_v42 = vor.u32 %v17710_v53, %v14547_v14 }
 0x372   :  { %7885 = vmatpush.bf16.msrb.mxu2 %v14668_v63  ;;  %v7612_v63 = vadd.f32 %v7611_v5, %v7598_v9  ;;  %v14644_v49 = vor.u32 %v17734_v0, %v14643_v2  ;;  %v14439_v9 = vld [vmem:[%s26465_s1 + $0x16a0] sm:$0xf]  ;;  %v17680_v5 = vld [vmem:[%s26465_s1 + $0x1690] sm:$0xf0]  ;;  %v14523_v0 = vld [vmem:[%s26465_s1 + $0x1748] sm:$0xf] }
 0x373   :  { %7899 = vmatpush.bf16.msrb.mxu3 %v14764_v48  ;;  %v26538_v48 = vmax.f32 %v20027_v56, %v21941_v28  ;;  %v14740_v56 = vor.u32 %v17758_v55, %v14739_v30  ;;  %v17707_v28 = vld [vmem:[%s26465_s1 + $0x1768] sm:$0xf0]  ;;  %v14440_v14 = vor.u32 %v17683_v22, %v14439_v9  ;;  %v14619_v30 = vld [vmem:[%s26465_s1 + $0x1808] sm:$0xf]  ;;  %v14728_v55 = vor.u32 %v17755_v37, %v14727_v24  ;;  %v17797_v9 = vld [vmem:[%s26465_s1 + $0x1a38] sm:$0xf0] }
 0x374   :  { %7858 = vmatpush.bf16.msrb.mxu0 %v14464_v32  ;;  %v24032_v32 = vpop.f32.mrf.mxu3  ;;  %v14536_v53 = vor.u32 %v17707_v28, %v14535_v52  ;;  %v14991_v22 = vld [vmem:[%s26465_s1 + $0x1af0] sm:$0xf] }
 0x375   :  { %7872 = vmatpush.bf16.msrb.mxu1 %v14560_v8  ;;  %v24021_v34 = vmax.f32 %v26538_v48, %v7612_v63  ;;  %26539 = vst [vmem:[#allocation71_spill] sm:$0xff] %v24032_v32  ;;  %v14631_v8 = vld [vmem:[%s26465_s1 + $0x1820] sm:$0xf]  ;;  %v17704_v63 = vld [vmem:[%s26465_s1 + $0x1750] sm:$0xf0] }
 0x376   :  { %7886 = vmatpush.bf16.msrb.mxu2 %v14656_v19  ;;  %v17731_v19 = vld [vmem:[%s26465_s1 + $0x1828] sm:$0xf0]  ;;  %v14715_v48 = vld [vmem:[%s26465_s1 + $0x18c8] sm:$0xf]  ;;  %v15087_v28 = vld [vmem:[%s26465_s1 + $0x1bb0] sm:$0xf] }
 0x377   :  { %7900 = vmatpush.bf16.msrb.mxu3 %v14752_v21  ;;  %v14427_v21 = vld [vmem:[%s26465_s1 + $0x1688] sm:$0xf]  ;;  %v14632_v2 = vor.u32 %v17731_v19, %v14631_v8  ;;  %v17845_v8 = vld [vmem:[%s26465_s1 + $0x1bb8] sm:$0xf0]  ;;  %v14524_v19 = vor.u32 %v17704_v63, %v14523_v0  ;;  %v15183_v37 = vld [vmem:[%s26465_s1 + $0x1c70] sm:$0xf] }
 0x378   :  { %7859 = vmatpush.bf16.msrb.mxu0 %v14452_v12  ;;  %v17728_v12 = vld [vmem:[%s26465_s1 + $0x1810] sm:$0xf0]  ;;  %v14428_v52 = vor.u32 %v17680_v5, %v14427_v21  ;;  %v15088_v33 = vor.u32 %v17845_v8, %v15087_v28  ;;  %v14979_v0 = vld [vmem:[%s26465_s1 + $0x1ad8] sm:$0xf]  ;;  %v14871_v28 = vld [vmem:[%s26465_s1 + $0x1a00] sm:$0xf] }
 0x379   :  { %7873 = vmatpush.bf16.msrb.mxu1 %v14548_v42  ;;  %v17752_v42 = vld [vmem:[%s26465_s1 + $0x18d0] sm:$0xf0]  ;;  %v14620_v24 = vor.u32 %v17728_v12, %v14619_v30  ;;  %v17818_v30 = vld [vmem:[%s26465_s1 + $0x1ae0] sm:$0xf0]  ;;  %v17791_v8 = vld [vmem:[%s26465_s1 + $0x1a08] sm:$0xf0] }
 0x37a   :  { %7887 = vmatpush.bf16.msrb.mxu2 %v14644_v49  ;;  %v14895_v49 = vld [vmem:[%s26465_s1 + $0x1a30] sm:$0xf]  ;;  %v14716_v21 = vor.u32 %v17752_v42, %v14715_v48  ;;  %v17842_v12 = vld [vmem:[%s26465_s1 + $0x1ba0] sm:$0xf0]  ;;  %v24115_v48 = vpop.f32.mrf.mxu0  ;;  %v15171_v42 = vld [vmem:[%s26465_s1 + $0x1c58] sm:$0xf] }
 0x37b   :  { %7901 = vmatpush.bf16.msrb.mxu3 %v14740_v56  ;;  %v17821_v56 = vld [vmem:[%s26465_s1 + $0x1af8] sm:$0xf0]  ;;  %v14896_v5 = vor.u32 %v17797_v9, %v14895_v49  ;;  %26540 = vst [vmem:[#allocation72_spill] sm:$0xff] %v24115_v48  ;;  %v17866_v49 = vld [vmem:[%s26465_s1 + $0x1c60] sm:$0xf0] }
 0x37c   :  { %7860 = vmatpush.bf16.msrb.mxu0 %v14440_v14  ;;  %v17869_v14 = vld [vmem:[%s26465_s1 + $0x1c78] sm:$0xf0]  ;;  %v7625_v32 = vpop.f32.mrf.mxu3  ;;  %v14992_v45 = vor.u32 %v17821_v56, %v14991_v22  ;;  %v24123_v22 = vpop.f32.mrf.mxu1 }
 0x37d   :  { %7874 = vmatpush.bf16.msrb.mxu1 %v14536_v53  ;;  %v14883_v53 = vld [vmem:[%s26465_s1 + $0x1a18] sm:$0xf]  ;;  %v15184_v63 = vor.u32 %v17869_v14, %v15183_v37  ;;  %26541 = vst [vmem:[#allocation73_spill] sm:$0xff] %v24123_v22  ;;  %v17839_v37 = vld [vmem:[%s26465_s1 + $0x1b88] sm:$0xf0] }
 0x37e   :  { %7888 = vmatpush.bf16.msrb.mxu2 %v14632_v2  ;;  %v17794_v2 = vld [vmem:[%s26465_s1 + $0x1a20] sm:$0xf0]  ;;  %v15159_v14 = vld [vmem:[%s26465_s1 + $0x1c40] sm:$0xf] }
 0x37f   :  { %7902 = vmatpush.bf16.msrb.mxu3 %v14728_v55  ;;  %v15075_v55 = vld [vmem:[%s26465_s1 + $0x1b98] sm:$0xf]  ;;  %v14884_v9 = vor.u32 %v17794_v2, %v14883_v53 }
 0x380   :  { %7861 = vmatpush.bf16.msrb.mxu0 %v14428_v52  ;;  %v14980_v52 = vor.u32 %v17818_v30, %v14979_v0  ;;  %v15076_v56 = vor.u32 %v17842_v12, %v15075_v55  ;;  %v14859_v0 = vld [vmem:[%s26465_s1 + $0x19e8] sm:$0xf]  ;;  %v24162_v55 = vpop.f32.mrf.mxu2 }
 0x381   :  { %7875 = vmatpush.bf16.msrb.mxu1 %v14524_v19  ;;  %v14967_v19 = vld [vmem:[%s26465_s1 + $0x1ac0] sm:$0xf]  ;;  %v14955_v30 = vld [vmem:[%s26465_s1 + $0x1aa8] sm:$0xf]  ;;  %26542 = vst [vmem:[#allocation74_spill] sm:$0xff] %v24162_v55 }
 0x382   :  { %7889 = vmatpush.bf16.msrb.mxu2 %v14620_v24  ;;  %v15172_v24 = vor.u32 %v17866_v49, %v15171_v42  ;;  %v17812_v49 = vld [vmem:[%s26465_s1 + $0x1ab0] sm:$0xf0]  ;;  %v14943_v55 = vld [vmem:[%s26465_s1 + $0x1a90] sm:$0xf] }
 0x383   :  { %7903 = vmatpush.bf16.msrb.mxu3 %v14716_v21  ;;  %7862 = vmatmul.bf16.vlgmr.msrb.gmra.mxu0 %v18703_v39  ;;  %v17863_v21 = vld [vmem:[%s26465_s1 + $0x1c48] sm:$0xf0] }
 0x384   :  { %7910 = vmatpush.bf16.msra.mxu0 %v14896_v5  ;;  %7876 = vmatmul.bf16.vlgmr.msrb.gmra.mxu1 %v18716_v44  ;;  %v14872_v5 = vor.u32 %v17791_v8, %v14871_v28  ;;  %v15160_v12 = vor.u32 %v17863_v21, %v15159_v14  ;;  %v24164_v42 = vpop.f32.mrf.mxu3  ;;  %v15147_v28 = vld [vmem:[%s26465_s1 + $0x1c28] sm:$0xf]  ;;  %v17860_v8 = vld [vmem:[%s26465_s1 + $0x1c30] sm:$0xf0]  ;;  %v14847_v14 = vld [vmem:[%s26465_s1 + $0x19d0] sm:$0xf] }
 0x385   :  { %7924 = vmatpush.bf16.msra.mxu1 %v14992_v45  ;;  %v15063_v45 = vld [vmem:[%s26465_s1 + $0x1b80] sm:$0xf]  ;;  %7890 = vmatmul.bf16.vlgmr.msrb.gmra.mxu2 %v18714_v43  ;;  %v17785_v21 = vld [vmem:[%s26465_s1 + $0x19d8] sm:$0xf0] }
 0x386   :  { %7938 = vmatpush.bf16.msra.mxu2 %v15088_v33  ;;  %v17815_v33 = vld [vmem:[%s26465_s1 + $0x1ac8] sm:$0xf0]  ;;  %7904 = vmatmul.bf16.vlgmr.msrb.gmra.mxu3 %v18724_v47  ;;  %v15064_v2 = vor.u32 %v17839_v37, %v15063_v45  ;;  %v7653_v37 = vpop.f32.mrf.mxu1 }
 0x387   :  { %7952 = vmatpush.bf16.msra.mxu3 %v15184_v63  ;;  %v14968_v53 = vor.u32 %v17815_v33, %v14967_v19  ;;  %v17788_v63 = vld [vmem:[%s26465_s1 + $0x19f0] sm:$0xf0]  ;;  %v14956_v33 = vor.u32 %v17812_v49, %v14955_v30  ;;  %v17857_v30 = vld [vmem:[%s26465_s1 + $0x1c18] sm:$0xf0] }
 0x388   :  { %7911 = vmatpush.bf16.msra.mxu0 %v14884_v9  ;;  %v15051_v9 = vld [vmem:[%s26465_s1 + $0x1b68] sm:$0xf] }
 0x389   :  { %7925 = vmatpush.bf16.msra.mxu1 %v14980_v52  ;;  %v17836_v52 = vld [vmem:[%s26465_s1 + $0x1b70] sm:$0xf0] }
 0x38a   :  { %7939 = vmatpush.bf16.msra.mxu2 %v15076_v56  ;;  %v7639_v56 = vpop.f32.mrf.mxu0  ;;  %v15052_v45 = vor.u32 %v17836_v52, %v15051_v9  ;;  %v14835_v52 = vld [vmem:[%s26465_s1 + $0x19b8] sm:$0xf] }
 0x38b   :  { %7953 = vmatpush.bf16.msra.mxu3 %v15172_v24  ;;  %v7640_v19 = vadd.f32 %v7639_v56, %v7625_v32  ;;  %v14860_v24 = vor.u32 %v17788_v63, %v14859_v0  ;;  %v15148_v32 = vor.u32 %v17860_v8, %v15147_v28  ;;  %v17833_v0 = vld [vmem:[%s26465_s1 + $0x1b58] sm:$0xf0]  ;;  %v15135_v63 = vld [vmem:[%s26465_s1 + $0x1c10] sm:$0xf]  ;;  %v17782_v56 = vld [vmem:[%s26465_s1 + $0x19c0] sm:$0xf0] }
 0x38c   :  { %7912 = vmatpush.bf16.msra.mxu0 %v14872_v5  ;;  %v14931_v28 = vld [vmem:[%s26465_s1 + $0x1a78] sm:$0xf]  ;;  %v15136_v8 = vor.u32 %v17857_v30, %v15135_v63  ;;  %v17779_v63 = vld [vmem:[%s26465_s1 + $0x19a8] sm:$0xf0]  ;;  %v14919_v30 = vld [vmem:[%s26465_s1 + $0x1a60] sm:$0xf] }
 0x38d   :  { %7926 = vmatpush.bf16.msra.mxu1 %v14968_v53  ;;  %v7654_v5 = vadd.f32 %v7653_v37, %v7640_v19  ;;  %v17809_v53 = vld [vmem:[%s26465_s1 + $0x1a98] sm:$0xf0]  ;;  %v7667_v19 = vpop.f32.mrf.mxu2  ;;  %v15123_v37 = vld [vmem:[%s26465_s1 + $0x1bf8] sm:$0xf] }
 0x38e   :  { %7940 = vmatpush.bf16.msra.mxu2 %v15064_v2  ;;  %v15039_v2 = vld [vmem:[%s26465_s1 + $0x1b50] sm:$0xf]  ;;  %v14944_v49 = vor.u32 %v17809_v53, %v14943_v55  ;;  %v17806_v55 = vld [vmem:[%s26465_s1 + $0x1a80] sm:$0xf0] }
 0x38f   :  { %7954 = vmatpush.bf16.msra.mxu3 %v15160_v12  ;;  %v14848_v12 = vor.u32 %v17785_v21, %v14847_v14  ;;  %v15040_v9 = vor.u32 %v17833_v0, %v15039_v2  ;;  %v17854_v14 = vld [vmem:[%s26465_s1 + $0x1c00] sm:$0xf0]  ;;  %v7681_v21 = vpop.f32.mrf.mxu3  ;;  %v14932_v2 = vor.u32 %v17806_v55, %v14931_v28  ;;  %v17851_v28 = vld [vmem:[%s26465_s1 + $0x1be8] sm:$0xf0]  ;;  %v17776_v55 = vld [vmem:[%s26465_s1 + $0x1990] sm:$0xf0] }
 0x390   :  { %7913 = vmatpush.bf16.msra.mxu0 %v14860_v24  ;;  %v15027_v24 = vld [vmem:[%s26465_s1 + $0x1b38] sm:$0xf] }
 0x391   :  { %7927 = vmatpush.bf16.msra.mxu1 %v14956_v33  ;;  %v17830_v33 = vld [vmem:[%s26465_s1 + $0x1b40] sm:$0xf0] }
 0x392   :  { %7941 = vmatpush.bf16.msra.mxu2 %v15052_v45  ;;  %v7668_v45 = vadd.f32 %v7667_v19, %v7654_v5  ;;  %v15028_v0 = vor.u32 %v17830_v33, %v15027_v24  ;;  %v14823_v5 = vld [vmem:[%s26465_s1 + $0x19a0] sm:$0xf]  ;;  %v14811_v19 = vld [vmem:[%s26465_s1 + $0x1988] sm:$0xf] }
 0x393   :  { %7955 = vmatpush.bf16.msra.mxu3 %v15148_v32  ;;  %v14836_v32 = vor.u32 %v17782_v56, %v14835_v52  ;;  %v17827_v52 = vld [vmem:[%s26465_s1 + $0x1b28] sm:$0xf0]  ;;  %v15111_v56 = vld [vmem:[%s26465_s1 + $0x1be0] sm:$0xf] }
 0x394   :  { %7914 = vmatpush.bf16.msra.mxu0 %v14848_v12  ;;  %v24229_v53 = vadd.f32 %v7681_v21, %v7668_v45  ;;  %v15124_v12 = vor.u32 %v17854_v14, %v15123_v37  ;;  %v14907_v45 = vld [vmem:[%s26465_s1 + $0x1a48] sm:$0xf]  ;;  %v17800_v37 = vld [vmem:[%s26465_s1 + $0x1a50] sm:$0xf0]  ;;  %v15112_v21 = vor.u32 %v17851_v28, %v15111_v56 }
 0x395   :  { %7928 = vmatpush.bf16.msra.mxu1 %v14944_v49  ;;  %v17803_v49 = vld [vmem:[%s26465_s1 + $0x1a68] sm:$0xf0]  ;;  %v15003_v14 = vld [vmem:[%s26465_s1 + $0x1b08] sm:$0xf]  ;;  %v14908_v56 = vor.u32 %v17800_v37, %v14907_v45  ;;  %v15771_v45 = vld [vmem:[%s26465_s1 + $0x1dd0] sm:$0xf] }
 0x396   :  { %7942 = vmatpush.bf16.msra.mxu2 %v15040_v9  ;;  %v15015_v9 = vld [vmem:[%s26465_s1 + $0x1b20] sm:$0xf]  ;;  %v14920_v24 = vor.u32 %v17803_v49, %v14919_v30  ;;  %v15783_v30 = vld [vmem:[%s26465_s1 + $0x1de8] sm:$0xf]  ;;  %v17916_v49 = vld [vmem:[%s26465_s1 + $0x1df0] sm:$0xf0] }
 0x397   :  { %7956 = vmatpush.bf16.msra.mxu3 %v15136_v8  ;;  %v14824_v8 = vor.u32 %v17779_v63, %v14823_v5  ;;  %v15016_v33 = vor.u32 %v17827_v52, %v15015_v9  ;;  %v15279_v5 = vld [vmem:[%s26465_s1 + $0x1d30] sm:$0xf]  ;;  %v17893_v63 = vld [vmem:[%s26465_s1 + $0x1d38] sm:$0xf0]  ;;  %v15879_v9 = vld [vmem:[%s26465_s1 + $0x1ea8] sm:$0xf]  ;;  %v15784_v48 = vor.u32 %v17916_v49, %v15783_v30 }
 0x398   :  { %7915 = vmatpush.bf16.msra.mxu0 %v14836_v32  ;;  %v17824_v32 = vld [vmem:[%s26465_s1 + $0x1b10] sm:$0xf0]  ;;  %v15280_v22 = vor.u32 %v17893_v63, %v15279_v5  ;;  %v17961_v5 = vld [vmem:[%s26465_s1 + $0x1f58] sm:$0xf0]  ;;  %v24329_v63 = vpop.f32.mrf.mxu1 }
 0x399   :  { %7929 = vmatpush.bf16.msra.mxu1 %v14932_v2  ;;  %v15099_v2 = vld [vmem:[%s26465_s1 + $0x1bc8] sm:$0xf]  ;;  %v17940_v52 = vld [vmem:[%s26465_s1 + $0x1eb0] sm:$0xf0]  ;;  %v15004_v28 = vor.u32 %v17824_v32, %v15003_v14  ;;  %v17913_v14 = vld [vmem:[%s26465_s1 + $0x1dd8] sm:$0xf0] }
 0x39a   :  { %7943 = vmatpush.bf16.msra.mxu2 %v15028_v0  ;;  %v17848_v0 = vld [vmem:[%s26465_s1 + $0x1bd0] sm:$0xf0]  ;;  %v15880_v61 = vor.u32 %v17940_v52, %v15879_v9  ;;  %v17937_v32 = vld [vmem:[%s26465_s1 + $0x1e98] sm:$0xf0]  ;;  %26543 = vst [vmem:[#allocation75_spill] sm:$0xff] %v24329_v63 }
 0x39b   :  { %7957 = vmatpush.bf16.msra.mxu3 %v15124_v12  ;;  %v14812_v12 = vor.u32 %v17776_v55, %v14811_v19  ;;  %v17964_v19 = vld [vmem:[%s26465_s1 + $0x1f70] sm:$0xf0]  ;;  %v15100_v55 = vor.u32 %v17848_v0, %v15099_v2  ;;  %v24321_v2 = vpop.f32.mrf.mxu0  ;;  %v15963_v0 = vld [vmem:[%s26465_s1 + $0x1f50] sm:$0xf]  ;;  %v15255_v9 = vld [vmem:[%s26465_s1 + $0x1d00] sm:$0xf] }
 0x39c   :  { %7916 = vmatpush.bf16.msra.mxu0 %v14824_v8  ;;  %v15975_v8 = vld [vmem:[%s26465_s1 + $0x1f68] sm:$0xf]  ;;  %v17887_v52 = vld [vmem:[%s26465_s1 + $0x1d08] sm:$0xf0] }
 0x39d   :  { %7930 = vmatpush.bf16.msra.mxu1 %v14920_v24  ;;  %v15267_v24 = vld [vmem:[%s26465_s1 + $0x1d18] sm:$0xf]  ;;  %v15976_v37 = vor.u32 %v17964_v19, %v15975_v8  ;;  %v17958_v19 = vld [vmem:[%s26465_s1 + $0x1f40] sm:$0xf0] }
 0x39e   :  { %7944 = vmatpush.bf16.msra.mxu2 %v15016_v33  ;;  %v17890_v33 = vld [vmem:[%s26465_s1 + $0x1d20] sm:$0xf0]  ;;  %v15951_v8 = vld [vmem:[%s26465_s1 + $0x1f38] sm:$0xf] }
 0x39f   :  { %7958 = vmatpush.bf16.msra.mxu3 %v15112_v21  ;;  %v15867_v21 = vld [vmem:[%s26465_s1 + $0x1e90] sm:$0xf]  ;;  %v15268_v30 = vor.u32 %v17890_v33, %v15267_v24 }
 0x3a0   :  { %7917 = vmatpush.bf16.msra.mxu0 %v14812_v12  ;;  %v15772_v12 = vor.u32 %v17913_v14, %v15771_v45  ;;  %v15868_v49 = vor.u32 %v17937_v32, %v15867_v21  ;;  %v15243_v45 = vld [vmem:[%s26465_s1 + $0x1ce8] sm:$0xf]  ;;  %v15747_v14 = vld [vmem:[%s26465_s1 + $0x1da0] sm:$0xf]  ;;  %v24368_v21 = vpop.f32.mrf.mxu2  ;;  %v15952_v32 = vor.u32 %v17958_v19, %v15951_v8  ;;  %v15231_v8 = vld [vmem:[%s26465_s1 + $0x1cd0] sm:$0xf] }
 0x3a1   :  { %7931 = vmatpush.bf16.msra.mxu1 %v14908_v56  ;;  %v15759_v56 = vld [vmem:[%s26465_s1 + $0x1db8] sm:$0xf]  ;;  %26544 = vst [vmem:[#allocation76_spill] sm:$0xff] %v24368_v21  ;;  %v17881_v19 = vld [vmem:[%s26465_s1 + $0x1cd8] sm:$0xf0] }
 0x3a2   :  { %7945 = vmatpush.bf16.msra.mxu2 %v15004_v28  ;;  %v17934_v28 = vld [vmem:[%s26465_s1 + $0x1e80] sm:$0xf0] }
 0x3a3   :  { %7959 = vmatpush.bf16.msra.mxu3 %v15100_v55  ;;  %7918 = vmatmul.bf16.vlgmr.msra.gmra.mxu0 %v18931_v31  ;;  %v15256_v55 = vor.u32 %v17887_v52, %v15255_v9  ;;  %v15939_v9 = vld [vmem:[%s26465_s1 + $0x1f20] sm:$0xf]  ;;  %v17955_v52 = vld [vmem:[%s26465_s1 + $0x1f28] sm:$0xf0] }
 0x3a4   :  { %7966 = vmatpush.bf16.msrb.mxu0 %v15280_v22  ;;  %v15964_v22 = vor.u32 %v17961_v5, %v15963_v0  ;;  %7932 = vmatmul.bf16.vlgmr.msra.gmra.mxu1 %v18944_v36  ;;  %v17907_v0 = vld [vmem:[%s26465_s1 + $0x1da8] sm:$0xf0]  ;;  %v15843_v5 = vld [vmem:[%s26465_s1 + $0x1e60] sm:$0xf] }
 0x3a5   :  { %10067 = vmatpush.bf16.msrb.mxu1 %v15784_v48  ;;  %v15855_v48 = vld [vmem:[%s26465_s1 + $0x1e78] sm:$0xf]  ;;  %7946 = vmatmul.bf16.vlgmr.msra.gmra.mxu2 %v18942_v35 }
 0x3a6   :  { %10081 = vmatpush.bf16.msrb.mxu2 %v15880_v61  ;;  %v17910_v61 = vld [vmem:[%s26465_s1 + $0x1dc0] sm:$0xf0]  ;;  %7960 = vmatmul.bf16.vlgmr.msra.gmra.mxu3 %v18952_v40  ;;  %v15856_v33 = vor.u32 %v17934_v28, %v15855_v48  ;;  %v15748_v48 = vor.u32 %v17907_v0, %v15747_v14  ;;  %v15927_v14 = vld [vmem:[%s26465_s1 + $0x1f08] sm:$0xf]  ;;  %v15232_v0 = vor.u32 %v17881_v19, %v15231_v8 }
 0x3a7   :  { %10095 = vmatpush.bf16.msrb.mxu3 %v15976_v37  ;;  %v15760_v24 = vor.u32 %v17910_v61, %v15759_v56  ;;  %v17884_v37 = vld [vmem:[%s26465_s1 + $0x1cf0] sm:$0xf0]  ;;  %v7709_v61 = vpop.f32.mrf.mxu1 }
 0x3a8   :  { %7967 = vmatpush.bf16.msrb.mxu0 %v15268_v30  ;;  %v17931_v30 = vld [vmem:[%s26465_s1 + $0x1e68] sm:$0xf0] }
 0x3a9   :  { %10068 = vmatpush.bf16.msrb.mxu1 %v15772_v12  ;;  %v24379_v12 = vpop.f32.mrf.mxu3  ;;  %v15844_v28 = vor.u32 %v17931_v30, %v15843_v5 }
 0x3aa   :  { %10082 = vmatpush.bf16.msrb.mxu2 %v15868_v49  ;;  %26545 = vst [vmem:[#allocation77_spill] sm:$0xff] %v24379_v12  ;;  %v7695_v49 = vpop.f32.mrf.mxu0 }
 0x3ab   :  { %10096 = vmatpush.bf16.msrb.mxu3 %v15964_v22  ;;  %v7696_v56 = vadd.f32 %v7695_v49, %v24229_v53  ;;  %v15244_v22 = vor.u32 %v17884_v37, %v15243_v45  ;;  %v15940_v53 = vor.u32 %v17955_v52, %v15939_v9  ;;  %v17928_v37 = vld [vmem:[%s26465_s1 + $0x1e50] sm:$0xf0]  ;;  %v15219_v49 = vld [vmem:[%s26465_s1 + $0x1cb8] sm:$0xf]  ;;  %v17878_v9 = vld [vmem:[%s26465_s1 + $0x1cc0] sm:$0xf0] }
 0x3ac   :  { %7968 = vmatpush.bf16.msrb.mxu0 %v15256_v55  ;;  %v15735_v55 = vld [vmem:[%s26465_s1 + $0x1d88] sm:$0xf]  ;;  %v15723_v52 = vld [vmem:[%s26465_s1 + $0x1d70] sm:$0xf] }
 0x3ad   :  { %10069 = vmatpush.bf16.msrb.mxu1 %v15760_v24  ;;  %v7710_v45 = vadd.f32 %v7709_v61, %v7696_v56  ;;  %v17904_v24 = vld [vmem:[%s26465_s1 + $0x1d90] sm:$0xf0]  ;;  %v17901_v61 = vld [vmem:[%s26465_s1 + $0x1d78] sm:$0xf0] }
 0x3ae   :  { %10083 = vmatpush.bf16.msrb.mxu2 %v15856_v33  ;;  %v15831_v33 = vld [vmem:[%s26465_s1 + $0x1e48] sm:$0xf]  ;;  %v15736_v5 = vor.u32 %v17904_v24, %v15735_v55  ;;  %v15915_v55 = vld [vmem:[%s26465_s1 + $0x1ef0] sm:$0xf]  ;;  %v15220_v24 = vor.u32 %v17878_v9, %v15219_v49  ;;  %v17922_v49 = vld [vmem:[%s26465_s1 + $0x1e20] sm:$0xf0] }
 0x3af   :  { %10097 = vmatpush.bf16.msrb.mxu3 %v15952_v32  ;;  %v17952_v32 = vld [vmem:[%s26465_s1 + $0x1f10] sm:$0xf0]  ;;  %v15832_v30 = vor.u32 %v17928_v37, %v15831_v33  ;;  %v15724_v37 = vor.u32 %v17901_v61, %v15723_v52  ;;  %v15903_v9 = vld [vmem:[%s26465_s1 + $0x1ed8] sm:$0xf]  ;;  %v17946_v52 = vld [vmem:[%s26465_s1 + $0x1ee0] sm:$0xf0] }
 0x3b0   :  { %7969 = vmatpush.bf16.msrb.mxu0 %v15244_v22  ;;  %v15928_v56 = vor.u32 %v17952_v32, %v15927_v14  ;;  %v7723_v22 = vpop.f32.mrf.mxu2  ;;  %v17875_v32 = vld [vmem:[%s26465_s1 + $0x1ca8] sm:$0xf0]  ;;  %v15195_v61 = vld [vmem:[%s26465_s1 + $0x1c88] sm:$0xf] }
 0x3b1   :  { %10070 = vmatpush.bf16.msrb.mxu1 %v15748_v48  ;;  %v15819_v48 = vld [vmem:[%s26465_s1 + $0x1e30] sm:$0xf]  ;;  %v7724_v8 = vadd.f32 %v7723_v22, %v7710_v45  ;;  %v7737_v19 = vpop.f32.mrf.mxu3  ;;  %v15207_v45 = vld [vmem:[%s26465_s1 + $0x1ca0] sm:$0xf]  ;;  %v15711_v22 = vld [vmem:[%s26465_s1 + $0x1d58] sm:$0xf] }
 0x3b2   :  { %10084 = vmatpush.bf16.msrb.mxu2 %v15844_v28  ;;  %v17925_v28 = vld [vmem:[%s26465_s1 + $0x1e38] sm:$0xf0] }
 0x3b3   :  { %10098 = vmatpush.bf16.msrb.mxu3 %v15940_v53  ;;  %v17949_v53 = vld [vmem:[%s26465_s1 + $0x1ef8] sm:$0xf0]  ;;  %v24436_v33 = vadd.f32 %v7737_v19, %v7724_v8  ;;  %v15820_v14 = vor.u32 %v17925_v28, %v15819_v48  ;;  %v17872_v48 = vld [vmem:[%s26465_s1 + $0x1c90] sm:$0xf0]  ;;  %v15699_v19 = vld [vmem:[%s26465_s1 + $0x1d40] sm:$0xf] }
 0x3b4   :  { %7970 = vmatpush.bf16.msrb.mxu0 %v15232_v0  ;;  %v15916_v0 = vor.u32 %v17949_v53, %v15915_v55  ;;  %v17895_v55 = vld [vmem:[%s26465_s1 + $0x1d48] sm:$0xf0]  ;;  %v15795_v53 = vld [vmem:[%s26465_s1 + $0x1e00] sm:$0xf] }
 0x3b5   :  { %10071 = vmatpush.bf16.msrb.mxu1 %v15736_v5  ;;  %v17898_v5 = vld [vmem:[%s26465_s1 + $0x1d60] sm:$0xf0] }
 0x3b6   :  { %10085 = vmatpush.bf16.msrb.mxu2 %v15832_v30  ;;  %v15807_v30 = vld [vmem:[%s26465_s1 + $0x1e18] sm:$0xf]  ;;  %v15712_v28 = vor.u32 %v17898_v5, %v15711_v22  ;;  %v17988_v22 = vld [vmem:[%s26465_s1 + $0x2030] sm:$0xf0]  ;;  %v15196_v5 = vor.u32 %v17872_v48, %v15195_v61 }
 0x3b7   :  { %10099 = vmatpush.bf16.msrb.mxu3 %v15928_v56  ;;  %v15208_v56 = vor.u32 %v17875_v32, %v15207_v45  ;;  %v15808_v8 = vor.u32 %v17922_v49, %v15807_v30  ;;  %v17943_v45 = vld [vmem:[%s26465_s1 + $0x1ec8] sm:$0xf0]  ;;  %v16071_v32 = vld [vmem:[%s26465_s1 + $0x2028] sm:$0xf]  ;;  %v18012_v30 = vld [vmem:[%s26465_s1 + $0x20f0] sm:$0xf0] }
 0x3b8   :  { %7971 = vmatpush.bf16.msrb.mxu0 %v15220_v24  ;;  %v15904_v24 = vor.u32 %v17946_v52, %v15903_v9  ;;  %v16263_v49 = vld [vmem:[%s26465_s1 + $0x21a8] sm:$0xf]  ;;  %v18036_v9 = vld [vmem:[%s26465_s1 + $0x21b0] sm:$0xf0]  ;;  %v15700_v52 = vor.u32 %v17895_v55, %v15699_v19  ;;  %v16072_v21 = vor.u32 %v17988_v22, %v16071_v32  ;;  %v16155_v19 = vld [vmem:[%s26465_s1 + $0x20d0] sm:$0xf]  ;;  %v24536_v22 = vpop.f32.mrf.mxu1 }
 0x3b9   :  { %10072 = vmatpush.bf16.msrb.mxu1 %v15724_v37  ;;  %v17919_v37 = vld [vmem:[%s26465_s1 + $0x1e08] sm:$0xf0]  ;;  %v18060_v61 = vld [vmem:[%s26465_s1 + $0x2270] sm:$0xf0]  ;;  %v16264_v41 = vor.u32 %v18036_v9, %v16263_v49  ;;  %v18057_v32 = vld [vmem:[%s26465_s1 + $0x2258] sm:$0xf0] }
 0x3ba   :  { %10086 = vmatpush.bf16.msrb.mxu2 %v15820_v14  ;;  %v15891_v14 = vld [vmem:[%s26465_s1 + $0x1ec0] sm:$0xf]  ;;  %v15796_v12 = vor.u32 %v17919_v37, %v15795_v53  ;;  %v18009_v53 = vld [vmem:[%s26465_s1 + $0x20d8] sm:$0xf0]  ;;  %26547 = vst [vmem:[#allocation79_spill] sm:$0xff] %v24536_v22 }
 0x3bb   :  { %10100 = vmatpush.bf16.msrb.mxu3 %v15916_v0  ;;  %v16167_v0 = vld [vmem:[%s26465_s1 + $0x20e8] sm:$0xf]  ;;  %v15892_v48 = vor.u32 %v17943_v45, %v15891_v14  ;;  %v18033_v37 = vld [vmem:[%s26465_s1 + $0x2198] sm:$0xf0]  ;;  %v24528_v14 = vpop.f32.mrf.mxu0  ;;  %v16347_v45 = vld [vmem:[%s26465_s1 + $0x2250] sm:$0xf] }
 0x3bc   :  { %7972 = vmatpush.bf16.msrb.mxu0 %v15208_v56  ;;  %v16359_v56 = vld [vmem:[%s26465_s1 + $0x2268] sm:$0xf]  ;;  %v16168_v63 = vor.u32 %v18012_v30, %v16167_v0  ;;  %26546 = vst [vmem:[#allocation78_spill] sm:$0xff] %v24528_v14  ;;  %v17982_v49 = vld [vmem:[%s26465_s1 + $0x2000] sm:$0xf0] }
 0x3bd   :  { %10073 = vmatpush.bf16.msrb.mxu1 %v15712_v28  ;;  %v16059_v28 = vld [vmem:[%s26465_s1 + $0x2010] sm:$0xf]  ;;  %v16360_v55 = vor.u32 %v18060_v61, %v16359_v56  ;;  %v16143_v9 = vld [vmem:[%s26465_s1 + $0x20b8] sm:$0xf]  ;;  %v18054_v61 = vld [vmem:[%s26465_s1 + $0x2240] sm:$0xf0] }
 0x3be   :  { %10087 = vmatpush.bf16.msrb.mxu2 %v15808_v8  ;;  %v17985_v8 = vld [vmem:[%s26465_s1 + $0x2018] sm:$0xf0]  ;;  %v16335_v56 = vld [vmem:[%s26465_s1 + $0x2238] sm:$0xf] }
 0x3bf   :  { %10101 = vmatpush.bf16.msrb.mxu3 %v15904_v24  ;;  %v16251_v24 = vld [vmem:[%s26465_s1 + $0x2190] sm:$0xf]  ;;  %v16060_v0 = vor.u32 %v17985_v8, %v16059_v28 }
 0x3c0   :  { %7973 = vmatpush.bf16.msrb.mxu0 %v15196_v5  ;;  %v16156_v5 = vor.u32 %v18009_v53, %v16155_v19  ;;  %v16252_v30 = vor.u32 %v18033_v37, %v16251_v24  ;;  %v16035_v19 = vld [vmem:[%s26465_s1 + $0x1fe0] sm:$0xf]  ;;  %v24575_v24 = vpop.f32.mrf.mxu2  ;;  %v16336_v37 = vor.u32 %v18054_v61, %v16335_v56  ;;  %v16023_v56 = vld [vmem:[%s26465_s1 + $0x1fc8] sm:$0xf]  ;;  %v17976_v61 = vld [vmem:[%s26465_s1 + $0x1fd0] sm:$0xf0] }
 0x3c1   :  { %10074 = vmatpush.bf16.msrb.mxu1 %v15700_v52  ;;  %v18030_v52 = vld [vmem:[%s26465_s1 + $0x2180] sm:$0xf0]  ;;  %v16131_v53 = vld [vmem:[%s26465_s1 + $0x20a0] sm:$0xf]  ;;  %26548 = vst [vmem:[#allocation80_spill] sm:$0xff] %v24575_v24 }
 0x3c2   :  { %10088 = vmatpush.bf16.msrb.mxu2 %v15796_v12  ;;  %v16047_v12 = vld [vmem:[%s26465_s1 + $0x1ff8] sm:$0xf] }
 0x3c3   :  { %10102 = vmatpush.bf16.msrb.mxu3 %v15892_v48  ;;  %7974 = vmatmul.bf16.vlgmr.msrb.gmra.mxu0 %v19141_v25  ;;  %v16048_v48 = vor.u32 %v17982_v49, %v16047_v12  ;;  %v16323_v12 = vld [vmem:[%s26465_s1 + $0x2220] sm:$0xf]  ;;  %v18051_v49 = vld [vmem:[%s26465_s1 + $0x2228] sm:$0xf0] }
 0x3c4   :  { %10109 = vmatpush.bf16.msra.mxu0 %v16072_v21  ;;  %v16348_v21 = vor.u32 %v18057_v32, %v16347_v45  ;;  %10075 = vmatmul.bf16.vlgmr.msrb.gmra.mxu1 %v18481_v58  ;;  %v18003_v45 = vld [vmem:[%s26465_s1 + $0x20a8] sm:$0xf0]  ;;  %v16227_v32 = vld [vmem:[%s26465_s1 + $0x2160] sm:$0xf] }
 0x3c5   :  { %10123 = vmatpush.bf16.msra.mxu1 %v16168_v63  ;;  %v16239_v63 = vld [vmem:[%s26465_s1 + $0x2178] sm:$0xf]  ;;  %10089 = vmatmul.bf16.vlgmr.msrb.gmra.mxu2 %v18517_v10 }
 0x3c6   :  { %10137 = vmatpush.bf16.msra.mxu2 %v16264_v41  ;;  %v18006_v41 = vld [vmem:[%s26465_s1 + $0x20c0] sm:$0xf0]  ;;  %10103 = vmatmul.bf16.vlgmr.msrb.gmra.mxu3 %v18495_v1  ;;  %v16240_v8 = vor.u32 %v18030_v52, %v16239_v63  ;;  %v16132_v63 = vor.u32 %v18003_v45, %v16131_v53  ;;  %v16311_v53 = vld [vmem:[%s26465_s1 + $0x2208] sm:$0xf]  ;;  %v16024_v45 = vor.u32 %v17976_v61, %v16023_v56 }
 0x3c7   :  { %10151 = vmatpush.bf16.msra.mxu3 %v16360_v55  ;;  %v16144_v28 = vor.u32 %v18006_v41, %v16143_v9  ;;  %v17979_v55 = vld [vmem:[%s26465_s1 + $0x1fe8] sm:$0xf0]  ;;  %v7765_v41 = vpop.f32.mrf.mxu1 }
 0x3c8   :  { %10110 = vmatpush.bf16.msra.mxu0 %v16060_v0  ;;  %v18027_v0 = vld [vmem:[%s26465_s1 + $0x2168] sm:$0xf0] }
 0x3c9   :  { %10124 = vmatpush.bf16.msra.mxu1 %v16156_v5  ;;  %v24586_v5 = vpop.f32.mrf.mxu3  ;;  %v16228_v52 = vor.u32 %v18027_v0, %v16227_v32 }
 0x3ca   :  { %10138 = vmatpush.bf16.msra.mxu2 %v16252_v30  ;;  %26549 = vst [vmem:[#allocation81_spill] sm:$0xff] %v24586_v5  ;;  %v7751_v30 = vpop.f32.mrf.mxu0 }
 0x3cb   :  { %10152 = vmatpush.bf16.msra.mxu3 %v16348_v21  ;;  %v7752_v9 = vadd.f32 %v7751_v30, %v24436_v33  ;;  %v16036_v21 = vor.u32 %v17979_v55, %v16035_v19  ;;  %v16324_v33 = vor.u32 %v18051_v49, %v16323_v12  ;;  %v18024_v55 = vld [vmem:[%s26465_s1 + $0x2150] sm:$0xf0]  ;;  %v16011_v30 = vld [vmem:[%s26465_s1 + $0x1fb0] sm:$0xf]  ;;  %v17973_v12 = vld [vmem:[%s26465_s1 + $0x1fb8] sm:$0xf0] }
 0x3cc   :  { %10111 = vmatpush.bf16.msra.mxu0 %v16048_v48  ;;  %v16119_v48 = vld [vmem:[%s26465_s1 + $0x2088] sm:$0xf]  ;;  %v16107_v49 = vld [vmem:[%s26465_s1 + $0x2070] sm:$0xf] }
 0x3cd   :  { %10125 = vmatpush.bf16.msra.mxu1 %v16144_v28  ;;  %v7766_v19 = vadd.f32 %v7765_v41, %v7752_v9  ;;  %v18000_v28 = vld [vmem:[%s26465_s1 + $0x2090] sm:$0xf0]  ;;  %v17997_v41 = vld [vmem:[%s26465_s1 + $0x2078] sm:$0xf0] }
 0x3ce   :  { %10139 = vmatpush.bf16.msra.mxu2 %v16240_v8  ;;  %v16215_v8 = vld [vmem:[%s26465_s1 + $0x2148] sm:$0xf]  ;;  %v16120_v32 = vor.u32 %v18000_v28, %v16119_v48  ;;  %v16299_v48 = vld [vmem:[%s26465_s1 + $0x21f0] sm:$0xf]  ;;  %v16012_v28 = vor.u32 %v17973_v12, %v16011_v30  ;;  %v18018_v30 = vld [vmem:[%s26465_s1 + $0x2120] sm:$0xf0]  ;;  %v26550_v12 = vmax.f32 %v20659_v51, %v22722_v23 }
 0x3cf   :  { %10153 = vmatpush.bf16.msra.mxu3 %v16336_v37  ;;  %v18048_v37 = vld [vmem:[%s26465_s1 + $0x2210] sm:$0xf0]  ;;  %v16216_v0 = vor.u32 %v18024_v55, %v16215_v8  ;;  %v16108_v55 = vor.u32 %v17997_v41, %v16107_v49  ;;  %v18042_v41 = vld [vmem:[%s26465_s1 + $0x21e0] sm:$0xf0]  ;;  %v17967_v51 = vld [vmem:[%s26465_s1 + $0x1f88] sm:$0xf0] }
 0x3d0   :  { %10112 = vmatpush.bf16.msra.mxu0 %v16036_v21  ;;  %v16312_v9 = vor.u32 %v18048_v37, %v16311_v53  ;;  %v7779_v21 = vpop.f32.mrf.mxu2  ;;  %v17970_v37 = vld [vmem:[%s26465_s1 + $0x1fa0] sm:$0xf0] }
 0x3d1   :  { %10126 = vmatpush.bf16.msra.mxu1 %v16132_v63  ;;  %v16203_v63 = vld [vmem:[%s26465_s1 + $0x2130] sm:$0xf]  ;;  %v7780_v56 = vadd.f32 %v7779_v21, %v7766_v19  ;;  %v7793_v61 = vpop.f32.mrf.mxu3  ;;  %v15999_v19 = vld [vmem:[%s26465_s1 + $0x1f98] sm:$0xf] }
 0x3d2   :  { %10140 = vmatpush.bf16.msra.mxu2 %v16228_v52  ;;  %v18021_v52 = vld [vmem:[%s26465_s1 + $0x2138] sm:$0xf0]  ;;  %v16095_v21 = vld [vmem:[%s26465_s1 + $0x2058] sm:$0xf] }
 0x3d3   :  { %10154 = vmatpush.bf16.msra.mxu3 %v16324_v33  ;;  %v18045_v33 = vld [vmem:[%s26465_s1 + $0x21f8] sm:$0xf0]  ;;  %v7794_v8 = vadd.f32 %v7793_v61, %v7780_v56  ;;  %v16204_v53 = vor.u32 %v18021_v52, %v16203_v63  ;;  %v16000_v63 = vor.u32 %v17970_v37, %v15999_v19  ;;  %v15987_v52 = vld [vmem:[%s26465_s1 + $0x1f80] sm:$0xf]  ;;  %v16455_v19 = vld [vmem:[%s26465_s1 + $0x2328] sm:$0xf] }
 0x3d4   :  { %10113 = vmatpush.bf16.msra.mxu0 %v16024_v45  ;;  %v16300_v45 = vor.u32 %v18045_v33, %v16299_v48  ;;  %v16083_v61 = vld [vmem:[%s26465_s1 + $0x2040] sm:$0xf]  ;;  %v17991_v48 = vld [vmem:[%s26465_s1 + $0x2048] sm:$0xf0]  ;;  %v18084_v37 = vld [vmem:[%s26465_s1 + $0x2330] sm:$0xf0] }
 0x3d5   :  { %10127 = vmatpush.bf16.msra.mxu1 %v16120_v32  ;;  %v17994_v32 = vld [vmem:[%s26465_s1 + $0x2060] sm:$0xf0]  ;;  %v24664_v49 = vmax.f32 %v26550_v12, %v7794_v8  ;;  %v16179_v33 = vld [vmem:[%s26465_s1 + $0x2100] sm:$0xf]  ;;  %v18015_v8 = vld [vmem:[%s26465_s1 + $0x2108] sm:$0xf0]  ;;  %v16084_v12 = vor.u32 %v17991_v48, %v16083_v61 }
 0x3d6   :  { %10141 = vmatpush.bf16.msra.mxu2 %v16216_v0  ;;  %v16191_v0 = vld [vmem:[%s26465_s1 + $0x2118] sm:$0xf]  ;;  %v16096_v23 = vor.u32 %v17994_v32, %v16095_v21  ;;  %v16551_v21 = vld [vmem:[%s26465_s1 + $0x23e8] sm:$0xf]  ;;  %v18108_v32 = vld [vmem:[%s26465_s1 + $0x23f0] sm:$0xf0] }
 0x3d7   :  { %10155 = vmatpush.bf16.msra.mxu3 %v16312_v9  ;;  %26551 = vst [vmem:[#allocation82_spill] sm:$0xff] %v24664_v49  ;;  %v16287_v9 = vld [vmem:[%s26465_s1 + $0x21d8] sm:$0xf]  ;;  %v16192_v56 = vor.u32 %v18018_v30, %v16191_v0  ;;  %v16647_v0 = vld [vmem:[%s26465_s1 + $0x24a8] sm:$0xf]  ;;  %v16552_v49 = vor.u32 %v18108_v32, %v16551_v21 }
 0x3d8   :  { %10114 = vmatpush.bf16.msra.mxu0 %v16012_v28  ;;  %v16288_v28 = vor.u32 %v18042_v41, %v16287_v9  ;;  %v18132_v30 = vld [vmem:[%s26465_s1 + $0x24b0] sm:$0xf0]  ;;  %v16180_v9 = vor.u32 %v18015_v8, %v16179_v33  ;;  %v16743_v41 = vld [vmem:[%s26465_s1 + $0x2568] sm:$0xf]  ;;  %v16539_v61 = vld [vmem:[%s26465_s1 + $0x23d0] sm:$0xf] }
 0x3d9   :  { %10128 = vmatpush.bf16.msra.mxu1 %v16108_v55  ;;  %v16275_v55 = vld [vmem:[%s26465_s1 + $0x21c0] sm:$0xf]  ;;  %v16648_v5 = vor.u32 %v18132_v30, %v16647_v0  ;;  %v18105_v33 = vld [vmem:[%s26465_s1 + $0x23d8] sm:$0xf0]  ;;  %v16431_v0 = vld [vmem:[%s26465_s1 + $0x22f8] sm:$0xf] }
 0x3da   :  { %10142 = vmatpush.bf16.msra.mxu2 %v16204_v53  ;;  %v18039_v53 = vld [vmem:[%s26465_s1 + $0x21c8] sm:$0xf0]  ;;  %v18129_v8 = vld [vmem:[%s26465_s1 + $0x2498] sm:$0xf0]  ;;  %v18078_v30 = vld [vmem:[%s26465_s1 + $0x2300] sm:$0xf0] }
 0x3db   :  { %10156 = vmatpush.bf16.msra.mxu3 %v16300_v45  ;;  %v15988_v45 = vor.u32 %v17967_v51, %v15987_v52  ;;  %v16276_v52 = vor.u32 %v18039_v53, %v16275_v55  ;;  %v16456_v51 = vor.u32 %v18084_v37, %v16455_v19  ;;  %v16731_v55 = vld [vmem:[%s26465_s1 + $0x2550] sm:$0xf]  ;;  %v18153_v53 = vld [vmem:[%s26465_s1 + $0x2558] sm:$0xf0]  ;;  %v24744_v19 = vpop.f32.mrf.mxu0  ;;  %v24746_v37 = vpop.f32.mrf.mxu1 }
 0x3dc   :  { %10115 = vmatpush.bf16.msra.mxu0 %v16000_v63  ;;  %v18156_v63 = vld [vmem:[%s26465_s1 + $0x2570] sm:$0xf0]  ;;  %26552 = vst [vmem:[#allocation83_spill] sm:$0xff] %v24744_v19 }
 0x3dd   :  { %10129 = vmatpush.bf16.msra.mxu1 %v16096_v23  ;;  %v16443_v23 = vld [vmem:[%s26465_s1 + $0x2310] sm:$0xf]  ;;  %v16744_v48 = vor.u32 %v18156_v63, %v16743_v41  ;;  %26553 = vst [vmem:[#allocation84_spill] sm:$0xff] %v24746_v37  ;;  %v18126_v41 = vld [vmem:[%s26465_s1 + $0x2480] sm:$0xf0] }
 0x3de   :  { %10143 = vmatpush.bf16.msra.mxu2 %v16192_v56  ;;  %v18081_v56 = vld [vmem:[%s26465_s1 + $0x2318] sm:$0xf0]  ;;  %v16719_v63 = vld [vmem:[%s26465_s1 + $0x2538] sm:$0xf] }
 0x3df   :  { %10157 = vmatpush.bf16.msra.mxu3 %v16288_v28  ;;  %v16635_v28 = vld [vmem:[%s26465_s1 + $0x2490] sm:$0xf]  ;;  %v16444_v21 = vor.u32 %v18081_v56, %v16443_v23 }
 0x3e0   :  { %10116 = vmatpush.bf16.msra.mxu0 %v15988_v45  ;;  %v16540_v45 = vor.u32 %v18105_v33, %v16539_v61  ;;  %v16636_v32 = vor.u32 %v18129_v8, %v16635_v28  ;;  %v16419_v61 = vld [vmem:[%s26465_s1 + $0x22e0] sm:$0xf]  ;;  %v24785_v28 = vpop.f32.mrf.mxu2 }
 0x3e1   :  { %10130 = vmatpush.bf16.msra.mxu1 %v16084_v12  ;;  %v16527_v12 = vld [vmem:[%s26465_s1 + $0x23b8] sm:$0xf]  ;;  %v16515_v33 = vld [vmem:[%s26465_s1 + $0x23a0] sm:$0xf]  ;;  %26554 = vst [vmem:[#allocation85_spill] sm:$0xff] %v24785_v28 }
 0x3e2   :  { %10144 = vmatpush.bf16.msra.mxu2 %v16180_v9  ;;  %v16732_v9 = vor.u32 %v18153_v53, %v16731_v55  ;;  %v18099_v55 = vld [vmem:[%s26465_s1 + $0x23a8] sm:$0xf0]  ;;  %v16611_v53 = vld [vmem:[%s26465_s1 + $0x2460] sm:$0xf]  ;;  %v16479_v28 = vld [vmem:[%s26465_s1 + $0x2358] sm:$0xf] }
 0x3e3   :  { %10158 = vmatpush.bf16.msra.mxu3 %v16276_v52  ;;  %10117 = vmatmul.bf16.vlgmr.msra.gmra.mxu0 %v18531_v17  ;;  %v18150_v52 = vld [vmem:[%s26465_s1 + $0x2540] sm:$0xf0] }
 0x3e4   :  { %10165 = vmatpush.bf16.msrb.mxu0 %v16456_v51  ;;  %10131 = vmatmul.bf16.vlgmr.msra.gmra.mxu1 %v18703_v39  ;;  %v16432_v51 = vor.u32 %v18078_v30, %v16431_v0  ;;  %v16720_v8 = vor.u32 %v18150_v52, %v16719_v63  ;;  %v18147_v0 = vld [vmem:[%s26465_s1 + $0x2528] sm:$0xf0]  ;;  %v18072_v63 = vld [vmem:[%s26465_s1 + $0x22d0] sm:$0xf0]  ;;  %v16503_v52 = vld [vmem:[%s26465_s1 + $0x2388] sm:$0xf] }
 0x3e5   :  { %10179 = vmatpush.bf16.msrb.mxu1 %v16552_v49  ;;  %v16623_v49 = vld [vmem:[%s26465_s1 + $0x2478] sm:$0xf]  ;;  %10145 = vmatmul.bf16.vlgmr.msra.gmra.mxu2 %v18716_v44 }
 0x3e6   :  { %10193 = vmatpush.bf16.msrb.mxu2 %v16648_v5  ;;  %v18102_v5 = vld [vmem:[%s26465_s1 + $0x23c0] sm:$0xf0]  ;;  %10159 = vmatmul.bf16.vlgmr.msra.gmra.mxu3 %v18714_v43  ;;  %v16624_v56 = vor.u32 %v18126_v41, %v16623_v49  ;;  %v16407_v41 = vld [vmem:[%s26465_s1 + $0x22c8] sm:$0xf] }
 0x3e7   :  { %10207 = vmatpush.bf16.msrb.mxu3 %v16744_v48  ;;  %v16528_v23 = vor.u32 %v18102_v5, %v16527_v12  ;;  %v18075_v48 = vld [vmem:[%s26465_s1 + $0x22e8] sm:$0xf0]  ;;  %v7807_v12 = vpop.f32.mrf.mxu0  ;;  %v16516_v5 = vor.u32 %v18099_v55, %v16515_v33  ;;  %v16695_v33 = vld [vmem:[%s26465_s1 + $0x2508] sm:$0xf]  ;;  %v16408_v55 = vor.u32 %v18072_v63, %v16407_v41  ;;  %v16683_v63 = vld [vmem:[%s26465_s1 + $0x24f0] sm:$0xf] }
 0x3e8   :  { %10166 = vmatpush.bf16.msrb.mxu0 %v16444_v21  ;;  %v18123_v21 = vld [vmem:[%s26465_s1 + $0x2468] sm:$0xf0]  ;;  %v16420_v30 = vor.u32 %v18075_v48, %v16419_v61  ;;  %v18120_v48 = vld [vmem:[%s26465_s1 + $0x2450] sm:$0xf0]  ;;  %v7835_v41 = vpop.f32.mrf.mxu2 }
 0x3e9   :  { %10180 = vmatpush.bf16.msrb.mxu1 %v16540_v45  ;;  %v24796_v45 = vpop.f32.mrf.mxu3  ;;  %v16612_v49 = vor.u32 %v18123_v21, %v16611_v53 }
 0x3ea   :  { %10194 = vmatpush.bf16.msrb.mxu2 %v16636_v32  ;;  %26555 = vst [vmem:[#allocation86_spill] sm:$0xff] %v24796_v45  ;;  %v16707_v32 = vld [vmem:[%s26465_s1 + $0x2520] sm:$0xf]  ;;  %v18066_v45 = vld [vmem:[%s26465_s1 + $0x22a0] sm:$0xf0] }
 0x3eb   :  { %10208 = vmatpush.bf16.msrb.mxu3 %v16732_v9  ;;  %v7821_v9 = vpop.f32.mrf.mxu1  ;;  %v16708_v61 = vor.u32 %v18147_v0, %v16707_v32  ;;  %v16395_v32 = vld [vmem:[%s26465_s1 + $0x22b0] sm:$0xf]  ;;  %v18069_v0 = vld [vmem:[%s26465_s1 + $0x22b8] sm:$0xf0] }
 0x3ec   :  { %10167 = vmatpush.bf16.msrb.mxu0 %v16432_v51  ;;  %v7822_v51 = vadd.f32 %v7821_v9, %v7807_v12  ;;  %v16491_v12 = vld [vmem:[%s26465_s1 + $0x2370] sm:$0xf] }
 0x3ed   :  { %10181 = vmatpush.bf16.msrb.mxu1 %v16528_v23  ;;  %v18096_v23 = vld [vmem:[%s26465_s1 + $0x2390] sm:$0xf0] }
 0x3ee   :  { %10195 = vmatpush.bf16.msrb.mxu2 %v16624_v56  ;;  %v16599_v56 = vld [vmem:[%s26465_s1 + $0x2448] sm:$0xf]  ;;  %v16504_v53 = vor.u32 %v18096_v23, %v16503_v52  ;;  %v18141_v52 = vld [vmem:[%s26465_s1 + $0x24f8] sm:$0xf0]  ;;  %v16396_v23 = vor.u32 %v18069_v0, %v16395_v32  ;;  %v18114_v32 = vld [vmem:[%s26465_s1 + $0x2420] sm:$0xf0] }
 0x3ef   :  { %10209 = vmatpush.bf16.msrb.mxu3 %v16720_v8  ;;  %v18144_v8 = vld [vmem:[%s26465_s1 + $0x2510] sm:$0xf0]  ;;  %v16600_v21 = vor.u32 %v18120_v48, %v16599_v56  ;;  %v16671_v0 = vld [vmem:[%s26465_s1 + $0x24d8] sm:$0xf]  ;;  %v7809_v22 = vpop.f32.mrf.mxu0 }
 0x3f0   :  { %10168 = vmatpush.bf16.msrb.mxu0 %v16420_v30  ;;  %v16696_v9 = vor.u32 %v18144_v8, %v16695_v33  ;;  %v18093_v30 = vld [vmem:[%s26465_s1 + $0x2378] sm:$0xf0]  ;;  %v16383_v8 = vld [vmem:[%s26465_s1 + $0x2298] sm:$0xf] }
 0x3f1   :  { %10182 = vmatpush.bf16.msrb.mxu1 %v16516_v5  ;;  %v16587_v5 = vld [vmem:[%s26465_s1 + $0x2430] sm:$0xf]  ;;  %v7849_v56 = vpop.f32.mrf.mxu3  ;;  %v16492_v48 = vor.u32 %v18093_v30, %v16491_v12  ;;  %v18138_v12 = vld [vmem:[%s26465_s1 + $0x24e0] sm:$0xf0]  ;;  %v16371_v30 = vld [vmem:[%s26465_s1 + $0x2280] sm:$0xf] }
 0x3f2   :  { %10196 = vmatpush.bf16.msrb.mxu2 %v16612_v49  ;;  %v18117_v49 = vld [vmem:[%s26465_s1 + $0x2438] sm:$0xf0] }
 0x3f3   :  { %10210 = vmatpush.bf16.msrb.mxu3 %v16708_v61  ;;  %v7836_v61 = vadd.f32 %v7835_v41, %v7822_v51  ;;  %v16588_v33 = vor.u32 %v18117_v49, %v16587_v5  ;;  %v18063_v5 = vld [vmem:[%s26465_s1 + $0x2288] sm:$0xf0] }
 0x3f4   :  { %10169 = vmatpush.bf16.msrb.mxu0 %v16408_v55  ;;  %v16684_v55 = vor.u32 %v18141_v52, %v16683_v63  ;;  %v16467_v63 = vld [vmem:[%s26465_s1 + $0x2340] sm:$0xf] }
 0x3f5   :  { %10183 = vmatpush.bf16.msrb.mxu1 %v16504_v53  ;;  %v24861_v51 = vadd.f32 %v7849_v56, %v7836_v61  ;;  %v18090_v53 = vld [vmem:[%s26465_s1 + $0x2360] sm:$0xf0]  ;;  %v16563_v52 = vld [vmem:[%s26465_s1 + $0x2400] sm:$0xf]  ;;  %v16672_v61 = vor.u32 %v18138_v12, %v16671_v0  ;;  %v18135_v56 = vld [vmem:[%s26465_s1 + $0x24c8] sm:$0xf0] }
 0x3f6   :  { %10197 = vmatpush.bf16.msrb.mxu2 %v16600_v21  ;;  %v16575_v21 = vld [vmem:[%s26465_s1 + $0x2418] sm:$0xf]  ;;  %v16480_v49 = vor.u32 %v18090_v53, %v16479_v28  ;;  %v16659_v28 = vld [vmem:[%s26465_s1 + $0x24c0] sm:$0xf]  ;;  %v18204_v53 = vld [vmem:[%s26465_s1 + $0x26f0] sm:$0xf0] }
 0x3f7   :  { %10211 = vmatpush.bf16.msrb.mxu3 %v16696_v9  ;;  %v16384_v9 = vor.u32 %v18066_v45, %v16383_v8  ;;  %v16576_v41 = vor.u32 %v18114_v32, %v16575_v21  ;;  %v18087_v45 = vld [vmem:[%s26465_s1 + $0x2348] sm:$0xf0]  ;;  %v16935_v8 = vld [vmem:[%s26465_s1 + $0x26e8] sm:$0xf]  ;;  %v15785_v32 = vld [vmem:[%s26465_s1 + $0x1df4] sm:$0xf0] }
 0x3f8   :  { %10170 = vmatpush.bf16.msrb.mxu0 %v16396_v23  ;;  %v18111_v23 = vld [vmem:[%s26465_s1 + $0x2408] sm:$0xf0]  ;;  %v16468_v0 = vor.u32 %v18087_v45, %v16467_v63  ;;  %v16936_v19 = vor.u32 %v18204_v53, %v16935_v8  ;;  %v16923_v63 = vld [vmem:[%s26465_s1 + $0x26d0] sm:$0xf]  ;;  %v16815_v53 = vld [vmem:[%s26465_s1 + $0x25f8] sm:$0xf] }
 0x3f9   :  { %10184 = vmatpush.bf16.msrb.mxu1 %v16492_v48  ;;  %v16839_v48 = vld [vmem:[%s26465_s1 + $0x2628] sm:$0xf]  ;;  %v17915_v21 = vld [vmem:[%s26465_s1 + $0x1dec] sm:$0xf]  ;;  %v16564_v12 = vor.u32 %v18111_v23, %v16563_v52  ;;  %v18201_v52 = vld [vmem:[%s26465_s1 + $0x26d8] sm:$0xf0] }
 0x3fa   :  { %10198 = vmatpush.bf16.msrb.mxu2 %v16588_v33  ;;  %v18180_v33 = vld [vmem:[%s26465_s1 + $0x2630] sm:$0xf0]  ;;  %v15788_v24 = vor.u32 %v17915_v21, %v15785_v32  ;;  %v15773_v23 = vld [vmem:[%s26465_s1 + $0x1ddc] sm:$0xf0]  ;;  %v16924_v8 = vor.u32 %v18201_v52, %v16923_v63  ;;  %v18174_v21 = vld [vmem:[%s26465_s1 + $0x2600] sm:$0xf0]  ;;  %v7851_v63 = vpop.f32.mrf.mxu3 }
 0x3fb   :  { %10212 = vmatpush.bf16.msrb.mxu3 %v16684_v55  ;;  %v16372_v55 = vor.u32 %v18063_v5, %v16371_v30  ;;  %v15881_v30 = vld [vmem:[%s26465_s1 + $0x1eb4] sm:$0xf0]  ;;  %v16660_v5 = vor.u32 %v18135_v56, %v16659_v28  ;;  %v16840_v37 = vor.u32 %v18180_v33, %v16839_v48  ;;  %v7823_v28 = vpop.f32.mrf.mxu1  ;;  %v17936_v56 = vld [vmem:[%s26465_s1 + $0x1e94] sm:$0xf]  ;;  %v15869_v48 = vld [vmem:[%s26465_s1 + $0x1e9c] sm:$0xf0] }
 0x3fc   :  { %10171 = vmatpush.bf16.msrb.mxu0 %v16384_v9  ;;  %v17939_v9 = vld [vmem:[%s26465_s1 + $0x1eac] sm:$0xf]  ;;  %v16911_v32 = vld [vmem:[%s26465_s1 + $0x26b8] sm:$0xf] }
 0x3fd   :  { %10185 = vmatpush.bf16.msrb.mxu1 %v16480_v49  ;;  %v16827_v49 = vld [vmem:[%s26465_s1 + $0x2610] sm:$0xf]  ;;  %v15884_v45 = vor.u32 %v17939_v9, %v15881_v30  ;;  %v15857_v9 = vld [vmem:[%s26465_s1 + $0x1e84] sm:$0xf0]  ;;  %v16816_v30 = vor.u32 %v18174_v21, %v16815_v53  ;;  %v18171_v52 = vld [vmem:[%s26465_s1 + $0x25e8] sm:$0xf0] }
 0x3fe   :  { %10199 = vmatpush.bf16.msrb.mxu2 %v16576_v41  ;;  %v18177_v41 = vld [vmem:[%s26465_s1 + $0x2618] sm:$0xf0]  ;;  %v17930_v53 = vld [vmem:[%s26465_s1 + $0x1e64] sm:$0xf] }
 0x3ff   :  { %10213 = vmatpush.bf16.msrb.mxu3 %v16672_v61  ;;  %v17912_v61 = vld [vmem:[%s26465_s1 + $0x1dd4] sm:$0xf]  ;;  %v16828_v33 = vor.u32 %v18177_v41, %v16827_v49 }
 0x400   :  { %10172 = vmatpush.bf16.msrb.mxu0 %v16372_v55  ;;  %v15776_v55 = vor.u32 %v17912_v61, %v15773_v23  ;;  %v16899_v61 = vld [vmem:[%s26465_s1 + $0x26a0] sm:$0xf]  ;;  %v7824_v23 = vadd.f32 %v7823_v28, %v7809_v22  ;;  %v15845_v22 = vld [vmem:[%s26465_s1 + $0x1e6c] sm:$0xf0] }
 0x401   :  { %10186 = vmatpush.bf16.msrb.mxu1 %v16468_v0  ;;  %v15761_v0 = vld [vmem:[%s26465_s1 + $0x1dc4] sm:$0xf0] }
 0x402   :  { %10200 = vmatpush.bf16.msrb.mxu2 %v16564_v12  ;;  %v17933_v12 = vld [vmem:[%s26465_s1 + $0x1e7c] sm:$0xf] }
 0x403   :  { %10214 = vmatpush.bf16.msrb.mxu3 %v16660_v5  ;;  %10173 = vmatmul.bf16.vlgmr.msrb.gmra.mxu0 %v18724_v47  ;;  %v7837_v5 = vpop.f32.mrf.mxu2 }
 0x404   :  { %10221 = vmatpush.bf16.msra.mxu0 %v16840_v37  ;;  %v15872_v37 = vor.u32 %v17936_v56, %v15869_v48  ;;  %10187 = vmatmul.bf16.vlgmr.msrb.gmra.mxu1 %v18931_v31  ;;  %v15860_v56 = vor.u32 %v17933_v12, %v15857_v9  ;;  %v18195_v48 = vld [vmem:[%s26465_s1 + $0x26a8] sm:$0xf0]  ;;  %v16887_v12 = vld [vmem:[%s26465_s1 + $0x2688] sm:$0xf]  ;;  %v15848_v9 = vor.u32 %v17930_v53, %v15845_v22 }
 0x405   :  { %10235 = vmatpush.bf16.msra.mxu1 %v16936_v19  ;;  %v17909_v19 = vld [vmem:[%s26465_s1 + $0x1dbc] sm:$0xf]  ;;  %10201 = vmatmul.bf16.vlgmr.msrb.gmra.mxu2 %v18944_v36 }
 0x406   :  { %10249 = vmatpush.bf16.msra.mxu2 %v15788_v24  ;;  %v18198_v24 = vld [vmem:[%s26465_s1 + $0x26c0] sm:$0xf0]  ;;  %10215 = vmatmul.bf16.vlgmr.msrb.gmra.mxu3 %v18942_v35  ;;  %v15764_v41 = vor.u32 %v17909_v19, %v15761_v0  ;;  %v16791_v19 = vld [vmem:[%s26465_s1 + $0x25c8] sm:$0xf]  ;;  %v18168_v0 = vld [vmem:[%s26465_s1 + $0x25d0] sm:$0xf0] }
 0x407   :  { %10263 = vmatpush.bf16.msra.mxu3 %v15884_v45  ;;  %v16912_v49 = vor.u32 %v18198_v24, %v16911_v32  ;;  %v16803_v45 = vld [vmem:[%s26465_s1 + $0x25e0] sm:$0xf]  ;;  %v7877_v32 = vpop.f32.mrf.mxu1 }
 0x408   :  { %10222 = vmatpush.bf16.msra.mxu0 %v16828_v33  ;;  %v17906_v33 = vld [vmem:[%s26465_s1 + $0x1da4] sm:$0xf]  ;;  %v16804_v21 = vor.u32 %v18171_v52, %v16803_v45  ;;  %v15737_v45 = vld [vmem:[%s26465_s1 + $0x1d94] sm:$0xf0]  ;;  %v17927_v52 = vld [vmem:[%s26465_s1 + $0x1e4c] sm:$0xf] }
 0x409   :  { %10236 = vmatpush.bf16.msra.mxu1 %v16924_v8  ;;  %v15749_v8 = vld [vmem:[%s26465_s1 + $0x1dac] sm:$0xf0] }
 0x40a   :  { %10250 = vmatpush.bf16.msra.mxu2 %v15776_v55  ;;  %v7863_v55 = vpop.f32.mrf.mxu0  ;;  %v15752_v24 = vor.u32 %v17906_v33, %v15749_v8  ;;  %v18165_v33 = vld [vmem:[%s26465_s1 + $0x25b8] sm:$0xf0]  ;;  %v16875_v8 = vld [vmem:[%s26465_s1 + $0x2670] sm:$0xf] }
 0x40b   :  { %10264 = vmatpush.bf16.msra.mxu3 %v15872_v37  ;;  %v7864_v28 = vadd.f32 %v7863_v55, %v24861_v51  ;;  %v16900_v37 = vor.u32 %v18195_v48, %v16899_v61  ;;  %v7838_v51 = vadd.f32 %v7837_v5, %v7824_v23  ;;  %v15833_v5 = vld [vmem:[%s26465_s1 + $0x1e54] sm:$0xf0]  ;;  %v16792_v61 = vor.u32 %v18168_v0, %v16791_v19  ;;  %v16779_v48 = vld [vmem:[%s26465_s1 + $0x25b0] sm:$0xf]  ;;  %v7891_v22 = vpop.f32.mrf.mxu2  ;;  %v7905_v19 = vpop.f32.mrf.mxu3  ;;  %v15821_v0 = vld [vmem:[%s26465_s1 + $0x1e3c] sm:$0xf0] }
 0x40c   :  { %10223 = vmatpush.bf16.msra.mxu0 %v16816_v30  ;;  %v15836_v53 = vor.u32 %v17927_v52, %v15833_v5  ;;  %v18162_v52 = vld [vmem:[%s26465_s1 + $0x25a0] sm:$0xf0]  ;;  %v16863_v5 = vld [vmem:[%s26465_s1 + $0x2658] sm:$0xf] }
 0x40d   :  { %10237 = vmatpush.bf16.msra.mxu1 %v16912_v49  ;;  %v7878_v30 = vadd.f32 %v7877_v32, %v7864_v28  ;;  %v18192_v49 = vld [vmem:[%s26465_s1 + $0x2690] sm:$0xf0]  ;;  %v7852_v55 = vadd.f32 %v7851_v63, %v7838_v51  ;;  %v18189_v28 = vld [vmem:[%s26465_s1 + $0x2678] sm:$0xf0]  ;;  %v15725_v32 = vld [vmem:[%s26465_s1 + $0x1d7c] sm:$0xf0]  ;;  %v16780_v51 = vor.u32 %v18165_v33, %v16779_v48 }
 0x40e   :  { %10251 = vmatpush.bf16.msra.mxu2 %v15764_v41  ;;  %v17903_v41 = vld [vmem:[%s26465_s1 + $0x1d8c] sm:$0xf]  ;;  %v16888_v23 = vor.u32 %v18192_v49, %v16887_v12  ;;  %v17924_v63 = vld [vmem:[%s26465_s1 + $0x1e34] sm:$0xf]  ;;  %v17897_v48 = vld [vmem:[%s26465_s1 + $0x1d5c] sm:$0xf] }
 0x40f   :  { %10265 = vmatpush.bf16.msra.mxu3 %v15860_v56  ;;  %v15740_v56 = vor.u32 %v17903_v41, %v15737_v45  ;;  %v16876_v41 = vor.u32 %v18189_v28, %v16875_v8  ;;  %v16767_v45 = vld [vmem:[%s26465_s1 + $0x2598] sm:$0xf]  ;;  %v15713_v33 = vld [vmem:[%s26465_s1 + $0x1d64] sm:$0xf0]  ;;  %v17921_v8 = vld [vmem:[%s26465_s1 + $0x1e1c] sm:$0xf] }
 0x410   :  { %10224 = vmatpush.bf16.msra.mxu0 %v16804_v21  ;;  %v17900_v21 = vld [vmem:[%s26465_s1 + $0x1d74] sm:$0xf]  ;;  %v18159_v28 = vld [vmem:[%s26465_s1 + $0x2588] sm:$0xf0] }
 0x411   :  { %10238 = vmatpush.bf16.msra.mxu1 %v16900_v37  ;;  %v7892_v37 = vadd.f32 %v7891_v22, %v7878_v30  ;;  %v15728_v30 = vor.u32 %v17900_v21, %v15725_v32  ;;  %v16755_v22 = vld [vmem:[%s26465_s1 + $0x2580] sm:$0xf]  ;;  %v15716_v32 = vor.u32 %v17897_v48, %v15713_v33  ;;  %v16169_v48 = vld [vmem:[%s26465_s1 + $0x20f4] sm:$0xf0] }
 0x412   :  { %10252 = vmatpush.bf16.msra.mxu2 %v15752_v24  ;;  %v7865_v24 = vpop.f32.mrf.mxu0 }
 0x413   :  { %10266 = vmatpush.bf16.msra.mxu3 %v15848_v9  ;;  %v7866_v12 = vadd.f32 %v7865_v24, %v7852_v55  ;;  %v7879_v9 = vpop.f32.mrf.mxu1  ;;  %v25051_v49 = vadd.f32 %v7905_v19, %v7892_v37  ;;  %v15809_v55 = vld [vmem:[%s26465_s1 + $0x1e24] sm:$0xf0]  ;;  %v16851_v37 = vld [vmem:[%s26465_s1 + $0x2640] sm:$0xf]  ;;  %v18183_v24 = vld [vmem:[%s26465_s1 + $0x2648] sm:$0xf0] }
 0x414   :  { %10225 = vmatpush.bf16.msra.mxu0 %v16792_v61  ;;  %v15824_v61 = vor.u32 %v17924_v63, %v15821_v0  ;;  %v17894_v19 = vld [vmem:[%s26465_s1 + $0x1d44] sm:$0xf]  ;;  %v15812_v63 = vor.u32 %v17921_v8, %v15809_v55  ;;  %v7893_v0 = vpop.f32.mrf.mxu2  ;;  %v16852_v8 = vor.u32 %v18183_v24, %v16851_v37  ;;  %v17984_v37 = vld [vmem:[%s26465_s1 + $0x2014] sm:$0xf] }
 0x415   :  { %10239 = vmatpush.bf16.msra.mxu1 %v16888_v23  ;;  %v7880_v23 = vadd.f32 %v7879_v9, %v7866_v12  ;;  %v15701_v12 = vld [vmem:[%s26465_s1 + $0x1d4c] sm:$0xf0] }
 0x416   :  { %10253 = vmatpush.bf16.msra.mxu2 %v15740_v56  ;;  %v18186_v56 = vld [vmem:[%s26465_s1 + $0x2660] sm:$0xf0]  ;;  %v15797_v9 = vld [vmem:[%s26465_s1 + $0x1e0c] sm:$0xf0]  ;;  %v15704_v55 = vor.u32 %v17894_v19, %v15701_v12  ;;  %v16061_v19 = vld [vmem:[%s26465_s1 + $0x201c] sm:$0xf0] }
 0x417   :  { %10267 = vmatpush.bf16.msra.mxu3 %v15836_v53  ;;  %v16768_v53 = vor.u32 %v18162_v52, %v16767_v45  ;;  %v16864_v21 = vor.u32 %v18186_v56, %v16863_v5  ;;  %v17963_v45 = vld [vmem:[%s26465_s1 + $0x1f6c] sm:$0xf]  ;;  %v15977_v52 = vld [vmem:[%s26465_s1 + $0x1f74] sm:$0xf0]  ;;  %v16157_v12 = vld [vmem:[%s26465_s1 + $0x20dc] sm:$0xf0] }
 0x418   :  { %10226 = vmatpush.bf16.msra.mxu0 %v16780_v51  ;;  %v17918_v51 = vld [vmem:[%s26465_s1 + $0x1e04] sm:$0xf]  ;;  %v17987_v5 = vld [vmem:[%s26465_s1 + $0x202c] sm:$0xf]  ;;  %v16073_v56 = vld [vmem:[%s26465_s1 + $0x2034] sm:$0xf0] }
 0x419   :  { %10240 = vmatpush.bf16.msra.mxu1 %v16876_v41  ;;  %v7894_v41 = vadd.f32 %v7893_v0, %v7880_v23  ;;  %v18011_v23 = vld [vmem:[%s26465_s1 + $0x20ec] sm:$0xf]  ;;  %v15980_v0 = vor.u32 %v17963_v45, %v15977_v52  ;;  %v16076_v14 = vor.u32 %v17987_v5, %v16073_v56  ;;  %v17957_v52 = vld [vmem:[%s26465_s1 + $0x1f3c] sm:$0xf]  ;;  %v15953_v5 = vld [vmem:[%s26465_s1 + $0x1f44] sm:$0xf0] }
 0x41a   :  { %10254 = vmatpush.bf16.msra.mxu2 %v15728_v30  ;;  %v7907_v30 = vpop.f32.mrf.mxu3  ;;  %v16172_v38 = vor.u32 %v18011_v23, %v16169_v48  ;;  %v16145_v23 = vld [vmem:[%s26465_s1 + $0x20c4] sm:$0xf0]  ;;  %v18029_v48 = vld [vmem:[%s26465_s1 + $0x217c] sm:$0xf] }
 0x41b   :  { %10268 = vmatpush.bf16.msra.mxu3 %v15824_v61  ;;  %v16756_v61 = vor.u32 %v18159_v28, %v16755_v22  ;;  %v25119_v33 = vadd.f32 %v7907_v30, %v7894_v41  ;;  %v16265_v22 = vld [vmem:[%s26465_s1 + $0x21b4] sm:$0xf0]  ;;  %v15800_v28 = vor.u32 %v17918_v51, %v15797_v9  ;;  %v18032_v51 = vld [vmem:[%s26465_s1 + $0x2194] sm:$0xf]  ;;  %v16253_v9 = vld [vmem:[%s26465_s1 + $0x219c] sm:$0xf0]  ;;  %v16064_v30 = vor.u32 %v17984_v37, %v16061_v19 }
 0x41c   :  { %10227 = vmatpush.bf16.msra.mxu0 %v16768_v53  ;;  %v18035_v53 = vld [vmem:[%s26465_s1 + $0x21ac] sm:$0xf]  ;;  %v16256_v56 = vor.u32 %v18032_v51, %v16253_v9  ;;  %v16037_v37 = vld [vmem:[%s26465_s1 + $0x1fec] sm:$0xf0] }
 0x41d   :  { %10241 = vmatpush.bf16.msra.mxu1 %v16864_v21  ;;  %v17960_v21 = vld [vmem:[%s26465_s1 + $0x1f54] sm:$0xf]  ;;  %v16268_v24 = vor.u32 %v18035_v53, %v16265_v22  ;;  %v16133_v19 = vld [vmem:[%s26465_s1 + $0x20ac] sm:$0xf0] }
 0x41e   :  { %10255 = vmatpush.bf16.msra.mxu2 %v15716_v32  ;;  %v15965_v32 = vld [vmem:[%s26465_s1 + $0x1f5c] sm:$0xf0]  ;;  %v16229_v51 = vld [vmem:[%s26465_s1 + $0x216c] sm:$0xf0] }
 0x41f   :  { %10269 = vmatpush.bf16.msra.mxu3 %v15812_v63  ;;  %v18008_v63 = vld [vmem:[%s26465_s1 + $0x20d4] sm:$0xf]  ;;  %v15968_v41 = vor.u32 %v17960_v21, %v15965_v32  ;;  %v17978_v21 = vld [vmem:[%s26465_s1 + $0x1fe4] sm:$0xf] }
 0x420   :  { %10228 = vmatpush.bf16.msra.mxu0 %v16756_v61  ;;  %v16160_v45 = vor.u32 %v18008_v63, %v16157_v12  ;;  %v17981_v61 = vld [vmem:[%s26465_s1 + $0x1ffc] sm:$0xf]  ;;  %v7919_v63 = vpop.f32.mrf.mxu0  ;;  %v18026_v12 = vld [vmem:[%s26465_s1 + $0x2164] sm:$0xf] }
 0x421   :  { %10242 = vmatpush.bf16.msra.mxu1 %v16852_v8  ;;  %v16241_v8 = vld [vmem:[%s26465_s1 + $0x2184] sm:$0xf0]  ;;  %v7920_v9 = vadd.f32 %v7919_v63, %v25051_v49  ;;  %v16232_v49 = vor.u32 %v18026_v12, %v16229_v51  ;;  %v17996_v63 = vld [vmem:[%s26465_s1 + $0x2074] sm:$0xf]  ;;  %v16109_v12 = vld [vmem:[%s26465_s1 + $0x207c] sm:$0xf0] }
 0x422   :  { %10256 = vmatpush.bf16.msra.mxu2 %v15704_v55  ;;  %v15956_v55 = vor.u32 %v17957_v52, %v15953_v5  ;;  %v16244_v32 = vor.u32 %v18029_v48, %v16241_v8  ;;  %v17951_v5 = vld [vmem:[%s26465_s1 + $0x1f0c] sm:$0xf]  ;;  %v16121_v48 = vld [vmem:[%s26465_s1 + $0x2094] sm:$0xf0] }
 0x423   :  { %10270 = vmatpush.bf16.msra.mxu3 %v15800_v28  ;;  %10229 = vmatmul.bf16.vlgmr.msra.gmra.mxu0 %v18952_v40  ;;  %v17954_v28 = vld [vmem:[%s26465_s1 + $0x1f24] sm:$0xf]  ;;  %v18023_v8 = vld [vmem:[%s26465_s1 + $0x214c] sm:$0xf] }
 0x424   :  { %10277 = vmatpush.bf16.msrb.mxu0 %v15980_v0  ;;  %10243 = vmatmul.bf16.vlgmr.msra.gmra.mxu1 %v19141_v25  ;;  %v15941_v0 = vld [vmem:[%s26465_s1 + $0x1f2c] sm:$0xf0] }
 0x425   :  { %10291 = vmatpush.bf16.msrb.mxu1 %v16076_v14  ;;  %v18005_v14 = vld [vmem:[%s26465_s1 + $0x20bc] sm:$0xf]  ;;  %10257 = vmatmul.bf16.vlgmr.msra.gmra.mxu2 %v18481_v58 }
 0x426   :  { %10305 = vmatpush.bf16.msrb.mxu2 %v16172_v38  ;;  %v16049_v38 = vld [vmem:[%s26465_s1 + $0x2004] sm:$0xf0]  ;;  %10271 = vmatmul.bf16.vlgmr.msra.gmra.mxu3 %v18517_v10  ;;  %v16148_v22 = vor.u32 %v18005_v14, %v16145_v23  ;;  %v16025_v14 = vld [vmem:[%s26465_s1 + $0x1fd4] sm:$0xf0]  ;;  %v17999_v23 = vld [vmem:[%s26465_s1 + $0x208c] sm:$0xf] }
 0x427   :  { %10319 = vmatpush.bf16.msrb.mxu3 %v16268_v24  ;;  %v16052_v53 = vor.u32 %v17981_v61, %v16049_v38  ;;  %v18002_v24 = vld [vmem:[%s26465_s1 + $0x20a4] sm:$0xf]  ;;  %v15929_v61 = vld [vmem:[%s26465_s1 + $0x1f14] sm:$0xf0] }
 0x428   :  { %10278 = vmatpush.bf16.msrb.mxu0 %v15968_v41  ;;  %v15944_v41 = vor.u32 %v17954_v28, %v15941_v0  ;;  %v16136_v52 = vor.u32 %v18002_v24, %v16133_v19  ;;  %v16124_v28 = vor.u32 %v17999_v23, %v16121_v48  ;;  %v17948_v0 = vld [vmem:[%s26465_s1 + $0x1ef4] sm:$0xf]  ;;  %v7947_v24 = vpop.f32.mrf.mxu2  ;;  %v16013_v19 = vld [vmem:[%s26465_s1 + $0x1fbc] sm:$0xf0]  ;;  %v15905_v23 = vld [vmem:[%s26465_s1 + $0x1ee4] sm:$0xf0] }
 0x429   :  { %10292 = vmatpush.bf16.msrb.mxu1 %v16064_v30  ;;  %v7933_v30 = vpop.f32.mrf.mxu1 }
 0x42a   :  { %10306 = vmatpush.bf16.msrb.mxu2 %v16160_v45  ;;  %v16040_v45 = vor.u32 %v17978_v21, %v16037_v37  ;;  %v7934_v38 = vadd.f32 %v7933_v30, %v7920_v9  ;;  %v15917_v21 = vld [vmem:[%s26465_s1 + $0x1efc] sm:$0xf0]  ;;  %v7921_v9 = vpop.f32.mrf.mxu0  ;;  %v18020_v30 = vld [vmem:[%s26465_s1 + $0x2134] sm:$0xf] }
 0x42b   :  { %10320 = vmatpush.bf16.msrb.mxu3 %v16256_v56  ;;  %v17975_v56 = vld [vmem:[%s26465_s1 + $0x1fcc] sm:$0xf] }
 0x42c   :  { %10279 = vmatpush.bf16.msrb.mxu0 %v15956_v55  ;;  %v16217_v55 = vld [vmem:[%s26465_s1 + $0x2154] sm:$0xf0]  ;;  %v7948_v51 = vadd.f32 %v7947_v24, %v7934_v38  ;;  %v16112_v38 = vor.u32 %v17996_v63, %v16109_v12  ;;  %v17966_v63 = vld [vmem:[%s26465_s1 + $0x1f84] sm:$0xf]  ;;  %v15989_v12 = vld [vmem:[%s26465_s1 + $0x1f8c] sm:$0xf0] }
 0x42d   :  { %10293 = vmatpush.bf16.msrb.mxu1 %v16052_v53  ;;  %v15932_v53 = vor.u32 %v17951_v5, %v15929_v61  ;;  %v16220_v37 = vor.u32 %v18023_v8, %v16217_v55  ;;  %v15920_v5 = vor.u32 %v17948_v0, %v15917_v21  ;;  %v16001_v55 = vld [vmem:[%s26465_s1 + $0x1fa4] sm:$0xf0] }
 0x42e   :  { %10307 = vmatpush.bf16.msrb.mxu2 %v16148_v22  ;;  %v16028_v22 = vor.u32 %v17975_v56, %v16025_v14  ;;  %v17945_v14 = vld [vmem:[%s26465_s1 + $0x1edc] sm:$0xf]  ;;  %v16193_v0 = vld [vmem:[%s26465_s1 + $0x2124] sm:$0xf0] }
 0x42f   :  { %10321 = vmatpush.bf16.msrb.mxu3 %v16244_v32  ;;  %v17972_v32 = vld [vmem:[%s26465_s1 + $0x1fb4] sm:$0xf]  ;;  %v15908_v21 = vor.u32 %v17945_v14, %v15905_v23  ;;  %v18083_v14 = vld [vmem:[%s26465_s1 + $0x232c] sm:$0xf] }
 0x430   :  { %10280 = vmatpush.bf16.msrb.mxu0 %v15944_v41  ;;  %v7961_v41 = vpop.f32.mrf.mxu3 }
 0x431   :  { %10294 = vmatpush.bf16.msrb.mxu1 %v16040_v45  ;;  %v16205_v45 = vld [vmem:[%s26465_s1 + $0x213c] sm:$0xf0]  ;;  %v7935_v61 = vpop.f32.mrf.mxu1  ;;  %v25253_v56 = vadd.f32 %v7961_v41, %v7948_v51  ;;  %v17990_v51 = vld [vmem:[%s26465_s1 + $0x2044] sm:$0xf]  ;;  %v7949_v41 = vpop.f32.mrf.mxu2 }
 0x432   :  { %10308 = vmatpush.bf16.msrb.mxu2 %v16136_v52  ;;  %v7922_v52 = vadd.f32 %v7921_v9, %v25119_v33  ;;  %v17969_v33 = vld [vmem:[%s26465_s1 + $0x1f9c] sm:$0xf]  ;;  %v16208_v48 = vor.u32 %v18020_v30, %v16205_v45  ;;  %v16085_v30 = vld [vmem:[%s26465_s1 + $0x204c] sm:$0xf0]  ;;  %v18014_v45 = vld [vmem:[%s26465_s1 + $0x2104] sm:$0xf] }
 0x433   :  { %10322 = vmatpush.bf16.msrb.mxu3 %v16232_v49  ;;  %v16016_v49 = vor.u32 %v17972_v32, %v16013_v19  ;;  %v17942_v32 = vld [vmem:[%s26465_s1 + $0x1ec4] sm:$0xf]  ;;  %v16004_v24 = vor.u32 %v17969_v33, %v16001_v55  ;;  %v16457_v33 = vld [vmem:[%s26465_s1 + $0x2334] sm:$0xf0] }
 0x434   :  { %10281 = vmatpush.bf16.msrb.mxu0 %v15932_v53  ;;  %v7936_v8 = vadd.f32 %v7935_v61, %v7922_v52  ;;  %v17993_v53 = vld [vmem:[%s26465_s1 + $0x205c] sm:$0xf]  ;;  %v16181_v52 = vld [vmem:[%s26465_s1 + $0x210c] sm:$0xf0] }
 0x435   :  { %10295 = vmatpush.bf16.msrb.mxu1 %v16028_v22  ;;  %v16097_v22 = vld [vmem:[%s26465_s1 + $0x2064] sm:$0xf0] }
 0x436   :  { %10309 = vmatpush.bf16.msrb.mxu2 %v16124_v28  ;;  %v18017_v28 = vld [vmem:[%s26465_s1 + $0x211c] sm:$0xf]  ;;  %v16100_v19 = vor.u32 %v17993_v53, %v16097_v22  ;;  %v15992_v53 = vor.u32 %v17966_v63, %v15989_v12  ;;  %v16088_v22 = vor.u32 %v17990_v51, %v16085_v30  ;;  %v18080_v63 = vld [vmem:[%s26465_s1 + $0x2314] sm:$0xf]  ;;  %v16445_v51 = vld [vmem:[%s26465_s1 + $0x231c] sm:$0xf0] }
 0x437   :  { %10323 = vmatpush.bf16.msrb.mxu3 %v16220_v37  ;;  %v15893_v37 = vld [vmem:[%s26465_s1 + $0x1ecc] sm:$0xf0]  ;;  %v16196_v9 = vor.u32 %v18017_v28, %v16193_v0  ;;  %v18131_v28 = vld [vmem:[%s26465_s1 + $0x24ac] sm:$0xf]  ;;  %v16649_v0 = vld [vmem:[%s26465_s1 + $0x24b4] sm:$0xf0] }
 0x438   :  { %10282 = vmatpush.bf16.msrb.mxu0 %v15920_v5  ;;  %v7950_v5 = vadd.f32 %v7949_v41, %v7936_v8  ;;  %v7963_v61 = vpop.f32.mrf.mxu3  ;;  %v15896_v23 = vor.u32 %v17942_v32, %v15893_v37  ;;  %v16553_v8 = vld [vmem:[%s26465_s1 + $0x23f4] sm:$0xf0]  ;;  %v16460_v37 = vor.u32 %v18083_v14, %v16457_v33  ;;  %v16652_v12 = vor.u32 %v18131_v28, %v16649_v0  ;;  %v16541_v30 = vld [vmem:[%s26465_s1 + $0x23dc] sm:$0xf0]  ;;  %v16337_v14 = vld [vmem:[%s26465_s1 + $0x2244] sm:$0xf0] }
 0x439   :  { %10296 = vmatpush.bf16.msrb.mxu1 %v16016_v49  ;;  %v18059_v49 = vld [vmem:[%s26465_s1 + $0x226c] sm:$0xf]  ;;  %v16625_v28 = vld [vmem:[%s26465_s1 + $0x2484] sm:$0xf0] }
 0x43a   :  { %10310 = vmatpush.bf16.msrb.mxu2 %v16112_v38  ;;  %v16361_v38 = vld [vmem:[%s26465_s1 + $0x2274] sm:$0xf0]  ;;  %v25321_v55 = vadd.f32 %v7963_v61, %v7950_v5  ;;  %v16448_v61 = vor.u32 %v18080_v63, %v16445_v51  ;;  %v16421_v63 = vld [vmem:[%s26465_s1 + $0x22ec] sm:$0xf0] }
 0x43b   :  { %10324 = vmatpush.bf16.msrb.mxu3 %v16208_v48  ;;  %v18107_v48 = vld [vmem:[%s26465_s1 + $0x23ec] sm:$0xf]  ;;  %v16364_v32 = vor.u32 %v18059_v49, %v16361_v38  ;;  %v18053_v38 = vld [vmem:[%s26465_s1 + $0x223c] sm:$0xf]  ;;  %v16517_v51 = vld [vmem:[%s26465_s1 + $0x23ac] sm:$0xf0] }
 0x43c   :  { %10283 = vmatpush.bf16.msrb.mxu0 %v15908_v21  ;;  %v16184_v21 = vor.u32 %v18014_v45, %v16181_v52  ;;  %v16556_v41 = vor.u32 %v18107_v48, %v16553_v8  ;;  %v18128_v45 = vld [vmem:[%s26465_s1 + $0x2494] sm:$0xf]  ;;  %v16637_v52 = vld [vmem:[%s26465_s1 + $0x249c] sm:$0xf0]  ;;  %v16433_v48 = vld [vmem:[%s26465_s1 + $0x2304] sm:$0xf0]  ;;  %v16340_v0 = vor.u32 %v18053_v38, %v16337_v14 }
 0x43d   :  { %10297 = vmatpush.bf16.msrb.mxu1 %v16004_v24  ;;  %v18056_v24 = vld [vmem:[%s26465_s1 + $0x2254] sm:$0xf]  ;;  %v16640_v33 = vor.u32 %v18128_v45, %v16637_v52  ;;  %v18101_v8 = vld [vmem:[%s26465_s1 + $0x23bc] sm:$0xf]  ;;  %v16613_v45 = vld [vmem:[%s26465_s1 + $0x246c] sm:$0xf0] }
 0x43e   :  { %10311 = vmatpush.bf16.msrb.mxu2 %v16100_v19  ;;  %v16349_v19 = vld [vmem:[%s26465_s1 + $0x225c] sm:$0xf0]  ;;  %v18047_v38 = vld [vmem:[%s26465_s1 + $0x220c] sm:$0xf]  ;;  %v16313_v14 = vld [vmem:[%s26465_s1 + $0x2214] sm:$0xf0] }
 0x43f   :  { %10325 = vmatpush.bf16.msrb.mxu3 %v16196_v9  ;;  %v18104_v9 = vld [vmem:[%s26465_s1 + $0x23d4] sm:$0xf]  ;;  %v16352_v5 = vor.u32 %v18056_v24, %v16349_v19  ;;  %v18074_v24 = vld [vmem:[%s26465_s1 + $0x22e4] sm:$0xf] }
 0x440   :  { %10284 = vmatpush.bf16.msrb.mxu0 %v15896_v23  ;;  %v16544_v49 = vor.u32 %v18104_v9, %v16541_v30  ;;  %v18077_v23 = vld [vmem:[%s26465_s1 + $0x22fc] sm:$0xf]  ;;  %v7975_v9 = vpop.f32.mrf.mxu0  ;;  %v18122_v30 = vld [vmem:[%s26465_s1 + $0x2464] sm:$0xf] }
 0x441   :  { %10298 = vmatpush.bf16.msrb.mxu1 %v15992_v53  ;;  %v16529_v53 = vld [vmem:[%s26465_s1 + $0x23c4] sm:$0xf0]  ;;  %v7976_v52 = vadd.f32 %v7975_v9, %v25253_v56  ;;  %v26556_v56 = vmax.f32 %v21313_v46, %v23356_v4  ;;  %v16601_v46 = vld [vmem:[%s26465_s1 + $0x2454] sm:$0xf0]  ;;  %v16316_v4 = vor.u32 %v18047_v38, %v16313_v14 }
 0x442   :  { %10312 = vmatpush.bf16.msrb.mxu2 %v16088_v22  ;;  %v18125_v22 = vld [vmem:[%s26465_s1 + $0x247c] sm:$0xf] }
 0x443   :  { %10326 = vmatpush.bf16.msrb.mxu3 %v16184_v21  ;;  %10285 = vmatmul.bf16.vlgmr.msrb.gmra.mxu0 %v18495_v1  ;;  %v16436_v21 = vor.u32 %v18077_v23, %v16433_v48  ;;  %v16628_v19 = vor.u32 %v18125_v22, %v16625_v28  ;;  %v18071_v23 = vld [vmem:[%s26465_s1 + $0x22cc] sm:$0xf]  ;;  %v16616_v48 = vor.u32 %v18122_v30, %v16613_v45  ;;  %v16505_v22 = vld [vmem:[%s26465_s1 + $0x2394] sm:$0xf0]  ;;  %v18116_v45 = vld [vmem:[%s26465_s1 + $0x2434] sm:$0xf] }
 0x444   :  { %10333 = vmatpush.bf16.msra.mxu0 %v16364_v32  ;;  %10299 = vmatmul.bf16.vlgmr.msrb.gmra.mxu1 %v18531_v17  ;;  %v16532_v32 = vor.u32 %v18101_v8, %v16529_v53  ;;  %v16409_v8 = vld [vmem:[%s26465_s1 + $0x22d4] sm:$0xf0]  ;;  %v18095_v53 = vld [vmem:[%s26465_s1 + $0x238c] sm:$0xf] }
 0x445   :  { %10347 = vmatpush.bf16.msra.mxu1 %v16460_v37  ;;  %10313 = vmatmul.bf16.vlgmr.msrb.gmra.mxu2 %v18703_v39  ;;  %v18050_v37 = vld [vmem:[%s26465_s1 + $0x2224] sm:$0xf]  ;;  %v18119_v28 = vld [vmem:[%s26465_s1 + $0x244c] sm:$0xf] }
 0x446   :  { %10361 = vmatpush.bf16.msra.mxu2 %v16556_v41  ;;  %10327 = vmatmul.bf16.vlgmr.msrb.gmra.mxu3 %v18716_v44  ;;  %v16325_v41 = vld [vmem:[%s26465_s1 + $0x222c] sm:$0xf0] }
 0x447   :  { %10375 = vmatpush.bf16.msra.mxu3 %v16652_v12  ;;  %v18098_v12 = vld [vmem:[%s26465_s1 + $0x23a4] sm:$0xf] }
 0x448   :  { %10334 = vmatpush.bf16.msra.mxu0 %v16352_v5  ;;  %v16328_v5 = vor.u32 %v18050_v37, %v16325_v41  ;;  %v18044_v37 = vld [vmem:[%s26465_s1 + $0x21f4] sm:$0xf]  ;;  %v16301_v41 = vld [vmem:[%s26465_s1 + $0x21fc] sm:$0xf0]  ;;  %v10090_v9 = vpop.f32.mrf.mxu2  ;;  %v7977_v30 = vpop.f32.mrf.mxu0 }
 0x449   :  { %10348 = vmatpush.bf16.msra.mxu1 %v16448_v61  ;;  %v16424_v61 = vor.u32 %v18074_v24, %v16421_v63  ;;  %v18068_v24 = vld [vmem:[%s26465_s1 + $0x22b4] sm:$0xf]  ;;  %v16397_v63 = vld [vmem:[%s26465_s1 + $0x22bc] sm:$0xf0]  ;;  %v16304_v38 = vor.u32 %v18044_v37, %v16301_v41  ;;  %v16277_v37 = vld [vmem:[%s26465_s1 + $0x21cc] sm:$0xf0] }
 0x44a   :  { %10362 = vmatpush.bf16.msra.mxu2 %v16544_v49  ;;  %v16520_v49 = vor.u32 %v18098_v12, %v16517_v51  ;;  %v18092_v12 = vld [vmem:[%s26465_s1 + $0x2374] sm:$0xf]  ;;  %v16493_v51 = vld [vmem:[%s26465_s1 + $0x237c] sm:$0xf0]  ;;  %v16400_v14 = vor.u32 %v18068_v24, %v16397_v63  ;;  %v16373_v63 = vld [vmem:[%s26465_s1 + $0x228c] sm:$0xf0] }
 0x44b   :  { %10376 = vmatpush.bf16.msra.mxu3 %v16640_v33  ;;  %v25418_v33 = vmax.f32 %v26556_v56, %v7976_v52  ;;  %v16589_v52 = vld [vmem:[%s26465_s1 + $0x243c] sm:$0xf0]  ;;  %v18041_v56 = vld [vmem:[%s26465_s1 + $0x21dc] sm:$0xf] }
 0x44c   :  { %10335 = vmatpush.bf16.msra.mxu0 %v16340_v0  ;;  %v10076_v0 = vpop.f32.mrf.mxu1 }
 0x44d   :  { %10349 = vmatpush.bf16.msra.mxu1 %v16436_v21  ;;  %v16412_v21 = vor.u32 %v18071_v23, %v16409_v8  ;;  %v16496_v23 = vor.u32 %v18092_v12, %v16493_v51  ;;  %v18065_v8 = vld [vmem:[%s26465_s1 + $0x229c] sm:$0xf]  ;;  %v18086_v12 = vld [vmem:[%s26465_s1 + $0x2344] sm:$0xf] }
 0x44e   :  { %10363 = vmatpush.bf16.msra.mxu2 %v16532_v32  ;;  %v16508_v32 = vor.u32 %v18095_v53, %v16505_v22  ;;  %v16385_v22 = vld [vmem:[%s26465_s1 + $0x22a4] sm:$0xf0] }
 0x44f   :  { %10377 = vmatpush.bf16.msra.mxu3 %v16628_v19  ;;  %v16604_v19 = vor.u32 %v18119_v28, %v16601_v46  ;;  %v18089_v28 = vld [vmem:[%s26465_s1 + $0x235c] sm:$0xf]  ;;  %v16481_v46 = vld [vmem:[%s26465_s1 + $0x2364] sm:$0xf0]  ;;  %v16388_v41 = vor.u32 %v18065_v8, %v16385_v22  ;;  %v18203_v8 = vld [vmem:[%s26465_s1 + $0x26ec] sm:$0xf] }
 0x450   :  { %10336 = vmatpush.bf16.msra.mxu0 %v16328_v5  ;;  %v10091_v5 = vadd.f32 %v10090_v9, %v10076_v0  ;;  %v16577_v0 = vld [vmem:[%s26465_s1 + $0x2424] sm:$0xf0]  ;;  %v16484_v24 = vor.u32 %v18089_v28, %v16481_v46  ;;  %v16469_v9 = vld [vmem:[%s26465_s1 + $0x234c] sm:$0xf0] }
 0x451   :  { %10350 = vmatpush.bf16.msra.mxu1 %v16424_v61  ;;  %v10104_v61 = vpop.f32.mrf.mxu3  ;;  %v16472_v46 = vor.u32 %v18086_v12, %v16469_v9  ;;  %v16829_v12 = vld [vmem:[%s26465_s1 + $0x261c] sm:$0xf0] }
 0x452   :  { %10364 = vmatpush.bf16.msra.mxu2 %v16520_v49  ;;  %v25460_v49 = vadd.f32 %v7977_v30, %v25321_v55  ;;  %v25471_v53 = vadd.f32 %v10104_v61, %v10091_v5  ;;  %v16592_v55 = vor.u32 %v18116_v45, %v16589_v52  ;;  %v18110_v30 = vld [vmem:[%s26465_s1 + $0x2404] sm:$0xf]  ;;  %v16565_v45 = vld [vmem:[%s26465_s1 + $0x240c] sm:$0xf0]  ;;  %v10092_v5 = vpop.f32.mrf.mxu2  ;;  %v18155_v61 = vld [vmem:[%s26465_s1 + $0x256c] sm:$0xf] }
 0x453   :  { %10378 = vmatpush.bf16.msra.mxu3 %v16616_v48  ;;  %v16289_v48 = vld [vmem:[%s26465_s1 + $0x21e4] sm:$0xf0]  ;;  %v16925_v9 = vld [vmem:[%s26465_s1 + $0x26dc] sm:$0xf0] }
 0x454   :  { %10337 = vmatpush.bf16.msra.mxu0 %v16316_v4  ;;  %26557 = vst [vmem:[#allocation87_spill] sm:$0xff] %v25460_v49  ;;  %v18113_v4 = vld [vmem:[%s26465_s1 + $0x241c] sm:$0xf]  ;;  %v10078_v52 = vpop.f32.mrf.mxu1 }
 0x455   :  { %10351 = vmatpush.bf16.msra.mxu1 %v16412_v21  ;;  %v16292_v21 = vor.u32 %v18041_v56, %v16289_v48  ;;  %v16580_v51 = vor.u32 %v18113_v4, %v16577_v0  ;;  %v16841_v48 = vld [vmem:[%s26465_s1 + $0x2634] sm:$0xf0]  ;;  %v15791_v4 = vld [vmem:[%s26465_s1 + $0x1df0] sm:$0xf]  ;;  %v17917_v0 = vld [vmem:[%s26465_s1 + $0x1df8] sm:$0xf0] }
 0x456   :  { %10365 = vmatpush.bf16.msra.mxu2 %v16508_v32  ;;  %v18038_v32 = vld [vmem:[%s26465_s1 + $0x21c4] sm:$0xf] }
 0x457   :  { %10379 = vmatpush.bf16.msra.mxu3 %v16604_v19  ;;  %v18062_v19 = vld [vmem:[%s26465_s1 + $0x2284] sm:$0xf]  ;;  %v16280_v56 = vor.u32 %v18038_v32, %v16277_v37  ;;  %v16568_v32 = vor.u32 %v18110_v30, %v16565_v45  ;;  %v15779_v30 = vld [vmem:[%s26465_s1 + $0x1dd8] sm:$0xf] }
 0x458   :  { %10338 = vmatpush.bf16.msra.mxu0 %v16304_v38  ;;  %v16745_v38 = vld [vmem:[%s26465_s1 + $0x2574] sm:$0xf0]  ;;  %v16376_v28 = vor.u32 %v18062_v19, %v16373_v63  ;;  %v18176_v19 = vld [vmem:[%s26465_s1 + $0x2614] sm:$0xf]  ;;  %v15792_v63 = vor.u32 %v17917_v0, %v15791_v4  ;;  %v17914_v45 = vld [vmem:[%s26465_s1 + $0x1de0] sm:$0xf0] }
 0x459   :  { %10352 = vmatpush.bf16.msra.mxu1 %v16400_v14  ;;  %v18179_v14 = vld [vmem:[%s26465_s1 + $0x262c] sm:$0xf]  ;;  %v10106_v22 = vpop.f32.mrf.mxu3  ;;  %v16748_v37 = vor.u32 %v18155_v61, %v16745_v38  ;;  %v16832_v38 = vor.u32 %v18176_v19, %v16829_v12  ;;  %v16805_v19 = vld [vmem:[%s26465_s1 + $0x25ec] sm:$0xf0] }
 0x45a   :  { %10366 = vmatpush.bf16.msra.mxu2 %v16496_v23  ;;  %v10093_v23 = vadd.f32 %v10092_v5, %v10078_v52  ;;  %v16844_v52 = vor.u32 %v18179_v14, %v16841_v48  ;;  %v18173_v48 = vld [vmem:[%s26465_s1 + $0x25fc] sm:$0xf]  ;;  %v17911_v4 = vld [vmem:[%s26465_s1 + $0x1dc8] sm:$0xf0]  ;;  %v16901_v12 = vld [vmem:[%s26465_s1 + $0x26ac] sm:$0xf0] }
 0x45b   :  { %10380 = vmatpush.bf16.msra.mxu3 %v16592_v55  ;;  %v16937_v55 = vld [vmem:[%s26465_s1 + $0x26f4] sm:$0xf0] }
 0x45c   :  { %10339 = vmatpush.bf16.msra.mxu0 %v16292_v21  ;;  %v25536_v21 = vadd.f32 %v10106_v22, %v10093_v23  ;;  %v16940_v5 = vor.u32 %v18203_v8, %v16937_v55  ;;  %v18149_v23 = vld [vmem:[%s26465_s1 + $0x253c] sm:$0xf]  ;;  %v15780_v8 = vor.u32 %v17914_v45, %v15779_v30  ;;  %v16817_v55 = vld [vmem:[%s26465_s1 + $0x2604] sm:$0xf0]  ;;  %v17908_v30 = vld [vmem:[%s26465_s1 + $0x1db0] sm:$0xf0] }
 0x45d   :  { %10353 = vmatpush.bf16.msra.mxu1 %v16388_v41  ;;  %v18152_v41 = vld [vmem:[%s26465_s1 + $0x2554] sm:$0xf]  ;;  %v18197_v22 = vld [vmem:[%s26465_s1 + $0x26bc] sm:$0xf] }
 0x45e   :  { %10367 = vmatpush.bf16.msra.mxu2 %v16484_v24  ;;  %v16733_v24 = vld [vmem:[%s26465_s1 + $0x255c] sm:$0xf0] }
 0x45f   :  { %10381 = vmatpush.bf16.msra.mxu3 %v16580_v51  ;;  %v18200_v51 = vld [vmem:[%s26465_s1 + $0x26d4] sm:$0xf]  ;;  %v16736_v61 = vor.u32 %v18152_v41, %v16733_v24  ;;  %v18170_v41 = vld [vmem:[%s26465_s1 + $0x25e4] sm:$0xf] }
 0x460   :  { %10340 = vmatpush.bf16.msra.mxu0 %v16280_v56  ;;  %v16928_v14 = vor.u32 %v18200_v51, %v16925_v9  ;;  %v16721_v56 = vld [vmem:[%s26465_s1 + $0x2544] sm:$0xf0]  ;;  %v10118_v51 = vpop.f32.mrf.mxu0 }
 0x461   :  { %10354 = vmatpush.bf16.msra.mxu1 %v16376_v28  ;;  %v16913_v28 = vld [vmem:[%s26465_s1 + $0x26c4] sm:$0xf0]  ;;  %v16724_v0 = vor.u32 %v18149_v23, %v16721_v56  ;;  %v10119_v45 = vadd.f32 %v10118_v51, %v25471_v53  ;;  %v18143_v56 = vld [vmem:[%s26465_s1 + $0x250c] sm:$0xf]  ;;  %v18188_v51 = vld [vmem:[%s26465_s1 + $0x2674] sm:$0xf] }
 0x462   :  { %10368 = vmatpush.bf16.msra.mxu2 %v16472_v46  ;;  %v15767_v46 = vld [vmem:[%s26465_s1 + $0x1dc0] sm:$0xf]  ;;  %v15755_v9 = vld [vmem:[%s26465_s1 + $0x1da8] sm:$0xf] }
 0x463   :  { %10382 = vmatpush.bf16.msra.mxu3 %v16568_v32  ;;  %10341 = vmatmul.bf16.vlgmr.msra.gmra.mxu0 %v18714_v43  ;;  %v16820_v32 = vor.u32 %v18173_v48, %v16817_v55  ;;  %v15768_v24 = vor.u32 %v17911_v4, %v15767_v46  ;;  %v16697_v48 = vld [vmem:[%s26465_s1 + $0x2514] sm:$0xf0]  ;;  %v15756_v53 = vor.u32 %v17908_v30, %v15755_v9  ;;  %v15743_v4 = vld [vmem:[%s26465_s1 + $0x1d90] sm:$0xf]  ;;  %v16877_v9 = vld [vmem:[%s26465_s1 + $0x267c] sm:$0xf0] }
 0x464   :  { %10389 = vmatpush.bf16.msrb.mxu0 %v16748_v37  ;;  %10355 = vmatmul.bf16.vlgmr.msra.gmra.mxu1 %v18724_v47  ;;  %v16916_v37 = vor.u32 %v18197_v22, %v16913_v28  ;;  %v16793_v22 = vld [vmem:[%s26465_s1 + $0x25d4] sm:$0xf0]  ;;  %v18191_v28 = vld [vmem:[%s26465_s1 + $0x268c] sm:$0xf] }
 0x465   :  { %10403 = vmatpush.bf16.msrb.mxu1 %v16844_v52  ;;  %10369 = vmatmul.bf16.vlgmr.msra.gmra.mxu2 %v18931_v31  ;;  %v18146_v52 = vld [vmem:[%s26465_s1 + $0x2524] sm:$0xf]  ;;  %v16889_v46 = vld [vmem:[%s26465_s1 + $0x2694] sm:$0xf0] }
 0x466   :  { %10417 = vmatpush.bf16.msrb.mxu2 %v16940_v5  ;;  %10383 = vmatmul.bf16.vlgmr.msra.gmra.mxu3 %v18944_v36  ;;  %v16709_v5 = vld [vmem:[%s26465_s1 + $0x252c] sm:$0xf0] }
 0x467   :  { %10431 = vmatpush.bf16.msrb.mxu3 %v15792_v63  ;;  %v18194_v63 = vld [vmem:[%s26465_s1 + $0x26a4] sm:$0xf] }
 0x468   :  { %10390 = vmatpush.bf16.msrb.mxu0 %v16736_v61  ;;  %v16712_v61 = vor.u32 %v18146_v52, %v16709_v5  ;;  %v16904_v23 = vor.u32 %v18194_v63, %v16901_v12  ;;  %v16892_v52 = vor.u32 %v18191_v28, %v16889_v46  ;;  %v18140_v5 = vld [vmem:[%s26465_s1 + $0x24f4] sm:$0xf]  ;;  %v10146_v63 = vpop.f32.mrf.mxu2  ;;  %v16781_v12 = vld [vmem:[%s26465_s1 + $0x25bc] sm:$0xf0]  ;;  %v16769_v46 = vld [vmem:[%s26465_s1 + $0x25a4] sm:$0xf0] }
 0x469   :  { %10404 = vmatpush.bf16.msrb.mxu1 %v16832_v38  ;;  %v10132_v38 = vpop.f32.mrf.mxu1 }
 0x46a   :  { %10418 = vmatpush.bf16.msrb.mxu2 %v16928_v14  ;;  %v16808_v14 = vor.u32 %v18170_v41, %v16805_v19  ;;  %v10133_v55 = vadd.f32 %v10132_v38, %v10119_v45  ;;  %v16685_v41 = vld [vmem:[%s26465_s1 + $0x24fc] sm:$0xf0]  ;;  %v10120_v45 = vpop.f32.mrf.mxu0  ;;  %v17902_v38 = vld [vmem:[%s26465_s1 + $0x1d80] sm:$0xf0] }
 0x46b   :  { %10432 = vmatpush.bf16.msrb.mxu3 %v15780_v8  ;;  %v18167_v8 = vld [vmem:[%s26465_s1 + $0x25cc] sm:$0xf] }
 0x46c   :  { %10391 = vmatpush.bf16.msrb.mxu0 %v16724_v0  ;;  %v17905_v0 = vld [vmem:[%s26465_s1 + $0x1d98] sm:$0xf0]  ;;  %v25657_v30 = vadd.f32 %v10146_v63, %v10133_v55  ;;  %v16673_v55 = vld [vmem:[%s26465_s1 + $0x24e4] sm:$0xf0]  ;;  %v18158_v63 = vld [vmem:[%s26465_s1 + $0x2584] sm:$0xf] }
 0x46d   :  { %10405 = vmatpush.bf16.msrb.mxu1 %v16820_v32  ;;  %v16700_v32 = vor.u32 %v18143_v56, %v16697_v48  ;;  %v15744_v19 = vor.u32 %v17905_v0, %v15743_v4  ;;  %v18185_v4 = vld [vmem:[%s26465_s1 + $0x265c] sm:$0xf]  ;;  %v16865_v0 = vld [vmem:[%s26465_s1 + $0x2664] sm:$0xf0] }
 0x46e   :  { %10419 = vmatpush.bf16.msrb.mxu2 %v16916_v37  ;;  %v16796_v37 = vor.u32 %v18167_v8, %v16793_v22  ;;  %v16880_v8 = vor.u32 %v18188_v51, %v16877_v9  ;;  %v18161_v22 = vld [vmem:[%s26465_s1 + $0x259c] sm:$0xf]  ;;  %v18182_v51 = vld [vmem:[%s26465_s1 + $0x2644] sm:$0xf] }
 0x46f   :  { %10433 = vmatpush.bf16.msrb.mxu3 %v15768_v24  ;;  %v18164_v24 = vld [vmem:[%s26465_s1 + $0x25b4] sm:$0xf] }
 0x470   :  { %10392 = vmatpush.bf16.msrb.mxu0 %v16712_v61  ;;  %v15731_v61 = vld [vmem:[%s26465_s1 + $0x1d78] sm:$0xf]  ;;  %v16784_v48 = vor.u32 %v18164_v24, %v16781_v12  ;;  %v16772_v24 = vor.u32 %v18161_v22, %v16769_v46  ;;  %v16757_v12 = vld [vmem:[%s26465_s1 + $0x258c] sm:$0xf0] }
 0x471   :  { %10406 = vmatpush.bf16.msrb.mxu1 %v16808_v14  ;;  %v10121_v14 = vadd.f32 %v10120_v45, %v25536_v21  ;;  %v10134_v56 = vpop.f32.mrf.mxu1  ;;  %v15732_v21 = vor.u32 %v17902_v38, %v15731_v61  ;;  %v10148_v45 = vpop.f32.mrf.mxu2  ;;  %v16853_v61 = vld [vmem:[%s26465_s1 + $0x264c] sm:$0xf0]  ;;  %v15707_v38 = vld [vmem:[%s26465_s1 + $0x1d48] sm:$0xf] }
 0x472   :  { %10420 = vmatpush.bf16.msrb.mxu2 %v16904_v23  ;;  %v16688_v23 = vor.u32 %v18140_v5, %v16685_v41  ;;  %v18134_v5 = vld [vmem:[%s26465_s1 + $0x24c4] sm:$0xf]  ;;  %v16661_v41 = vld [vmem:[%s26465_s1 + $0x24cc] sm:$0xf0]  ;;  %v16856_v46 = vor.u32 %v18182_v51, %v16853_v61  ;;  %v16067_v51 = vld [vmem:[%s26465_s1 + $0x2018] sm:$0xf] }
 0x473   :  { %10434 = vmatpush.bf16.msrb.mxu3 %v15756_v53  ;;  %v18137_v53 = vld [vmem:[%s26465_s1 + $0x24dc] sm:$0xf]  ;;  %v10135_v28 = vadd.f32 %v10134_v56, %v10121_v14  ;;  %v17896_v14 = vld [vmem:[%s26465_s1 + $0x1d50] sm:$0xf0]  ;;  %v15887_v56 = vld [vmem:[%s26465_s1 + $0x1eb0] sm:$0xf] }
 0x474   :  { %10393 = vmatpush.bf16.msrb.mxu0 %v16700_v32  ;;  %v15719_v32 = vld [vmem:[%s26465_s1 + $0x1d60] sm:$0xf]  ;;  %v16079_v22 = vld [vmem:[%s26465_s1 + $0x2030] sm:$0xf]  ;;  %v18010_v61 = vld [vmem:[%s26465_s1 + $0x20e0] sm:$0xf0] }
 0x475   :  { %10407 = vmatpush.bf16.msrb.mxu1 %v16796_v37  ;;  %v17899_v37 = vld [vmem:[%s26465_s1 + $0x1d68] sm:$0xf0] }
 0x476   :  { %10421 = vmatpush.bf16.msrb.mxu2 %v16892_v52  ;;  %v16676_v52 = vor.u32 %v18137_v53, %v16673_v55  ;;  %v15720_v9 = vor.u32 %v17899_v37, %v15719_v32  ;;  %v16664_v53 = vor.u32 %v18134_v5, %v16661_v41  ;;  %v17965_v55 = vld [vmem:[%s26465_s1 + $0x1f78] sm:$0xf0]  ;;  %v15708_v32 = vor.u32 %v17896_v14, %v15707_v38  ;;  %v15875_v41 = vld [vmem:[%s26465_s1 + $0x1e98] sm:$0xf] }
 0x477   :  { %10435 = vmatpush.bf16.msrb.mxu3 %v15744_v19  ;;  %v16868_v19 = vor.u32 %v18185_v4, %v16865_v0  ;;  %v16175_v4 = vld [vmem:[%s26465_s1 + $0x20f0] sm:$0xf]  ;;  %v18013_v0 = vld [vmem:[%s26465_s1 + $0x20f8] sm:$0xf0] }
 0x478   :  { %10394 = vmatpush.bf16.msrb.mxu0 %v16688_v23  ;;  %v25714_v23 = vadd.f32 %v10148_v45, %v10135_v28  ;;  %v16760_v28 = vor.u32 %v18158_v63, %v16757_v12  ;;  %v16176_v63 = vor.u32 %v18013_v0, %v16175_v4  ;;  %v17962_v12 = vld [vmem:[%s26465_s1 + $0x1f60] sm:$0xf0]  ;;  %v16163_v45 = vld [vmem:[%s26465_s1 + $0x20d8] sm:$0xf]  ;;  %v18007_v4 = vld [vmem:[%s26465_s1 + $0x20c8] sm:$0xf0] }
 0x479   :  { %10408 = vmatpush.bf16.msrb.mxu1 %v16784_v48  ;;  %v17941_v48 = vld [vmem:[%s26465_s1 + $0x1eb8] sm:$0xf0] }
 0x47a   :  { %10422 = vmatpush.bf16.msrb.mxu2 %v16880_v8  ;;  %v15983_v8 = vld [vmem:[%s26465_s1 + $0x1f70] sm:$0xf]  ;;  %v15888_v37 = vor.u32 %v17941_v48, %v15887_v56  ;;  %v15863_v48 = vld [vmem:[%s26465_s1 + $0x1e80] sm:$0xf] }
 0x47b   :  { %10436 = vmatpush.bf16.msrb.mxu3 %v15732_v21  ;;  %v17989_v21 = vld [vmem:[%s26465_s1 + $0x2038] sm:$0xf0] }
 0x47c   :  { %10395 = vmatpush.bf16.msrb.mxu0 %v16676_v52  ;;  %v15984_v52 = vor.u32 %v17965_v55, %v15983_v8  ;;  %v16080_v5 = vor.u32 %v17989_v21, %v16079_v22  ;;  %v17935_v8 = vld [vmem:[%s26465_s1 + $0x1e88] sm:$0xf0]  ;;  %v16164_v55 = vor.u32 %v18010_v61, %v16163_v45  ;;  %v16055_v21 = vld [vmem:[%s26465_s1 + $0x2000] sm:$0xf] }
 0x47d   :  { %10409 = vmatpush.bf16.msrb.mxu1 %v16772_v24  ;;  %v17938_v24 = vld [vmem:[%s26465_s1 + $0x1ea0] sm:$0xf0]  ;;  %v17959_v22 = vld [vmem:[%s26465_s1 + $0x1f48] sm:$0xf0]  ;;  %v15864_v0 = vor.u32 %v17935_v8, %v15863_v48  ;;  %v17953_v8 = vld [vmem:[%s26465_s1 + $0x1f18] sm:$0xf0] }
 0x47e   :  { %10423 = vmatpush.bf16.msrb.mxu2 %v16868_v19  ;;  %v15971_v19 = vld [vmem:[%s26465_s1 + $0x1f58] sm:$0xf]  ;;  %v15876_v38 = vor.u32 %v17938_v24, %v15875_v41  ;;  %v15947_v41 = vld [vmem:[%s26465_s1 + $0x1f28] sm:$0xf] }
 0x47f   :  { %10437 = vmatpush.bf16.msrb.mxu3 %v15720_v9  ;;  %v17986_v9 = vld [vmem:[%s26465_s1 + $0x2020] sm:$0xf0]  ;;  %v15972_v14 = vor.u32 %v17962_v12, %v15971_v19  ;;  %v16043_v19 = vld [vmem:[%s26465_s1 + $0x1fe8] sm:$0xf] }
 0x480   :  { %10396 = vmatpush.bf16.msrb.mxu0 %v16664_v53  ;;  %v16068_v56 = vor.u32 %v17986_v9, %v16067_v51  ;;  %v15959_v53 = vld [vmem:[%s26465_s1 + $0x1f40] sm:$0xf]  ;;  %v16139_v12 = vld [vmem:[%s26465_s1 + $0x20a8] sm:$0xf]  ;;  %v18004_v51 = vld [vmem:[%s26465_s1 + $0x20b0] sm:$0xf0] }
 0x481   :  { %10410 = vmatpush.bf16.msrb.mxu1 %v16760_v28  ;;  %v17983_v28 = vld [vmem:[%s26465_s1 + $0x2008] sm:$0xf0]  ;;  %v16140_v48 = vor.u32 %v18004_v51, %v16139_v12 }
 0x482   :  { %10424 = vmatpush.bf16.msrb.mxu2 %v16856_v46  ;;  %v16151_v46 = vld [vmem:[%s26465_s1 + $0x20c0] sm:$0xf] }
 0x483   :  { %10438 = vmatpush.bf16.msrb.mxu3 %v15708_v32  ;;  %10397 = vmatmul.bf16.vlgmr.msrb.gmra.mxu0 %v18942_v35  ;;  %v15960_v32 = vor.u32 %v17959_v22, %v15959_v53  ;;  %v16152_v24 = vor.u32 %v18007_v4, %v16151_v46  ;;  %v16031_v53 = vld [vmem:[%s26465_s1 + $0x1fd0] sm:$0xf] }
 0x484   :  { %10445 = vmatpush.bf16.msra.mxu0 %v15888_v37  ;;  %10411 = vmatmul.bf16.vlgmr.msrb.gmra.mxu1 %v18952_v40  ;;  %v16056_v37 = vor.u32 %v17983_v28, %v16055_v21  ;;  %v16127_v22 = vld [vmem:[%s26465_s1 + $0x2090] sm:$0xf]  ;;  %v18001_v21 = vld [vmem:[%s26465_s1 + $0x2098] sm:$0xf0] }
 0x485   :  { %10459 = vmatpush.bf16.msra.mxu1 %v15984_v52  ;;  %10425 = vmatmul.bf16.vlgmr.msrb.gmra.mxu2 %v19141_v25  ;;  %v15851_v52 = vld [vmem:[%s26465_s1 + $0x1e68] sm:$0xf] }
 0x486   :  { %10473 = vmatpush.bf16.msra.mxu2 %v16080_v5  ;;  %10439 = vmatmul.bf16.vlgmr.msrb.gmra.mxu3 %v18481_v58  ;;  %v17932_v5 = vld [vmem:[%s26465_s1 + $0x1e70] sm:$0xf0] }
 0x487   :  { %10487 = vmatpush.bf16.msra.mxu3 %v16176_v63  ;;  %v17956_v58 = vld [vmem:[%s26465_s1 + $0x1f30] sm:$0xf0]  ;;  %v15852_v9 = vor.u32 %v17932_v5, %v15851_v52  ;;  %v16128_v52 = vor.u32 %v18001_v21, %v16127_v22  ;;  %v17950_v5 = vld [vmem:[%s26465_s1 + $0x1f00] sm:$0xf0]  ;;  %v17995_v22 = vld [vmem:[%s26465_s1 + $0x2068] sm:$0xf0]  ;;  %v10188_v21 = vpop.f32.mrf.mxu1 }
 0x488   :  { %10446 = vmatpush.bf16.msra.mxu0 %v15876_v38  ;;  %v17980_v63 = vld [vmem:[%s26465_s1 + $0x1ff0] sm:$0xf0]  ;;  %v15948_v45 = vor.u32 %v17956_v58, %v15947_v41  ;;  %v15839_v38 = vld [vmem:[%s26465_s1 + $0x1e50] sm:$0xf]  ;;  %v16019_v41 = vld [vmem:[%s26465_s1 + $0x1fb8] sm:$0xf]  ;;  %v10160_v58 = vpop.f32.mrf.mxu3 }
 0x489   :  { %10460 = vmatpush.bf16.msra.mxu1 %v15972_v14  ;;  %v16044_v61 = vor.u32 %v17980_v63, %v16043_v19  ;;  %v17929_v14 = vld [vmem:[%s26465_s1 + $0x1e58] sm:$0xf0]  ;;  %v16115_v19 = vld [vmem:[%s26465_s1 + $0x2078] sm:$0xf]  ;;  %v17998_v63 = vld [vmem:[%s26465_s1 + $0x2080] sm:$0xf0] }
 0x48a   :  { %10474 = vmatpush.bf16.msra.mxu2 %v16068_v56  ;;  %v15935_v56 = vld [vmem:[%s26465_s1 + $0x1f10] sm:$0xf]  ;;  %v15840_v28 = vor.u32 %v17929_v14, %v15839_v38  ;;  %v15911_v38 = vld [vmem:[%s26465_s1 + $0x1ee0] sm:$0xf]  ;;  %v16116_v14 = vor.u32 %v17998_v63, %v16115_v19  ;;  %v16091_v19 = vld [vmem:[%s26465_s1 + $0x2048] sm:$0xf] }
 0x48b   :  { %10488 = vmatpush.bf16.msra.mxu3 %v16164_v55  ;;  %v17977_v55 = vld [vmem:[%s26465_s1 + $0x1fd8] sm:$0xf0]  ;;  %v15936_v46 = vor.u32 %v17953_v8, %v15935_v56  ;;  %v17947_v56 = vld [vmem:[%s26465_s1 + $0x1ee8] sm:$0xf0]  ;;  %v17992_v63 = vld [vmem:[%s26465_s1 + $0x2050] sm:$0xf0] }
 0x48c   :  { %10447 = vmatpush.bf16.msra.mxu0 %v15864_v0  ;;  %v16032_v4 = vor.u32 %v17977_v55, %v16031_v53  ;;  %v15827_v0 = vld [vmem:[%s26465_s1 + $0x1e38] sm:$0xf]  ;;  %v17971_v8 = vld [vmem:[%s26465_s1 + $0x1fa8] sm:$0xf0]  ;;  %v10174_v53 = vpop.f32.mrf.mxu0  ;;  %v16103_v55 = vld [vmem:[%s26465_s1 + $0x2060] sm:$0xf] }
 0x48d   :  { %10461 = vmatpush.bf16.msra.mxu1 %v15960_v32  ;;  %v17926_v32 = vld [vmem:[%s26465_s1 + $0x1e40] sm:$0xf0] }
 0x48e   :  { %10475 = vmatpush.bf16.msra.mxu2 %v16056_v37  ;;  %v15923_v37 = vld [vmem:[%s26465_s1 + $0x1ef8] sm:$0xf]  ;;  %v15828_v12 = vor.u32 %v17926_v32, %v15827_v0  ;;  %v15912_v0 = vor.u32 %v17947_v56, %v15911_v38  ;;  %v18061_v38 = vld [vmem:[%s26465_s1 + $0x2278] sm:$0xf0] }
 0x48f   :  { %10489 = vmatpush.bf16.msra.mxu3 %v16152_v24  ;;  %v17974_v24 = vld [vmem:[%s26465_s1 + $0x1fc0] sm:$0xf0]  ;;  %v15924_v51 = vor.u32 %v17950_v5, %v15923_v37  ;;  %v15899_v37 = vld [vmem:[%s26465_s1 + $0x1ec8] sm:$0xf]  ;;  %v18085_v56 = vld [vmem:[%s26465_s1 + $0x2338] sm:$0xf0] }
 0x490   :  { %10448 = vmatpush.bf16.msra.mxu0 %v15852_v9  ;;  %v16020_v9 = vor.u32 %v17974_v24, %v16019_v41  ;;  %v15995_v5 = vld [vmem:[%s26465_s1 + $0x1f88] sm:$0xf]  ;;  %v16104_v41 = vor.u32 %v17995_v22, %v16103_v55  ;;  %v17968_v24 = vld [vmem:[%s26465_s1 + $0x1f90] sm:$0xf0]  ;;  %v18109_v55 = vld [vmem:[%s26465_s1 + $0x23f8] sm:$0xf0] }
 0x491   :  { %10462 = vmatpush.bf16.msra.mxu1 %v15948_v45  ;;  %v15815_v45 = vld [vmem:[%s26465_s1 + $0x1e20] sm:$0xf] }
 0x492   :  { %10476 = vmatpush.bf16.msra.mxu2 %v16044_v61  ;;  %v17923_v61 = vld [vmem:[%s26465_s1 + $0x1e28] sm:$0xf0] }
 0x493   :  { %10490 = vmatpush.bf16.msra.mxu3 %v16140_v48  ;;  %v16007_v48 = vld [vmem:[%s26465_s1 + $0x1fa0] sm:$0xf] }
 0x494   :  { %10449 = vmatpush.bf16.msra.mxu0 %v15840_v28  ;;  %v15816_v28 = vor.u32 %v17923_v61, %v15815_v45  ;;  %v16008_v32 = vor.u32 %v17971_v8, %v16007_v48  ;;  %v10161_v45 = vadd.f32 %v10160_v58, %v25657_v30  ;;  %v25931_v48 = vpop.f32.mrf.mxu3  ;;  %v15996_v30 = vor.u32 %v17968_v24, %v15995_v5  ;;  %v16559_v58 = vld [vmem:[%s26465_s1 + $0x23f0] sm:$0xf]  ;;  %v16451_v5 = vld [vmem:[%s26465_s1 + $0x2318] sm:$0xf]  ;;  %v10202_v24 = vpop.f32.mrf.mxu2 }
 0x495   :  { %10463 = vmatpush.bf16.msra.mxu1 %v15936_v46  ;;  %v15803_v46 = vld [vmem:[%s26465_s1 + $0x1e08] sm:$0xf] }
 0x496   :  { %10477 = vmatpush.bf16.msra.mxu2 %v16032_v4  ;;  %v17920_v4 = vld [vmem:[%s26465_s1 + $0x1e10] sm:$0xf0]  ;;  %v10175_v22 = vadd.f32 %v10174_v53, %v10161_v45  ;;  %v18058_v53 = vld [vmem:[%s26465_s1 + $0x2260] sm:$0xf0] }
 0x497   :  { %10491 = vmatpush.bf16.msra.mxu3 %v16128_v52  ;;  %v17944_v52 = vld [vmem:[%s26465_s1 + $0x1ed0] sm:$0xf0]  ;;  %v15804_v61 = vor.u32 %v17920_v4, %v15803_v46 }
 0x498   :  { %10450 = vmatpush.bf16.msra.mxu0 %v15828_v12  ;;  %v16271_v12 = vld [vmem:[%s26465_s1 + $0x21b0] sm:$0xf]  ;;  %v15900_v8 = vor.u32 %v17944_v52, %v15899_v37  ;;  %v16355_v37 = vld [vmem:[%s26465_s1 + $0x2258] sm:$0xf]  ;;  %v16560_v52 = vor.u32 %v18109_v55, %v16559_v58  ;;  %v16439_v58 = vld [vmem:[%s26465_s1 + $0x2300] sm:$0xf] }
 0x499   :  { %10464 = vmatpush.bf16.msra.mxu1 %v15924_v51  ;;  %v18037_v51 = vld [vmem:[%s26465_s1 + $0x21b8] sm:$0xf0]  ;;  %v18079_v55 = vld [vmem:[%s26465_s1 + $0x2308] sm:$0xf0] }
 0x49a   :  { %10478 = vmatpush.bf16.msra.mxu2 %v16020_v9  ;;  %v16367_v9 = vld [vmem:[%s26465_s1 + $0x2270] sm:$0xf]  ;;  %v16272_v46 = vor.u32 %v18037_v51, %v16271_v12  ;;  %v18106_v12 = vld [vmem:[%s26465_s1 + $0x23e0] sm:$0xf0]  ;;  %v10189_v51 = vadd.f32 %v10188_v21, %v10175_v22  ;;  %v16343_v21 = vld [vmem:[%s26465_s1 + $0x2240] sm:$0xf] }
 0x49b   :  { %10492 = vmatpush.bf16.msra.mxu3 %v16116_v14  ;;  %v16463_v14 = vld [vmem:[%s26465_s1 + $0x2330] sm:$0xf]  ;;  %v16368_v4 = vor.u32 %v18061_v38, %v16367_v9  ;;  %v25965_v9 = vpop.f32.mrf.mxu1 }
 0x49c   :  { %10451 = vmatpush.bf16.msra.mxu0 %v15816_v28  ;;  %v16092_v28 = vor.u32 %v17992_v63, %v16091_v19  ;;  %v16464_v49 = vor.u32 %v18085_v56, %v16463_v14  ;;  %v25957_v19 = vpop.f32.mrf.mxu0  ;;  %v16547_v63 = vld [vmem:[%s26465_s1 + $0x23d8] sm:$0xf]  ;;  %v16247_v14 = vld [vmem:[%s26465_s1 + $0x2180] sm:$0xf]  ;;  %v18031_v56 = vld [vmem:[%s26465_s1 + $0x2188] sm:$0xf0]  ;;  %v10216_v22 = vpop.f32.mrf.mxu3 }
 0x49d   :  { %10465 = vmatpush.bf16.msra.mxu1 %v15912_v0  ;;  %v16259_v0 = vld [vmem:[%s26465_s1 + $0x2198] sm:$0xf] }
 0x49e   :  { %10479 = vmatpush.bf16.msra.mxu2 %v16008_v32  ;;  %v18034_v32 = vld [vmem:[%s26465_s1 + $0x21a0] sm:$0xf0] }
 0x49f   :  { %10493 = vmatpush.bf16.msra.mxu3 %v16104_v41  ;;  %v18082_v41 = vld [vmem:[%s26465_s1 + $0x2320] sm:$0xf0]  ;;  %v16260_v45 = vor.u32 %v18034_v32, %v16259_v0  ;;  %v16440_v0 = vor.u32 %v18079_v55, %v16439_v58  ;;  %v16331_v32 = vld [vmem:[%s26465_s1 + $0x2228] sm:$0xf]  ;;  %v16415_v58 = vld [vmem:[%s26465_s1 + $0x22d0] sm:$0xf] }
 0x4a0   :  { %10452 = vmatpush.bf16.msra.mxu0 %v15804_v61  ;;  %v16356_v61 = vor.u32 %v18058_v53, %v16355_v37  ;;  %v16452_v38 = vor.u32 %v18082_v41, %v16451_v5  ;;  %v16427_v53 = vld [vmem:[%s26465_s1 + $0x22e8] sm:$0xf]  ;;  %v18076_v5 = vld [vmem:[%s26465_s1 + $0x22f0] sm:$0xf0]  ;;  %v18073_v55 = vld [vmem:[%s26465_s1 + $0x22d8] sm:$0xf0] }
 0x4a1   :  { %10466 = vmatpush.bf16.msra.mxu1 %v15900_v8  ;;  %v10203_v8 = vadd.f32 %v10202_v24, %v10189_v51  ;;  %v16523_v24 = vld [vmem:[%s26465_s1 + $0x23a8] sm:$0xf] }
 0x4a2   :  { %10480 = vmatpush.bf16.msra.mxu2 %v15996_v30  ;;  %v16548_v30 = vor.u32 %v18106_v12, %v16547_v63  ;;  %v18100_v63 = vld [vmem:[%s26465_s1 + $0x23b0] sm:$0xf0] }
 0x4a3   :  { %10494 = vmatpush.bf16.msra.mxu3 %v16092_v28  ;;  %10453 = vmatmul.bf16.vlgmr.msra.gmra.mxu0 %v18517_v10  ;;  %v16535_v10 = vld [vmem:[%s26465_s1 + $0x23c0] sm:$0xf]  ;;  %v18103_v28 = vld [vmem:[%s26465_s1 + $0x23c8] sm:$0xf0]  ;;  %v10217_v37 = vadd.f32 %v10216_v22, %v10203_v8  ;;  %v16524_v8 = vor.u32 %v18100_v63, %v16523_v24  ;;  %v16511_v22 = vld [vmem:[%s26465_s1 + $0x2390] sm:$0xf] }
 0x4a4   :  { %10501 = vmatpush.bf16.msrb.mxu0 %v16272_v46  ;;  %10467 = vmatmul.bf16.vlgmr.msra.gmra.mxu1 %v18495_v1  ;;  %v16248_v46 = vor.u32 %v18031_v56, %v16247_v14  ;;  %v16235_v1 = vld [vmem:[%s26465_s1 + $0x2168] sm:$0xf]  ;;  %v10230_v41 = vpop.f32.mrf.mxu0  ;;  %v16223_v14 = vld [vmem:[%s26465_s1 + $0x2150] sm:$0xf]  ;;  %v18025_v56 = vld [vmem:[%s26465_s1 + $0x2158] sm:$0xf0] }
 0x4a5   :  { %10515 = vmatpush.bf16.msrb.mxu1 %v16368_v4  ;;  %10481 = vmatmul.bf16.vlgmr.msra.gmra.mxu2 %v18531_v17  ;;  %v18028_v17 = vld [vmem:[%s26465_s1 + $0x2170] sm:$0xf0]  ;;  %v10231_v12 = vadd.f32 %v10230_v41, %v10217_v37  ;;  %v18094_v41 = vld [vmem:[%s26465_s1 + $0x2380] sm:$0xf0] }
 0x4a6   :  { %10529 = vmatpush.bf16.msrb.mxu2 %v16464_v49  ;;  %v18055_v49 = vld [vmem:[%s26465_s1 + $0x2248] sm:$0xf0]  ;;  %10495 = vmatmul.bf16.vlgmr.msra.gmra.mxu3 %v18703_v39  ;;  %v16536_v39 = vor.u32 %v18103_v28, %v16535_v10  ;;  %v16236_v51 = vor.u32 %v18028_v17, %v16235_v1  ;;  %v18097_v10 = vld [vmem:[%s26465_s1 + $0x2398] sm:$0xf0]  ;;  %v16211_v1 = vld [vmem:[%s26465_s1 + $0x2138] sm:$0xf] }
 0x4a7   :  { %10543 = vmatpush.bf16.msrb.mxu3 %v16560_v52  ;;  %v16344_v4 = vor.u32 %v18055_v49, %v16343_v21  ;;  %v18052_v52 = vld [vmem:[%s26465_s1 + $0x2230] sm:$0xf0]  ;;  %v16319_v21 = vld [vmem:[%s26465_s1 + $0x2210] sm:$0xf]  ;;  %v18049_v49 = vld [vmem:[%s26465_s1 + $0x2218] sm:$0xf0]  ;;  %v16512_v37 = vor.u32 %v18097_v10, %v16511_v22 }
 0x4a8   :  { %10502 = vmatpush.bf16.msrb.mxu0 %v16260_v45  ;;  %v10244_v45 = vpop.f32.mrf.mxu1  ;;  %v18022_v17 = vld [vmem:[%s26465_s1 + $0x2140] sm:$0xf0]  ;;  %v18016_v22 = vld [vmem:[%s26465_s1 + $0x2110] sm:$0xf0] }
 0x4a9   :  { %10516 = vmatpush.bf16.msrb.mxu1 %v16356_v61  ;;  %v16332_v61 = vor.u32 %v18052_v52, %v16331_v32  ;;  %v16307_v32 = vld [vmem:[%s26465_s1 + $0x21f8] sm:$0xf]  ;;  %v16212_v24 = vor.u32 %v18022_v17, %v16211_v1  ;;  %v16379_v1 = vld [vmem:[%s26465_s1 + $0x2288] sm:$0xf] }
 0x4aa   :  { %10530 = vmatpush.bf16.msrb.mxu2 %v16452_v38  ;;  %v16428_v38 = vor.u32 %v18076_v5, %v16427_v53  ;;  %v16403_v52 = vld [vmem:[%s26465_s1 + $0x22b8] sm:$0xf]  ;;  %v18070_v53 = vld [vmem:[%s26465_s1 + $0x22c0] sm:$0xf0] }
 0x4ab   :  { %10544 = vmatpush.bf16.msrb.mxu3 %v16548_v30  ;;  %v26028_v30 = vadd.f32 %v10244_v45, %v10231_v12  ;;  %v16499_v5 = vld [vmem:[%s26465_s1 + $0x2378] sm:$0xf]  ;;  %v16404_v12 = vor.u32 %v18070_v53, %v16403_v52  ;;  %v18019_v45 = vld [vmem:[%s26465_s1 + $0x2128] sm:$0xf0]  ;;  %v16655_v52 = vld [vmem:[%s26465_s1 + $0x24b0] sm:$0xf] }
 0x4ac   :  { %10503 = vmatpush.bf16.msrb.mxu0 %v16248_v46  ;;  %v16224_v46 = vor.u32 %v18025_v56, %v16223_v14  ;;  %v18043_v14 = vld [vmem:[%s26465_s1 + $0x21e8] sm:$0xf0]  ;;  %v16391_v56 = vld [vmem:[%s26465_s1 + $0x22a0] sm:$0xf]  ;;  %v18133_v53 = vld [vmem:[%s26465_s1 + $0x24b8] sm:$0xf0] }
 0x4ad   :  { %10517 = vmatpush.bf16.msrb.mxu1 %v16344_v4  ;;  %v10613_v28 = vmax.f32 %v24021_v34, %v26028_v30  ;;  %v16320_v4 = vor.u32 %v18049_v49, %v16319_v21  ;;  %v18067_v21 = vld [vmem:[%s26465_s1 + $0x22a8] sm:$0xf0] }
 0x4ae   :  { %10531 = vmatpush.bf16.msrb.mxu2 %v16440_v0  ;;  %v16416_v0 = vor.u32 %v18073_v55, %v16415_v58  ;;  %v18091_v49 = vld [vmem:[%s26465_s1 + $0x2368] sm:$0xf0]  ;;  %v16187_v55 = vld [vmem:[%s26465_s1 + $0x2108] sm:$0xf] }
 0x4af   :  { %10545 = vmatpush.bf16.msrb.mxu3 %v16536_v39  ;;  %v18046_v39 = vld [vmem:[%s26465_s1 + $0x2200] sm:$0xf0] }
 0x4b0   :  { %10504 = vmatpush.bf16.msrb.mxu0 %v16236_v51  ;;  %v16308_v63 = vor.u32 %v18046_v39, %v16307_v32  ;;  %v16199_v51 = vld [vmem:[%s26465_s1 + $0x2120] sm:$0xf]  ;;  %v18064_v32 = vld [vmem:[%s26465_s1 + $0x2290] sm:$0xf0] }
 0x4b1   :  { %10518 = vmatpush.bf16.msrb.mxu1 %v16332_v61  ;;  %v16295_v61 = vld [vmem:[%s26465_s1 + $0x21e0] sm:$0xf]  ;;  %v16200_v58 = vor.u32 %v18019_v45, %v16199_v51  ;;  %v18088_v39 = vld [vmem:[%s26465_s1 + $0x2350] sm:$0xf0]  ;;  %v16380_v45 = vor.u32 %v18064_v32, %v16379_v1  ;;  %v18202_v1 = vld [vmem:[%s26465_s1 + $0x26e0] sm:$0xf0] }
 0x4b2   :  { %10532 = vmatpush.bf16.msrb.mxu2 %v16428_v38  ;;  %v16500_v38 = vor.u32 %v18094_v41, %v16499_v5  ;;  %v16296_v10 = vor.u32 %v18043_v14, %v16295_v61  ;;  %v16751_v5 = vld [vmem:[%s26465_s1 + $0x2570] sm:$0xf]  ;;  %v16188_v41 = vor.u32 %v18016_v22, %v16187_v55  ;;  %v16739_v55 = vld [vmem:[%s26465_s1 + $0x2558] sm:$0xf] }
 0x4b3   :  { %10546 = vmatpush.bf16.msrb.mxu3 %v16524_v8  ;;  %v16487_v8 = vld [vmem:[%s26465_s1 + $0x2360] sm:$0xf]  ;;  %v16943_v61 = vld [vmem:[%s26465_s1 + $0x26f0] sm:$0xf] }
 0x4b4   :  { %10505 = vmatpush.bf16.msrb.mxu0 %v16224_v46  ;;  %v16392_v46 = vor.u32 %v18067_v21, %v16391_v56  ;;  %v16488_v17 = vor.u32 %v18091_v49, %v16487_v8  ;;  %v16656_v56 = vor.u32 %v18133_v53, %v16655_v52  ;;  %v16643_v49 = vld [vmem:[%s26465_s1 + $0x2498] sm:$0xf]  ;;  %v18127_v52 = vld [vmem:[%s26465_s1 + $0x2488] sm:$0xf0]  ;;  %v16727_v53 = vld [vmem:[%s26465_s1 + $0x2540] sm:$0xf] }
 0x4b5   :  { %10519 = vmatpush.bf16.msrb.mxu1 %v16320_v4  ;;  %v16283_v4 = vld [vmem:[%s26465_s1 + $0x21c8] sm:$0xf] }
 0x4b6   :  { %10533 = vmatpush.bf16.msrb.mxu2 %v16416_v0  ;;  %v18040_v0 = vld [vmem:[%s26465_s1 + $0x21d0] sm:$0xf0] }
 0x4b7   :  { %10547 = vmatpush.bf16.msrb.mxu3 %v16512_v37  ;;  %v16475_v37 = vld [vmem:[%s26465_s1 + $0x2348] sm:$0xf]  ;;  %v16284_v51 = vor.u32 %v18040_v0, %v16283_v4  ;;  %v18178_v4 = vld [vmem:[%s26465_s1 + $0x2620] sm:$0xf0]  ;;  %v16931_v0 = vld [vmem:[%s26465_s1 + $0x26d8] sm:$0xf] }
 0x4b8   :  { %10506 = vmatpush.bf16.msrb.mxu0 %v16212_v24  ;;  %v18157_v24 = vld [vmem:[%s26465_s1 + $0x2578] sm:$0xf0]  ;;  %v16476_v14 = vor.u32 %v18088_v39, %v16475_v37  ;;  %v16631_v39 = vld [vmem:[%s26465_s1 + $0x2480] sm:$0xf] }
 0x4b9   :  { %10520 = vmatpush.bf16.msrb.mxu1 %v16308_v63  ;;  %v16847_v63 = vld [vmem:[%s26465_s1 + $0x2630] sm:$0xf]  ;;  %v16752_v21 = vor.u32 %v18157_v24, %v16751_v5  ;;  %v16932_v5 = vor.u32 %v18202_v1, %v16931_v0  ;;  %v16823_v24 = vld [vmem:[%s26465_s1 + $0x2600] sm:$0xf]  ;;  %v26228_v0 = vpop.f32.mrf.mxu2 }
 0x4ba   :  { %10534 = vmatpush.bf16.msrb.mxu2 %v16404_v12  ;;  %v18181_v12 = vld [vmem:[%s26465_s1 + $0x2638] sm:$0xf0] }
 0x4bb   :  { %10548 = vmatpush.bf16.msrb.mxu3 %v16500_v38  ;;  %v18205_v38 = vld [vmem:[%s26465_s1 + $0x26f8] sm:$0xf0]  ;;  %v16848_v8 = vor.u32 %v18181_v12, %v16847_v63  ;;  %v18175_v63 = vld [vmem:[%s26465_s1 + $0x2608] sm:$0xf0] }
 0x4bc   :  { %10507 = vmatpush.bf16.msrb.mxu0 %v16200_v58  ;;  %v18130_v58 = vld [vmem:[%s26465_s1 + $0x24a0] sm:$0xf0]  ;;  %v16944_v22 = vor.u32 %v18205_v38, %v16943_v61  ;;  %v18199_v12 = vld [vmem:[%s26465_s1 + $0x26c8] sm:$0xf0]  ;;  %v16824_v61 = vor.u32 %v18175_v63, %v16823_v24  ;;  %v16715_v38 = vld [vmem:[%s26465_s1 + $0x2528] sm:$0xf] }
 0x4bd   :  { %10521 = vmatpush.bf16.msrb.mxu1 %v16296_v10  ;;  %v18154_v10 = vld [vmem:[%s26465_s1 + $0x2560] sm:$0xf0]  ;;  %v16595_v24 = vld [vmem:[%s26465_s1 + $0x2438] sm:$0xf] }
 0x4be   :  { %10535 = vmatpush.bf16.msrb.mxu2 %v16392_v46  ;;  %v16835_v46 = vld [vmem:[%s26465_s1 + $0x2618] sm:$0xf]  ;;  %v16740_v32 = vor.u32 %v18154_v10, %v16739_v55  ;;  %v16607_v10 = vld [vmem:[%s26465_s1 + $0x2450] sm:$0xf]  ;;  %v18118_v63 = vld [vmem:[%s26465_s1 + $0x2440] sm:$0xf0] }
 0x4bf   :  { %10549 = vmatpush.bf16.msrb.mxu3 %v16488_v17  ;;  %v16644_v17 = vor.u32 %v18130_v58, %v16643_v49  ;;  %v16836_v37 = vor.u32 %v18178_v4, %v16835_v46  ;;  %v18196_v49 = vld [vmem:[%s26465_s1 + $0x26b0] sm:$0xf0]  ;;  %v18121_v46 = vld [vmem:[%s26465_s1 + $0x2458] sm:$0xf0]  ;;  %v16703_v4 = vld [vmem:[%s26465_s1 + $0x2510] sm:$0xf] }
 0x4c0   :  { %10508 = vmatpush.bf16.msrb.mxu0 %v16188_v41  ;;  %v18151_v41 = vld [vmem:[%s26465_s1 + $0x2548] sm:$0xf0] }
 0x4c1   :  { %10522 = vmatpush.bf16.msrb.mxu1 %v16284_v51  ;;  %v16632_v51 = vor.u32 %v18127_v52, %v16631_v39  ;;  %v16895_v39 = vld [vmem:[%s26465_s1 + $0x2690] sm:$0xf]  ;;  %v18193_v52 = vld [vmem:[%s26465_s1 + $0x2698] sm:$0xf0] }
 0x4c2   :  { %10536 = vmatpush.bf16.msrb.mxu2 %v16380_v45  ;;  %v16728_v45 = vor.u32 %v18151_v41, %v16727_v53  ;;  %v16608_v53 = vor.u32 %v18121_v46, %v16607_v10  ;;  %v16775_v10 = vld [vmem:[%s26465_s1 + $0x25a0] sm:$0xf]  ;;  %v18163_v46 = vld [vmem:[%s26465_s1 + $0x25a8] sm:$0xf0] }
 0x4c3   :  { %10550 = vmatpush.bf16.msrb.mxu3 %v16476_v14  ;;  %10509 = vmatmul.bf16.vlgmr.msrb.gmra.mxu0 %v18716_v44  ;;  %v16919_v44 = vld [vmem:[%s26465_s1 + $0x26c0] sm:$0xf]  ;;  %v18148_v14 = vld [vmem:[%s26465_s1 + $0x2530] sm:$0xf0] }
 0x4c4   :  { %10557 = vmatpush.bf16.msra.mxu0 %v16656_v56  ;;  %10523 = vmatmul.bf16.vlgmr.msrb.gmra.mxu1 %v18714_v43  ;;  %v16619_v43 = vld [vmem:[%s26465_s1 + $0x2468] sm:$0xf]  ;;  %v16716_v55 = vor.u32 %v18148_v14, %v16715_v38  ;;  %v26269_v38 = vpop.f32.mrf.mxu3 }
 0x4c5   :  { %10571 = vmatpush.bf16.msra.mxu1 %v16752_v21  ;;  %10537 = vmatmul.bf16.vlgmr.msrb.gmra.mxu2 %v18724_v47  ;;  %v18124_v47 = vld [vmem:[%s26465_s1 + $0x2470] sm:$0xf0]  ;;  %v16811_v56 = vld [vmem:[%s26465_s1 + $0x25e8] sm:$0xf] }
 0x4c6   :  { %10585 = vmatpush.bf16.msra.mxu2 %v16848_v8  ;;  %10551 = vmatmul.bf16.vlgmr.msrb.gmra.mxu3 %v18931_v31  ;;  %v16920_v31 = vor.u32 %v18199_v12, %v16919_v44  ;;  %v18172_v21 = vld [vmem:[%s26465_s1 + $0x25f0] sm:$0xf0]  ;;  %v16907_v8 = vld [vmem:[%s26465_s1 + $0x26a8] sm:$0xf]  ;;  %v16620_v58 = vor.u32 %v18124_v47, %v16619_v43  ;;  %v16691_v44 = vld [vmem:[%s26465_s1 + $0x24f8] sm:$0xf]  ;;  %v16896_v12 = vor.u32 %v18193_v52, %v16895_v39 }
 0x4c7   :  { %10599 = vmatpush.bf16.msra.mxu3 %v16944_v22  ;;  %v16812_v22 = vor.u32 %v18172_v21, %v16811_v56  ;;  %v16908_v1 = vor.u32 %v18196_v49, %v16907_v8  ;;  %v16883_v43 = vld [vmem:[%s26465_s1 + $0x2678] sm:$0xf]  ;;  %v18190_v47 = vld [vmem:[%s26465_s1 + $0x2680] sm:$0xf0]  ;;  %v16583_v21 = vld [vmem:[%s26465_s1 + $0x2420] sm:$0xf] }
 0x4c8   :  { %10558 = vmatpush.bf16.msra.mxu0 %v16644_v17  ;;  %v18145_v17 = vld [vmem:[%s26465_s1 + $0x2518] sm:$0xf0]  ;;  %v18115_v8 = vld [vmem:[%s26465_s1 + $0x2428] sm:$0xf0]  ;;  %v16679_v49 = vld [vmem:[%s26465_s1 + $0x24e0] sm:$0xf] }
 0x4c9   :  { %10572 = vmatpush.bf16.msra.mxu1 %v16740_v32  ;;  %v16799_v32 = vld [vmem:[%s26465_s1 + $0x25d0] sm:$0xf]  ;;  %v16571_v39 = vld [vmem:[%s26465_s1 + $0x2408] sm:$0xf]  ;;  %v18112_v52 = vld [vmem:[%s26465_s1 + $0x2410] sm:$0xf0] }
 0x4ca   :  { %10586 = vmatpush.bf16.msra.mxu2 %v16836_v37  ;;  %v18169_v37 = vld [vmem:[%s26465_s1 + $0x25d8] sm:$0xf0] }
 0x4cb   :  { %10600 = vmatpush.bf16.msra.mxu3 %v16932_v5  ;;  %v16704_v5 = vor.u32 %v18145_v17, %v16703_v4  ;;  %v16800_v41 = vor.u32 %v18169_v37, %v16799_v32  ;;  %v16871_v4 = vld [vmem:[%s26465_s1 + $0x2660] sm:$0xf]  ;;  %v16584_v17 = vor.u32 %v18115_v8, %v16583_v21  ;;  %v16776_v37 = vor.u32 %v18163_v46, %v16775_v10 }
 0x4cc   :  { %10559 = vmatpush.bf16.msra.mxu0 %v16632_v51  ;;  %v18142_v51 = vld [vmem:[%s26465_s1 + $0x2500] sm:$0xf0]  ;;  %v2200_v10 = vadd.f32 %v19554_v27, %v19528_v15 }
 0x4cd   :  { %10573 = vmatpush.bf16.msra.mxu1 %v16728_v45  ;;  %v16787_v45 = vld [vmem:[%s26465_s1 + $0x25b8] sm:$0xf]  ;;  %v16692_v14 = vor.u32 %v18142_v51, %v16691_v44  ;;  %v26313_v44 = vpop.f32.mrf.mxu0  ;;  %v18184_v51 = vld [vmem:[%s26465_s1 + $0x2650] sm:$0xf0] }
 0x4ce   :  { %10587 = vmatpush.bf16.msra.mxu2 %v16824_v61  ;;  %v18166_v61 = vld [vmem:[%s26465_s1 + $0x25c0] sm:$0xf0] }
 0x4cf   :  { %10601 = vmatpush.bf16.msra.mxu3 %v16920_v31  ;;  %v16596_v31 = vor.u32 %v18118_v63, %v16595_v24  ;;  %v16788_v56 = vor.u32 %v18166_v61, %v16787_v45  ;;  %v16763_v24 = vld [vmem:[%s26465_s1 + $0x2588] sm:$0xf]  ;;  %v18160_v63 = vld [vmem:[%s26465_s1 + $0x2590] sm:$0xf0]  ;;  %v26321_v45 = vpop.f32.mrf.mxu1  ;;  %v10272_v61 = vpop.f32.mrf.mxu3 }
 0x4d0   :  { %10560 = vmatpush.bf16.msra.mxu0 %v16620_v58  ;;  %v10258_v58 = vpop.f32.mrf.mxu2 }
 0x4d1   :  { %10574 = vmatpush.bf16.msra.mxu1 %v16716_v55  ;;  %v16884_v55 = vor.u32 %v18190_v47, %v16883_v43  ;;  %v16572_v43 = vor.u32 %v18112_v52, %v16571_v39  ;;  %v10273_v46 = vadd.f32 %v10272_v61, %v10258_v58  ;;  %v26558_v58 = vld [vmem:[#allocation65_spill] sm:$0xff]  ;;  %v26561_v52 = vld [vmem:[#allocation11_spill] sm:$0xff] }
 0x4d2   :  { %10588 = vmatpush.bf16.msra.mxu2 %v16812_v22  ;;  %v18139_v22 = vld [vmem:[%s26465_s1 + $0x24e8] sm:$0xf0] }
 0x4d3   :  { %10602 = vmatpush.bf16.msra.mxu3 %v16908_v1  ;;  %v18187_v1 = vld [vmem:[%s26465_s1 + $0x2668] sm:$0xf0]  ;;  %v16680_v32 = vor.u32 %v18139_v22, %v16679_v49 }
 0x4d4   :  { %10561 = vmatpush.bf16.msra.mxu0 %v16608_v53  ;;  %v16667_v53 = vld [vmem:[%s26465_s1 + $0x24c8] sm:$0xf] }
 0x4d5   :  { %10575 = vmatpush.bf16.msra.mxu1 %v16704_v5  ;;  %v16872_v5 = vor.u32 %v18187_v1, %v16871_v4  ;;  %v10286_v21 = vpop.f32.mrf.mxu0 }
 0x4d6   :  { %10589 = vmatpush.bf16.msra.mxu2 %v16800_v41  ;;  %v18136_v41 = vld [vmem:[%s26465_s1 + $0x24d0] sm:$0xf0] }
 0x4d7   :  { %10603 = vmatpush.bf16.msra.mxu3 %v16896_v12  ;;  %v16859_v12 = vld [vmem:[%s26465_s1 + $0x2648] sm:$0xf]  ;;  %v16668_v47 = vor.u32 %v18136_v41, %v16667_v53  ;;  %v10300_v8 = vpop.f32.mrf.mxu1  ;;  %v10274_v49 = vpop.f32.mrf.mxu3 }
 0x4d8   :  { %10562 = vmatpush.bf16.msra.mxu0 %v16596_v31  ;;  %v16764_v31 = vor.u32 %v18160_v63, %v16763_v24 }
 0x4d9   :  { %10576 = vmatpush.bf16.msra.mxu1 %v16692_v14  ;;  %v16860_v14 = vor.u32 %v18184_v51, %v16859_v12  ;;  %v26566_v51 = vld [vmem:[#allocation43_spill] sm:$0xff] }
 0x4da   :  { %10590 = vmatpush.bf16.msra.mxu2 %v16788_v56  ;;  %v10260_v56 = vpop.f32.mrf.mxu2 }
 0x4db   :  { %10604 = vmatpush.bf16.msra.mxu3 %v16884_v55  ;;  %v4827_v55 = vadd.f32 %v21619_v3, %v21462_v6  ;;  %v2382_v6 = vadd.f32 %v20207_v18, %v20177_v62  ;;  %v26559_v18 = vld [vmem:[#allocation2_spill] sm:$0xff] }
 0x4dc   :  { %10563 = vmatpush.bf16.msra.mxu0 %v16584_v17  ;;  %v10287_v17 = vadd.f32 %v10286_v21, %v10273_v46 }
 0x4dd   :  { %10577 = vmatpush.bf16.msra.mxu1 %v16680_v32  ;;  %v10288_v4 = vpop.f32.mrf.mxu0  ;;  %v4841_v1 = vadd.f32 %v21627_v20, %v4827_v55  ;;  %v7642_v20 = vadd.f32 %v24321_v2, %v24164_v42  ;;  %v26562_v42 = vld [vmem:[#allocation34_spill] sm:$0xff] }
 0x4de   :  { %10591 = vmatpush.bf16.msra.mxu2 %v16776_v37  ;;  %v26560_v37 = vld [vmem:[#allocation75_spill] sm:$0xff] }
 0x4df   :  { %10605 = vmatpush.bf16.msra.mxu3 %v16872_v5  ;;  %v4855_v3 = vadd.f32 %v21666_v54, %v4841_v1  ;;  %v10328_v27 = vpop.f32.mrf.mxu3 }
 0x4e0   :  { %10564 = vmatpush.bf16.msra.mxu0 %v16572_v43  ;;  %v26567_v43 = vld [vmem:[#allocation3_spill] sm:$0xff] }
 0x4e1   :  { %10578 = vmatpush.bf16.msra.mxu1 %v16668_v47 }
 0x4e2   :  { %10592 = vmatpush.bf16.msra.mxu2 %v16764_v31  ;;  %v10314_v22 = vpop.f32.mrf.mxu2 }
 0x4e3   :  { %10606 = vmatpush.bf16.msra.mxu3 %v16860_v14  ;;  %10565 = vmatmul.bf16.vlgmr.msra.gmra.mxu0 %v18944_v36  ;;  %v5009_v36 = vadd.f32 %v22249_v59, %v22223_v13  ;;  %v26568_v14 = vld [vmem:[#allocation12_spill] sm:$0xff] }
 0x4e4   :  { %10579 = vmatmul.bf16.vlgmr.msra.gmra.mxu1 %v18942_v35  ;;  %v7460_v35 = vadd.f32 %v23540_v60, %v23529_v16  ;;  %v10301_v16 = vadd.f32 %v10300_v8, %v10287_v17  ;;  %v2396_v60 = vadd.f32 %v20218_v26, %v2382_v6  ;;  %v26565_v26 = vld [vmem:[#allocation76_spill] sm:$0xff]  ;;  %v26569_v8 = vld [vmem:[#allocation35_spill] sm:$0xff] }
 0x4e5   :  { %10593 = vmatmul.bf16.vlgmr.msra.gmra.mxu2 %v18952_v40  ;;  %v10302_v40 = vpop.f32.mrf.mxu1  ;;  %v5023_v13 = vadd.f32 %v22279_v7, %v5009_v36  ;;  %v10342_v39 = vpop.f32.mrf.mxu0  ;;  %v26563_v7 = vld [vmem:[#allocation42_spill] sm:$0xff]  ;;  %v26571_v36 = vld [vmem:[#allocation4_spill] sm:$0xff] }
 0x4e6   :  { %10607 = vmatmul.bf16.vlgmr.msra.gmra.mxu3 %v19141_v25  ;;  %v2214_v25 = vadd.f32 %v19584_v50, %v2200_v10  ;;  %v7474_v15 = vadd.f32 %v23698_v29, %v7460_v35  ;;  %v4869_v50 = vadd.f32 %v21677_v11, %v4855_v3  ;;  %v7656_v29 = vadd.f32 %v26560_v37, %v7642_v20  ;;  %v26570_v10 = vld [vmem:[#allocation67_spill] sm:$0xff]  ;;  %v26573_v3 = vld [vmem:[#allocation13_spill] sm:$0xff] }
 0x4e7   :  { %v2410_v53 = vadd.f32 %v26561_v52, %v2396_v60  ;;  %v5037_v5 = vadd.f32 %v26563_v7, %v5023_v13  ;;  %v10275_v11 = vadd.f32 %v10274_v49, %v10260_v56  ;;  %v10315_v12 = vadd.f32 %v10314_v22, %v10301_v16  ;;  %v10330_v1 = vpop.f32.mrf.mxu3  ;;  %v26574_v49 = vld [vmem:[#allocation36_spill] sm:$0xff]  ;;  %v26577_v16 = vld [vmem:[#allocation78_spill] sm:$0xff] }
 0x4e8   :  { %v2228_v59 = vadd.f32 %v19595_v57, %v2214_v25  ;;  %v7488_v32 = vadd.f32 %v26558_v58, %v7474_v15  ;;  %v4883_v2 = vadd.f32 %v26562_v42, %v4869_v50  ;;  %v26564_v57 = vld [vmem:[#allocation66_spill] sm:$0xff]  ;;  %v7670_v63 = vadd.f32 %v26565_v26, %v7656_v29  ;;  %v26572_v25 = vld [vmem:[#allocation77_spill] sm:$0xff]  ;;  %v26575_v15 = vld [vmem:[#allocation44_spill] sm:$0xff] }
 0x4e9   :  { %v5051_v61 = vadd.f32 %v26566_v51, %v5037_v5  ;;  %v10289_v31 = vadd.f32 %v10288_v4, %v10275_v11  ;;  %v2424_v21 = vadd.f32 %v26568_v14, %v2410_v53  ;;  %v10329_v6 = vadd.f32 %v10328_v27, %v10315_v12  ;;  %v26576_v13 = vld [vmem:[#allocation68_spill] sm:$0xff]  ;;  %v26580_v53 = vld [vmem:[#allocation14_spill] sm:$0xff]  ;;  %v26582_v5 = vld [vmem:[#allocation69_spill] sm:$0xff] }
 0x4ea   :  { %v10316_v62 = vpop.f32.mrf.mxu2  ;;  %v2242_v54 = vadd.f32 %v26559_v18, %v2228_v59  ;;  %v7502_v41 = vadd.f32 %v26564_v57, %v7488_v32  ;;  %v4897_v55 = vadd.f32 %v26569_v8, %v4883_v2  ;;  %v7684_v17 = vadd.f32 %v26572_v25, %v7670_v63  ;;  %v26578_v32 = vld [vmem:[#allocation45_spill] sm:$0xff]  ;;  %v26583_v26 = vld [vmem:[#allocation6_spill] sm:$0xff]  ;;  %v26585_v51 = vld [vmem:[#allocation15_spill] sm:$0xff] }
 0x4eb   :  { %v2438_v56 = vadd.f32 %v26573_v3, %v2424_v21  ;;  %v5065_v20 = vadd.f32 %v26575_v15, %v5051_v61  ;;  %v10303_v50 = vadd.f32 %v10302_v40, %v10289_v31  ;;  %v10343_v58 = vadd.f32 %v10342_v39, %v10329_v6  ;;  %v26581_v2 = vld [vmem:[#allocation37_spill] sm:$0xff]  ;;  %v26584_v40 = vld [vmem:[#allocation79_spill] sm:$0xff]  ;;  %v26589_v21 = vld [vmem:[#allocation80_spill] sm:$0xff] }
 0x4ec   :  { %v2256_v47 = vadd.f32 %v26567_v43, %v2242_v54  ;;  %v7516_v46 = vadd.f32 %v26570_v10, %v7502_v41  ;;  %v4911_v22 = vadd.f32 %v26574_v49, %v4897_v55  ;;  %v7698_v60 = vadd.f32 %v26577_v16, %v7684_v17  ;;  %v26579_v54 = vld [vmem:[#allocation5_spill] sm:$0xff]  ;;  %v26586_v43 = vld [vmem:[#allocation38_spill] sm:$0xff]  ;;  %v26592_v17 = vld [vmem:[#allocation16_spill] sm:$0xff] }
 0x4ed   :  { %v10356_v24 = vpop.f32.mrf.mxu1  ;;  %v5079_v18 = vadd.f32 %v26578_v32, %v5065_v20  ;;  %v10163_v27 = vadd.f32 %v25931_v48, %v25714_v23  ;;  %v10317_v29 = vadd.f32 %v10316_v62, %v10303_v50  ;;  %v10344_v52 = vpop.f32.mrf.mxu0  ;;  %v2452_v42 = vadd.f32 %v26580_v53, %v2438_v56  ;;  %v26587_v48 = vld [vmem:[#allocation46_spill] sm:$0xff]  ;;  %v26593_v3 = vld [vmem:[#allocation39_spill] sm:$0xff]  ;;  %v26595_v20 = vld [vmem:[#allocation8_spill] sm:$0xff] }
 0x4ee   :  { %v2270_v35 = vadd.f32 %v26571_v36, %v2256_v47  ;;  %v7530_v4 = vadd.f32 %v26576_v13, %v7516_v46  ;;  %v4925_v7 = vadd.f32 %v26581_v2, %v4911_v22  ;;  %v7712_v39 = vadd.f32 %v26584_v40, %v7698_v60  ;;  %v26588_v47 = vld [vmem:[#allocation70_spill] sm:$0xff]  ;;  %v26590_v46 = vld [vmem:[#allocation47_spill] sm:$0xff]  ;;  %v26597_v50 = vld [vmem:[#allocation17_spill] sm:$0xff] }
 0x4ef   :  { %v10177_v11 = vadd.f32 %v25957_v19, %v10163_v27  ;;  %v10357_v12 = vadd.f32 %v10356_v24, %v10343_v58  ;;  %v2466_v61 = vadd.f32 %v26585_v51, %v2452_v42  ;;  %v5093_v62 = vadd.f32 %v26587_v48, %v5079_v18  ;;  %v10384_v14 = vpop.f32.mrf.mxu3  ;;  %v26594_v49 = vld [vmem:[#allocation71_spill] sm:$0xff]  ;;  %v26598_v32 = vld [vmem:[#allocation40_spill] sm:$0xff] }
 0x4f0   :  { %v2284_v37 = vadd.f32 %v26579_v54, %v2270_v35  ;;  %v7544_v57 = vadd.f32 %v26582_v5, %v7530_v4  ;;  %v4939_v23 = vadd.f32 %v26586_v43, %v4925_v7  ;;  %v7726_v8 = vadd.f32 %v26589_v21, %v7712_v39  ;;  %v26591_v35 = vld [vmem:[#allocation7_spill] sm:$0xff]  ;;  %v26596_v4 = vld [vmem:[#allocation81_spill] sm:$0xff]  ;;  %v26599_v18 = vld [vmem:[#allocation48_spill] sm:$0xff] }
 0x4f1   :  { %v10331_v55 = vadd.f32 %v10330_v1, %v10317_v29  ;;  %v5107_v36 = vadd.f32 %v26590_v46, %v5093_v62  ;;  %v10191_v19 = vadd.f32 %v25965_v9, %v10177_v11  ;;  %v2480_v6 = vadd.f32 %v26592_v17, %v2466_v61  ;;  %v26602_v7 = vld [vmem:[#allocation49_spill] sm:$0xff]  ;;  %v26604_v39 = vld [vmem:[#allocation18_spill] sm:$0xff] }
 0x4f2   :  { %v10370_v59 = vpop.f32.mrf.mxu2  ;;  %v2298_v63 = vadd.f32 %v26583_v26, %v2284_v37  ;;  %v7558_v31 = vadd.f32 %v26588_v47, %v7544_v57  ;;  %v4953_v56 = vadd.f32 %v26593_v3, %v4939_v23  ;;  %v7740_v16 = vadd.f32 %v26596_v4, %v7726_v8  ;;  %v26600_v37 = vld [vmem:[#allocation72_spill] sm:$0xff]  ;;  %v26606_v61 = vld [vmem:[#allocation73_spill] sm:$0xff]  ;;  %v26611_v46 = vld [vmem:[#allocation74_spill] sm:$0xff] }
 0x4f3   :  { %v10371_v10 = vadd.f32 %v10370_v59, %v10357_v12  ;;  %v10345_v24 = vadd.f32 %v10344_v52, %v10331_v55  ;;  %v10205_v1 = vadd.f32 %v26228_v0, %v10191_v19  ;;  %v2494_v58 = vadd.f32 %v26597_v50, %v2480_v6  ;;  %v26601_v52 = vld [vmem:[#allocation83_spill] sm:$0xff]  ;;  %v26400_v0 = vld [vmem:[%s26467_s2] sm:$0x7]  ;;  %v26605_v12 = vld [vmem:[#allocation41_spill] sm:$0xff] }
 0x4f4   :  { %v2312_v25 = vadd.f32 %v26591_v35, %v2298_v63  ;;  %v7572_v22 = vadd.f32 %v26594_v49, %v7558_v31  ;;  %v4967_v9 = vadd.f32 %v26598_v32, %v4953_v56  ;;  %v5121_v54 = vadd.f32 %v26599_v18, %v5107_v36  ;;  %v26603_v63 = vld [vmem:[#allocation9_spill] sm:$0xff]  ;;  %v26607_v23 = vld [vmem:[#allocation84_spill] sm:$0xff]  ;;  %v26610_v55 = vld [vmem:[#allocation50_spill] sm:$0xff] }
 0x4f5   :  { %v10358_v41 = vpop.f32.mrf.mxu1  ;;  %v10385_v59 = vadd.f32 %v10384_v14, %v10371_v10  ;;  %v7754_v53 = vadd.f32 %v26601_v52, %v7740_v16  ;;  %v10219_v57 = vadd.f32 %v26269_v38, %v10205_v1  ;;  %v2508_v11 = vadd.f32 %v26604_v39, %v2494_v58  ;;  %v26608_v14 = vld [vmem:[#allocation10_spill] sm:$0xff]  ;;  %v26609_v38 = vld [vmem:[#allocation19_spill] sm:$0xff]  ;;  %v26615_v16 = vld [vmem:[#allocation20_spill] sm:$0xff] }
 0x4f6   :  { %v2326_v13 = vadd.f32 %v26595_v20, %v2312_v25  ;;  %v7586_v27 = vadd.f32 %v26600_v37, %v7572_v22  ;;  %v10359_v42 = vadd.f32 %v10358_v41, %v10345_v24  ;;  %v5135_v5 = vadd.f32 %v26602_v7, %v5121_v54  ;;  %v26612_v25 = vld [vmem:[#allocation85_spill] sm:$0xff]  ;;  %v26613_v49 = vld [vmem:[#allocation51_spill] sm:$0xff]  ;;  %v26614_v20 = vld [vmem:[#allocation82_spill] sm:$0xff] }
 0x4f7   :  { %v4981_v51 = vadd.f32 %v26605_v12, %v4967_v9  ;;  %v10386_v41 = vpop.f32.mrf.mxu3  ;;  %v7768_v48 = vadd.f32 %v26607_v23, %v7754_v53  ;;  %v10621_v62 = vperm.slane %v26400_v0, 0  ;;  %v10233_v47 = vadd.f32 %v26313_v44, %v10219_v57  ;;  %v26616_v50 = vld [vmem:[#allocation86_spill] sm:$0xff] }
 0x4f8   :  { %v2340_v40 = vadd.f32 %v26603_v63, %v2326_v13  ;;  %v7600_v43 = vadd.f32 %v26606_v61, %v7586_v27  ;;  %v2522_v8 = vadd.f32 %v26609_v38, %v2508_v11  ;;  %v5149_v10 = vadd.f32 %v26610_v55, %v5135_v5  ;;  %v26617_v61 = vld [vmem:[#allocation52_spill] sm:$0xff]  ;;  %v26622_v55 = vld [vmem:[#allocation23_spill] sm:$0xff] }
 0x4f9   :  { %v7782_v19 = vadd.f32 %v26612_v25, %v7768_v48  ;;  %v10622_v6 = vperm.slane %v26400_v0, 1  ;;  %v10627_v22 = vadd.f32 %v10621_v62, %v10613_v28 }
 0x4fa   :  { %v10372_v15 = vpop.f32.mrf.mxu2  ;;  %v2354_v21 = vadd.f32 %v26608_v14, %v2340_v40  ;;  %v7614_v36 = vadd.f32 %v26611_v46, %v7600_v43  ;;  %v5163_v44 = vadd.f32 %v26613_v49, %v5149_v10  ;;  %v2536_v1 = vadd.f32 %v26615_v16, %v2522_v8  ;;  %v26618_v43 = vld [vmem:[#allocation53_spill] sm:$0xff]  ;;  %v26621_v14 = vld [vmem:[#allocation54_spill] sm:$0xff]  ;;  %v26623_v46 = vld [vmem:[#allocation55_spill] sm:$0xff] }
 0x4fb   :  { %v10373_v26 = vadd.f32 %v10372_v15, %v10359_v42  ;;  %v10247_v15 = vadd.f32 %v26321_v45, %v10233_v47  ;;  %v7796_v58 = vadd.f32 %v26616_v50, %v7782_v19  ;;  %v10633_v18 = vmax.f32 %v10627_v22, 0.0  ;;  %v26620_v47 = vld [vmem:[#allocation22_spill] sm:$0xff] }
 0x4fc   :  { %v5350_v56 = vmax.f32 %v2354_v21, %v4981_v51  ;;  %v5351_v9 = vmax.f32 %v2536_v1, %v5163_v44  ;;  %v26626_v44 = vld [vmem:[#allocation25_spill] sm:$0xff] }
 0x4fd   :  { %v10387_v24 = vadd.f32 %v10386_v41, %v10373_v26  ;;  %v5191_v41 = vadd.f32 %v26618_v43, %v26617_v61  ;;  %v26636_v43 = vld [vmem:[#allocation30_spill] sm:$0xff] }
 0x4fe   :  { %v7984_v34 = vmax.f32 %v5351_v9, %v7796_v58  ;;  %v26629_v58 = vld [vmem:[#allocation58_spill] sm:$0xff] }
 0x4ff   :  { %v5205_v21 = vadd.f32 %v26621_v14, %v5191_v41 }
 0x500   :  { %v10398_v60 = vpop.f32.mrf.mxu0 }
 0x501   :  { %v10412_v29 = vpop.f32.mrf.mxu1  ;;  %v10399_v2 = vadd.f32 %v10398_v60, %v10385_v59  ;;  %v7983_v60 = vmax.f32 %v5350_v56, %v7614_v36  ;;  %v5219_v36 = vadd.f32 %v26623_v46, %v5205_v21  ;;  %v26639_v21 = vld [vmem:[#allocation63_spill] sm:$0xff] }
 0x503   :  { %v10413_v31 = vadd.f32 %v10412_v29, %v10399_v2  ;;  %v10616_v54 = vmax.f32 %v7983_v60, %v10247_v15  ;;  %v26627_v15 = vld [vmem:[#allocation57_spill] sm:$0xff]  ;;  %v26628_v60 = vld [vmem:[#allocation26_spill] sm:$0xff] }
 0x505   :  { %v10630_v45 = vadd.f32 %v10621_v62, %v10616_v54  ;;  %v26619_v62 = vld [vmem:[#allocation21_spill] sm:$0xff]  ;;  %v26630_v54 = vld [vmem:[#allocation27_spill] sm:$0xff] }
 0x507   :  { %v10636_v42 = vmax.f32 %v10630_v45, 0.0 }
 0x508   :  { %v10426_v35 = vpop.f32.mrf.mxu2  ;;  %v10400_v3 = vpop.f32.mrf.mxu0 }
 0x509   :  { %v10427_v17 = vadd.f32 %v10426_v35, %v10413_v31  ;;  %v10401_v4 = vadd.f32 %v10400_v3, %v10387_v24  ;;  %v10414_v59 = vpop.f32.mrf.mxu1  ;;  %v10440_v5 = vpop.f32.mrf.mxu3  ;;  %v2564_v31 = vadd.f32 %v26620_v47, %v26619_v62  ;;  %v26624_v24 = vld [vmem:[#allocation24_spill] sm:$0xff] }
 0x50b   :  { %v10614_v13 = vmax.f32 %v26614_v20, %v10427_v17  ;;  %v10415_v27 = vadd.f32 %v10414_v59, %v10401_v4  ;;  %v2578_v10 = vadd.f32 %v26622_v55, %v2564_v31  ;;  %v26638_v31 = vld [vmem:[#allocation31_spill] sm:$0xff] }
 0x50d   :  { %v10628_v32 = vadd.f32 %v10622_v6, %v10614_v13  ;;  %v2592_v17 = vadd.f32 %v26624_v24, %v2578_v10 }
 0x50f   :  { %v10634_v37 = vmax.f32 %v10628_v32, 0.0  ;;  %v2606_v22 = vadd.f32 %v26626_v44, %v2592_v17  ;;  %v26641_v17 = vld [vmem:[#allocation64_spill] sm:$0xff] }
 0x510   :  { %v10428_v29 = vpop.f32.mrf.mxu2 }
 0x511   :  { %v10639_v30 = vpack.c.bf16 %v10634_v37, %v10633_v18  ;;  %v10429_v28 = vadd.f32 %v10428_v29, %v10415_v27  ;;  %v10442_v57 = vpop.f32.mrf.mxu3  ;;  %v2620_v50 = vadd.f32 %v26628_v60, %v2606_v22  ;;  %v26631_v27 = vld [vmem:[#allocation59_spill] sm:$0xff] }
 0x513   :  { %10643 = vst [vmem:[%s26468_s3] sm:$0xff] %v10639_v30  ;;  %v10617_v52 = vmax.f32 %v7984_v34, %v10429_v28  ;;  %v2634_v37 = vadd.f32 %v26630_v54, %v2620_v50 }
 0x515   :  { %v10631_v53 = vadd.f32 %v10622_v6, %v10617_v52  ;;  %v26625_v6 = vld [vmem:[#allocation56_spill] sm:$0xff] }
 0x516   :  { %v5233_v3 = vadd.f32 %v26625_v6, %v5219_v36  ;;  %v26632_v52 = vld [vmem:[#allocation28_spill] sm:$0xff] }
 0x517   :  { %v10637_v2 = vmax.f32 %v10631_v53, 0.0  ;;  %v2648_v53 = vadd.f32 %v26632_v52, %v2634_v37 }
 0x518   :  { %v5247_v20 = vadd.f32 %v26627_v15, %v5233_v3 }
 0x519   :  { %v10641_v7 = vpack.c.bf16 %v10637_v2, %v10636_v42  ;;  %v26633_v42 = vld [vmem:[#allocation60_spill] sm:$0xff] }
 0x51a   :  { %v5261_v32 = vadd.f32 %v26629_v58, %v5247_v20 }
 0x51b   :  { %10646 = vst [vmem:[%s26468_s3 + $0xc] sm:$0x11] %v10641_v7 }
 0x51c   :  { %v5275_v29 = vadd.f32 %v26631_v27, %v5261_v32 }
 0x51e   :  { %v5289_v2 = vadd.f32 %v26633_v42, %v5275_v29 }
 0x520   :  { %v10454_v26 = vpop.f32.mrf.mxu0 }
 0x521   :  { %v10468_v63 = vpop.f32.mrf.mxu1  ;;  %v10455_v12 = vadd.f32 %v10454_v26, %v10440_v5  ;;  %v26634_v26 = vld [vmem:[#allocation29_spill] sm:$0xff] }
 0x523   :  { %v10469_v23 = vadd.f32 %v10468_v63, %v10455_v12  ;;  %v2662_v63 = vadd.f32 %v26634_v26, %v2648_v53 }
 0x525   :  { %v2676_v41 = vadd.f32 %v26636_v43, %v2662_v63 }
 0x527   :  { %v2690_v14 = vadd.f32 %v26638_v31, %v2676_v41 }
 0x528   :  { %v10482_v40 = vpop.f32.mrf.mxu2  ;;  %v10456_v11 = vpop.f32.mrf.mxu0 }
 0x529   :  { %v10496_v39 = vpop.f32.mrf.mxu3  ;;  %v10470_v51 = vpop.f32.mrf.mxu1  ;;  %v10483_v35 = vadd.f32 %v10482_v40, %v10469_v23  ;;  %v10457_v19 = vadd.f32 %v10456_v11, %v10442_v57  ;;  %v26635_v40 = vld [vmem:[#allocation61_spill] sm:$0xff]  ;;  %v26637_v23 = vld [vmem:[#allocation62_spill] sm:$0xff] }
 0x52b   :  { %v10497_v56 = vadd.f32 %v10496_v39, %v10483_v35  ;;  %v10471_v13 = vadd.f32 %v10470_v51, %v10457_v19  ;;  %v5303_v39 = vadd.f32 %v26635_v40, %v5289_v2  ;;  %v10623_v35 = vperm.slane %v26400_v0, 2  ;;  %v26640_v19 = vld [vmem:[#allocation32_spill] sm:$0xff] }
 0x52c   :  { %v2704_v24 = vadd.f32 %v26640_v19, %v2690_v14 }
 0x530   :  { %v10484_v48 = vpop.f32.mrf.mxu2 }
 0x531   :  { %v10498_v38 = vpop.f32.mrf.mxu3  ;;  %v10485_v1 = vadd.f32 %v10484_v48, %v10471_v13  ;;  %v5317_v48 = vadd.f32 %v26637_v23, %v5303_v39 }
 0x533   :  { %v10499_v34 = vadd.f32 %v10498_v38, %v10485_v1  ;;  %v5331_v38 = vadd.f32 %v26639_v21, %v5317_v48 }
 0x535   :  { %v5345_v6 = vadd.f32 %v26641_v17, %v5331_v38 }
 0x540   :  { %v10510_v8 = vpop.f32.mrf.mxu0 }
 0x541   :  { %v10524_v25 = vpop.f32.mrf.mxu1  ;;  %v10511_v4 = vadd.f32 %v10510_v8, %v10497_v56 }
 0x543   :  { %v10525_v9 = vadd.f32 %v10524_v25, %v10511_v4 }
 0x548   :  { %v10538_v49 = vpop.f32.mrf.mxu2  ;;  %v10512_v59 = vpop.f32.mrf.mxu0 }
 0x549   :  { %v10552_v16 = vpop.f32.mrf.mxu3  ;;  %v10526_v18 = vpop.f32.mrf.mxu1  ;;  %v10539_v30 = vadd.f32 %v10538_v49, %v10525_v9  ;;  %v10513_v28 = vadd.f32 %v10512_v59, %v10499_v34  ;;  %v26642_v49 = vld [vmem:[#allocation33_spill] sm:$0xff]  ;;  %v26643_v59 = vld [vmem:[#allocation87_spill] sm:$0xff] }
 0x54a   :  { %v2718_v44 = vadd.f32 %v26642_v49, %v2704_v24 }
 0x54b   :  { %v10553_v7 = vadd.f32 %v10552_v16, %v10539_v30  ;;  %v10527_v11 = vadd.f32 %v10526_v18, %v10513_v28 }
 0x54c   :  { %v5352_v13 = vmax.f32 %v2718_v44, %v5345_v6 }
 0x54e   :  { %v7985_v0 = vmax.f32 %v5352_v13, %v26643_v59 }
 0x550   :  { %v10540_v45 = vpop.f32.mrf.mxu2 }
 0x551   :  { %v10554_v5 = vpop.f32.mrf.mxu3  ;;  %v10541_v61 = vadd.f32 %v10540_v45, %v10527_v11 }
 0x553   :  { %v10555_v8 = vadd.f32 %v10554_v5, %v10541_v61 }
 0x560   :  { %v10566_v57 = vpop.f32.mrf.mxu0 }
 0x561   :  { %v10567_v12 = vadd.f32 %v10566_v57, %v10553_v7  ;;  %v10580_v51 = vpop.f32.mrf.mxu1 }
 0x563   :  { %v10581_v62 = vadd.f32 %v10580_v51, %v10567_v12 }
 0x568   :  { %v10594_v47 = vpop.f32.mrf.mxu2  ;;  %v10568_v46 = vpop.f32.mrf.mxu0 }
 0x569   :  { %v10595_v55 = vadd.f32 %v10594_v47, %v10581_v62  ;;  %v10608_v10 = vpop.f32.mrf.mxu3  ;;  %v10569_v25 = vadd.f32 %v10568_v46, %v10555_v8  ;;  %v10582_v56 = vpop.f32.mrf.mxu1 }
 0x56b   :  { %v10609_v36 = vadd.f32 %v10608_v10, %v10595_v55  ;;  %v10583_v15 = vadd.f32 %v10582_v56, %v10569_v25 }
 0x56d   :  { %v10615_v3 = vmax.f32 %v25418_v33, %v10609_v36 }
 0x56f   :  { %v10629_v22 = vadd.f32 %v10623_v35, %v10615_v3 }
 0x570   :  { %v10596_v20 = vpop.f32.mrf.mxu2 }
 0x571   :  { %v10635_v4 = vmax.f32 %v10629_v22, 0.0  ;;  %v10597_v16 = vadd.f32 %v10596_v20, %v10583_v15  ;;  %v10610_v1 = vpop.f32.mrf.mxu3 }
 0x573   :  { %v10640_v60 = vpack.c.bf16 %v10635_v4, %v10635_v4  ;;  %v10611_v50 = vadd.f32 %v10610_v1, %v10597_v16 }
 0x575   :  { %10645 = vst.msk [vmem:[%s26468_s3 + $0x8] sm:$0xf] %vm10644_vm0, %v10640_v60  ;;  %v10618_v33 = vmax.f32 %v7985_v0, %v10611_v50 }
 0x577   :  { %v10632_v58 = vadd.f32 %v10623_v35, %v10618_v33 }
 0x579   :  { %v10638_v32 = vmax.f32 %v10632_v58, 0.0 }
 0x57b   :  { %v10642_v9 = vpack.c.bf16 %v10638_v32, %v10638_v32 }
 0x57d   :  { %10648 = vst.msk [vmem:[%s26468_s3 + $0x14] sm:$0x1] %vm10647_vm1, %v10642_v9 }

</bundles_post_ra>
